<compile_context>
chip_gen: v6e
topology: v6e:2x2x1
jax: 0.10.0
libtpu: 0.0.40
codegen_flags: <defaults>
</compile_context>

<pallas_src>
import functools
import math

import jax
import jax.numpy as jnp
from jax import lax
from jax.experimental import pallas as pl
from jax.experimental.pallas import tpu as pltpu

LN_EPS = 1e-5                       # torch.nn.LayerNorm default
# MXU input dtype knob: set to jnp.bfloat16 on v6e/v7x for ~2x MXU and half the HBM
# traffic of matmul operands (accumulation / LN / softmax statistics stay f32).
MXU_DTYPE = jnp.float32
VMEM_LIMIT_BYTES = 32 * 1024 * 1024  # explicit scoped-VMEM budget (safe on v5e/v6e/v7x)
TM_MAX = 512                         # ~512-row tiles reach ~85% of HBM roofline


# ------------------------------ small helpers -------------------------------

def _round_up(n, m):
    return ((n + m - 1) // m) * m


def _row_tiling(m, tm_max=TM_MAX):
    tm = min(tm_max, _round_up(m, 8))
    mp = _round_up(m, tm)
    return tm, mp


def _pad_rows(a, mp):
    m = a.shape[0]
    if mp == m:
        return a
    return jnp.pad(a, ((0, mp - m),) + ((0, 0),) * (a.ndim - 1))


def _cparams():
    return pltpu.CompilerParams(dimension_semantics=("parallel",),
                                vmem_limit_bytes=VMEM_LIMIT_BYTES)


def _layernorm(x, g, b):
    mu = jnp.mean(x, axis=-1, keepdims=True)
    xc = x - mu
    var = jnp.mean(xc * xc, axis=-1, keepdims=True)
    return xc * lax.rsqrt(var + LN_EPS) * g + b


# TODO(synk): exact lax.erf lowering is not relied upon; erf is computed in-kernel with a
# 1.5e-7-accurate polynomial (Abramowitz & Stegun 7.1.26) so exact GELU stays fused.
def _erf_approx(x):
    a1, a2, a3, a4, a5 = (0.254829592, -0.284496736, 1.421413741,
                          -1.453152027, 1.061405429)
    p = 0.3275911
    sign = jnp.where(x >= 0.0, 1.0, -1.0)
    ax = jnp.abs(x)
    t = 1.0 / (1.0 + p * ax)
    poly = ((((a5 * t + a4) * t + a3) * t + a2) * t + a1) * t
    return sign * (1.0 - poly * jnp.exp(-ax * ax))


def _gelu_exact(x):
    return 0.5 * x * (1.0 + _erf_approx(x * 0.7071067811865476))


# --------------------------- fused matmul kernel -----------------------------

def _make_matmul_kernel(has_ln_in, has_ln_out, has_res, emit_ln_in):
    def kernel(*refs):
        it = iter(refs)
        x_ref = next(it)
        w_ref = next(it)
        b_ref = next(it)
        gi_ref = bi_ref = go_ref = bo_ref = r_ref = None
        if has_ln_in:
            gi_ref = next(it)
            bi_ref = next(it)
        if has_ln_out:
            go_ref = next(it)
            bo_ref = next(it)
        if has_res:
            r_ref = next(it)
        o_ref = next(it)
        xn_ref = next(it) if emit_ln_in else None

        x = x_ref[...]
        if has_ln_in:                                   # fused pre-LayerNorm (f32 stats)
            x = _layernorm(x, gi_ref[...], bi_ref[...])
            if emit_ln_in:
                xn_ref[...] = x                         # also emit LN(x) for reuse
        y = jnp.dot(x.astype(MXU_DTYPE), w_ref[...].astype(MXU_DTYPE),
                    preferred_element_type=jnp.float32) + b_ref[...]
        if has_ln_out:                                  # fused post-LayerNorm
            y = _layernorm(y, go_ref[...], bo_ref[...])
        if has_res:                                     # fused residual add
            y = y + r_ref[...]
        o_ref[...] = y
    return kernel


def pallas_matmul(x, w, b=None, *, ln_in=None, ln_out=None, residual=None,
                  return_ln_in=False):
    """y = [LN_out](LN_in(x) @ w + b) [+ residual], row-tiled over M.

    x: (M, K), w: (K, N), b: (N,) or None.  ln_in / ln_out are (gamma, beta) pairs
    over K / N.  residual: (M, N).  If return_ln_in also returns LN_in(x)."""
    assert (not return_ln_in) or (ln_in is not None)
    M, K = x.shape
    N = w.shape[1]
    tm, Mp = _row_tiling(M)
    grid = (Mp // tm,)

    bias = jnp.zeros((N,), jnp.float32) if b is None else b
    arrays = [_pad_rows(x.astype(jnp.float32), Mp),
              w.astype(jnp.float32),
              bias.reshape(1, N).astype(jnp.float32)]
    in_specs = [pl.BlockSpec((tm, K), lambda i: (i, 0)),
                pl.BlockSpec((K, N), lambda i: (0, 0)),
                pl.BlockSpec((1, N), lambda i: (0, 0))]
    if ln_in is not None:
        g, be = ln_in
        arrays += [g.reshape(1, K).astype(jnp.float32),
                   be.reshape(1, K).astype(jnp.float32)]
        in_specs += [pl.BlockSpec((1, K), lambda i: (0, 0)),
                     pl.BlockSpec((1, K), lambda i: (0, 0))]
    if ln_out is not None:
        g, be = ln_out
        arrays += [g.reshape(1, N).astype(jnp.float32),
                   be.reshape(1, N).astype(jnp.float32)]
        in_specs += [pl.BlockSpec((1, N), lambda i: (0, 0)),
                     pl.BlockSpec((1, N), lambda i: (0, 0))]
    if residual is not None:
        arrays.append(_pad_rows(residual.astype(jnp.float32), Mp))
        in_specs.append(pl.BlockSpec((tm, N), lambda i: (i, 0)))

    out_specs = pl.BlockSpec((tm, N), lambda i: (i, 0))
    out_shape = jax.ShapeDtypeStruct((Mp, N), jnp.float32)
    if return_ln_in:
        out_specs = (out_specs, pl.BlockSpec((tm, K), lambda i: (i, 0)))
        out_shape = (out_shape, jax.ShapeDtypeStruct((Mp, K), jnp.float32))

    out = pl.pallas_call(
        _make_matmul_kernel(ln_in is not None, ln_out is not None,
                            residual is not None, return_ln_in),
        grid=grid, in_specs=in_specs, out_specs=out_specs, out_shape=out_shape,
        compiler_params=_cparams(),
    )(*arrays)
    if return_ln_in:
        return out[0][:M], out[1][:M]
    return out[:M]


# --------------------------- standalone LayerNorm ----------------------------

def _ln_kernel(x_ref, g_ref, b_ref, o_ref):
    o_ref[...] = _layernorm(x_ref[...], g_ref[...], b_ref[...])


def pallas_layernorm(x, g, b):
    M, C = x.shape
    tm, Mp = _row_tiling(M)
    out = pl.pallas_call(
        _ln_kernel, grid=(Mp // tm,),
        in_specs=[pl.BlockSpec((tm, C), lambda i: (i, 0)),
                  pl.BlockSpec((1, C), lambda i: (0, 0)),
                  pl.BlockSpec((1, C), lambda i: (0, 0))],
        out_specs=pl.BlockSpec((tm, C), lambda i: (i, 0)),
        out_shape=jax.ShapeDtypeStruct((Mp, C), jnp.float32),
        compiler_params=_cparams(),
    )(_pad_rows(x.astype(jnp.float32), Mp),
      g.reshape(1, C).astype(jnp.float32), b.reshape(1, C).astype(jnp.float32))
    return out[:M]


# ----------------- fused attention + out_proj + residual kernel --------------

def _make_attention_kernel(num_heads, dh):
    def kernel(q_ref, k_ref, v_ref, wo_ref, bo_ref, r_ref, o_ref):
        q = q_ref[0]                                   # (L, C); 1/sqrt(dh) folded into Wq
        k = k_ref[0]                                   # (Lk, C)
        v = v_ref[0]
        acc = jnp.zeros(o_ref.shape[1:], jnp.float32)  # (L, C) lane-dense accumulator
        for h in range(num_heads):                     # static unroll; heads stay on lanes
            lo, hi = h * dh, (h + 1) * dh
            s = lax.dot_general(q[:, lo:hi].astype(MXU_DTYPE),
                                k[:, lo:hi].astype(MXU_DTYPE),
                                (((1,), (1,)), ((), ())),
                                preferred_element_type=jnp.float32)        # (L, Lk)
            m = jnp.max(s, axis=-1, keepdims=True)
            p = jnp.exp(s - m)
            p = p * pl.reciprocal(jnp.sum(p, axis=-1, keepdims=True), approx=True)
            oh = jnp.dot(p.astype(MXU_DTYPE), v[:, lo:hi].astype(MXU_DTYPE),
                         preferred_element_type=jnp.float32)               # (L, dh)
            # fused output projection: head h contributes oh @ Wout[h*dh:(h+1)*dh, :]
            acc = acc + jnp.dot(oh.astype(MXU_DTYPE),
                                wo_ref[lo:hi, :].astype(MXU_DTYPE),
                                preferred_element_type=jnp.float32)
        o_ref[0] = acc + bo_ref[...] + r_ref[0]        # fused bias + residual add
    return kernel


def pallas_attention_outproj(q, k, v, wo, bo, residual, num_heads):
    """q: (B, L, C) (scale folded into Wq), k/v: (B, Lk, C), wo: (C, C) = out_proj_w.T,
    bo: (C,), residual: (B, L, C).  Returns residual + MHA_out_proj(q, k, v)."""
    B, L, C = q.shape
    Lk = k.shape[1]
    dh = C // num_heads
    return pl.pallas_call(
        _make_attention_kernel(num_heads, dh),
        grid=(B,),
        in_specs=[pl.BlockSpec((1, L, C), lambda i: (i, 0, 0)),
                  pl.BlockSpec((1, Lk, C), lambda i: (i, 0, 0)),
                  pl.BlockSpec((1, Lk, C), lambda i: (i, 0, 0)),
                  pl.BlockSpec((C, C), lambda i: (0, 0)),
                  pl.BlockSpec((1, C), lambda i: (0, 0)),
                  pl.BlockSpec((1, L, C), lambda i: (i, 0, 0))],
        out_specs=pl.BlockSpec((1, L, C), lambda i: (i, 0, 0)),
        out_shape=jax.ShapeDtypeStruct((B, L, C), jnp.float32),
        compiler_params=_cparams(),
    )(q.astype(jnp.float32), k.astype(jnp.float32), v.astype(jnp.float32),
      wo.astype(jnp.float32), bo.reshape(1, C).astype(jnp.float32),
      residual.astype(jnp.float32))


# ------------- fused depthwise-3x3 + GELU + fc2 + residual kernel -------------

def _make_mixmlp_tail_kernel(expansion):
    def kernel(xs_ref, wdw_ref, bdw_ref, w2_ref, b2_ref, r_ref, o_ref):
        # xs: (9, tm, C) 3x3 taps; wdw: (9, E, C); bdw: (E, C);
        # w2: (E, C, Cout) fc2 weights in (e, c) input order; b2: (1, Cout); r: (tm, Cout).
        y = jnp.zeros(o_ref.shape, jnp.float32)
        for e in range(expansion):                 # broadcast over E in-kernel (no repeat)
            acc = jnp.zeros(xs_ref.shape[1:], jnp.float32)        # (tm, C)
            for t in range(9):                     # static unroll over the 3x3 taps
                acc = acc + xs_ref[t] * wdw_ref[t, e:e + 1, :]
            acc = _gelu_exact(acc + bdw_ref[e:e + 1, :])          # fused exact GELU
            y = y + jnp.dot(acc.astype(MXU_DTYPE), w2_ref[e].astype(MXU_DTYPE),
                            preferred_element_type=jnp.float32)   # fused fc2
        o_ref[...] = y + b2_ref[...] + r_ref[...]                 # fused bias + residual
    return kernel


def pallas_mixmlp_tail(taps, w_dw, b_dw, w2, b2, residual):
    _, N, C = taps.shape
    E = w_dw.shape[1]
    Cout = w2.shape[2]
    tm, Np = _row_tiling(N)
    taps_p = jnp.pad(taps, ((0, 0), (0, Np - N), (0, 0))) if Np != N else taps
    out = pl.pallas_call(
        _make_mixmlp_tail_kernel(E),
        grid=(Np // tm,),
        in_specs=[pl.BlockSpec((9, tm, C), lambda i: (0, i, 0)),
                  pl.BlockSpec((9, E, C), lambda i: (0, 0, 0)),
                  pl.BlockSpec((E, C), lambda i: (0, 0)),
                  pl.BlockSpec((E, C, Cout), lambda i: (0, 0, 0)),
                  pl.BlockSpec((1, Cout), lambda i: (0, 0)),
                  pl.BlockSpec((tm, Cout), lambda i: (i, 0))],
        out_specs=pl.BlockSpec((tm, Cout), lambda i: (i, 0)),
        out_shape=jax.ShapeDtypeStruct((Np, Cout), jnp.float32),
        compiler_params=_cparams(),
    )(taps_p.astype(jnp.float32), w_dw.astype(jnp.float32), b_dw.astype(jnp.float32),
      w2.astype(jnp.float32), b2.reshape(1, Cout).astype(jnp.float32),
      _pad_rows(residual.astype(jnp.float32), Np))
    return out[:N]


# ------------------------------ plain-JAX glue -------------------------------

def im2col_nhwc(x, kh, kw, stride, pad):
    """x: (B, H, W, C) -> (B*Ho*Wo, C*kh*kw), columns ordered like torch's
    conv-weight flatten (channel-major, tap-minor).  Slicing only, no transposes."""
    B, H, W, C = x.shape
    xp = jnp.pad(x, ((0, 0), (pad, pad), (pad, pad), (0, 0)))
    Ho = (H + 2 * pad - kh) // stride + 1
    Wo = (W + 2 * pad - kw) // stride + 1
    taps = []
    for i in range(kh):
        for j in range(kw):
            taps.append(xp[:, i:i + stride * (Ho - 1) + 1:stride,
                              j:j + stride * (Wo - 1) + 1:stride, :])
    patches = jnp.stack(taps, axis=-1)             # (B, Ho, Wo, C, kh*kw)
    return patches.reshape(B * Ho * Wo, C * kh * kw), Ho, Wo


# ------------------------------ model forward --------------------------------

def efficient_mha_block(x_nhwc, p, num_heads, r):
    """Whole first residual branch: x + EfficientMHA(LayerNorm2d(x))."""
    B, H, W, C = x_nhwc.shape
    L = H * W
    x_rows = x_nhwc.reshape(B * L, C)
    dh = C // num_heads
    scale = 1.0 / math.sqrt(dh)

    Wq = p['in_proj_w'][:C]
    Wk = p['in_proj_w'][C:2 * C]
    Wv = p['in_proj_w'][2 * C:]
    bq = p['in_proj_b'][:C]
    bk = p['in_proj_b'][C:2 * C]
    bv = p['in_proj_b'][2 * C:]

    # fused: ln1 -> Q projection (1/sqrt(dh) folded into Wq/bq); also emits ln1(x) rows.
    q_rows, xn_rows = pallas_matmul(x_rows, (Wq * scale).T, bq * scale,
                                    ln_in=(p['ln1_g'], p['ln1_b']), return_ln_in=True)

    # reducer: Conv2d(C, C, kernel=r, stride=r, bias=True) as NHWC im2col + matmul.
    patches, Hr, Wr = im2col_nhwc(xn_rows.reshape(B, H, W, C), r, r, stride=r, pad=0)
    red_rows = pallas_matmul(patches, p['red_w'].reshape(C, C * r * r).T, p['red_b'])
    Lr = Hr * Wr

    # fused: red LayerNorm2d -> combined K,V projection (single matmul, 2C lanes out).
    wkv = jnp.concatenate([Wk.T, Wv.T], axis=1)
    bkv = jnp.concatenate([bk, bv], axis=0)
    kv = pallas_matmul(red_rows, wkv, bkv, ln_in=(p['red_ln_g'], p['red_ln_b']))
    k_rows, v_rows = kv[:, :C], kv[:, C:]

    # fused attention + out_proj + residual(x), one grid step per batch element.
    out = pallas_attention_outproj(
        q_rows.reshape(B, L, C), k_rows.reshape(B, Lr, C), v_rows.reshape(B, Lr, C),
        p['out_proj_w'].T, p['out_proj_b'], x_rows.reshape(B, L, C), num_heads)
    return out.reshape(B, H, W, C)


def mix_mlp_block(x_nhwc, p, expansion):
    """Whole second residual branch: x + MixMLP(LayerNorm2d(x)); StochasticDepth(p=0)=id."""
    B, H, W, C = x_nhwc.shape
    E = expansion
    N = B * H * W
    x_rows = x_nhwc.reshape(N, C)

    # fused: ln2 -> fc1 (1x1 conv).
    h1 = pallas_matmul(x_rows, p['fc1_w'].reshape(C, C).T, p['fc1_b'],
                       ln_in=(p['ln2_g'], p['ln2_b']))

    # 3x3 depthwise taps gathered from NHWC by slicing (no transposes, no E-fold repeat).
    hp = jnp.pad(h1.reshape(B, H, W, C), ((0, 0), (1, 1), (1, 1), (0, 0)))
    taps = jnp.stack([hp[:, dy:dy + H, dx:dx + W, :].reshape(N, C)
                      for dy in range(3) for dx in range(3)], axis=0)      # (9, N, C)

    # depthwise weights as (tap, e, c); biases as (e, c); fc2 weights as (e, c, out).
    w_dw = p['dw_w'].reshape(C, E, 3, 3).transpose(2, 3, 1, 0).reshape(9, E, C)
    b_dw = p['dw_b'].reshape(C, E).T
    w2 = p['fc2_w'].reshape(C, C, E).transpose(2, 1, 0)

    out = pallas_mixmlp_tail(taps, w_dw, b_dw, w2, p['fc2_b'], residual=x_rows)
    return out.reshape(B, H, W, C)


def encoder_block(x_nhwc, p, num_heads, r, expansion):
    x = efficient_mha_block(x_nhwc, p, num_heads, r)   # includes residual add
    x = mix_mlp_block(x, p, expansion)                 # includes residual add
    return x


def stage_forward(x_nhwc, p, patch_size, overlap_size, num_heads, r, expansion):
    B, _, _, Cin = x_nhwc.shape
    Cout = p['patch_w'].shape[0]
    # OverlapPatchMerging: Conv2d(stride=overlap, pad=patch//2, bias=False) with fused LN.
    patches, Ho, Wo = im2col_nhwc(x_nhwc, patch_size, patch_size,
                                  stride=overlap_size, pad=patch_size // 2)
    rows = pallas_matmul(patches,
                         p['patch_w'].reshape(Cout, Cin * patch_size * patch_size).T,
                         None, ln_out=(p['patch_ln_g'], p['patch_ln_b']))
    x = rows.reshape(B, Ho, Wo, Cout)
    for blk in p['blocks']:
        x = encoder_block(x, blk, num_heads, r, expansion)
    rows = pallas_layernorm(x.reshape(B * Ho * Wo, Cout), p['norm_g'], p['norm_b'])
    return rows.reshape(B, Ho, Wo, Cout)


def segformer_encoder(x_nchw, params, cfg):
    x = jnp.transpose(x_nchw.astype(jnp.float32), (0, 2, 3, 1))   # NCHW -> NHWC once
    features = []
    for s, p in enumerate(params):
        x = stage_forward(x, p, cfg['patch_sizes'][s], cfg['overlap_sizes'][s],
                          cfg['all_num_heads'][s], cfg['reduction_ratios'][s],
                          cfg['mlp_expansions'][s])
        features.append(jnp.transpose(x, (0, 3, 1, 2)))           # external NCHW contract
    return features


# --------------------------- parameter construction --------------------------

def init_encoder_params(key, cfg):
    keys = iter(jax.random.split(key, 512))

    def randn(shape, scale=0.05):
        return (scale * jax.random.normal(next(keys), shape)).astype(jnp.float32)

    def ones(n):
        return jnp.ones((n,), jnp.float32)

    def zeros(n):
        return jnp.zeros((n,), jnp.float32)

    cins = [cfg['in_channels']] + list(cfg['widths'])
    stages = []
    for s, C in enumerate(cfg['widths']):
        Cin = cins[s]
        kp = cfg['patch_sizes'][s]
        r = cfg['reduction_ratios'][s]
        E = cfg['mlp_expansions'][s]
        blocks = []
        for _ in range(cfg['depths'][s]):
            blocks.append(dict(
                ln1_g=ones(C), ln1_b=zeros(C),
                red_w=randn((C, C, r, r)), red_b=randn((C,), 0.01),
                red_ln_g=ones(C), red_ln_b=zeros(C),
                in_proj_w=randn((3 * C, C)), in_proj_b=randn((3 * C,), 0.01),
                out_proj_w=randn((C, C)), out_proj_b=randn((C,), 0.01),
                ln2_g=ones(C), ln2_b=zeros(C),
                fc1_w=randn((C, C, 1, 1)), fc1_b=randn((C,), 0.01),
                dw_w=randn((C * E, 1, 3, 3)), dw_b=randn((C * E,), 0.01),
                fc2_w=randn((C, C * E, 1, 1)), fc2_b=randn((C,), 0.01),
            ))
        stages.append(dict(
            patch_w=randn((C, Cin, kp, kp)),
            patch_ln_g=ones(C), patch_ln_b=zeros(C),
            blocks=blocks,
            norm_g=ones(C), norm_b=zeros(C),
        ))
    return stages


# ----------------------------------- main ------------------------------------

if __name__ == "__main__":
    cfg = dict(
        in_channels=3,
        widths=[16, 32],
        depths=[1, 1],
        all_num_heads=[2, 4],
        patch_sizes=[7, 3],
        overlap_sizes=[4, 2],
        reduction_ratios=[4, 2],
        mlp_expansions=[2, 2],
        drop_prob=0.0,   # -> StochasticDepth is identity
    )
    key = jax.random.PRNGKey(0)
    k_x, k_p = jax.random.split(key)
    x = jax.random.normal(k_x, (2, cfg['in_channels'], 32, 32), jnp.float32)
    params = init_encoder_params(k_p, cfg)

    fwd = jax.jit(lambda xx, pp: segformer_encoder(xx, pp, cfg))
    feats = jax.block_until_ready(fwd(x, params))

    expected = [(2, 16, 8, 8), (2, 32, 4, 4)]
    got = [tuple(f.shape) for f in feats]
    assert got == expected, f"unexpected feature shapes: {got}"
    assert all(bool(jnp.all(jnp.isfinite(f))) for f in feats), "non-finite output"
    print("KERNEL_OK")
</pallas_src>

<mosaic_0001>
module attributes {stable_mosaic.version = 11 : i64} {
  func.func @kernel(%arg0: i32, %arg1: memref<128x147xf32, #tpu.memory_space<vmem>>, %arg2: memref<147x16xf32, #tpu.memory_space<vmem>>, %arg3: memref<1x16xf32, #tpu.memory_space<vmem>>, %arg4: memref<1x16xf32, #tpu.memory_space<vmem>>, %arg5: memref<1x16xf32, #tpu.memory_space<vmem>>, %arg6: memref<128x16xf32, #tpu.memory_space<vmem>>) attributes {dimension_semantics = [#tpu.dimension_semantics<parallel>], iteration_bounds = array<i64: 1>, scalar_prefetch = 0 : i64, scratch_operands = 0 : i64, tpu.core_type = #tpu.core_type<tc>, window_params = [{transform_indices = @transform_0, window_bounds = array<i64: 128, 147>}, {pipeline_mode = #tpu.pipeline_mode<synchronous>, transform_indices = @transform_1, window_bounds = array<i64: 147, 16>}, {pipeline_mode = #tpu.pipeline_mode<synchronous>, transform_indices = @transform_2, window_bounds = array<i64: 1, 16>}, {pipeline_mode = #tpu.pipeline_mode<synchronous>, transform_indices = @transform_3, window_bounds = array<i64: 1, 16>}, {pipeline_mode = #tpu.pipeline_mode<synchronous>, transform_indices = @transform_4, window_bounds = array<i64: 1, 16>}, {transform_indices = @transform_5, window_bounds = array<i64: 128, 16>}]} {
    %c0 = arith.constant 0 : index
    %c0_0 = arith.constant 0 : index
    %0 = vector.load %arg1[%c0, %c0_0] : memref<128x147xf32, #tpu.memory_space<vmem>>, vector<128x147xf32>
    %c0_1 = arith.constant 0 : index
    %c0_2 = arith.constant 0 : index
    %1 = vector.load %arg2[%c0_1, %c0_2] : memref<147x16xf32, #tpu.memory_space<vmem>>, vector<147x16xf32>
    %cst = arith.constant dense<0.000000e+00> : vector<128x16xf32>
    %2 = tpu.matmul %0, %1, %cst {dimension_numbers = #tpu.dot_dimension_numbers<[1], [0], [0], [1], [0, 0, 1, 1], [], []>} : vector<128x147xf32>, vector<147x16xf32>, vector<128x16xf32> -> vector<128x16xf32>
    %c0_3 = arith.constant 0 : index
    %c0_4 = arith.constant 0 : index
    %3 = vector.load %arg3[%c0_3, %c0_4] : memref<1x16xf32, #tpu.memory_space<vmem>>, vector<1x16xf32>
    %4 = vector.broadcast %3 : vector<1x16xf32> to vector<128x16xf32>
    %5 = arith.addf %2, %4 : vector<128x16xf32>
    %c0_5 = arith.constant 0 : index
    %c0_6 = arith.constant 0 : index
    %6 = vector.load %arg4[%c0_5, %c0_6] : memref<1x16xf32, #tpu.memory_space<vmem>>, vector<1x16xf32>
    %c0_7 = arith.constant 0 : index
    %c0_8 = arith.constant 0 : index
    %7 = vector.load %arg5[%c0_7, %c0_8] : memref<1x16xf32, #tpu.memory_space<vmem>>, vector<1x16xf32>
    %cst_9 = arith.constant dense<0.000000e+00> : vector<128xf32>
    %8 = vector.multi_reduction <add>, %5, %cst_9 [1] : vector<128x16xf32> to vector<128xf32>
    %9 = vector.shape_cast %8 : vector<128xf32> to vector<128x1xf32>
    %cst_10 = arith.constant 1.600000e+01 : f32
    %10 = vector.broadcast %cst_10 : f32 to vector<128x1xf32>
    %11 = arith.divf %9, %10 : vector<128x1xf32>
    %12 = vector.broadcast %11 : vector<128x1xf32> to vector<128x16xf32>
    %13 = arith.subf %5, %12 : vector<128x16xf32>
    %14 = arith.mulf %13, %13 : vector<128x16xf32>
    %cst_11 = arith.constant dense<0.000000e+00> : vector<128xf32>
    %15 = vector.multi_reduction <add>, %14, %cst_11 [1] : vector<128x16xf32> to vector<128xf32>
    %16 = vector.shape_cast %15 : vector<128xf32> to vector<128x1xf32>
    %cst_12 = arith.constant 1.600000e+01 : f32
    %17 = vector.broadcast %cst_12 : f32 to vector<128x1xf32>
    %18 = arith.divf %16, %17 : vector<128x1xf32>
    %cst_13 = arith.constant 9.99999974E-6 : f32
    %19 = vector.broadcast %cst_13 : f32 to vector<128x1xf32>
    %20 = arith.addf %18, %19 : vector<128x1xf32>
    %21 = math.rsqrt %20 : vector<128x1xf32>
    %22 = vector.broadcast %21 : vector<128x1xf32> to vector<128x16xf32>
    %23 = arith.mulf %13, %22 : vector<128x16xf32>
    %24 = vector.broadcast %6 : vector<1x16xf32> to vector<128x16xf32>
    %25 = arith.mulf %23, %24 : vector<128x16xf32>
    %26 = vector.broadcast %7 : vector<1x16xf32> to vector<128x16xf32>
    %27 = arith.addf %25, %26 : vector<128x16xf32>
    %c0_14 = arith.constant 0 : index
    %c0_15 = arith.constant 0 : index
    %28 = vector.load %arg6[%c0_14, %c0_15] : memref<128x16xf32, #tpu.memory_space<vmem>>, vector<128x16xf32>
    tpu.vector_store %arg6[%c0_14, %c0_15], %27 {strides = array<i32>} : memref<128x16xf32, #tpu.memory_space<vmem>>, vector<128x16xf32>,
    return
  }
  func.func @transform_0(%arg0: i32) -> (i32, i32) {
    %c0_i32 = arith.constant 0 : i32
    %c0_i32_0 = arith.constant 0 : i32
    return %arg0, %c0_i32 : i32, i32
  }
  func.func @transform_1(%arg0: i32) -> (i32, i32) {
    %c0_i32 = arith.constant 0 : i32
    %c0_i32_0 = arith.constant 0 : i32
    %c0_i32_1 = arith.constant 0 : i32
    return %c0_i32, %c0_i32_0 : i32, i32
  }
  func.func @transform_2(%arg0: i32) -> (i32, i32) {
    %c0_i32 = arith.constant 0 : i32
    %c0_i32_0 = arith.constant 0 : i32
    %c0_i32_1 = arith.constant 0 : i32
    return %c0_i32, %c0_i32_0 : i32, i32
  }
  func.func @transform_3(%arg0: i32) -> (i32, i32) {
    %c0_i32 = arith.constant 0 : i32
    %c0_i32_0 = arith.constant 0 : i32
    %c0_i32_1 = arith.constant 0 : i32
    return %c0_i32, %c0_i32_0 : i32, i32
  }
  func.func @transform_4(%arg0: i32) -> (i32, i32) {
    %c0_i32 = arith.constant 0 : i32
    %c0_i32_0 = arith.constant 0 : i32
    %c0_i32_1 = arith.constant 0 : i32
    return %c0_i32, %c0_i32_0 : i32, i32
  }
  func.func @transform_5(%arg0: i32) -> (i32, i32) {
    %c0_i32 = arith.constant 0 : i32
    %c0_i32_0 = arith.constant 0 : i32
    return %arg0, %c0_i32 : i32, i32
  }
}

module attributes {stable_mosaic.version = 11 : i64} {
  func.func @kernel(%arg0: i32, %arg1: memref<128x16xf32, #tpu.memory_space<vmem>>, %arg2: memref<16x16xf32, #tpu.memory_space<vmem>>, %arg3: memref<1x16xf32, #tpu.memory_space<vmem>>, %arg4: memref<1x16xf32, #tpu.memory_space<vmem>>, %arg5: memref<1x16xf32, #tpu.memory_space<vmem>>, %arg6: memref<128x16xf32, #tpu.memory_space<vmem>>, %arg7: memref<128x16xf32, #tpu.memory_space<vmem>>) attributes {dimension_semantics = [#tpu.dimension_semantics<parallel>], iteration_bounds = array<i64: 1>, scalar_prefetch = 0 : i64, scratch_operands = 0 : i64, tpu.core_type = #tpu.core_type<tc>, window_params = [{transform_indices = @transform_0, window_bounds = array<i64: 128, 16>}, {pipeline_mode = #tpu.pipeline_mode<synchronous>, transform_indices = @transform_1, window_bounds = array<i64: 16, 16>}, {pipeline_mode = #tpu.pipeline_mode<synchronous>, transform_indices = @transform_2, window_bounds = array<i64: 1, 16>}, {pipeline_mode = #tpu.pipeline_mode<synchronous>, transform_indices = @transform_3, window_bounds = array<i64: 1, 16>}, {pipeline_mode = #tpu.pipeline_mode<synchronous>, transform_indices = @transform_4, window_bounds = array<i64: 1, 16>}, {transform_indices = @transform_5, window_bounds = array<i64: 128, 16>}, {transform_indices = @transform_6, window_bounds = array<i64: 128, 16>}]} {
    %c0 = arith.constant 0 : index
    %c0_0 = arith.constant 0 : index
    %0 = vector.load %arg1[%c0, %c0_0] : memref<128x16xf32, #tpu.memory_space<vmem>>, vector<128x16xf32>
    %c0_1 = arith.constant 0 : index
    %c0_2 = arith.constant 0 : index
    %1 = vector.load %arg4[%c0_1, %c0_2] : memref<1x16xf32, #tpu.memory_space<vmem>>, vector<1x16xf32>
    %c0_3 = arith.constant 0 : index
    %c0_4 = arith.constant 0 : index
    %2 = vector.load %arg5[%c0_3, %c0_4] : memref<1x16xf32, #tpu.memory_space<vmem>>, vector<1x16xf32>
    %cst = arith.constant dense<0.000000e+00> : vector<128xf32>
    %3 = vector.multi_reduction <add>, %0, %cst [1] : vector<128x16xf32> to vector<128xf32>
    %4 = vector.shape_cast %3 : vector<128xf32> to vector<128x1xf32>
    %cst_5 = arith.constant 1.600000e+01 : f32
    %5 = vector.broadcast %cst_5 : f32 to vector<128x1xf32>
    %6 = arith.divf %4, %5 : vector<128x1xf32>
    %7 = vector.broadcast %6 : vector<128x1xf32> to vector<128x16xf32>
    %8 = arith.subf %0, %7 : vector<128x16xf32>
    %9 = arith.mulf %8, %8 : vector<128x16xf32>
    %cst_6 = arith.constant dense<0.000000e+00> : vector<128xf32>
    %10 = vector.multi_reduction <add>, %9, %cst_6 [1] : vector<128x16xf32> to vector<128xf32>
    %11 = vector.shape_cast %10 : vector<128xf32> to vector<128x1xf32>
    %cst_7 = arith.constant 1.600000e+01 : f32
    %12 = vector.broadcast %cst_7 : f32 to vector<128x1xf32>
    %13 = arith.divf %11, %12 : vector<128x1xf32>
    %cst_8 = arith.constant 9.99999974E-6 : f32
    %14 = vector.broadcast %cst_8 : f32 to vector<128x1xf32>
    %15 = arith.addf %13, %14 : vector<128x1xf32>
    %16 = math.rsqrt %15 : vector<128x1xf32>
    %17 = vector.broadcast %16 : vector<128x1xf32> to vector<128x16xf32>
    %18 = arith.mulf %8, %17 : vector<128x16xf32>
    %19 = vector.broadcast %1 : vector<1x16xf32> to vector<128x16xf32>
    %20 = arith.mulf %18, %19 : vector<128x16xf32>
    %21 = vector.broadcast %2 : vector<1x16xf32> to vector<128x16xf32>
    %22 = arith.addf %20, %21 : vector<128x16xf32>
    %c0_9 = arith.constant 0 : index
    %c0_10 = arith.constant 0 : index
    %23 = vector.load %arg7[%c0_9, %c0_10] : memref<128x16xf32, #tpu.memory_space<vmem>>, vector<128x16xf32>
    tpu.vector_store %arg7[%c0_9, %c0_10], %22 {strides = array<i32>} : memref<128x16xf32, #tpu.memory_space<vmem>>, vector<128x16xf32>,
    %c0_11 = arith.constant 0 : index
    %c0_12 = arith.constant 0 : index
    %24 = vector.load %arg2[%c0_11, %c0_12] : memref<16x16xf32, #tpu.memory_space<vmem>>, vector<16x16xf32>
    %cst_13 = arith.constant dense<0.000000e+00> : vector<128x16xf32>
    %25 = tpu.matmul %22, %24, %cst_13 {dimension_numbers = #tpu.dot_dimension_numbers<[1], [0], [0], [1], [0, 0, 1, 1], [], []>} : vector<128x16xf32>, vector<16x16xf32>, vector<128x16xf32> -> vector<128x16xf32>
    %c0_14 = arith.constant 0 : index
    %c0_15 = arith.constant 0 : index
    %26 = vector.load %arg3[%c0_14, %c0_15] : memref<1x16xf32, #tpu.memory_space<vmem>>, vector<1x16xf32>
    %27 = vector.broadcast %26 : vector<1x16xf32> to vector<128x16xf32>
    %28 = arith.addf %25, %27 : vector<128x16xf32>
    %c0_16 = arith.constant 0 : index
    %c0_17 = arith.constant 0 : index
    %29 = vector.load %arg6[%c0_16, %c0_17] : memref<128x16xf32, #tpu.memory_space<vmem>>, vector<128x16xf32>
    tpu.vector_store %arg6[%c0_16, %c0_17], %28 {strides = array<i32>} : memref<128x16xf32, #tpu.memory_space<vmem>>, vector<128x16xf32>,
    return
  }
  func.func @transform_0(%arg0: i32) -> (i32, i32) {
    %c0_i32 = arith.constant 0 : i32
    %c0_i32_0 = arith.constant 0 : i32
    return %arg0, %c0_i32 : i32, i32
  }
  func.func @transform_1(%arg0: i32) -> (i32, i32) {
    %c0_i32 = arith.constant 0 : i32
    %c0_i32_0 = arith.constant 0 : i32
    %c0_i32_1 = arith.constant 0 : i32
    return %c0_i32, %c0_i32_0 : i32, i32
  }
  func.func @transform_2(%arg0: i32) -> (i32, i32) {
    %c0_i32 = arith.constant 0 : i32
    %c0_i32_0 = arith.constant 0 : i32
    %c0_i32_1 = arith.constant 0 : i32
    return %c0_i32, %c0_i32_0 : i32, i32
  }
  func.func @transform_3(%arg0: i32) -> (i32, i32) {
    %c0_i32 = arith.constant 0 : i32
    %c0_i32_0 = arith.constant 0 : i32
    %c0_i32_1 = arith.constant 0 : i32
    return %c0_i32, %c0_i32_0 : i32, i32
  }
  func.func @transform_4(%arg0: i32) -> (i32, i32) {
    %c0_i32 = arith.constant 0 : i32
    %c0_i32_0 = arith.constant 0 : i32
    %c0_i32_1 = arith.constant 0 : i32
    return %c0_i32, %c0_i32_0 : i32, i32
  }
  func.func @transform_5(%arg0: i32) -> (i32, i32) {
    %c0_i32 = arith.constant 0 : i32
    %c0_i32_0 = arith.constant 0 : i32
    return %arg0, %c0_i32 : i32, i32
  }
  func.func @transform_6(%arg0: i32) -> (i32, i32) {
    %c0_i32 = arith.constant 0 : i32
    %c0_i32_0 = arith.constant 0 : i32
    return %arg0, %c0_i32 : i32, i32
  }
}

module attributes {stable_mosaic.version = 11 : i64} {
  func.func @kernel(%arg0: i32, %arg1: memref<8x256xf32, #tpu.memory_space<vmem>>, %arg2: memref<256x16xf32, #tpu.memory_space<vmem>>, %arg3: memref<1x16xf32, #tpu.memory_space<vmem>>, %arg4: memref<8x16xf32, #tpu.memory_space<vmem>>) attributes {dimension_semantics = [#tpu.dimension_semantics<parallel>], iteration_bounds = array<i64: 1>, scalar_prefetch = 0 : i64, scratch_operands = 0 : i64, tpu.core_type = #tpu.core_type<tc>, window_params = [{transform_indices = @transform_0, window_bounds = array<i64: 8, 256>}, {pipeline_mode = #tpu.pipeline_mode<synchronous>, transform_indices = @transform_1, window_bounds = array<i64: 256, 16>}, {pipeline_mode = #tpu.pipeline_mode<synchronous>, transform_indices = @transform_2, window_bounds = array<i64: 1, 16>}, {transform_indices = @transform_3, window_bounds = array<i64: 8, 16>}]} {
    %c0 = arith.constant 0 : index
    %c0_0 = arith.constant 0 : index
    %0 = vector.load %arg1[%c0, %c0_0] : memref<8x256xf32, #tpu.memory_space<vmem>>, vector<8x256xf32>
    %c0_1 = arith.constant 0 : index
    %c0_2 = arith.constant 0 : index
    %1 = vector.load %arg2[%c0_1, %c0_2] : memref<256x16xf32, #tpu.memory_space<vmem>>, vector<256x16xf32>
    %cst = arith.constant dense<0.000000e+00> : vector<8x16xf32>
    %2 = tpu.matmul %0, %1, %cst {dimension_numbers = #tpu.dot_dimension_numbers<[1], [0], [0], [1], [0, 0, 1, 1], [], []>} : vector<8x256xf32>, vector<256x16xf32>, vector<8x16xf32> -> vector<8x16xf32>
    %c0_3 = arith.constant 0 : index
    %c0_4 = arith.constant 0 : index
    %3 = vector.load %arg3[%c0_3, %c0_4] : memref<1x16xf32, #tpu.memory_space<vmem>>, vector<1x16xf32>
    %4 = vector.broadcast %3 : vector<1x16xf32> to vector<8x16xf32>
    %5 = arith.addf %2, %4 : vector<8x16xf32>
    %c0_5 = arith.constant 0 : index
    %c0_6 = arith.constant 0 : index
    %6 = vector.load %arg4[%c0_5, %c0_6] : memref<8x16xf32, #tpu.memory_space<vmem>>, vector<8x16xf32>
    tpu.vector_store %arg4[%c0_5, %c0_6], %5 {strides = array<i32>} : memref<8x16xf32, #tpu.memory_space<vmem>>, vector<8x16xf32>,
    return
  }
  func.func @transform_0(%arg0: i32) -> (i32, i32) {
    %c0_i32 = arith.constant 0 : i32
    %c0_i32_0 = arith.constant 0 : i32
    return %arg0, %c0_i32 : i32, i32
  }
  func.func @transform_1(%arg0: i32) -> (i32, i32) {
    %c0_i32 = arith.constant 0 : i32
    %c0_i32_0 = arith.constant 0 : i32
    %c0_i32_1 = arith.constant 0 : i32
    return %c0_i32, %c0_i32_0 : i32, i32
  }
  func.func @transform_2(%arg0: i32) -> (i32, i32) {
    %c0_i32 = arith.constant 0 : i32
    %c0_i32_0 = arith.constant 0 : i32
    %c0_i32_1 = arith.constant 0 : i32
    return %c0_i32, %c0_i32_0 : i32, i32
  }
  func.func @transform_3(%arg0: i32) -> (i32, i32) {
    %c0_i32 = arith.constant 0 : i32
    %c0_i32_0 = arith.constant 0 : i32
    return %arg0, %c0_i32 : i32, i32
  }
}

module attributes {stable_mosaic.version = 11 : i64} {
  func.func @kernel(%arg0: i32, %arg1: memref<1x64x16xf32, #tpu.memory_space<vmem>>, %arg2: memref<1x4x16xf32, #tpu.memory_space<vmem>>, %arg3: memref<1x4x16xf32, #tpu.memory_space<vmem>>, %arg4: memref<16x16xf32, #tpu.memory_space<vmem>>, %arg5: memref<1x16xf32, #tpu.memory_space<vmem>>, %arg6: memref<1x64x16xf32, #tpu.memory_space<vmem>>, %arg7: memref<1x64x16xf32, #tpu.memory_space<vmem>>) attributes {dimension_semantics = [#tpu.dimension_semantics<parallel>], iteration_bounds = array<i64: 2>, scalar_prefetch = 0 : i64, scratch_operands = 0 : i64, tpu.core_type = #tpu.core_type<tc>, window_params = [{transform_indices = @transform_0, window_bounds = array<i64: 1, 64, 16>}, {transform_indices = @transform_1, window_bounds = array<i64: 1, 4, 16>}, {transform_indices = @transform_2, window_bounds = array<i64: 1, 4, 16>}, {pipeline_mode = #tpu.pipeline_mode<synchronous>, transform_indices = @transform_3, window_bounds = array<i64: 16, 16>}, {pipeline_mode = #tpu.pipeline_mode<synchronous>, transform_indices = @transform_4, window_bounds = array<i64: 1, 16>}, {transform_indices = @transform_5, window_bounds = array<i64: 1, 64, 16>}, {transform_indices = @transform_6, window_bounds = array<i64: 1, 64, 16>}]} {
    %c0 = arith.constant 0 : index
    %c0_0 = arith.constant 0 : index
    %c0_1 = arith.constant 0 : index
    %0 = vector.load %arg1[%c0, %c0_0, %c0_1] : memref<1x64x16xf32, #tpu.memory_space<vmem>>, vector<1x64x16xf32>
    %1 = vector.shape_cast %0 : vector<1x64x16xf32> to vector<64x16xf32>
    %c0_2 = arith.constant 0 : index
    %c0_3 = arith.constant 0 : index
    %c0_4 = arith.constant 0 : index
    %2 = vector.load %arg2[%c0_2, %c0_3, %c0_4] : memref<1x4x16xf32, #tpu.memory_space<vmem>>, vector<1x4x16xf32>
    %3 = vector.shape_cast %2 : vector<1x4x16xf32> to vector<4x16xf32>
    %c0_5 = arith.constant 0 : index
    %c0_6 = arith.constant 0 : index
    %c0_7 = arith.constant 0 : index
    %4 = vector.load %arg3[%c0_5, %c0_6, %c0_7] : memref<1x4x16xf32, #tpu.memory_space<vmem>>, vector<1x4x16xf32>
    %5 = vector.shape_cast %4 : vector<1x4x16xf32> to vector<4x16xf32>
    %cst = arith.constant 0.000000e+00 : f32
    %6 = vector.broadcast %cst : f32 to vector<64x16xf32>
    %7 = vector.extract_strided_slice %1 {offsets = [0, 0], sizes = [64, 8], strides = [1, 1]} : vector<64x16xf32> to vector<64x8xf32>
    %8 = vector.extract_strided_slice %3 {offsets = [0, 0], sizes = [4, 8], strides = [1, 1]} : vector<4x16xf32> to vector<4x8xf32>
    %cst_8 = arith.constant dense<0.000000e+00> : vector<64x4xf32>
    %9 = tpu.matmul %7, %8, %cst_8 {dimension_numbers = #tpu.dot_dimension_numbers<[1], [1], [0], [0], [0, 0, 1, 0], [], []>} : vector<64x8xf32>, vector<4x8xf32>, vector<64x4xf32> -> vector<64x4xf32>
    %cst_9 = arith.constant dense<0xFF800000> : vector<64xf32>
    %10 = vector.multi_reduction <maximumf>, %9, %cst_9 [1] : vector<64x4xf32> to vector<64xf32>
    %11 = vector.shape_cast %10 : vector<64xf32> to vector<64x1xf32>
    %12 = vector.broadcast %11 : vector<64x1xf32> to vector<64x4xf32>
    %13 = arith.subf %9, %12 : vector<64x4xf32>
    %14 = math.exp %13 : vector<64x4xf32>
    %cst_10 = arith.constant dense<0.000000e+00> : vector<64xf32>
    %15 = vector.multi_reduction <add>, %14, %cst_10 [1] : vector<64x4xf32> to vector<64xf32>
    %16 = vector.shape_cast %15 : vector<64xf32> to vector<64x1xf32>
    %17 = tpu.reciprocal %16 {approx = true} : vector<64x1xf32> -> vector<64x1xf32>
    %18 = vector.broadcast %17 : vector<64x1xf32> to vector<64x4xf32>
    %19 = arith.mulf %14, %18 : vector<64x4xf32>
    %20 = vector.extract_strided_slice %5 {offsets = [0, 0], sizes = [4, 8], strides = [1, 1]} : vector<4x16xf32> to vector<4x8xf32>
    %cst_11 = arith.constant dense<0.000000e+00> : vector<64x8xf32>
    %21 = tpu.matmul %19, %20, %cst_11 {dimension_numbers = #tpu.dot_dimension_numbers<[1], [0], [0], [1], [0, 0, 1, 1], [], []>} : vector<64x4xf32>, vector<4x8xf32>, vector<64x8xf32> -> vector<64x8xf32>
    %c0_12 = arith.constant 0 : index
    %c0_13 = arith.constant 0 : index
    %22 = vector.load %arg4[%c0_12, %c0_13] : memref<16x16xf32, #tpu.memory_space<vmem>>, vector<8x16xf32>
    %cst_14 = arith.constant dense<0.000000e+00> : vector<64x16xf32>
    %23 = tpu.matmul %21, %22, %cst_14 {dimension_numbers = #tpu.dot_dimension_numbers<[1], [0], [0], [1], [0, 0, 1, 1], [], []>} : vector<64x8xf32>, vector<8x16xf32>, vector<64x16xf32> -> vector<64x16xf32>
    %24 = arith.addf %6, %23 : vector<64x16xf32>
    %25 = vector.extract_strided_slice %1 {offsets = [0, 8], sizes = [64, 8], strides = [1, 1]} : vector<64x16xf32> to vector<64x8xf32>
    %26 = vector.extract_strided_slice %3 {offsets = [0, 8], sizes = [4, 8], strides = [1, 1]} : vector<4x16xf32> to vector<4x8xf32>
    %cst_15 = arith.constant dense<0.000000e+00> : vector<64x4xf32>
    %27 = tpu.matmul %25, %26, %cst_15 {dimension_numbers = #tpu.dot_dimension_numbers<[1], [1], [0], [0], [0, 0, 1, 0], [], []>} : vector<64x8xf32>, vector<4x8xf32>, vector<64x4xf32> -> vector<64x4xf32>
    %cst_16 = arith.constant dense<0xFF800000> : vector<64xf32>
    %28 = vector.multi_reduction <maximumf>, %27, %cst_16 [1] : vector<64x4xf32> to vector<64xf32>
    %29 = vector.shape_cast %28 : vector<64xf32> to vector<64x1xf32>
    %30 = vector.broadcast %29 : vector<64x1xf32> to vector<64x4xf32>
    %31 = arith.subf %27, %30 : vector<64x4xf32>
    %32 = math.exp %31 : vector<64x4xf32>
    %cst_17 = arith.constant dense<0.000000e+00> : vector<64xf32>
    %33 = vector.multi_reduction <add>, %32, %cst_17 [1] : vector<64x4xf32> to vector<64xf32>
    %34 = vector.shape_cast %33 : vector<64xf32> to vector<64x1xf32>
    %35 = tpu.reciprocal %34 {approx = true} : vector<64x1xf32> -> vector<64x1xf32>
    %36 = vector.broadcast %35 : vector<64x1xf32> to vector<64x4xf32>
    %37 = arith.mulf %32, %36 : vector<64x4xf32>
    %38 = vector.extract_strided_slice %5 {offsets = [0, 8], sizes = [4, 8], strides = [1, 1]} : vector<4x16xf32> to vector<4x8xf32>
    %cst_18 = arith.constant dense<0.000000e+00> : vector<64x8xf32>
    %39 = tpu.matmul %37, %38, %cst_18 {dimension_numbers = #tpu.dot_dimension_numbers<[1], [0], [0], [1], [0, 0, 1, 1], [], []>} : vector<64x4xf32>, vector<4x8xf32>, vector<64x8xf32> -> vector<64x8xf32>
    %c8 = arith.constant 8 : index
    %c0_19 = arith.constant 0 : index
    %40 = vector.load %arg4[%c8, %c0_19] : memref<16x16xf32, #tpu.memory_space<vmem>>, vector<8x16xf32>
    %cst_20 = arith.constant dense<0.000000e+00> : vector<64x16xf32>
    %41 = tpu.matmul %39, %40, %cst_20 {dimension_numbers = #tpu.dot_dimension_numbers<[1], [0], [0], [1], [0, 0, 1, 1], [], []>} : vector<64x8xf32>, vector<8x16xf32>, vector<64x16xf32> -> vector<64x16xf32>
    %42 = arith.addf %24, %41 : vector<64x16xf32>
    %c0_21 = arith.constant 0 : index
    %c0_22 = arith.constant 0 : index
    %43 = vector.load %arg5[%c0_21, %c0_22] : memref<1x16xf32, #tpu.memory_space<vmem>>, vector<1x16xf32>
    %44 = vector.broadcast %43 : vector<1x16xf32> to vector<64x16xf32>
    %45 = arith.addf %42, %44 : vector<64x16xf32>
    %c0_23 = arith.constant 0 : index
    %c0_24 = arith.constant 0 : index
    %c0_25 = arith.constant 0 : index
    %46 = vector.load %arg6[%c0_23, %c0_24, %c0_25] : memref<1x64x16xf32, #tpu.memory_space<vmem>>, vector<1x64x16xf32>
    %47 = vector.shape_cast %46 : vector<1x64x16xf32> to vector<64x16xf32>
    %48 = arith.addf %45, %47 : vector<64x16xf32>
    %c0_26 = arith.constant 0 : index
    %c0_27 = arith.constant 0 : index
    %c0_28 = arith.constant 0 : index
    %49 = vector.load %arg7[%c0_26, %c0_27, %c0_28] : memref<1x64x16xf32, #tpu.memory_space<vmem>>, vector<1x64x16xf32>
    %50 = vector.shape_cast %49 : vector<1x64x16xf32> to vector<64x16xf32>
    %51 = vector.shape_cast %48 : vector<64x16xf32> to vector<1x64x16xf32>
    tpu.vector_store %arg7[%c0_26, %c0_27, %c0_28], %51 {strides = array<i32>} : memref<1x64x16xf32, #tpu.memory_space<vmem>>, vector<1x64x16xf32>,
    return
  }
  func.func @transform_0(%arg0: i32) -> (i32, i32, i32) {
    %c0_i32 = arith.constant 0 : i32
    %c0_i32_0 = arith.constant 0 : i32
    %c0_i32_1 = arith.constant 0 : i32
    return %arg0, %c0_i32, %c0_i32_0 : i32, i32, i32
  }
  func.func @transform_1(%arg0: i32) -> (i32, i32, i32) {
    %c0_i32 = arith.constant 0 : i32
    %c0_i32_0 = arith.constant 0 : i32
    %c0_i32_1 = arith.constant 0 : i32
    return %arg0, %c0_i32, %c0_i32_0 : i32, i32, i32
  }
  func.func @transform_2(%arg0: i32) -> (i32, i32, i32) {
    %c0_i32 = arith.constant 0 : i32
    %c0_i32_0 = arith.constant 0 : i32
    %c0_i32_1 = arith.constant 0 : i32
    return %arg0, %c0_i32, %c0_i32_0 : i32, i32, i32
  }
  func.func @transform_3(%arg0: i32) -> (i32, i32) {
    %c0_i32 = arith.constant 0 : i32
    %c0_i32_0 = arith.constant 0 : i32
    %c0_i32_1 = arith.constant 0 : i32
    return %c0_i32, %c0_i32_0 : i32, i32
  }
  func.func @transform_4(%arg0: i32) -> (i32, i32) {
    %c0_i32 = arith.constant 0 : i32
    %c0_i32_0 = arith.constant 0 : i32
    %c0_i32_1 = arith.constant 0 : i32
    return %c0_i32, %c0_i32_0 : i32, i32
  }
  func.func @transform_5(%arg0: i32) -> (i32, i32, i32) {
    %c0_i32 = arith.constant 0 : i32
    %c0_i32_0 = arith.constant 0 : i32
    %c0_i32_1 = arith.constant 0 : i32
    return %arg0, %c0_i32, %c0_i32_0 : i32, i32, i32
  }
  func.func @transform_6(%arg0: i32) -> (i32, i32, i32) {
    %c0_i32 = arith.constant 0 : i32
    %c0_i32_0 = arith.constant 0 : i32
    %c0_i32_1 = arith.constant 0 : i32
    return %arg0, %c0_i32, %c0_i32_0 : i32, i32, i32
  }
}

module attributes {stable_mosaic.version = 11 : i64} {
  func.func @kernel(%arg0: i32, %arg1: memref<8x16xf32, #tpu.memory_space<vmem>>, %arg2: memref<16x32xf32, #tpu.memory_space<vmem>>, %arg3: memref<1x32xf32, #tpu.memory_space<vmem>>, %arg4: memref<1x16xf32, #tpu.memory_space<vmem>>, %arg5: memref<1x16xf32, #tpu.memory_space<vmem>>, %arg6: memref<8x32xf32, #tpu.memory_space<vmem>>) attributes {dimension_semantics = [#tpu.dimension_semantics<parallel>], iteration_bounds = array<i64: 1>, scalar_prefetch = 0 : i64, scratch_operands = 0 : i64, tpu.core_type = #tpu.core_type<tc>, window_params = [{transform_indices = @transform_0, window_bounds = array<i64: 8, 16>}, {pipeline_mode = #tpu.pipeline_mode<synchronous>, transform_indices = @transform_1, window_bounds = array<i64: 16, 32>}, {pipeline_mode = #tpu.pipeline_mode<synchronous>, transform_indices = @transform_2, window_bounds = array<i64: 1, 32>}, {pipeline_mode = #tpu.pipeline_mode<synchronous>, transform_indices = @transform_3, window_bounds = array<i64: 1, 16>}, {pipeline_mode = #tpu.pipeline_mode<synchronous>, transform_indices = @transform_4, window_bounds = array<i64: 1, 16>}, {transform_indices = @transform_5, window_bounds = array<i64: 8, 32>}]} {
    %c0 = arith.constant 0 : index
    %c0_0 = arith.constant 0 : index
    %0 = vector.load %arg1[%c0, %c0_0] : memref<8x16xf32, #tpu.memory_space<vmem>>, vector<8x16xf32>
    %c0_1 = arith.constant 0 : index
    %c0_2 = arith.constant 0 : index
    %1 = vector.load %arg4[%c0_1, %c0_2] : memref<1x16xf32, #tpu.memory_space<vmem>>, vector<1x16xf32>
    %c0_3 = arith.constant 0 : index
    %c0_4 = arith.constant 0 : index
    %2 = vector.load %arg5[%c0_3, %c0_4] : memref<1x16xf32, #tpu.memory_space<vmem>>, vector<1x16xf32>
    %cst = arith.constant dense<0.000000e+00> : vector<8xf32>
    %3 = vector.multi_reduction <add>, %0, %cst [1] : vector<8x16xf32> to vector<8xf32>
    %4 = vector.shape_cast %3 : vector<8xf32> to vector<8x1xf32>
    %cst_5 = arith.constant 1.600000e+01 : f32
    %5 = vector.broadcast %cst_5 : f32 to vector<8x1xf32>
    %6 = arith.divf %4, %5 : vector<8x1xf32>
    %7 = vector.broadcast %6 : vector<8x1xf32> to vector<8x16xf32>
    %8 = arith.subf %0, %7 : vector<8x16xf32>
    %9 = arith.mulf %8, %8 : vector<8x16xf32>
    %cst_6 = arith.constant dense<0.000000e+00> : vector<8xf32>
    %10 = vector.multi_reduction <add>, %9, %cst_6 [1] : vector<8x16xf32> to vector<8xf32>
    %11 = vector.shape_cast %10 : vector<8xf32> to vector<8x1xf32>
    %cst_7 = arith.constant 1.600000e+01 : f32
    %12 = vector.broadcast %cst_7 : f32 to vector<8x1xf32>
    %13 = arith.divf %11, %12 : vector<8x1xf32>
    %cst_8 = arith.constant 9.99999974E-6 : f32
    %14 = vector.broadcast %cst_8 : f32 to vector<8x1xf32>
    %15 = arith.addf %13, %14 : vector<8x1xf32>
    %16 = math.rsqrt %15 : vector<8x1xf32>
    %17 = vector.broadcast %16 : vector<8x1xf32> to vector<8x16xf32>
    %18 = arith.mulf %8, %17 : vector<8x16xf32>
    %19 = vector.broadcast %1 : vector<1x16xf32> to vector<8x16xf32>
    %20 = arith.mulf %18, %19 : vector<8x16xf32>
    %21 = vector.broadcast %2 : vector<1x16xf32> to vector<8x16xf32>
    %22 = arith.addf %20, %21 : vector<8x16xf32>
    %c0_9 = arith.constant 0 : index
    %c0_10 = arith.constant 0 : index
    %23 = vector.load %arg2[%c0_9, %c0_10] : memref<16x32xf32, #tpu.memory_space<vmem>>, vector<16x32xf32>
    %cst_11 = arith.constant dense<0.000000e+00> : vector<8x32xf32>
    %24 = tpu.matmul %22, %23, %cst_11 {dimension_numbers = #tpu.dot_dimension_numbers<[1], [0], [0], [1], [0, 0, 1, 1], [], []>} : vector<8x16xf32>, vector<16x32xf32>, vector<8x32xf32> -> vector<8x32xf32>
    %c0_12 = arith.constant 0 : index
    %c0_13 = arith.constant 0 : index
    %25 = vector.load %arg3[%c0_12, %c0_13] : memref<1x32xf32, #tpu.memory_space<vmem>>, vector<1x32xf32>
    %26 = vector.broadcast %25 : vector<1x32xf32> to vector<8x32xf32>
    %27 = arith.addf %24, %26 : vector<8x32xf32>
    %c0_14 = arith.constant 0 : index
    %c0_15 = arith.constant 0 : index
    %28 = vector.load %arg6[%c0_14, %c0_15] : memref<8x32xf32, #tpu.memory_space<vmem>>, vector<8x32xf32>
    tpu.vector_store %arg6[%c0_14, %c0_15], %27 {strides = array<i32>} : memref<8x32xf32, #tpu.memory_space<vmem>>, vector<8x32xf32>,
    return
  }
  func.func @transform_0(%arg0: i32) -> (i32, i32) {
    %c0_i32 = arith.constant 0 : i32
    %c0_i32_0 = arith.constant 0 : i32
    return %arg0, %c0_i32 : i32, i32
  }
  func.func @transform_1(%arg0: i32) -> (i32, i32) {
    %c0_i32 = arith.constant 0 : i32
    %c0_i32_0 = arith.constant 0 : i32
    %c0_i32_1 = arith.constant 0 : i32
    return %c0_i32, %c0_i32_0 : i32, i32
  }
  func.func @transform_2(%arg0: i32) -> (i32, i32) {
    %c0_i32 = arith.constant 0 : i32
    %c0_i32_0 = arith.constant 0 : i32
    %c0_i32_1 = arith.constant 0 : i32
    return %c0_i32, %c0_i32_0 : i32, i32
  }
  func.func @transform_3(%arg0: i32) -> (i32, i32) {
    %c0_i32 = arith.constant 0 : i32
    %c0_i32_0 = arith.constant 0 : i32
    %c0_i32_1 = arith.constant 0 : i32
    return %c0_i32, %c0_i32_0 : i32, i32
  }
  func.func @transform_4(%arg0: i32) -> (i32, i32) {
    %c0_i32 = arith.constant 0 : i32
    %c0_i32_0 = arith.constant 0 : i32
    %c0_i32_1 = arith.constant 0 : i32
    return %c0_i32, %c0_i32_0 : i32, i32
  }
  func.func @transform_5(%arg0: i32) -> (i32, i32) {
    %c0_i32 = arith.constant 0 : i32
    %c0_i32_0 = arith.constant 0 : i32
    return %arg0, %c0_i32 : i32, i32
  }
}

module attributes {stable_mosaic.version = 11 : i64} {
  func.func @kernel(%arg0: i32, %arg1: memref<128x16xf32, #tpu.memory_space<vmem>>, %arg2: memref<16x16xf32, #tpu.memory_space<vmem>>, %arg3: memref<1x16xf32, #tpu.memory_space<vmem>>, %arg4: memref<1x16xf32, #tpu.memory_space<vmem>>, %arg5: memref<1x16xf32, #tpu.memory_space<vmem>>, %arg6: memref<128x16xf32, #tpu.memory_space<vmem>>) attributes {dimension_semantics = [#tpu.dimension_semantics<parallel>], iteration_bounds = array<i64: 1>, scalar_prefetch = 0 : i64, scratch_operands = 0 : i64, tpu.core_type = #tpu.core_type<tc>, window_params = [{transform_indices = @transform_0, window_bounds = array<i64: 128, 16>}, {pipeline_mode = #tpu.pipeline_mode<synchronous>, transform_indices = @transform_1, window_bounds = array<i64: 16, 16>}, {pipeline_mode = #tpu.pipeline_mode<synchronous>, transform_indices = @transform_2, window_bounds = array<i64: 1, 16>}, {pipeline_mode = #tpu.pipeline_mode<synchronous>, transform_indices = @transform_3, window_bounds = array<i64: 1, 16>}, {pipeline_mode = #tpu.pipeline_mode<synchronous>, transform_indices = @transform_4, window_bounds = array<i64: 1, 16>}, {transform_indices = @transform_5, window_bounds = array<i64: 128, 16>}]} {
    %c0 = arith.constant 0 : index
    %c0_0 = arith.constant 0 : index
    %0 = vector.load %arg1[%c0, %c0_0] : memref<128x16xf32, #tpu.memory_space<vmem>>, vector<128x16xf32>
    %c0_1 = arith.constant 0 : index
    %c0_2 = arith.constant 0 : index
    %1 = vector.load %arg4[%c0_1, %c0_2] : memref<1x16xf32, #tpu.memory_space<vmem>>, vector<1x16xf32>
    %c0_3 = arith.constant 0 : index
    %c0_4 = arith.constant 0 : index
    %2 = vector.load %arg5[%c0_3, %c0_4] : memref<1x16xf32, #tpu.memory_space<vmem>>, vector<1x16xf32>
    %cst = arith.constant dense<0.000000e+00> : vector<128xf32>
    %3 = vector.multi_reduction <add>, %0, %cst [1] : vector<128x16xf32> to vector<128xf32>
    %4 = vector.shape_cast %3 : vector<128xf32> to vector<128x1xf32>
    %cst_5 = arith.constant 1.600000e+01 : f32
    %5 = vector.broadcast %cst_5 : f32 to vector<128x1xf32>
    %6 = arith.divf %4, %5 : vector<128x1xf32>
    %7 = vector.broadcast %6 : vector<128x1xf32> to vector<128x16xf32>
    %8 = arith.subf %0, %7 : vector<128x16xf32>
    %9 = arith.mulf %8, %8 : vector<128x16xf32>
    %cst_6 = arith.constant dense<0.000000e+00> : vector<128xf32>
    %10 = vector.multi_reduction <add>, %9, %cst_6 [1] : vector<128x16xf32> to vector<128xf32>
    %11 = vector.shape_cast %10 : vector<128xf32> to vector<128x1xf32>
    %cst_7 = arith.constant 1.600000e+01 : f32
    %12 = vector.broadcast %cst_7 : f32 to vector<128x1xf32>
    %13 = arith.divf %11, %12 : vector<128x1xf32>
    %cst_8 = arith.constant 9.99999974E-6 : f32
    %14 = vector.broadcast %cst_8 : f32 to vector<128x1xf32>
    %15 = arith.addf %13, %14 : vector<128x1xf32>
    %16 = math.rsqrt %15 : vector<128x1xf32>
    %17 = vector.broadcast %16 : vector<128x1xf32> to vector<128x16xf32>
    %18 = arith.mulf %8, %17 : vector<128x16xf32>
    %19 = vector.broadcast %1 : vector<1x16xf32> to vector<128x16xf32>
    %20 = arith.mulf %18, %19 : vector<128x16xf32>
    %21 = vector.broadcast %2 : vector<1x16xf32> to vector<128x16xf32>
    %22 = arith.addf %20, %21 : vector<128x16xf32>
    %c0_9 = arith.constant 0 : index
    %c0_10 = arith.constant 0 : index
    %23 = vector.load %arg2[%c0_9, %c0_10] : memref<16x16xf32, #tpu.memory_space<vmem>>, vector<16x16xf32>
    %cst_11 = arith.constant dense<0.000000e+00> : vector<128x16xf32>
    %24 = tpu.matmul %22, %23, %cst_11 {dimension_numbers = #tpu.dot_dimension_numbers<[1], [0], [0], [1], [0, 0, 1, 1], [], []>} : vector<128x16xf32>, vector<16x16xf32>, vector<128x16xf32> -> vector<128x16xf32>
    %c0_12 = arith.constant 0 : index
    %c0_13 = arith.constant 0 : index
    %25 = vector.load %arg3[%c0_12, %c0_13] : memref<1x16xf32, #tpu.memory_space<vmem>>, vector<1x16xf32>
    %26 = vector.broadcast %25 : vector<1x16xf32> to vector<128x16xf32>
    %27 = arith.addf %24, %26 : vector<128x16xf32>
    %c0_14 = arith.constant 0 : index
    %c0_15 = arith.constant 0 : index
    %28 = vector.load %arg6[%c0_14, %c0_15] : memref<128x16xf32, #tpu.memory_space<vmem>>, vector<128x16xf32>
    tpu.vector_store %arg6[%c0_14, %c0_15], %27 {strides = array<i32>} : memref<128x16xf32, #tpu.memory_space<vmem>>, vector<128x16xf32>,
    return
  }
  func.func @transform_0(%arg0: i32) -> (i32, i32) {
    %c0_i32 = arith.constant 0 : i32
    %c0_i32_0 = arith.constant 0 : i32
    return %arg0, %c0_i32 : i32, i32
  }
  func.func @transform_1(%arg0: i32) -> (i32, i32) {
    %c0_i32 = arith.constant 0 : i32
    %c0_i32_0 = arith.constant 0 : i32
    %c0_i32_1 = arith.constant 0 : i32
    return %c0_i32, %c0_i32_0 : i32, i32
  }
  func.func @transform_2(%arg0: i32) -> (i32, i32) {
    %c0_i32 = arith.constant 0 : i32
    %c0_i32_0 = arith.constant 0 : i32
    %c0_i32_1 = arith.constant 0 : i32
    return %c0_i32, %c0_i32_0 : i32, i32
  }
  func.func @transform_3(%arg0: i32) -> (i32, i32) {
    %c0_i32 = arith.constant 0 : i32
    %c0_i32_0 = arith.constant 0 : i32
    %c0_i32_1 = arith.constant 0 : i32
    return %c0_i32, %c0_i32_0 : i32, i32
  }
  func.func @transform_4(%arg0: i32) -> (i32, i32) {
    %c0_i32 = arith.constant 0 : i32
    %c0_i32_0 = arith.constant 0 : i32
    %c0_i32_1 = arith.constant 0 : i32
    return %c0_i32, %c0_i32_0 : i32, i32
  }
  func.func @transform_5(%arg0: i32) -> (i32, i32) {
    %c0_i32 = arith.constant 0 : i32
    %c0_i32_0 = arith.constant 0 : i32
    return %arg0, %c0_i32 : i32, i32
  }
}

module attributes {stable_mosaic.version = 11 : i64} {
  func.func @kernel(%arg0: i32, %arg1: memref<9x128x16xf32, #tpu.memory_space<vmem>>, %arg2: memref<9x2x16xf32, #tpu.memory_space<vmem>>, %arg3: memref<2x16xf32, #tpu.memory_space<vmem>>, %arg4: memref<2x16x16xf32, #tpu.memory_space<vmem>>, %arg5: memref<1x16xf32, #tpu.memory_space<vmem>>, %arg6: memref<128x16xf32, #tpu.memory_space<vmem>>, %arg7: memref<128x16xf32, #tpu.memory_space<vmem>>) attributes {dimension_semantics = [#tpu.dimension_semantics<parallel>], iteration_bounds = array<i64: 1>, scalar_prefetch = 0 : i64, scratch_operands = 0 : i64, tpu.core_type = #tpu.core_type<tc>, window_params = [{transform_indices = @transform_0, window_bounds = array<i64: 9, 128, 16>}, {pipeline_mode = #tpu.pipeline_mode<synchronous>, transform_indices = @transform_1, window_bounds = array<i64: 9, 2, 16>}, {pipeline_mode = #tpu.pipeline_mode<synchronous>, transform_indices = @transform_2, window_bounds = array<i64: 2, 16>}, {pipeline_mode = #tpu.pipeline_mode<synchronous>, transform_indices = @transform_3, window_bounds = array<i64: 2, 16, 16>}, {pipeline_mode = #tpu.pipeline_mode<synchronous>, transform_indices = @transform_4, window_bounds = array<i64: 1, 16>}, {transform_indices = @transform_5, window_bounds = array<i64: 128, 16>}, {transform_indices = @transform_6, window_bounds = array<i64: 128, 16>}]} {
    %cst = arith.constant 0.000000e+00 : f32
    %0 = vector.broadcast %cst : f32 to vector<128x16xf32>
    %cst_0 = arith.constant 0.000000e+00 : f32
    %1 = vector.broadcast %cst_0 : f32 to vector<128x16xf32>
    %c0 = arith.constant 0 : index
    %c0_1 = arith.constant 0 : index
    %c0_2 = arith.constant 0 : index
    %2 = vector.load %arg1[%c0, %c0_1, %c0_2] : memref<9x128x16xf32, #tpu.memory_space<vmem>>, vector<1x128x16xf32>
    %3 = vector.shape_cast %2 : vector<1x128x16xf32> to vector<128x16xf32>
    %c0_3 = arith.constant 0 : index
    %c0_4 = arith.constant 0 : index
    %c0_5 = arith.constant 0 : index
    %4 = vector.load %arg2[%c0_3, %c0_4, %c0_5] : memref<9x2x16xf32, #tpu.memory_space<vmem>>, vector<1x1x16xf32>
    %5 = vector.shape_cast %4 : vector<1x1x16xf32> to vector<1x16xf32>
    %6 = vector.broadcast %5 : vector<1x16xf32> to vector<128x16xf32>
    %7 = arith.mulf %3, %6 : vector<128x16xf32>
    %8 = arith.addf %1, %7 : vector<128x16xf32>
    %c1 = arith.constant 1 : index
    %c0_6 = arith.constant 0 : index
    %c0_7 = arith.constant 0 : index
    %9 = vector.load %arg1[%c1, %c0_6, %c0_7] : memref<9x128x16xf32, #tpu.memory_space<vmem>>, vector<1x128x16xf32>
    %10 = vector.shape_cast %9 : vector<1x128x16xf32> to vector<128x16xf32>
    %c1_8 = arith.constant 1 : index
    %c0_9 = arith.constant 0 : index
    %c0_10 = arith.constant 0 : index
    %11 = vector.load %arg2[%c1_8, %c0_9, %c0_10] : memref<9x2x16xf32, #tpu.memory_space<vmem>>, vector<1x1x16xf32>
    %12 = vector.shape_cast %11 : vector<1x1x16xf32> to vector<1x16xf32>
    %13 = vector.broadcast %12 : vector<1x16xf32> to vector<128x16xf32>
    %14 = arith.mulf %10, %13 : vector<128x16xf32>
    %15 = arith.addf %8, %14 : vector<128x16xf32>
    %c2 = arith.constant 2 : index
    %c0_11 = arith.constant 0 : index
    %c0_12 = arith.constant 0 : index
    %16 = vector.load %arg1[%c2, %c0_11, %c0_12] : memref<9x128x16xf32, #tpu.memory_space<vmem>>, vector<1x128x16xf32>
    %17 = vector.shape_cast %16 : vector<1x128x16xf32> to vector<128x16xf32>
    %c2_13 = arith.constant 2 : index
    %c0_14 = arith.constant 0 : index
    %c0_15 = arith.constant 0 : index
    %18 = vector.load %arg2[%c2_13, %c0_14, %c0_15] : memref<9x2x16xf32, #tpu.memory_space<vmem>>, vector<1x1x16xf32>
    %19 = vector.shape_cast %18 : vector<1x1x16xf32> to vector<1x16xf32>
    %20 = vector.broadcast %19 : vector<1x16xf32> to vector<128x16xf32>
    %21 = arith.mulf %17, %20 : vector<128x16xf32>
    %22 = arith.addf %15, %21 : vector<128x16xf32>
    %c3 = arith.constant 3 : index
    %c0_16 = arith.constant 0 : index
    %c0_17 = arith.constant 0 : index
    %23 = vector.load %arg1[%c3, %c0_16, %c0_17] : memref<9x128x16xf32, #tpu.memory_space<vmem>>, vector<1x128x16xf32>
    %24 = vector.shape_cast %23 : vector<1x128x16xf32> to vector<128x16xf32>
    %c3_18 = arith.constant 3 : index
    %c0_19 = arith.constant 0 : index
    %c0_20 = arith.constant 0 : index
    %25 = vector.load %arg2[%c3_18, %c0_19, %c0_20] : memref<9x2x16xf32, #tpu.memory_space<vmem>>, vector<1x1x16xf32>
    %26 = vector.shape_cast %25 : vector<1x1x16xf32> to vector<1x16xf32>
    %27 = vector.broadcast %26 : vector<1x16xf32> to vector<128x16xf32>
    %28 = arith.mulf %24, %27 : vector<128x16xf32>
    %29 = arith.addf %22, %28 : vector<128x16xf32>
    %c4 = arith.constant 4 : index
    %c0_21 = arith.constant 0 : index
    %c0_22 = arith.constant 0 : index
    %30 = vector.load %arg1[%c4, %c0_21, %c0_22] : memref<9x128x16xf32, #tpu.memory_space<vmem>>, vector<1x128x16xf32>
    %31 = vector.shape_cast %30 : vector<1x128x16xf32> to vector<128x16xf32>
    %c4_23 = arith.constant 4 : index
    %c0_24 = arith.constant 0 : index
    %c0_25 = arith.constant 0 : index
    %32 = vector.load %arg2[%c4_23, %c0_24, %c0_25] : memref<9x2x16xf32, #tpu.memory_space<vmem>>, vector<1x1x16xf32>
    %33 = vector.shape_cast %32 : vector<1x1x16xf32> to vector<1x16xf32>
    %34 = vector.broadcast %33 : vector<1x16xf32> to vector<128x16xf32>
    %35 = arith.mulf %31, %34 : vector<128x16xf32>
    %36 = arith.addf %29, %35 : vector<128x16xf32>
    %c5 = arith.constant 5 : index
    %c0_26 = arith.constant 0 : index
    %c0_27 = arith.constant 0 : index
    %37 = vector.load %arg1[%c5, %c0_26, %c0_27] : memref<9x128x16xf32, #tpu.memory_space<vmem>>, vector<1x128x16xf32>
    %38 = vector.shape_cast %37 : vector<1x128x16xf32> to vector<128x16xf32>
    %c5_28 = arith.constant 5 : index
    %c0_29 = arith.constant 0 : index
    %c0_30 = arith.constant 0 : index
    %39 = vector.load %arg2[%c5_28, %c0_29, %c0_30] : memref<9x2x16xf32, #tpu.memory_space<vmem>>, vector<1x1x16xf32>
    %40 = vector.shape_cast %39 : vector<1x1x16xf32> to vector<1x16xf32>
    %41 = vector.broadcast %40 : vector<1x16xf32> to vector<128x16xf32>
    %42 = arith.mulf %38, %41 : vector<128x16xf32>
    %43 = arith.addf %36, %42 : vector<128x16xf32>
    %c6 = arith.constant 6 : index
    %c0_31 = arith.constant 0 : index
    %c0_32 = arith.constant 0 : index
    %44 = vector.load %arg1[%c6, %c0_31, %c0_32] : memref<9x128x16xf32, #tpu.memory_space<vmem>>, vector<1x128x16xf32>
    %45 = vector.shape_cast %44 : vector<1x128x16xf32> to vector<128x16xf32>
    %c6_33 = arith.constant 6 : index
    %c0_34 = arith.constant 0 : index
    %c0_35 = arith.constant 0 : index
    %46 = vector.load %arg2[%c6_33, %c0_34, %c0_35] : memref<9x2x16xf32, #tpu.memory_space<vmem>>, vector<1x1x16xf32>
    %47 = vector.shape_cast %46 : vector<1x1x16xf32> to vector<1x16xf32>
    %48 = vector.broadcast %47 : vector<1x16xf32> to vector<128x16xf32>
    %49 = arith.mulf %45, %48 : vector<128x16xf32>
    %50 = arith.addf %43, %49 : vector<128x16xf32>
    %c7 = arith.constant 7 : index
    %c0_36 = arith.constant 0 : index
    %c0_37 = arith.constant 0 : index
    %51 = vector.load %arg1[%c7, %c0_36, %c0_37] : memref<9x128x16xf32, #tpu.memory_space<vmem>>, vector<1x128x16xf32>
    %52 = vector.shape_cast %51 : vector<1x128x16xf32> to vector<128x16xf32>
    %c7_38 = arith.constant 7 : index
    %c0_39 = arith.constant 0 : index
    %c0_40 = arith.constant 0 : index
    %53 = vector.load %arg2[%c7_38, %c0_39, %c0_40] : memref<9x2x16xf32, #tpu.memory_space<vmem>>, vector<1x1x16xf32>
    %54 = vector.shape_cast %53 : vector<1x1x16xf32> to vector<1x16xf32>
    %55 = vector.broadcast %54 : vector<1x16xf32> to vector<128x16xf32>
    %56 = arith.mulf %52, %55 : vector<128x16xf32>
    %57 = arith.addf %50, %56 : vector<128x16xf32>
    %c8 = arith.constant 8 : index
    %c0_41 = arith.constant 0 : index
    %c0_42 = arith.constant 0 : index
    %58 = vector.load %arg1[%c8, %c0_41, %c0_42] : memref<9x128x16xf32, #tpu.memory_space<vmem>>, vector<1x128x16xf32>
    %59 = vector.shape_cast %58 : vector<1x128x16xf32> to vector<128x16xf32>
    %c8_43 = arith.constant 8 : index
    %c0_44 = arith.constant 0 : index
    %c0_45 = arith.constant 0 : index
    %60 = vector.load %arg2[%c8_43, %c0_44, %c0_45] : memref<9x2x16xf32, #tpu.memory_space<vmem>>, vector<1x1x16xf32>
    %61 = vector.shape_cast %60 : vector<1x1x16xf32> to vector<1x16xf32>
    %62 = vector.broadcast %61 : vector<1x16xf32> to vector<128x16xf32>
    %63 = arith.mulf %59, %62 : vector<128x16xf32>
    %64 = arith.addf %57, %63 : vector<128x16xf32>
    %c0_46 = arith.constant 0 : index
    %c0_47 = arith.constant 0 : index
    %65 = vector.load %arg3[%c0_46, %c0_47] : memref<2x16xf32, #tpu.memory_space<vmem>>, vector<1x16xf32>
    %66 = vector.broadcast %65 : vector<1x16xf32> to vector<128x16xf32>
    %67 = arith.addf %64, %66 : vector<128x16xf32>
    %cst_48 = arith.constant 5.000000e-01 : f32
    %68 = vector.broadcast %cst_48 : f32 to vector<128x16xf32>
    %69 = arith.mulf %68, %67 : vector<128x16xf32>
    %cst_49 = arith.constant 0.707106769 : f32
    %70 = vector.broadcast %cst_49 : f32 to vector<128x16xf32>
    %71 = arith.mulf %67, %70 : vector<128x16xf32>
    %cst_50 = arith.constant 0.000000e+00 : f32
    %72 = vector.broadcast %cst_50 : f32 to vector<128x16xf32>
    %73 = arith.cmpf oge, %71, %72 : vector<128x16xf32>
    %cst_51 = arith.constant 1.000000e+00 : f32
    %cst_52 = arith.constant -1.000000e+00 : f32
    %74 = vector.broadcast %cst_51 : f32 to vector<128x16xf32>
    %75 = vector.broadcast %cst_52 : f32 to vector<128x16xf32>
    %76 = arith.select %73, %74, %75 : vector<128x16xi1>, vector<128x16xf32>
    %77 = math.absf %71 : vector<128x16xf32>
    %cst_53 = arith.constant 0.327591091 : f32
    %78 = vector.broadcast %cst_53 : f32 to vector<128x16xf32>
    %79 = arith.mulf %78, %77 : vector<128x16xf32>
    %cst_54 = arith.constant 1.000000e+00 : f32
    %80 = vector.broadcast %cst_54 : f32 to vector<128x16xf32>
    %81 = arith.addf %80, %79 : vector<128x16xf32>
    %cst_55 = arith.constant 1.000000e+00 : f32
    %82 = vector.broadcast %cst_55 : f32 to vector<128x16xf32>
    %83 = arith.divf %82, %81 : vector<128x16xf32>
    %cst_56 = arith.constant 1.06140542 : f32
    %84 = vector.broadcast %cst_56 : f32 to vector<128x16xf32>
    %85 = arith.mulf %84, %83 : vector<128x16xf32>
    %cst_57 = arith.constant -1.45315206 : f32
    %86 = vector.broadcast %cst_57 : f32 to vector<128x16xf32>
    %87 = arith.addf %85, %86 : vector<128x16xf32>
    %88 = arith.mulf %87, %83 : vector<128x16xf32>
    %cst_58 = arith.constant 1.42141378 : f32
    %89 = vector.broadcast %cst_58 : f32 to vector<128x16xf32>
    %90 = arith.addf %88, %89 : vector<128x16xf32>
    %91 = arith.mulf %90, %83 : vector<128x16xf32>
    %cst_59 = arith.constant -0.284496725 : f32
    %92 = vector.broadcast %cst_59 : f32 to vector<128x16xf32>
    %93 = arith.addf %91, %92 : vector<128x16xf32>
    %94 = arith.mulf %93, %83 : vector<128x16xf32>
    %cst_60 = arith.constant 0.254829586 : f32
    %95 = vector.broadcast %cst_60 : f32 to vector<128x16xf32>
    %96 = arith.addf %94, %95 : vector<128x16xf32>
    %97 = arith.mulf %96, %83 : vector<128x16xf32>
    %cst_61 = arith.constant 0.000000e+00 : f32
    %98 = vector.broadcast %cst_61 : f32 to vector<128x16xf32>
    %99 = arith.subf %98, %77 : vector<128x16xf32>
    %100 = arith.mulf %99, %77 : vector<128x16xf32>
    %101 = math.exp %100 : vector<128x16xf32>
    %102 = arith.mulf %97, %101 : vector<128x16xf32>
    %cst_62 = arith.constant 1.000000e+00 : f32
    %103 = vector.broadcast %cst_62 : f32 to vector<128x16xf32>
    %104 = arith.subf %103, %102 : vector<128x16xf32>
    %105 = arith.mulf %76, %104 : vector<128x16xf32>
    %cst_63 = arith.constant 1.000000e+00 : f32
    %106 = vector.broadcast %cst_63 : f32 to vector<128x16xf32>
    %107 = arith.addf %106, %105 : vector<128x16xf32>
    %108 = arith.mulf %69, %107 : vector<128x16xf32>
    %c0_64 = arith.constant 0 : index
    %c0_65 = arith.constant 0 : index
    %c0_66 = arith.constant 0 : index
    %109 = vector.load %arg4[%c0_64, %c0_65, %c0_66] : memref<2x16x16xf32, #tpu.memory_space<vmem>>, vector<1x16x16xf32>
    %110 = vector.shape_cast %109 : vector<1x16x16xf32> to vector<16x16xf32>
    %cst_67 = arith.constant dense<0.000000e+00> : vector<128x16xf32>
    %111 = tpu.matmul %108, %110, %cst_67 {dimension_numbers = #tpu.dot_dimension_numbers<[1], [0], [0], [1], [0, 0, 1, 1], [], []>} : vector<128x16xf32>, vector<16x16xf32>, vector<128x16xf32> -> vector<128x16xf32>
    %112 = arith.addf %0, %111 : vector<128x16xf32>
    %cst_68 = arith.constant 0.000000e+00 : f32
    %113 = vector.broadcast %cst_68 : f32 to vector<128x16xf32>
    %c0_69 = arith.constant 0 : index
    %c0_70 = arith.constant 0 : index
    %c0_71 = arith.constant 0 : index
    %114 = vector.load %arg1[%c0_69, %c0_70, %c0_71] : memref<9x128x16xf32, #tpu.memory_space<vmem>>, vector<1x128x16xf32>
    %115 = vector.shape_cast %114 : vector<1x128x16xf32> to vector<128x16xf32>
    %c0_72 = arith.constant 0 : index
    %c1_73 = arith.constant 1 : index
    %c0_74 = arith.constant 0 : index
    %116 = vector.load %arg2[%c0_72, %c1_73, %c0_74] : memref<9x2x16xf32, #tpu.memory_space<vmem>>, vector<1x1x16xf32>
    %117 = vector.shape_cast %116 : vector<1x1x16xf32> to vector<1x16xf32>
    %118 = vector.broadcast %117 : vector<1x16xf32> to vector<128x16xf32>
    %119 = arith.mulf %115, %118 : vector<128x16xf32>
    %120 = arith.addf %113, %119 : vector<128x16xf32>
    %c1_75 = arith.constant 1 : index
    %c0_76 = arith.constant 0 : index
    %c0_77 = arith.constant 0 : index
    %121 = vector.load %arg1[%c1_75, %c0_76, %c0_77] : memref<9x128x16xf32, #tpu.memory_space<vmem>>, vector<1x128x16xf32>
    %122 = vector.shape_cast %121 : vector<1x128x16xf32> to vector<128x16xf32>
    %c1_78 = arith.constant 1 : index
    %c1_79 = arith.constant 1 : index
    %c0_80 = arith.constant 0 : index
    %123 = vector.load %arg2[%c1_78, %c1_79, %c0_80] : memref<9x2x16xf32, #tpu.memory_space<vmem>>, vector<1x1x16xf32>
    %124 = vector.shape_cast %123 : vector<1x1x16xf32> to vector<1x16xf32>
    %125 = vector.broadcast %124 : vector<1x16xf32> to vector<128x16xf32>
    %126 = arith.mulf %122, %125 : vector<128x16xf32>
    %127 = arith.addf %120, %126 : vector<128x16xf32>
    %c2_81 = arith.constant 2 : index
    %c0_82 = arith.constant 0 : index
    %c0_83 = arith.constant 0 : index
    %128 = vector.load %arg1[%c2_81, %c0_82, %c0_83] : memref<9x128x16xf32, #tpu.memory_space<vmem>>, vector<1x128x16xf32>
    %129 = vector.shape_cast %128 : vector<1x128x16xf32> to vector<128x16xf32>
    %c2_84 = arith.constant 2 : index
    %c1_85 = arith.constant 1 : index
    %c0_86 = arith.constant 0 : index
    %130 = vector.load %arg2[%c2_84, %c1_85, %c0_86] : memref<9x2x16xf32, #tpu.memory_space<vmem>>, vector<1x1x16xf32>
    %131 = vector.shape_cast %130 : vector<1x1x16xf32> to vector<1x16xf32>
    %132 = vector.broadcast %131 : vector<1x16xf32> to vector<128x16xf32>
    %133 = arith.mulf %129, %132 : vector<128x16xf32>
    %134 = arith.addf %127, %133 : vector<128x16xf32>
    %c3_87 = arith.constant 3 : index
    %c0_88 = arith.constant 0 : index
    %c0_89 = arith.constant 0 : index
    %135 = vector.load %arg1[%c3_87, %c0_88, %c0_89] : memref<9x128x16xf32, #tpu.memory_space<vmem>>, vector<1x128x16xf32>
    %136 = vector.shape_cast %135 : vector<1x128x16xf32> to vector<128x16xf32>
    %c3_90 = arith.constant 3 : index
    %c1_91 = arith.constant 1 : index
    %c0_92 = arith.constant 0 : index
    %137 = vector.load %arg2[%c3_90, %c1_91, %c0_92] : memref<9x2x16xf32, #tpu.memory_space<vmem>>, vector<1x1x16xf32>
    %138 = vector.shape_cast %137 : vector<1x1x16xf32> to vector<1x16xf32>
    %139 = vector.broadcast %138 : vector<1x16xf32> to vector<128x16xf32>
    %140 = arith.mulf %136, %139 : vector<128x16xf32>
    %141 = arith.addf %134, %140 : vector<128x16xf32>
    %c4_93 = arith.constant 4 : index
    %c0_94 = arith.constant 0 : index
    %c0_95 = arith.constant 0 : index
    %142 = vector.load %arg1[%c4_93, %c0_94, %c0_95] : memref<9x128x16xf32, #tpu.memory_space<vmem>>, vector<1x128x16xf32>
    %143 = vector.shape_cast %142 : vector<1x128x16xf32> to vector<128x16xf32>
    %c4_96 = arith.constant 4 : index
    %c1_97 = arith.constant 1 : index
    %c0_98 = arith.constant 0 : index
    %144 = vector.load %arg2[%c4_96, %c1_97, %c0_98] : memref<9x2x16xf32, #tpu.memory_space<vmem>>, vector<1x1x16xf32>
    %145 = vector.shape_cast %144 : vector<1x1x16xf32> to vector<1x16xf32>
    %146 = vector.broadcast %145 : vector<1x16xf32> to vector<128x16xf32>
    %147 = arith.mulf %143, %146 : vector<128x16xf32>
    %148 = arith.addf %141, %147 : vector<128x16xf32>
    %c5_99 = arith.constant 5 : index
    %c0_100 = arith.constant 0 : index
    %c0_101 = arith.constant 0 : index
    %149 = vector.load %arg1[%c5_99, %c0_100, %c0_101] : memref<9x128x16xf32, #tpu.memory_space<vmem>>, vector<1x128x16xf32>
    %150 = vector.shape_cast %149 : vector<1x128x16xf32> to vector<128x16xf32>
    %c5_102 = arith.constant 5 : index
    %c1_103 = arith.constant 1 : index
    %c0_104 = arith.constant 0 : index
    %151 = vector.load %arg2[%c5_102, %c1_103, %c0_104] : memref<9x2x16xf32, #tpu.memory_space<vmem>>, vector<1x1x16xf32>
    %152 = vector.shape_cast %151 : vector<1x1x16xf32> to vector<1x16xf32>
    %153 = vector.broadcast %152 : vector<1x16xf32> to vector<128x16xf32>
    %154 = arith.mulf %150, %153 : vector<128x16xf32>
    %155 = arith.addf %148, %154 : vector<128x16xf32>
    %c6_105 = arith.constant 6 : index
    %c0_106 = arith.constant 0 : index
    %c0_107 = arith.constant 0 : index
    %156 = vector.load %arg1[%c6_105, %c0_106, %c0_107] : memref<9x128x16xf32, #tpu.memory_space<vmem>>, vector<1x128x16xf32>
    %157 = vector.shape_cast %156 : vector<1x128x16xf32> to vector<128x16xf32>
    %c6_108 = arith.constant 6 : index
    %c1_109 = arith.constant 1 : index
    %c0_110 = arith.constant 0 : index
    %158 = vector.load %arg2[%c6_108, %c1_109, %c0_110] : memref<9x2x16xf32, #tpu.memory_space<vmem>>, vector<1x1x16xf32>
    %159 = vector.shape_cast %158 : vector<1x1x16xf32> to vector<1x16xf32>
    %160 = vector.broadcast %159 : vector<1x16xf32> to vector<128x16xf32>
    %161 = arith.mulf %157, %160 : vector<128x16xf32>
    %162 = arith.addf %155, %161 : vector<128x16xf32>
    %c7_111 = arith.constant 7 : index
    %c0_112 = arith.constant 0 : index
    %c0_113 = arith.constant 0 : index
    %163 = vector.load %arg1[%c7_111, %c0_112, %c0_113] : memref<9x128x16xf32, #tpu.memory_space<vmem>>, vector<1x128x16xf32>
    %164 = vector.shape_cast %163 : vector<1x128x16xf32> to vector<128x16xf32>
    %c7_114 = arith.constant 7 : index
    %c1_115 = arith.constant 1 : index
    %c0_116 = arith.constant 0 : index
    %165 = vector.load %arg2[%c7_114, %c1_115, %c0_116] : memref<9x2x16xf32, #tpu.memory_space<vmem>>, vector<1x1x16xf32>
    %166 = vector.shape_cast %165 : vector<1x1x16xf32> to vector<1x16xf32>
    %167 = vector.broadcast %166 : vector<1x16xf32> to vector<128x16xf32>
    %168 = arith.mulf %164, %167 : vector<128x16xf32>
    %169 = arith.addf %162, %168 : vector<128x16xf32>
    %c8_117 = arith.constant 8 : index
    %c0_118 = arith.constant 0 : index
    %c0_119 = arith.constant 0 : index
    %170 = vector.load %arg1[%c8_117, %c0_118, %c0_119] : memref<9x128x16xf32, #tpu.memory_space<vmem>>, vector<1x128x16xf32>
    %171 = vector.shape_cast %170 : vector<1x128x16xf32> to vector<128x16xf32>
    %c8_120 = arith.constant 8 : index
    %c1_121 = arith.constant 1 : index
    %c0_122 = arith.constant 0 : index
    %172 = vector.load %arg2[%c8_120, %c1_121, %c0_122] : memref<9x2x16xf32, #tpu.memory_space<vmem>>, vector<1x1x16xf32>
    %173 = vector.shape_cast %172 : vector<1x1x16xf32> to vector<1x16xf32>
    %174 = vector.broadcast %173 : vector<1x16xf32> to vector<128x16xf32>
    %175 = arith.mulf %171, %174 : vector<128x16xf32>
    %176 = arith.addf %169, %175 : vector<128x16xf32>
    %c1_123 = arith.constant 1 : index
    %c0_124 = arith.constant 0 : index
    %177 = vector.load %arg3[%c1_123, %c0_124] : memref<2x16xf32, #tpu.memory_space<vmem>>, vector<1x16xf32>
    %178 = vector.broadcast %177 : vector<1x16xf32> to vector<128x16xf32>
    %179 = arith.addf %176, %178 : vector<128x16xf32>
    %cst_125 = arith.constant 5.000000e-01 : f32
    %180 = vector.broadcast %cst_125 : f32 to vector<128x16xf32>
    %181 = arith.mulf %180, %179 : vector<128x16xf32>
    %cst_126 = arith.constant 0.707106769 : f32
    %182 = vector.broadcast %cst_126 : f32 to vector<128x16xf32>
    %183 = arith.mulf %179, %182 : vector<128x16xf32>
    %cst_127 = arith.constant 0.000000e+00 : f32
    %184 = vector.broadcast %cst_127 : f32 to vector<128x16xf32>
    %185 = arith.cmpf oge, %183, %184 : vector<128x16xf32>
    %cst_128 = arith.constant 1.000000e+00 : f32
    %cst_129 = arith.constant -1.000000e+00 : f32
    %186 = vector.broadcast %cst_128 : f32 to vector<128x16xf32>
    %187 = vector.broadcast %cst_129 : f32 to vector<128x16xf32>
    %188 = arith.select %185, %186, %187 : vector<128x16xi1>, vector<128x16xf32>
    %189 = math.absf %183 : vector<128x16xf32>
    %cst_130 = arith.constant 0.327591091 : f32
    %190 = vector.broadcast %cst_130 : f32 to vector<128x16xf32>
    %191 = arith.mulf %190, %189 : vector<128x16xf32>
    %cst_131 = arith.constant 1.000000e+00 : f32
    %192 = vector.broadcast %cst_131 : f32 to vector<128x16xf32>
    %193 = arith.addf %192, %191 : vector<128x16xf32>
    %cst_132 = arith.constant 1.000000e+00 : f32
    %194 = vector.broadcast %cst_132 : f32 to vector<128x16xf32>
    %195 = arith.divf %194, %193 : vector<128x16xf32>
    %cst_133 = arith.constant 1.06140542 : f32
    %196 = vector.broadcast %cst_133 : f32 to vector<128x16xf32>
    %197 = arith.mulf %196, %195 : vector<128x16xf32>
    %cst_134 = arith.constant -1.45315206 : f32
    %198 = vector.broadcast %cst_134 : f32 to vector<128x16xf32>
    %199 = arith.addf %197, %198 : vector<128x16xf32>
    %200 = arith.mulf %199, %195 : vector<128x16xf32>
    %cst_135 = arith.constant 1.42141378 : f32
    %201 = vector.broadcast %cst_135 : f32 to vector<128x16xf32>
    %202 = arith.addf %200, %201 : vector<128x16xf32>
    %203 = arith.mulf %202, %195 : vector<128x16xf32>
    %cst_136 = arith.constant -0.284496725 : f32
    %204 = vector.broadcast %cst_136 : f32 to vector<128x16xf32>
    %205 = arith.addf %203, %204 : vector<128x16xf32>
    %206 = arith.mulf %205, %195 : vector<128x16xf32>
    %cst_137 = arith.constant 0.254829586 : f32
    %207 = vector.broadcast %cst_137 : f32 to vector<128x16xf32>
    %208 = arith.addf %206, %207 : vector<128x16xf32>
    %209 = arith.mulf %208, %195 : vector<128x16xf32>
    %cst_138 = arith.constant 0.000000e+00 : f32
    %210 = vector.broadcast %cst_138 : f32 to vector<128x16xf32>
    %211 = arith.subf %210, %189 : vector<128x16xf32>
    %212 = arith.mulf %211, %189 : vector<128x16xf32>
    %213 = math.exp %212 : vector<128x16xf32>
    %214 = arith.mulf %209, %213 : vector<128x16xf32>
    %cst_139 = arith.constant 1.000000e+00 : f32
    %215 = vector.broadcast %cst_139 : f32 to vector<128x16xf32>
    %216 = arith.subf %215, %214 : vector<128x16xf32>
    %217 = arith.mulf %188, %216 : vector<128x16xf32>
    %cst_140 = arith.constant 1.000000e+00 : f32
    %218 = vector.broadcast %cst_140 : f32 to vector<128x16xf32>
    %219 = arith.addf %218, %217 : vector<128x16xf32>
    %220 = arith.mulf %181, %219 : vector<128x16xf32>
    %c1_141 = arith.constant 1 : index
    %c0_142 = arith.constant 0 : index
    %c0_143 = arith.constant 0 : index
    %221 = vector.load %arg4[%c1_141, %c0_142, %c0_143] : memref<2x16x16xf32, #tpu.memory_space<vmem>>, vector<1x16x16xf32>
    %222 = vector.shape_cast %221 : vector<1x16x16xf32> to vector<16x16xf32>
    %cst_144 = arith.constant dense<0.000000e+00> : vector<128x16xf32>
    %223 = tpu.matmul %220, %222, %cst_144 {dimension_numbers = #tpu.dot_dimension_numbers<[1], [0], [0], [1], [0, 0, 1, 1], [], []>} : vector<128x16xf32>, vector<16x16xf32>, vector<128x16xf32> -> vector<128x16xf32>
    %224 = arith.addf %112, %223 : vector<128x16xf32>
    %c0_145 = arith.constant 0 : index
    %c0_146 = arith.constant 0 : index
    %225 = vector.load %arg5[%c0_145, %c0_146] : memref<1x16xf32, #tpu.memory_space<vmem>>, vector<1x16xf32>
    %226 = vector.broadcast %225 : vector<1x16xf32> to vector<128x16xf32>
    %227 = arith.addf %224, %226 : vector<128x16xf32>
    %c0_147 = arith.constant 0 : index
    %c0_148 = arith.constant 0 : index
    %228 = vector.load %arg6[%c0_147, %c0_148] : memref<128x16xf32, #tpu.memory_space<vmem>>, vector<128x16xf32>
    %229 = arith.addf %227, %228 : vector<128x16xf32>
    %c0_149 = arith.constant 0 : index
    %c0_150 = arith.constant 0 : index
    %230 = vector.load %arg7[%c0_149, %c0_150] : memref<128x16xf32, #tpu.memory_space<vmem>>, vector<128x16xf32>
    tpu.vector_store %arg7[%c0_149, %c0_150], %229 {strides = array<i32>} : memref<128x16xf32, #tpu.memory_space<vmem>>, vector<128x16xf32>,
    return
  }
  func.func @transform_0(%arg0: i32) -> (i32, i32, i32) {
    %c0_i32 = arith.constant 0 : i32
    %c0_i32_0 = arith.constant 0 : i32
    %c0_i32_1 = arith.constant 0 : i32
    return %c0_i32, %arg0, %c0_i32_0 : i32, i32, i32
  }
  func.func @transform_1(%arg0: i32) -> (i32, i32, i32) {
    %c0_i32 = arith.constant 0 : i32
    %c0_i32_0 = arith.constant 0 : i32
    %c0_i32_1 = arith.constant 0 : i32
    %c0_i32_2 = arith.constant 0 : i32
    return %c0_i32, %c0_i32_0, %c0_i32_1 : i32, i32, i32
  }
  func.func @transform_2(%arg0: i32) -> (i32, i32) {
    %c0_i32 = arith.constant 0 : i32
    %c0_i32_0 = arith.constant 0 : i32
    %c0_i32_1 = arith.constant 0 : i32
    return %c0_i32, %c0_i32_0 : i32, i32
  }
  func.func @transform_3(%arg0: i32) -> (i32, i32, i32) {
    %c0_i32 = arith.constant 0 : i32
    %c0_i32_0 = arith.constant 0 : i32
    %c0_i32_1 = arith.constant 0 : i32
    %c0_i32_2 = arith.constant 0 : i32
    return %c0_i32, %c0_i32_0, %c0_i32_1 : i32, i32, i32
  }
  func.func @transform_4(%arg0: i32) -> (i32, i32) {
    %c0_i32 = arith.constant 0 : i32
    %c0_i32_0 = arith.constant 0 : i32
    %c0_i32_1 = arith.constant 0 : i32
    return %c0_i32, %c0_i32_0 : i32, i32
  }
  func.func @transform_5(%arg0: i32) -> (i32, i32) {
    %c0_i32 = arith.constant 0 : i32
    %c0_i32_0 = arith.constant 0 : i32
    return %arg0, %c0_i32 : i32, i32
  }
  func.func @transform_6(%arg0: i32) -> (i32, i32) {
    %c0_i32 = arith.constant 0 : i32
    %c0_i32_0 = arith.constant 0 : i32
    return %arg0, %c0_i32 : i32, i32
  }
}

module attributes {stable_mosaic.version = 11 : i64} {
  func.func @_ln_kernel(%arg0: i32, %arg1: memref<128x16xf32, #tpu.memory_space<vmem>>, %arg2: memref<1x16xf32, #tpu.memory_space<vmem>>, %arg3: memref<1x16xf32, #tpu.memory_space<vmem>>, %arg4: memref<128x16xf32, #tpu.memory_space<vmem>>) attributes {dimension_semantics = [#tpu.dimension_semantics<parallel>], iteration_bounds = array<i64: 1>, scalar_prefetch = 0 : i64, scratch_operands = 0 : i64, tpu.core_type = #tpu.core_type<tc>, window_params = [{transform_indices = @transform_0, window_bounds = array<i64: 128, 16>}, {pipeline_mode = #tpu.pipeline_mode<synchronous>, transform_indices = @transform_1, window_bounds = array<i64: 1, 16>}, {pipeline_mode = #tpu.pipeline_mode<synchronous>, transform_indices = @transform_2, window_bounds = array<i64: 1, 16>}, {transform_indices = @transform_3, window_bounds = array<i64: 128, 16>}]} {
    %c0 = arith.constant 0 : index
    %c0_0 = arith.constant 0 : index
    %0 = vector.load %arg1[%c0, %c0_0] : memref<128x16xf32, #tpu.memory_space<vmem>>, vector<128x16xf32>
    %c0_1 = arith.constant 0 : index
    %c0_2 = arith.constant 0 : index
    %1 = vector.load %arg2[%c0_1, %c0_2] : memref<1x16xf32, #tpu.memory_space<vmem>>, vector<1x16xf32>
    %c0_3 = arith.constant 0 : index
    %c0_4 = arith.constant 0 : index
    %2 = vector.load %arg3[%c0_3, %c0_4] : memref<1x16xf32, #tpu.memory_space<vmem>>, vector<1x16xf32>
    %cst = arith.constant dense<0.000000e+00> : vector<128xf32>
    %3 = vector.multi_reduction <add>, %0, %cst [1] : vector<128x16xf32> to vector<128xf32>
    %4 = vector.shape_cast %3 : vector<128xf32> to vector<128x1xf32>
    %cst_5 = arith.constant 1.600000e+01 : f32
    %5 = vector.broadcast %cst_5 : f32 to vector<128x1xf32>
    %6 = arith.divf %4, %5 : vector<128x1xf32>
    %7 = vector.broadcast %6 : vector<128x1xf32> to vector<128x16xf32>
    %8 = arith.subf %0, %7 : vector<128x16xf32>
    %9 = arith.mulf %8, %8 : vector<128x16xf32>
    %cst_6 = arith.constant dense<0.000000e+00> : vector<128xf32>
    %10 = vector.multi_reduction <add>, %9, %cst_6 [1] : vector<128x16xf32> to vector<128xf32>
    %11 = vector.shape_cast %10 : vector<128xf32> to vector<128x1xf32>
    %cst_7 = arith.constant 1.600000e+01 : f32
    %12 = vector.broadcast %cst_7 : f32 to vector<128x1xf32>
    %13 = arith.divf %11, %12 : vector<128x1xf32>
    %cst_8 = arith.constant 9.99999974E-6 : f32
    %14 = vector.broadcast %cst_8 : f32 to vector<128x1xf32>
    %15 = arith.addf %13, %14 : vector<128x1xf32>
    %16 = math.rsqrt %15 : vector<128x1xf32>
    %17 = vector.broadcast %16 : vector<128x1xf32> to vector<128x16xf32>
    %18 = arith.mulf %8, %17 : vector<128x16xf32>
    %19 = vector.broadcast %1 : vector<1x16xf32> to vector<128x16xf32>
    %20 = arith.mulf %18, %19 : vector<128x16xf32>
    %21 = vector.broadcast %2 : vector<1x16xf32> to vector<128x16xf32>
    %22 = arith.addf %20, %21 : vector<128x16xf32>
    %c0_9 = arith.constant 0 : index
    %c0_10 = arith.constant 0 : index
    %23 = vector.load %arg4[%c0_9, %c0_10] : memref<128x16xf32, #tpu.memory_space<vmem>>, vector<128x16xf32>
    tpu.vector_store %arg4[%c0_9, %c0_10], %22 {strides = array<i32>} : memref<128x16xf32, #tpu.memory_space<vmem>>, vector<128x16xf32>,
    return
  }
  func.func @transform_0(%arg0: i32) -> (i32, i32) {
    %c0_i32 = arith.constant 0 : i32
    %c0_i32_0 = arith.constant 0 : i32
    return %arg0, %c0_i32 : i32, i32
  }
  func.func @transform_1(%arg0: i32) -> (i32, i32) {
    %c0_i32 = arith.constant 0 : i32
    %c0_i32_0 = arith.constant 0 : i32
    %c0_i32_1 = arith.constant 0 : i32
    return %c0_i32, %c0_i32_0 : i32, i32
  }
  func.func @transform_2(%arg0: i32) -> (i32, i32) {
    %c0_i32 = arith.constant 0 : i32
    %c0_i32_0 = arith.constant 0 : i32
    %c0_i32_1 = arith.constant 0 : i32
    return %c0_i32, %c0_i32_0 : i32, i32
  }
  func.func @transform_3(%arg0: i32) -> (i32, i32) {
    %c0_i32 = arith.constant 0 : i32
    %c0_i32_0 = arith.constant 0 : i32
    return %arg0, %c0_i32 : i32, i32
  }
}

module attributes {stable_mosaic.version = 11 : i64} {
  func.func @kernel(%arg0: i32, %arg1: memref<32x144xf32, #tpu.memory_space<vmem>>, %arg2: memref<144x32xf32, #tpu.memory_space<vmem>>, %arg3: memref<1x32xf32, #tpu.memory_space<vmem>>, %arg4: memref<1x32xf32, #tpu.memory_space<vmem>>, %arg5: memref<1x32xf32, #tpu.memory_space<vmem>>, %arg6: memref<32x32xf32, #tpu.memory_space<vmem>>) attributes {dimension_semantics = [#tpu.dimension_semantics<parallel>], iteration_bounds = array<i64: 1>, scalar_prefetch = 0 : i64, scratch_operands = 0 : i64, tpu.core_type = #tpu.core_type<tc>, window_params = [{transform_indices = @transform_0, window_bounds = array<i64: 32, 144>}, {pipeline_mode = #tpu.pipeline_mode<synchronous>, transform_indices = @transform_1, window_bounds = array<i64: 144, 32>}, {pipeline_mode = #tpu.pipeline_mode<synchronous>, transform_indices = @transform_2, window_bounds = array<i64: 1, 32>}, {pipeline_mode = #tpu.pipeline_mode<synchronous>, transform_indices = @transform_3, window_bounds = array<i64: 1, 32>}, {pipeline_mode = #tpu.pipeline_mode<synchronous>, transform_indices = @transform_4, window_bounds = array<i64: 1, 32>}, {transform_indices = @transform_5, window_bounds = array<i64: 32, 32>}]} {
    %c0 = arith.constant 0 : index
    %c0_0 = arith.constant 0 : index
    %0 = vector.load %arg1[%c0, %c0_0] : memref<32x144xf32, #tpu.memory_space<vmem>>, vector<32x144xf32>
    %c0_1 = arith.constant 0 : index
    %c0_2 = arith.constant 0 : index
    %1 = vector.load %arg2[%c0_1, %c0_2] : memref<144x32xf32, #tpu.memory_space<vmem>>, vector<144x32xf32>
    %cst = arith.constant dense<0.000000e+00> : vector<32x32xf32>
    %2 = tpu.matmul %0, %1, %cst {dimension_numbers = #tpu.dot_dimension_numbers<[1], [0], [0], [1], [0, 0, 1, 1], [], []>} : vector<32x144xf32>, vector<144x32xf32>, vector<32x32xf32> -> vector<32x32xf32>
    %c0_3 = arith.constant 0 : index
    %c0_4 = arith.constant 0 : index
    %3 = vector.load %arg3[%c0_3, %c0_4] : memref<1x32xf32, #tpu.memory_space<vmem>>, vector<1x32xf32>
    %4 = vector.broadcast %3 : vector<1x32xf32> to vector<32x32xf32>
    %5 = arith.addf %2, %4 : vector<32x32xf32>
    %c0_5 = arith.constant 0 : index
    %c0_6 = arith.constant 0 : index
    %6 = vector.load %arg4[%c0_5, %c0_6] : memref<1x32xf32, #tpu.memory_space<vmem>>, vector<1x32xf32>
    %c0_7 = arith.constant 0 : index
    %c0_8 = arith.constant 0 : index
    %7 = vector.load %arg5[%c0_7, %c0_8] : memref<1x32xf32, #tpu.memory_space<vmem>>, vector<1x32xf32>
    %cst_9 = arith.constant dense<0.000000e+00> : vector<32xf32>
    %8 = vector.multi_reduction <add>, %5, %cst_9 [1] : vector<32x32xf32> to vector<32xf32>
    %9 = vector.shape_cast %8 : vector<32xf32> to vector<32x1xf32>
    %cst_10 = arith.constant 3.200000e+01 : f32
    %10 = vector.broadcast %cst_10 : f32 to vector<32x1xf32>
    %11 = arith.divf %9, %10 : vector<32x1xf32>
    %12 = vector.broadcast %11 : vector<32x1xf32> to vector<32x32xf32>
    %13 = arith.subf %5, %12 : vector<32x32xf32>
    %14 = arith.mulf %13, %13 : vector<32x32xf32>
    %cst_11 = arith.constant dense<0.000000e+00> : vector<32xf32>
    %15 = vector.multi_reduction <add>, %14, %cst_11 [1] : vector<32x32xf32> to vector<32xf32>
    %16 = vector.shape_cast %15 : vector<32xf32> to vector<32x1xf32>
    %cst_12 = arith.constant 3.200000e+01 : f32
    %17 = vector.broadcast %cst_12 : f32 to vector<32x1xf32>
    %18 = arith.divf %16, %17 : vector<32x1xf32>
    %cst_13 = arith.constant 9.99999974E-6 : f32
    %19 = vector.broadcast %cst_13 : f32 to vector<32x1xf32>
    %20 = arith.addf %18, %19 : vector<32x1xf32>
    %21 = math.rsqrt %20 : vector<32x1xf32>
    %22 = vector.broadcast %21 : vector<32x1xf32> to vector<32x32xf32>
    %23 = arith.mulf %13, %22 : vector<32x32xf32>
    %24 = vector.broadcast %6 : vector<1x32xf32> to vector<32x32xf32>
    %25 = arith.mulf %23, %24 : vector<32x32xf32>
    %26 = vector.broadcast %7 : vector<1x32xf32> to vector<32x32xf32>
    %27 = arith.addf %25, %26 : vector<32x32xf32>
    %c0_14 = arith.constant 0 : index
    %c0_15 = arith.constant 0 : index
    %28 = vector.load %arg6[%c0_14, %c0_15] : memref<32x32xf32, #tpu.memory_space<vmem>>, vector<32x32xf32>
    tpu.vector_store %arg6[%c0_14, %c0_15], %27 {strides = array<i32>} : memref<32x32xf32, #tpu.memory_space<vmem>>, vector<32x32xf32>,
    return
  }
  func.func @transform_0(%arg0: i32) -> (i32, i32) {
    %c0_i32 = arith.constant 0 : i32
    %c0_i32_0 = arith.constant 0 : i32
    return %arg0, %c0_i32 : i32, i32
  }
  func.func @transform_1(%arg0: i32) -> (i32, i32) {
    %c0_i32 = arith.constant 0 : i32
    %c0_i32_0 = arith.constant 0 : i32
    %c0_i32_1 = arith.constant 0 : i32
    return %c0_i32, %c0_i32_0 : i32, i32
  }
  func.func @transform_2(%arg0: i32) -> (i32, i32) {
    %c0_i32 = arith.constant 0 : i32
    %c0_i32_0 = arith.constant 0 : i32
    %c0_i32_1 = arith.constant 0 : i32
    return %c0_i32, %c0_i32_0 : i32, i32
  }
  func.func @transform_3(%arg0: i32) -> (i32, i32) {
    %c0_i32 = arith.constant 0 : i32
    %c0_i32_0 = arith.constant 0 : i32
    %c0_i32_1 = arith.constant 0 : i32
    return %c0_i32, %c0_i32_0 : i32, i32
  }
  func.func @transform_4(%arg0: i32) -> (i32, i32) {
    %c0_i32 = arith.constant 0 : i32
    %c0_i32_0 = arith.constant 0 : i32
    %c0_i32_1 = arith.constant 0 : i32
    return %c0_i32, %c0_i32_0 : i32, i32
  }
  func.func @transform_5(%arg0: i32) -> (i32, i32) {
    %c0_i32 = arith.constant 0 : i32
    %c0_i32_0 = arith.constant 0 : i32
    return %arg0, %c0_i32 : i32, i32
  }
}

module attributes {stable_mosaic.version = 11 : i64} {
  func.func @kernel(%arg0: i32, %arg1: memref<32x32xf32, #tpu.memory_space<vmem>>, %arg2: memref<32x32xf32, #tpu.memory_space<vmem>>, %arg3: memref<1x32xf32, #tpu.memory_space<vmem>>, %arg4: memref<1x32xf32, #tpu.memory_space<vmem>>, %arg5: memref<1x32xf32, #tpu.memory_space<vmem>>, %arg6: memref<32x32xf32, #tpu.memory_space<vmem>>, %arg7: memref<32x32xf32, #tpu.memory_space<vmem>>) attributes {dimension_semantics = [#tpu.dimension_semantics<parallel>], iteration_bounds = array<i64: 1>, scalar_prefetch = 0 : i64, scratch_operands = 0 : i64, tpu.core_type = #tpu.core_type<tc>, window_params = [{transform_indices = @transform_0, window_bounds = array<i64: 32, 32>}, {pipeline_mode = #tpu.pipeline_mode<synchronous>, transform_indices = @transform_1, window_bounds = array<i64: 32, 32>}, {pipeline_mode = #tpu.pipeline_mode<synchronous>, transform_indices = @transform_2, window_bounds = array<i64: 1, 32>}, {pipeline_mode = #tpu.pipeline_mode<synchronous>, transform_indices = @transform_3, window_bounds = array<i64: 1, 32>}, {pipeline_mode = #tpu.pipeline_mode<synchronous>, transform_indices = @transform_4, window_bounds = array<i64: 1, 32>}, {transform_indices = @transform_5, window_bounds = array<i64: 32, 32>}, {transform_indices = @transform_6, window_bounds = array<i64: 32, 32>}]} {
    %c0 = arith.constant 0 : index
    %c0_0 = arith.constant 0 : index
    %0 = vector.load %arg1[%c0, %c0_0] : memref<32x32xf32, #tpu.memory_space<vmem>>, vector<32x32xf32>
    %c0_1 = arith.constant 0 : index
    %c0_2 = arith.constant 0 : index
    %1 = vector.load %arg4[%c0_1, %c0_2] : memref<1x32xf32, #tpu.memory_space<vmem>>, vector<1x32xf32>
    %c0_3 = arith.constant 0 : index
    %c0_4 = arith.constant 0 : index
    %2 = vector.load %arg5[%c0_3, %c0_4] : memref<1x32xf32, #tpu.memory_space<vmem>>, vector<1x32xf32>
    %cst = arith.constant dense<0.000000e+00> : vector<32xf32>
    %3 = vector.multi_reduction <add>, %0, %cst [1] : vector<32x32xf32> to vector<32xf32>
    %4 = vector.shape_cast %3 : vector<32xf32> to vector<32x1xf32>
    %cst_5 = arith.constant 3.200000e+01 : f32
    %5 = vector.broadcast %cst_5 : f32 to vector<32x1xf32>
    %6 = arith.divf %4, %5 : vector<32x1xf32>
    %7 = vector.broadcast %6 : vector<32x1xf32> to vector<32x32xf32>
    %8 = arith.subf %0, %7 : vector<32x32xf32>
    %9 = arith.mulf %8, %8 : vector<32x32xf32>
    %cst_6 = arith.constant dense<0.000000e+00> : vector<32xf32>
    %10 = vector.multi_reduction <add>, %9, %cst_6 [1] : vector<32x32xf32> to vector<32xf32>
    %11 = vector.shape_cast %10 : vector<32xf32> to vector<32x1xf32>
    %cst_7 = arith.constant 3.200000e+01 : f32
    %12 = vector.broadcast %cst_7 : f32 to vector<32x1xf32>
    %13 = arith.divf %11, %12 : vector<32x1xf32>
    %cst_8 = arith.constant 9.99999974E-6 : f32
    %14 = vector.broadcast %cst_8 : f32 to vector<32x1xf32>
    %15 = arith.addf %13, %14 : vector<32x1xf32>
    %16 = math.rsqrt %15 : vector<32x1xf32>
    %17 = vector.broadcast %16 : vector<32x1xf32> to vector<32x32xf32>
    %18 = arith.mulf %8, %17 : vector<32x32xf32>
    %19 = vector.broadcast %1 : vector<1x32xf32> to vector<32x32xf32>
    %20 = arith.mulf %18, %19 : vector<32x32xf32>
    %21 = vector.broadcast %2 : vector<1x32xf32> to vector<32x32xf32>
    %22 = arith.addf %20, %21 : vector<32x32xf32>
    %c0_9 = arith.constant 0 : index
    %c0_10 = arith.constant 0 : index
    %23 = vector.load %arg7[%c0_9, %c0_10] : memref<32x32xf32, #tpu.memory_space<vmem>>, vector<32x32xf32>
    tpu.vector_store %arg7[%c0_9, %c0_10], %22 {strides = array<i32>} : memref<32x32xf32, #tpu.memory_space<vmem>>, vector<32x32xf32>,
    %c0_11 = arith.constant 0 : index
    %c0_12 = arith.constant 0 : index
    %24 = vector.load %arg2[%c0_11, %c0_12] : memref<32x32xf32, #tpu.memory_space<vmem>>, vector<32x32xf32>
    %cst_13 = arith.constant dense<0.000000e+00> : vector<32x32xf32>
    %25 = tpu.matmul %22, %24, %cst_13 {dimension_numbers = #tpu.dot_dimension_numbers<[1], [0], [0], [1], [0, 0, 1, 1], [], []>} : vector<32x32xf32>, vector<32x32xf32>, vector<32x32xf32> -> vector<32x32xf32>
    %c0_14 = arith.constant 0 : index
    %c0_15 = arith.constant 0 : index
    %26 = vector.load %arg3[%c0_14, %c0_15] : memref<1x32xf32, #tpu.memory_space<vmem>>, vector<1x32xf32>
    %27 = vector.broadcast %26 : vector<1x32xf32> to vector<32x32xf32>
    %28 = arith.addf %25, %27 : vector<32x32xf32>
    %c0_16 = arith.constant 0 : index
    %c0_17 = arith.constant 0 : index
    %29 = vector.load %arg6[%c0_16, %c0_17] : memref<32x32xf32, #tpu.memory_space<vmem>>, vector<32x32xf32>
    tpu.vector_store %arg6[%c0_16, %c0_17], %28 {strides = array<i32>} : memref<32x32xf32, #tpu.memory_space<vmem>>, vector<32x32xf32>,
    return
  }
  func.func @transform_0(%arg0: i32) -> (i32, i32) {
    %c0_i32 = arith.constant 0 : i32
    %c0_i32_0 = arith.constant 0 : i32
    return %arg0, %c0_i32 : i32, i32
  }
  func.func @transform_1(%arg0: i32) -> (i32, i32) {
    %c0_i32 = arith.constant 0 : i32
    %c0_i32_0 = arith.constant 0 : i32
    %c0_i32_1 = arith.constant 0 : i32
    return %c0_i32, %c0_i32_0 : i32, i32
  }
  func.func @transform_2(%arg0: i32) -> (i32, i32) {
    %c0_i32 = arith.constant 0 : i32
    %c0_i32_0 = arith.constant 0 : i32
    %c0_i32_1 = arith.constant 0 : i32
    return %c0_i32, %c0_i32_0 : i32, i32
  }
  func.func @transform_3(%arg0: i32) -> (i32, i32) {
    %c0_i32 = arith.constant 0 : i32
    %c0_i32_0 = arith.constant 0 : i32
    %c0_i32_1 = arith.constant 0 : i32
    return %c0_i32, %c0_i32_0 : i32, i32
  }
  func.func @transform_4(%arg0: i32) -> (i32, i32) {
    %c0_i32 = arith.constant 0 : i32
    %c0_i32_0 = arith.constant 0 : i32
    %c0_i32_1 = arith.constant 0 : i32
    return %c0_i32, %c0_i32_0 : i32, i32
  }
  func.func @transform_5(%arg0: i32) -> (i32, i32) {
    %c0_i32 = arith.constant 0 : i32
    %c0_i32_0 = arith.constant 0 : i32
    return %arg0, %c0_i32 : i32, i32
  }
  func.func @transform_6(%arg0: i32) -> (i32, i32) {
    %c0_i32 = arith.constant 0 : i32
    %c0_i32_0 = arith.constant 0 : i32
    return %arg0, %c0_i32 : i32, i32
  }
}

module attributes {stable_mosaic.version = 11 : i64} {
  func.func @kernel(%arg0: i32, %arg1: memref<8x128xf32, #tpu.memory_space<vmem>>, %arg2: memref<128x32xf32, #tpu.memory_space<vmem>>, %arg3: memref<1x32xf32, #tpu.memory_space<vmem>>, %arg4: memref<8x32xf32, #tpu.memory_space<vmem>>) attributes {dimension_semantics = [#tpu.dimension_semantics<parallel>], iteration_bounds = array<i64: 1>, scalar_prefetch = 0 : i64, scratch_operands = 0 : i64, tpu.core_type = #tpu.core_type<tc>, window_params = [{transform_indices = @transform_0, window_bounds = array<i64: 8, 128>}, {pipeline_mode = #tpu.pipeline_mode<synchronous>, transform_indices = @transform_1, window_bounds = array<i64: 128, 32>}, {pipeline_mode = #tpu.pipeline_mode<synchronous>, transform_indices = @transform_2, window_bounds = array<i64: 1, 32>}, {transform_indices = @transform_3, window_bounds = array<i64: 8, 32>}]} {
    %c0 = arith.constant 0 : index
    %c0_0 = arith.constant 0 : index
    %0 = vector.load %arg1[%c0, %c0_0] : memref<8x128xf32, #tpu.memory_space<vmem>>, vector<8x128xf32>
    %c0_1 = arith.constant 0 : index
    %c0_2 = arith.constant 0 : index
    %1 = vector.load %arg2[%c0_1, %c0_2] : memref<128x32xf32, #tpu.memory_space<vmem>>, vector<128x32xf32>
    %cst = arith.constant dense<0.000000e+00> : vector<8x32xf32>
    %2 = tpu.matmul %0, %1, %cst {dimension_numbers = #tpu.dot_dimension_numbers<[1], [0], [0], [1], [0, 0, 1, 1], [], []>} : vector<8x128xf32>, vector<128x32xf32>, vector<8x32xf32> -> vector<8x32xf32>
    %c0_3 = arith.constant 0 : index
    %c0_4 = arith.constant 0 : index
    %3 = vector.load %arg3[%c0_3, %c0_4] : memref<1x32xf32, #tpu.memory_space<vmem>>, vector<1x32xf32>
    %4 = vector.broadcast %3 : vector<1x32xf32> to vector<8x32xf32>
    %5 = arith.addf %2, %4 : vector<8x32xf32>
    %c0_5 = arith.constant 0 : index
    %c0_6 = arith.constant 0 : index
    %6 = vector.load %arg4[%c0_5, %c0_6] : memref<8x32xf32, #tpu.memory_space<vmem>>, vector<8x32xf32>
    tpu.vector_store %arg4[%c0_5, %c0_6], %5 {strides = array<i32>} : memref<8x32xf32, #tpu.memory_space<vmem>>, vector<8x32xf32>,
    return
  }
  func.func @transform_0(%arg0: i32) -> (i32, i32) {
    %c0_i32 = arith.constant 0 : i32
    %c0_i32_0 = arith.constant 0 : i32
    return %arg0, %c0_i32 : i32, i32
  }
  func.func @transform_1(%arg0: i32) -> (i32, i32) {
    %c0_i32 = arith.constant 0 : i32
    %c0_i32_0 = arith.constant 0 : i32
    %c0_i32_1 = arith.constant 0 : i32
    return %c0_i32, %c0_i32_0 : i32, i32
  }
  func.func @transform_2(%arg0: i32) -> (i32, i32) {
    %c0_i32 = arith.constant 0 : i32
    %c0_i32_0 = arith.constant 0 : i32
    %c0_i32_1 = arith.constant 0 : i32
    return %c0_i32, %c0_i32_0 : i32, i32
  }
  func.func @transform_3(%arg0: i32) -> (i32, i32) {
    %c0_i32 = arith.constant 0 : i32
    %c0_i32_0 = arith.constant 0 : i32
    return %arg0, %c0_i32 : i32, i32
  }
}

module attributes {stable_mosaic.version = 11 : i64} {
  func.func @kernel(%arg0: i32, %arg1: memref<32x32xf32, #tpu.memory_space<vmem>>, %arg2: memref<32x32xf32, #tpu.memory_space<vmem>>, %arg3: memref<1x32xf32, #tpu.memory_space<vmem>>, %arg4: memref<1x32xf32, #tpu.memory_space<vmem>>, %arg5: memref<1x32xf32, #tpu.memory_space<vmem>>, %arg6: memref<32x32xf32, #tpu.memory_space<vmem>>) attributes {dimension_semantics = [#tpu.dimension_semantics<parallel>], iteration_bounds = array<i64: 1>, scalar_prefetch = 0 : i64, scratch_operands = 0 : i64, tpu.core_type = #tpu.core_type<tc>, window_params = [{transform_indices = @transform_0, window_bounds = array<i64: 32, 32>}, {pipeline_mode = #tpu.pipeline_mode<synchronous>, transform_indices = @transform_1, window_bounds = array<i64: 32, 32>}, {pipeline_mode = #tpu.pipeline_mode<synchronous>, transform_indices = @transform_2, window_bounds = array<i64: 1, 32>}, {pipeline_mode = #tpu.pipeline_mode<synchronous>, transform_indices = @transform_3, window_bounds = array<i64: 1, 32>}, {pipeline_mode = #tpu.pipeline_mode<synchronous>, transform_indices = @transform_4, window_bounds = array<i64: 1, 32>}, {transform_indices = @transform_5, window_bounds = array<i64: 32, 32>}]} {
    %c0 = arith.constant 0 : index
    %c0_0 = arith.constant 0 : index
    %0 = vector.load %arg1[%c0, %c0_0] : memref<32x32xf32, #tpu.memory_space<vmem>>, vector<32x32xf32>
    %c0_1 = arith.constant 0 : index
    %c0_2 = arith.constant 0 : index
    %1 = vector.load %arg4[%c0_1, %c0_2] : memref<1x32xf32, #tpu.memory_space<vmem>>, vector<1x32xf32>
    %c0_3 = arith.constant 0 : index
    %c0_4 = arith.constant 0 : index
    %2 = vector.load %arg5[%c0_3, %c0_4] : memref<1x32xf32, #tpu.memory_space<vmem>>, vector<1x32xf32>
    %cst = arith.constant dense<0.000000e+00> : vector<32xf32>
    %3 = vector.multi_reduction <add>, %0, %cst [1] : vector<32x32xf32> to vector<32xf32>
    %4 = vector.shape_cast %3 : vector<32xf32> to vector<32x1xf32>
    %cst_5 = arith.constant 3.200000e+01 : f32
    %5 = vector.broadcast %cst_5 : f32 to vector<32x1xf32>
    %6 = arith.divf %4, %5 : vector<32x1xf32>
    %7 = vector.broadcast %6 : vector<32x1xf32> to vector<32x32xf32>
    %8 = arith.subf %0, %7 : vector<32x32xf32>
    %9 = arith.mulf %8, %8 : vector<32x32xf32>
    %cst_6 = arith.constant dense<0.000000e+00> : vector<32xf32>
    %10 = vector.multi_reduction <add>, %9, %cst_6 [1] : vector<32x32xf32> to vector<32xf32>
    %11 = vector.shape_cast %10 : vector<32xf32> to vector<32x1xf32>
    %cst_7 = arith.constant 3.200000e+01 : f32
    %12 = vector.broadcast %cst_7 : f32 to vector<32x1xf32>
    %13 = arith.divf %11, %12 : vector<32x1xf32>
    %cst_8 = arith.constant 9.99999974E-6 : f32
    %14 = vector.broadcast %cst_8 : f32 to vector<32x1xf32>
    %15 = arith.addf %13, %14 : vector<32x1xf32>
    %16 = math.rsqrt %15 : vector<32x1xf32>
    %17 = vector.broadcast %16 : vector<32x1xf32> to vector<32x32xf32>
    %18 = arith.mulf %8, %17 : vector<32x32xf32>
    %19 = vector.broadcast %1 : vector<1x32xf32> to vector<32x32xf32>
    %20 = arith.mulf %18, %19 : vector<32x32xf32>
    %21 = vector.broadcast %2 : vector<1x32xf32> to vector<32x32xf32>
    %22 = arith.addf %20, %21 : vector<32x32xf32>
    %c0_9 = arith.constant 0 : index
    %c0_10 = arith.constant 0 : index
    %23 = vector.load %arg2[%c0_9, %c0_10] : memref<32x32xf32, #tpu.memory_space<vmem>>, vector<32x32xf32>
    %cst_11 = arith.constant dense<0.000000e+00> : vector<32x32xf32>
    %24 = tpu.matmul %22, %23, %cst_11 {dimension_numbers = #tpu.dot_dimension_numbers<[1], [0], [0], [1], [0, 0, 1, 1], [], []>} : vector<32x32xf32>, vector<32x32xf32>, vector<32x32xf32> -> vector<32x32xf32>
    %c0_12 = arith.constant 0 : index
    %c0_13 = arith.constant 0 : index
    %25 = vector.load %arg3[%c0_12, %c0_13] : memref<1x32xf32, #tpu.memory_space<vmem>>, vector<1x32xf32>
    %26 = vector.broadcast %25 : vector<1x32xf32> to vector<32x32xf32>
    %27 = arith.addf %24, %26 : vector<32x32xf32>
    %c0_14 = arith.constant 0 : index
    %c0_15 = arith.constant 0 : index
    %28 = vector.load %arg6[%c0_14, %c0_15] : memref<32x32xf32, #tpu.memory_space<vmem>>, vector<32x32xf32>
    tpu.vector_store %arg6[%c0_14, %c0_15], %27 {strides = array<i32>} : memref<32x32xf32, #tpu.memory_space<vmem>>, vector<32x32xf32>,
    return
  }
  func.func @transform_0(%arg0: i32) -> (i32, i32) {
    %c0_i32 = arith.constant 0 : i32
    %c0_i32_0 = arith.constant 0 : i32
    return %arg0, %c0_i32 : i32, i32
  }
  func.func @transform_1(%arg0: i32) -> (i32, i32) {
    %c0_i32 = arith.constant 0 : i32
    %c0_i32_0 = arith.constant 0 : i32
    %c0_i32_1 = arith.constant 0 : i32
    return %c0_i32, %c0_i32_0 : i32, i32
  }
  func.func @transform_2(%arg0: i32) -> (i32, i32) {
    %c0_i32 = arith.constant 0 : i32
    %c0_i32_0 = arith.constant 0 : i32
    %c0_i32_1 = arith.constant 0 : i32
    return %c0_i32, %c0_i32_0 : i32, i32
  }
  func.func @transform_3(%arg0: i32) -> (i32, i32) {
    %c0_i32 = arith.constant 0 : i32
    %c0_i32_0 = arith.constant 0 : i32
    %c0_i32_1 = arith.constant 0 : i32
    return %c0_i32, %c0_i32_0 : i32, i32
  }
  func.func @transform_4(%arg0: i32) -> (i32, i32) {
    %c0_i32 = arith.constant 0 : i32
    %c0_i32_0 = arith.constant 0 : i32
    %c0_i32_1 = arith.constant 0 : i32
    return %c0_i32, %c0_i32_0 : i32, i32
  }
  func.func @transform_5(%arg0: i32) -> (i32, i32) {
    %c0_i32 = arith.constant 0 : i32
    %c0_i32_0 = arith.constant 0 : i32
    return %arg0, %c0_i32 : i32, i32
  }
}

module attributes {stable_mosaic.version = 11 : i64} {
  func.func @kernel(%arg0: i32, %arg1: memref<8x32xf32, #tpu.memory_space<vmem>>, %arg2: memref<32x64xf32, #tpu.memory_space<vmem>>, %arg3: memref<1x64xf32, #tpu.memory_space<vmem>>, %arg4: memref<1x32xf32, #tpu.memory_space<vmem>>, %arg5: memref<1x32xf32, #tpu.memory_space<vmem>>, %arg6: memref<8x64xf32, #tpu.memory_space<vmem>>) attributes {dimension_semantics = [#tpu.dimension_semantics<parallel>], iteration_bounds = array<i64: 1>, scalar_prefetch = 0 : i64, scratch_operands = 0 : i64, tpu.core_type = #tpu.core_type<tc>, window_params = [{transform_indices = @transform_0, window_bounds = array<i64: 8, 32>}, {pipeline_mode = #tpu.pipeline_mode<synchronous>, transform_indices = @transform_1, window_bounds = array<i64: 32, 64>}, {pipeline_mode = #tpu.pipeline_mode<synchronous>, transform_indices = @transform_2, window_bounds = array<i64: 1, 64>}, {pipeline_mode = #tpu.pipeline_mode<synchronous>, transform_indices = @transform_3, window_bounds = array<i64: 1, 32>}, {pipeline_mode = #tpu.pipeline_mode<synchronous>, transform_indices = @transform_4, window_bounds = array<i64: 1, 32>}, {transform_indices = @transform_5, window_bounds = array<i64: 8, 64>}]} {
    %c0 = arith.constant 0 : index
    %c0_0 = arith.constant 0 : index
    %0 = vector.load %arg1[%c0, %c0_0] : memref<8x32xf32, #tpu.memory_space<vmem>>, vector<8x32xf32>
    %c0_1 = arith.constant 0 : index
    %c0_2 = arith.constant 0 : index
    %1 = vector.load %arg4[%c0_1, %c0_2] : memref<1x32xf32, #tpu.memory_space<vmem>>, vector<1x32xf32>
    %c0_3 = arith.constant 0 : index
    %c0_4 = arith.constant 0 : index
    %2 = vector.load %arg5[%c0_3, %c0_4] : memref<1x32xf32, #tpu.memory_space<vmem>>, vector<1x32xf32>
    %cst = arith.constant dense<0.000000e+00> : vector<8xf32>
    %3 = vector.multi_reduction <add>, %0, %cst [1] : vector<8x32xf32> to vector<8xf32>
    %4 = vector.shape_cast %3 : vector<8xf32> to vector<8x1xf32>
    %cst_5 = arith.constant 3.200000e+01 : f32
    %5 = vector.broadcast %cst_5 : f32 to vector<8x1xf32>
    %6 = arith.divf %4, %5 : vector<8x1xf32>
    %7 = vector.broadcast %6 : vector<8x1xf32> to vector<8x32xf32>
    %8 = arith.subf %0, %7 : vector<8x32xf32>
    %9 = arith.mulf %8, %8 : vector<8x32xf32>
    %cst_6 = arith.constant dense<0.000000e+00> : vector<8xf32>
    %10 = vector.multi_reduction <add>, %9, %cst_6 [1] : vector<8x32xf32> to vector<8xf32>
    %11 = vector.shape_cast %10 : vector<8xf32> to vector<8x1xf32>
    %cst_7 = arith.constant 3.200000e+01 : f32
    %12 = vector.broadcast %cst_7 : f32 to vector<8x1xf32>
    %13 = arith.divf %11, %12 : vector<8x1xf32>
    %cst_8 = arith.constant 9.99999974E-6 : f32
    %14 = vector.broadcast %cst_8 : f32 to vector<8x1xf32>
    %15 = arith.addf %13, %14 : vector<8x1xf32>
    %16 = math.rsqrt %15 : vector<8x1xf32>
    %17 = vector.broadcast %16 : vector<8x1xf32> to vector<8x32xf32>
    %18 = arith.mulf %8, %17 : vector<8x32xf32>
    %19 = vector.broadcast %1 : vector<1x32xf32> to vector<8x32xf32>
    %20 = arith.mulf %18, %19 : vector<8x32xf32>
    %21 = vector.broadcast %2 : vector<1x32xf32> to vector<8x32xf32>
    %22 = arith.addf %20, %21 : vector<8x32xf32>
    %c0_9 = arith.constant 0 : index
    %c0_10 = arith.constant 0 : index
    %23 = vector.load %arg2[%c0_9, %c0_10] : memref<32x64xf32, #tpu.memory_space<vmem>>, vector<32x64xf32>
    %cst_11 = arith.constant dense<0.000000e+00> : vector<8x64xf32>
    %24 = tpu.matmul %22, %23, %cst_11 {dimension_numbers = #tpu.dot_dimension_numbers<[1], [0], [0], [1], [0, 0, 1, 1], [], []>} : vector<8x32xf32>, vector<32x64xf32>, vector<8x64xf32> -> vector<8x64xf32>
    %c0_12 = arith.constant 0 : index
    %c0_13 = arith.constant 0 : index
    %25 = vector.load %arg3[%c0_12, %c0_13] : memref<1x64xf32, #tpu.memory_space<vmem>>, vector<1x64xf32>
    %26 = vector.broadcast %25 : vector<1x64xf32> to vector<8x64xf32>
    %27 = arith.addf %24, %26 : vector<8x64xf32>
    %c0_14 = arith.constant 0 : index
    %c0_15 = arith.constant 0 : index
    %28 = vector.load %arg6[%c0_14, %c0_15] : memref<8x64xf32, #tpu.memory_space<vmem>>, vector<8x64xf32>
    tpu.vector_store %arg6[%c0_14, %c0_15], %27 {strides = array<i32>} : memref<8x64xf32, #tpu.memory_space<vmem>>, vector<8x64xf32>,
    return
  }
  func.func @transform_0(%arg0: i32) -> (i32, i32) {
    %c0_i32 = arith.constant 0 : i32
    %c0_i32_0 = arith.constant 0 : i32
    return %arg0, %c0_i32 : i32, i32
  }
  func.func @transform_1(%arg0: i32) -> (i32, i32) {
    %c0_i32 = arith.constant 0 : i32
    %c0_i32_0 = arith.constant 0 : i32
    %c0_i32_1 = arith.constant 0 : i32
    return %c0_i32, %c0_i32_0 : i32, i32
  }
  func.func @transform_2(%arg0: i32) -> (i32, i32) {
    %c0_i32 = arith.constant 0 : i32
    %c0_i32_0 = arith.constant 0 : i32
    %c0_i32_1 = arith.constant 0 : i32
    return %c0_i32, %c0_i32_0 : i32, i32
  }
  func.func @transform_3(%arg0: i32) -> (i32, i32) {
    %c0_i32 = arith.constant 0 : i32
    %c0_i32_0 = arith.constant 0 : i32
    %c0_i32_1 = arith.constant 0 : i32
    return %c0_i32, %c0_i32_0 : i32, i32
  }
  func.func @transform_4(%arg0: i32) -> (i32, i32) {
    %c0_i32 = arith.constant 0 : i32
    %c0_i32_0 = arith.constant 0 : i32
    %c0_i32_1 = arith.constant 0 : i32
    return %c0_i32, %c0_i32_0 : i32, i32
  }
  func.func @transform_5(%arg0: i32) -> (i32, i32) {
    %c0_i32 = arith.constant 0 : i32
    %c0_i32_0 = arith.constant 0 : i32
    return %arg0, %c0_i32 : i32, i32
  }
}

module attributes {stable_mosaic.version = 11 : i64} {
  func.func @kernel(%arg0: i32, %arg1: memref<1x16x32xf32, #tpu.memory_space<vmem>>, %arg2: memref<1x4x32xf32, #tpu.memory_space<vmem>>, %arg3: memref<1x4x32xf32, #tpu.memory_space<vmem>>, %arg4: memref<32x32xf32, #tpu.memory_space<vmem>>, %arg5: memref<1x32xf32, #tpu.memory_space<vmem>>, %arg6: memref<1x16x32xf32, #tpu.memory_space<vmem>>, %arg7: memref<1x16x32xf32, #tpu.memory_space<vmem>>) attributes {dimension_semantics = [#tpu.dimension_semantics<parallel>], iteration_bounds = array<i64: 2>, scalar_prefetch = 0 : i64, scratch_operands = 0 : i64, tpu.core_type = #tpu.core_type<tc>, window_params = [{transform_indices = @transform_0, window_bounds = array<i64: 1, 16, 32>}, {transform_indices = @transform_1, window_bounds = array<i64: 1, 4, 32>}, {transform_indices = @transform_2, window_bounds = array<i64: 1, 4, 32>}, {pipeline_mode = #tpu.pipeline_mode<synchronous>, transform_indices = @transform_3, window_bounds = array<i64: 32, 32>}, {pipeline_mode = #tpu.pipeline_mode<synchronous>, transform_indices = @transform_4, window_bounds = array<i64: 1, 32>}, {transform_indices = @transform_5, window_bounds = array<i64: 1, 16, 32>}, {transform_indices = @transform_6, window_bounds = array<i64: 1, 16, 32>}]} {
    %c0 = arith.constant 0 : index
    %c0_0 = arith.constant 0 : index
    %c0_1 = arith.constant 0 : index
    %0 = vector.load %arg1[%c0, %c0_0, %c0_1] : memref<1x16x32xf32, #tpu.memory_space<vmem>>, vector<1x16x32xf32>
    %1 = vector.shape_cast %0 : vector<1x16x32xf32> to vector<16x32xf32>
    %c0_2 = arith.constant 0 : index
    %c0_3 = arith.constant 0 : index
    %c0_4 = arith.constant 0 : index
    %2 = vector.load %arg2[%c0_2, %c0_3, %c0_4] : memref<1x4x32xf32, #tpu.memory_space<vmem>>, vector<1x4x32xf32>
    %3 = vector.shape_cast %2 : vector<1x4x32xf32> to vector<4x32xf32>
    %c0_5 = arith.constant 0 : index
    %c0_6 = arith.constant 0 : index
    %c0_7 = arith.constant 0 : index
    %4 = vector.load %arg3[%c0_5, %c0_6, %c0_7] : memref<1x4x32xf32, #tpu.memory_space<vmem>>, vector<1x4x32xf32>
    %5 = vector.shape_cast %4 : vector<1x4x32xf32> to vector<4x32xf32>
    %cst = arith.constant 0.000000e+00 : f32
    %6 = vector.broadcast %cst : f32 to vector<16x32xf32>
    %7 = vector.extract_strided_slice %1 {offsets = [0, 0], sizes = [16, 8], strides = [1, 1]} : vector<16x32xf32> to vector<16x8xf32>
    %8 = vector.extract_strided_slice %3 {offsets = [0, 0], sizes = [4, 8], strides = [1, 1]} : vector<4x32xf32> to vector<4x8xf32>
    %cst_8 = arith.constant dense<0.000000e+00> : vector<16x4xf32>
    %9 = tpu.matmul %7, %8, %cst_8 {dimension_numbers = #tpu.dot_dimension_numbers<[1], [1], [0], [0], [0, 0, 1, 0], [], []>} : vector<16x8xf32>, vector<4x8xf32>, vector<16x4xf32> -> vector<16x4xf32>
    %cst_9 = arith.constant dense<0xFF800000> : vector<16xf32>
    %10 = vector.multi_reduction <maximumf>, %9, %cst_9 [1] : vector<16x4xf32> to vector<16xf32>
    %11 = vector.shape_cast %10 : vector<16xf32> to vector<16x1xf32>
    %12 = vector.broadcast %11 : vector<16x1xf32> to vector<16x4xf32>
    %13 = arith.subf %9, %12 : vector<16x4xf32>
    %14 = math.exp %13 : vector<16x4xf32>
    %cst_10 = arith.constant dense<0.000000e+00> : vector<16xf32>
    %15 = vector.multi_reduction <add>, %14, %cst_10 [1] : vector<16x4xf32> to vector<16xf32>
    %16 = vector.shape_cast %15 : vector<16xf32> to vector<16x1xf32>
    %17 = tpu.reciprocal %16 {approx = true} : vector<16x1xf32> -> vector<16x1xf32>
    %18 = vector.broadcast %17 : vector<16x1xf32> to vector<16x4xf32>
    %19 = arith.mulf %14, %18 : vector<16x4xf32>
    %20 = vector.extract_strided_slice %5 {offsets = [0, 0], sizes = [4, 8], strides = [1, 1]} : vector<4x32xf32> to vector<4x8xf32>
    %cst_11 = arith.constant dense<0.000000e+00> : vector<16x8xf32>
    %21 = tpu.matmul %19, %20, %cst_11 {dimension_numbers = #tpu.dot_dimension_numbers<[1], [0], [0], [1], [0, 0, 1, 1], [], []>} : vector<16x4xf32>, vector<4x8xf32>, vector<16x8xf32> -> vector<16x8xf32>
    %c0_12 = arith.constant 0 : index
    %c0_13 = arith.constant 0 : index
    %22 = vector.load %arg4[%c0_12, %c0_13] : memref<32x32xf32, #tpu.memory_space<vmem>>, vector<8x32xf32>
    %cst_14 = arith.constant dense<0.000000e+00> : vector<16x32xf32>
    %23 = tpu.matmul %21, %22, %cst_14 {dimension_numbers = #tpu.dot_dimension_numbers<[1], [0], [0], [1], [0, 0, 1, 1], [], []>} : vector<16x8xf32>, vector<8x32xf32>, vector<16x32xf32> -> vector<16x32xf32>
    %24 = arith.addf %6, %23 : vector<16x32xf32>
    %25 = vector.extract_strided_slice %1 {offsets = [0, 8], sizes = [16, 8], strides = [1, 1]} : vector<16x32xf32> to vector<16x8xf32>
    %26 = vector.extract_strided_slice %3 {offsets = [0, 8], sizes = [4, 8], strides = [1, 1]} : vector<4x32xf32> to vector<4x8xf32>
    %cst_15 = arith.constant dense<0.000000e+00> : vector<16x4xf32>
    %27 = tpu.matmul %25, %26, %cst_15 {dimension_numbers = #tpu.dot_dimension_numbers<[1], [1], [0], [0], [0, 0, 1, 0], [], []>} : vector<16x8xf32>, vector<4x8xf32>, vector<16x4xf32> -> vector<16x4xf32>
    %cst_16 = arith.constant dense<0xFF800000> : vector<16xf32>
    %28 = vector.multi_reduction <maximumf>, %27, %cst_16 [1] : vector<16x4xf32> to vector<16xf32>
    %29 = vector.shape_cast %28 : vector<16xf32> to vector<16x1xf32>
    %30 = vector.broadcast %29 : vector<16x1xf32> to vector<16x4xf32>
    %31 = arith.subf %27, %30 : vector<16x4xf32>
    %32 = math.exp %31 : vector<16x4xf32>
    %cst_17 = arith.constant dense<0.000000e+00> : vector<16xf32>
    %33 = vector.multi_reduction <add>, %32, %cst_17 [1] : vector<16x4xf32> to vector<16xf32>
    %34 = vector.shape_cast %33 : vector<16xf32> to vector<16x1xf32>
    %35 = tpu.reciprocal %34 {approx = true} : vector<16x1xf32> -> vector<16x1xf32>
    %36 = vector.broadcast %35 : vector<16x1xf32> to vector<16x4xf32>
    %37 = arith.mulf %32, %36 : vector<16x4xf32>
    %38 = vector.extract_strided_slice %5 {offsets = [0, 8], sizes = [4, 8], strides = [1, 1]} : vector<4x32xf32> to vector<4x8xf32>
    %cst_18 = arith.constant dense<0.000000e+00> : vector<16x8xf32>
    %39 = tpu.matmul %37, %38, %cst_18 {dimension_numbers = #tpu.dot_dimension_numbers<[1], [0], [0], [1], [0, 0, 1, 1], [], []>} : vector<16x4xf32>, vector<4x8xf32>, vector<16x8xf32> -> vector<16x8xf32>
    %c8 = arith.constant 8 : index
    %c0_19 = arith.constant 0 : index
    %40 = vector.load %arg4[%c8, %c0_19] : memref<32x32xf32, #tpu.memory_space<vmem>>, vector<8x32xf32>
    %cst_20 = arith.constant dense<0.000000e+00> : vector<16x32xf32>
    %41 = tpu.matmul %39, %40, %cst_20 {dimension_numbers = #tpu.dot_dimension_numbers<[1], [0], [0], [1], [0, 0, 1, 1], [], []>} : vector<16x8xf32>, vector<8x32xf32>, vector<16x32xf32> -> vector<16x32xf32>
    %42 = arith.addf %24, %41 : vector<16x32xf32>
    %43 = vector.extract_strided_slice %1 {offsets = [0, 16], sizes = [16, 8], strides = [1, 1]} : vector<16x32xf32> to vector<16x8xf32>
    %44 = vector.extract_strided_slice %3 {offsets = [0, 16], sizes = [4, 8], strides = [1, 1]} : vector<4x32xf32> to vector<4x8xf32>
    %cst_21 = arith.constant dense<0.000000e+00> : vector<16x4xf32>
    %45 = tpu.matmul %43, %44, %cst_21 {dimension_numbers = #tpu.dot_dimension_numbers<[1], [1], [0], [0], [0, 0, 1, 0], [], []>} : vector<16x8xf32>, vector<4x8xf32>, vector<16x4xf32> -> vector<16x4xf32>
    %cst_22 = arith.constant dense<0xFF800000> : vector<16xf32>
    %46 = vector.multi_reduction <maximumf>, %45, %cst_22 [1] : vector<16x4xf32> to vector<16xf32>
    %47 = vector.shape_cast %46 : vector<16xf32> to vector<16x1xf32>
    %48 = vector.broadcast %47 : vector<16x1xf32> to vector<16x4xf32>
    %49 = arith.subf %45, %48 : vector<16x4xf32>
    %50 = math.exp %49 : vector<16x4xf32>
    %cst_23 = arith.constant dense<0.000000e+00> : vector<16xf32>
    %51 = vector.multi_reduction <add>, %50, %cst_23 [1] : vector<16x4xf32> to vector<16xf32>
    %52 = vector.shape_cast %51 : vector<16xf32> to vector<16x1xf32>
    %53 = tpu.reciprocal %52 {approx = true} : vector<16x1xf32> -> vector<16x1xf32>
    %54 = vector.broadcast %53 : vector<16x1xf32> to vector<16x4xf32>
    %55 = arith.mulf %50, %54 : vector<16x4xf32>
    %56 = vector.extract_strided_slice %5 {offsets = [0, 16], sizes = [4, 8], strides = [1, 1]} : vector<4x32xf32> to vector<4x8xf32>
    %cst_24 = arith.constant dense<0.000000e+00> : vector<16x8xf32>
    %57 = tpu.matmul %55, %56, %cst_24 {dimension_numbers = #tpu.dot_dimension_numbers<[1], [0], [0], [1], [0, 0, 1, 1], [], []>} : vector<16x4xf32>, vector<4x8xf32>, vector<16x8xf32> -> vector<16x8xf32>
    %c16 = arith.constant 16 : index
    %c0_25 = arith.constant 0 : index
    %58 = vector.load %arg4[%c16, %c0_25] : memref<32x32xf32, #tpu.memory_space<vmem>>, vector<8x32xf32>
    %cst_26 = arith.constant dense<0.000000e+00> : vector<16x32xf32>
    %59 = tpu.matmul %57, %58, %cst_26 {dimension_numbers = #tpu.dot_dimension_numbers<[1], [0], [0], [1], [0, 0, 1, 1], [], []>} : vector<16x8xf32>, vector<8x32xf32>, vector<16x32xf32> -> vector<16x32xf32>
    %60 = arith.addf %42, %59 : vector<16x32xf32>
    %61 = vector.extract_strided_slice %1 {offsets = [0, 24], sizes = [16, 8], strides = [1, 1]} : vector<16x32xf32> to vector<16x8xf32>
    %62 = vector.extract_strided_slice %3 {offsets = [0, 24], sizes = [4, 8], strides = [1, 1]} : vector<4x32xf32> to vector<4x8xf32>
    %cst_27 = arith.constant dense<0.000000e+00> : vector<16x4xf32>
    %63 = tpu.matmul %61, %62, %cst_27 {dimension_numbers = #tpu.dot_dimension_numbers<[1], [1], [0], [0], [0, 0, 1, 0], [], []>} : vector<16x8xf32>, vector<4x8xf32>, vector<16x4xf32> -> vector<16x4xf32>
    %cst_28 = arith.constant dense<0xFF800000> : vector<16xf32>
    %64 = vector.multi_reduction <maximumf>, %63, %cst_28 [1] : vector<16x4xf32> to vector<16xf32>
    %65 = vector.shape_cast %64 : vector<16xf32> to vector<16x1xf32>
    %66 = vector.broadcast %65 : vector<16x1xf32> to vector<16x4xf32>
    %67 = arith.subf %63, %66 : vector<16x4xf32>
    %68 = math.exp %67 : vector<16x4xf32>
    %cst_29 = arith.constant dense<0.000000e+00> : vector<16xf32>
    %69 = vector.multi_reduction <add>, %68, %cst_29 [1] : vector<16x4xf32> to vector<16xf32>
    %70 = vector.shape_cast %69 : vector<16xf32> to vector<16x1xf32>
    %71 = tpu.reciprocal %70 {approx = true} : vector<16x1xf32> -> vector<16x1xf32>
    %72 = vector.broadcast %71 : vector<16x1xf32> to vector<16x4xf32>
    %73 = arith.mulf %68, %72 : vector<16x4xf32>
    %74 = vector.extract_strided_slice %5 {offsets = [0, 24], sizes = [4, 8], strides = [1, 1]} : vector<4x32xf32> to vector<4x8xf32>
    %cst_30 = arith.constant dense<0.000000e+00> : vector<16x8xf32>
    %75 = tpu.matmul %73, %74, %cst_30 {dimension_numbers = #tpu.dot_dimension_numbers<[1], [0], [0], [1], [0, 0, 1, 1], [], []>} : vector<16x4xf32>, vector<4x8xf32>, vector<16x8xf32> -> vector<16x8xf32>
    %c24 = arith.constant 24 : index
    %c0_31 = arith.constant 0 : index
    %76 = vector.load %arg4[%c24, %c0_31] : memref<32x32xf32, #tpu.memory_space<vmem>>, vector<8x32xf32>
    %cst_32 = arith.constant dense<0.000000e+00> : vector<16x32xf32>
    %77 = tpu.matmul %75, %76, %cst_32 {dimension_numbers = #tpu.dot_dimension_numbers<[1], [0], [0], [1], [0, 0, 1, 1], [], []>} : vector<16x8xf32>, vector<8x32xf32>, vector<16x32xf32> -> vector<16x32xf32>
    %78 = arith.addf %60, %77 : vector<16x32xf32>
    %c0_33 = arith.constant 0 : index
    %c0_34 = arith.constant 0 : index
    %79 = vector.load %arg5[%c0_33, %c0_34] : memref<1x32xf32, #tpu.memory_space<vmem>>, vector<1x32xf32>
    %80 = vector.broadcast %79 : vector<1x32xf32> to vector<16x32xf32>
    %81 = arith.addf %78, %80 : vector<16x32xf32>
    %c0_35 = arith.constant 0 : index
    %c0_36 = arith.constant 0 : index
    %c0_37 = arith.constant 0 : index
    %82 = vector.load %arg6[%c0_35, %c0_36, %c0_37] : memref<1x16x32xf32, #tpu.memory_space<vmem>>, vector<1x16x32xf32>
    %83 = vector.shape_cast %82 : vector<1x16x32xf32> to vector<16x32xf32>
    %84 = arith.addf %81, %83 : vector<16x32xf32>
    %c0_38 = arith.constant 0 : index
    %c0_39 = arith.constant 0 : index
    %c0_40 = arith.constant 0 : index
    %85 = vector.load %arg7[%c0_38, %c0_39, %c0_40] : memref<1x16x32xf32, #tpu.memory_space<vmem>>, vector<1x16x32xf32>
    %86 = vector.shape_cast %85 : vector<1x16x32xf32> to vector<16x32xf32>
    %87 = vector.shape_cast %84 : vector<16x32xf32> to vector<1x16x32xf32>
    tpu.vector_store %arg7[%c0_38, %c0_39, %c0_40], %87 {strides = array<i32>} : memref<1x16x32xf32, #tpu.memory_space<vmem>>, vector<1x16x32xf32>,
    return
  }
  func.func @transform_0(%arg0: i32) -> (i32, i32, i32) {
    %c0_i32 = arith.constant 0 : i32
    %c0_i32_0 = arith.constant 0 : i32
    %c0_i32_1 = arith.constant 0 : i32
    return %arg0, %c0_i32, %c0_i32_0 : i32, i32, i32
  }
  func.func @transform_1(%arg0: i32) -> (i32, i32, i32) {
    %c0_i32 = arith.constant 0 : i32
    %c0_i32_0 = arith.constant 0 : i32
    %c0_i32_1 = arith.constant 0 : i32
    return %arg0, %c0_i32, %c0_i32_0 : i32, i32, i32
  }
  func.func @transform_2(%arg0: i32) -> (i32, i32, i32) {
    %c0_i32 = arith.constant 0 : i32
    %c0_i32_0 = arith.constant 0 : i32
    %c0_i32_1 = arith.constant 0 : i32
    return %arg0, %c0_i32, %c0_i32_0 : i32, i32, i32
  }
  func.func @transform_3(%arg0: i32) -> (i32, i32) {
    %c0_i32 = arith.constant 0 : i32
    %c0_i32_0 = arith.constant 0 : i32
    %c0_i32_1 = arith.constant 0 : i32
    return %c0_i32, %c0_i32_0 : i32, i32
  }
  func.func @transform_4(%arg0: i32) -> (i32, i32) {
    %c0_i32 = arith.constant 0 : i32
    %c0_i32_0 = arith.constant 0 : i32
    %c0_i32_1 = arith.constant 0 : i32
    return %c0_i32, %c0_i32_0 : i32, i32
  }
  func.func @transform_5(%arg0: i32) -> (i32, i32, i32) {
    %c0_i32 = arith.constant 0 : i32
    %c0_i32_0 = arith.constant 0 : i32
    %c0_i32_1 = arith.constant 0 : i32
    return %arg0, %c0_i32, %c0_i32_0 : i32, i32, i32
  }
  func.func @transform_6(%arg0: i32) -> (i32, i32, i32) {
    %c0_i32 = arith.constant 0 : i32
    %c0_i32_0 = arith.constant 0 : i32
    %c0_i32_1 = arith.constant 0 : i32
    return %arg0, %c0_i32, %c0_i32_0 : i32, i32, i32
  }
}

module attributes {stable_mosaic.version = 11 : i64} {
  func.func @_ln_kernel(%arg0: i32, %arg1: memref<32x32xf32, #tpu.memory_space<vmem>>, %arg2: memref<1x32xf32, #tpu.memory_space<vmem>>, %arg3: memref<1x32xf32, #tpu.memory_space<vmem>>, %arg4: memref<32x32xf32, #tpu.memory_space<vmem>>) attributes {dimension_semantics = [#tpu.dimension_semantics<parallel>], iteration_bounds = array<i64: 1>, scalar_prefetch = 0 : i64, scratch_operands = 0 : i64, tpu.core_type = #tpu.core_type<tc>, window_params = [{transform_indices = @transform_0, window_bounds = array<i64: 32, 32>}, {pipeline_mode = #tpu.pipeline_mode<synchronous>, transform_indices = @transform_1, window_bounds = array<i64: 1, 32>}, {pipeline_mode = #tpu.pipeline_mode<synchronous>, transform_indices = @transform_2, window_bounds = array<i64: 1, 32>}, {transform_indices = @transform_3, window_bounds = array<i64: 32, 32>}]} {
    %c0 = arith.constant 0 : index
    %c0_0 = arith.constant 0 : index
    %0 = vector.load %arg1[%c0, %c0_0] : memref<32x32xf32, #tpu.memory_space<vmem>>, vector<32x32xf32>
    %c0_1 = arith.constant 0 : index
    %c0_2 = arith.constant 0 : index
    %1 = vector.load %arg2[%c0_1, %c0_2] : memref<1x32xf32, #tpu.memory_space<vmem>>, vector<1x32xf32>
    %c0_3 = arith.constant 0 : index
    %c0_4 = arith.constant 0 : index
    %2 = vector.load %arg3[%c0_3, %c0_4] : memref<1x32xf32, #tpu.memory_space<vmem>>, vector<1x32xf32>
    %cst = arith.constant dense<0.000000e+00> : vector<32xf32>
    %3 = vector.multi_reduction <add>, %0, %cst [1] : vector<32x32xf32> to vector<32xf32>
    %4 = vector.shape_cast %3 : vector<32xf32> to vector<32x1xf32>
    %cst_5 = arith.constant 3.200000e+01 : f32
    %5 = vector.broadcast %cst_5 : f32 to vector<32x1xf32>
    %6 = arith.divf %4, %5 : vector<32x1xf32>
    %7 = vector.broadcast %6 : vector<32x1xf32> to vector<32x32xf32>
    %8 = arith.subf %0, %7 : vector<32x32xf32>
    %9 = arith.mulf %8, %8 : vector<32x32xf32>
    %cst_6 = arith.constant dense<0.000000e+00> : vector<32xf32>
    %10 = vector.multi_reduction <add>, %9, %cst_6 [1] : vector<32x32xf32> to vector<32xf32>
    %11 = vector.shape_cast %10 : vector<32xf32> to vector<32x1xf32>
    %cst_7 = arith.constant 3.200000e+01 : f32
    %12 = vector.broadcast %cst_7 : f32 to vector<32x1xf32>
    %13 = arith.divf %11, %12 : vector<32x1xf32>
    %cst_8 = arith.constant 9.99999974E-6 : f32
    %14 = vector.broadcast %cst_8 : f32 to vector<32x1xf32>
    %15 = arith.addf %13, %14 : vector<32x1xf32>
    %16 = math.rsqrt %15 : vector<32x1xf32>
    %17 = vector.broadcast %16 : vector<32x1xf32> to vector<32x32xf32>
    %18 = arith.mulf %8, %17 : vector<32x32xf32>
    %19 = vector.broadcast %1 : vector<1x32xf32> to vector<32x32xf32>
    %20 = arith.mulf %18, %19 : vector<32x32xf32>
    %21 = vector.broadcast %2 : vector<1x32xf32> to vector<32x32xf32>
    %22 = arith.addf %20, %21 : vector<32x32xf32>
    %c0_9 = arith.constant 0 : index
    %c0_10 = arith.constant 0 : index
    %23 = vector.load %arg4[%c0_9, %c0_10] : memref<32x32xf32, #tpu.memory_space<vmem>>, vector<32x32xf32>
    tpu.vector_store %arg4[%c0_9, %c0_10], %22 {strides = array<i32>} : memref<32x32xf32, #tpu.memory_space<vmem>>, vector<32x32xf32>,
    return
  }
  func.func @transform_0(%arg0: i32) -> (i32, i32) {
    %c0_i32 = arith.constant 0 : i32
    %c0_i32_0 = arith.constant 0 : i32
    return %arg0, %c0_i32 : i32, i32
  }
  func.func @transform_1(%arg0: i32) -> (i32, i32) {
    %c0_i32 = arith.constant 0 : i32
    %c0_i32_0 = arith.constant 0 : i32
    %c0_i32_1 = arith.constant 0 : i32
    return %c0_i32, %c0_i32_0 : i32, i32
  }
  func.func @transform_2(%arg0: i32) -> (i32, i32) {
    %c0_i32 = arith.constant 0 : i32
    %c0_i32_0 = arith.constant 0 : i32
    %c0_i32_1 = arith.constant 0 : i32
    return %c0_i32, %c0_i32_0 : i32, i32
  }
  func.func @transform_3(%arg0: i32) -> (i32, i32) {
    %c0_i32 = arith.constant 0 : i32
    %c0_i32_0 = arith.constant 0 : i32
    return %arg0, %c0_i32 : i32, i32
  }
}

module attributes {stable_mosaic.version = 11 : i64} {
  func.func @kernel(%arg0: i32, %arg1: memref<9x32x32xf32, #tpu.memory_space<vmem>>, %arg2: memref<9x2x32xf32, #tpu.memory_space<vmem>>, %arg3: memref<2x32xf32, #tpu.memory_space<vmem>>, %arg4: memref<2x32x32xf32, #tpu.memory_space<vmem>>, %arg5: memref<1x32xf32, #tpu.memory_space<vmem>>, %arg6: memref<32x32xf32, #tpu.memory_space<vmem>>, %arg7: memref<32x32xf32, #tpu.memory_space<vmem>>) attributes {dimension_semantics = [#tpu.dimension_semantics<parallel>], iteration_bounds = array<i64: 1>, scalar_prefetch = 0 : i64, scratch_operands = 0 : i64, tpu.core_type = #tpu.core_type<tc>, window_params = [{transform_indices = @transform_0, window_bounds = array<i64: 9, 32, 32>}, {pipeline_mode = #tpu.pipeline_mode<synchronous>, transform_indices = @transform_1, window_bounds = array<i64: 9, 2, 32>}, {pipeline_mode = #tpu.pipeline_mode<synchronous>, transform_indices = @transform_2, window_bounds = array<i64: 2, 32>}, {pipeline_mode = #tpu.pipeline_mode<synchronous>, transform_indices = @transform_3, window_bounds = array<i64: 2, 32, 32>}, {pipeline_mode = #tpu.pipeline_mode<synchronous>, transform_indices = @transform_4, window_bounds = array<i64: 1, 32>}, {transform_indices = @transform_5, window_bounds = array<i64: 32, 32>}, {transform_indices = @transform_6, window_bounds = array<i64: 32, 32>}]} {
    %cst = arith.constant 0.000000e+00 : f32
    %0 = vector.broadcast %cst : f32 to vector<32x32xf32>
    %cst_0 = arith.constant 0.000000e+00 : f32
    %1 = vector.broadcast %cst_0 : f32 to vector<32x32xf32>
    %c0 = arith.constant 0 : index
    %c0_1 = arith.constant 0 : index
    %c0_2 = arith.constant 0 : index
    %2 = vector.load %arg1[%c0, %c0_1, %c0_2] : memref<9x32x32xf32, #tpu.memory_space<vmem>>, vector<1x32x32xf32>
    %3 = vector.shape_cast %2 : vector<1x32x32xf32> to vector<32x32xf32>
    %c0_3 = arith.constant 0 : index
    %c0_4 = arith.constant 0 : index
    %c0_5 = arith.constant 0 : index
    %4 = vector.load %arg2[%c0_3, %c0_4, %c0_5] : memref<9x2x32xf32, #tpu.memory_space<vmem>>, vector<1x1x32xf32>
    %5 = vector.shape_cast %4 : vector<1x1x32xf32> to vector<1x32xf32>
    %6 = vector.broadcast %5 : vector<1x32xf32> to vector<32x32xf32>
    %7 = arith.mulf %3, %6 : vector<32x32xf32>
    %8 = arith.addf %1, %7 : vector<32x32xf32>
    %c1 = arith.constant 1 : index
    %c0_6 = arith.constant 0 : index
    %c0_7 = arith.constant 0 : index
    %9 = vector.load %arg1[%c1, %c0_6, %c0_7] : memref<9x32x32xf32, #tpu.memory_space<vmem>>, vector<1x32x32xf32>
    %10 = vector.shape_cast %9 : vector<1x32x32xf32> to vector<32x32xf32>
    %c1_8 = arith.constant 1 : index
    %c0_9 = arith.constant 0 : index
    %c0_10 = arith.constant 0 : index
    %11 = vector.load %arg2[%c1_8, %c0_9, %c0_10] : memref<9x2x32xf32, #tpu.memory_space<vmem>>, vector<1x1x32xf32>
    %12 = vector.shape_cast %11 : vector<1x1x32xf32> to vector<1x32xf32>
    %13 = vector.broadcast %12 : vector<1x32xf32> to vector<32x32xf32>
    %14 = arith.mulf %10, %13 : vector<32x32xf32>
    %15 = arith.addf %8, %14 : vector<32x32xf32>
    %c2 = arith.constant 2 : index
    %c0_11 = arith.constant 0 : index
    %c0_12 = arith.constant 0 : index
    %16 = vector.load %arg1[%c2, %c0_11, %c0_12] : memref<9x32x32xf32, #tpu.memory_space<vmem>>, vector<1x32x32xf32>
    %17 = vector.shape_cast %16 : vector<1x32x32xf32> to vector<32x32xf32>
    %c2_13 = arith.constant 2 : index
    %c0_14 = arith.constant 0 : index
    %c0_15 = arith.constant 0 : index
    %18 = vector.load %arg2[%c2_13, %c0_14, %c0_15] : memref<9x2x32xf32, #tpu.memory_space<vmem>>, vector<1x1x32xf32>
    %19 = vector.shape_cast %18 : vector<1x1x32xf32> to vector<1x32xf32>
    %20 = vector.broadcast %19 : vector<1x32xf32> to vector<32x32xf32>
    %21 = arith.mulf %17, %20 : vector<32x32xf32>
    %22 = arith.addf %15, %21 : vector<32x32xf32>
    %c3 = arith.constant 3 : index
    %c0_16 = arith.constant 0 : index
    %c0_17 = arith.constant 0 : index
    %23 = vector.load %arg1[%c3, %c0_16, %c0_17] : memref<9x32x32xf32, #tpu.memory_space<vmem>>, vector<1x32x32xf32>
    %24 = vector.shape_cast %23 : vector<1x32x32xf32> to vector<32x32xf32>
    %c3_18 = arith.constant 3 : index
    %c0_19 = arith.constant 0 : index
    %c0_20 = arith.constant 0 : index
    %25 = vector.load %arg2[%c3_18, %c0_19, %c0_20] : memref<9x2x32xf32, #tpu.memory_space<vmem>>, vector<1x1x32xf32>
    %26 = vector.shape_cast %25 : vector<1x1x32xf32> to vector<1x32xf32>
    %27 = vector.broadcast %26 : vector<1x32xf32> to vector<32x32xf32>
    %28 = arith.mulf %24, %27 : vector<32x32xf32>
    %29 = arith.addf %22, %28 : vector<32x32xf32>
    %c4 = arith.constant 4 : index
    %c0_21 = arith.constant 0 : index
    %c0_22 = arith.constant 0 : index
    %30 = vector.load %arg1[%c4, %c0_21, %c0_22] : memref<9x32x32xf32, #tpu.memory_space<vmem>>, vector<1x32x32xf32>
    %31 = vector.shape_cast %30 : vector<1x32x32xf32> to vector<32x32xf32>
    %c4_23 = arith.constant 4 : index
    %c0_24 = arith.constant 0 : index
    %c0_25 = arith.constant 0 : index
    %32 = vector.load %arg2[%c4_23, %c0_24, %c0_25] : memref<9x2x32xf32, #tpu.memory_space<vmem>>, vector<1x1x32xf32>
    %33 = vector.shape_cast %32 : vector<1x1x32xf32> to vector<1x32xf32>
    %34 = vector.broadcast %33 : vector<1x32xf32> to vector<32x32xf32>
    %35 = arith.mulf %31, %34 : vector<32x32xf32>
    %36 = arith.addf %29, %35 : vector<32x32xf32>
    %c5 = arith.constant 5 : index
    %c0_26 = arith.constant 0 : index
    %c0_27 = arith.constant 0 : index
    %37 = vector.load %arg1[%c5, %c0_26, %c0_27] : memref<9x32x32xf32, #tpu.memory_space<vmem>>, vector<1x32x32xf32>
    %38 = vector.shape_cast %37 : vector<1x32x32xf32> to vector<32x32xf32>
    %c5_28 = arith.constant 5 : index
    %c0_29 = arith.constant 0 : index
    %c0_30 = arith.constant 0 : index
    %39 = vector.load %arg2[%c5_28, %c0_29, %c0_30] : memref<9x2x32xf32, #tpu.memory_space<vmem>>, vector<1x1x32xf32>
    %40 = vector.shape_cast %39 : vector<1x1x32xf32> to vector<1x32xf32>
    %41 = vector.broadcast %40 : vector<1x32xf32> to vector<32x32xf32>
    %42 = arith.mulf %38, %41 : vector<32x32xf32>
    %43 = arith.addf %36, %42 : vector<32x32xf32>
    %c6 = arith.constant 6 : index
    %c0_31 = arith.constant 0 : index
    %c0_32 = arith.constant 0 : index
    %44 = vector.load %arg1[%c6, %c0_31, %c0_32] : memref<9x32x32xf32, #tpu.memory_space<vmem>>, vector<1x32x32xf32>
    %45 = vector.shape_cast %44 : vector<1x32x32xf32> to vector<32x32xf32>
    %c6_33 = arith.constant 6 : index
    %c0_34 = arith.constant 0 : index
    %c0_35 = arith.constant 0 : index
    %46 = vector.load %arg2[%c6_33, %c0_34, %c0_35] : memref<9x2x32xf32, #tpu.memory_space<vmem>>, vector<1x1x32xf32>
    %47 = vector.shape_cast %46 : vector<1x1x32xf32> to vector<1x32xf32>
    %48 = vector.broadcast %47 : vector<1x32xf32> to vector<32x32xf32>
    %49 = arith.mulf %45, %48 : vector<32x32xf32>
    %50 = arith.addf %43, %49 : vector<32x32xf32>
    %c7 = arith.constant 7 : index
    %c0_36 = arith.constant 0 : index
    %c0_37 = arith.constant 0 : index
    %51 = vector.load %arg1[%c7, %c0_36, %c0_37] : memref<9x32x32xf32, #tpu.memory_space<vmem>>, vector<1x32x32xf32>
    %52 = vector.shape_cast %51 : vector<1x32x32xf32> to vector<32x32xf32>
    %c7_38 = arith.constant 7 : index
    %c0_39 = arith.constant 0 : index
    %c0_40 = arith.constant 0 : index
    %53 = vector.load %arg2[%c7_38, %c0_39, %c0_40] : memref<9x2x32xf32, #tpu.memory_space<vmem>>, vector<1x1x32xf32>
    %54 = vector.shape_cast %53 : vector<1x1x32xf32> to vector<1x32xf32>
    %55 = vector.broadcast %54 : vector<1x32xf32> to vector<32x32xf32>
    %56 = arith.mulf %52, %55 : vector<32x32xf32>
    %57 = arith.addf %50, %56 : vector<32x32xf32>
    %c8 = arith.constant 8 : index
    %c0_41 = arith.constant 0 : index
    %c0_42 = arith.constant 0 : index
    %58 = vector.load %arg1[%c8, %c0_41, %c0_42] : memref<9x32x32xf32, #tpu.memory_space<vmem>>, vector<1x32x32xf32>
    %59 = vector.shape_cast %58 : vector<1x32x32xf32> to vector<32x32xf32>
    %c8_43 = arith.constant 8 : index
    %c0_44 = arith.constant 0 : index
    %c0_45 = arith.constant 0 : index
    %60 = vector.load %arg2[%c8_43, %c0_44, %c0_45] : memref<9x2x32xf32, #tpu.memory_space<vmem>>, vector<1x1x32xf32>
    %61 = vector.shape_cast %60 : vector<1x1x32xf32> to vector<1x32xf32>
    %62 = vector.broadcast %61 : vector<1x32xf32> to vector<32x32xf32>
    %63 = arith.mulf %59, %62 : vector<32x32xf32>
    %64 = arith.addf %57, %63 : vector<32x32xf32>
    %c0_46 = arith.constant 0 : index
    %c0_47 = arith.constant 0 : index
    %65 = vector.load %arg3[%c0_46, %c0_47] : memref<2x32xf32, #tpu.memory_space<vmem>>, vector<1x32xf32>
    %66 = vector.broadcast %65 : vector<1x32xf32> to vector<32x32xf32>
    %67 = arith.addf %64, %66 : vector<32x32xf32>
    %cst_48 = arith.constant 5.000000e-01 : f32
    %68 = vector.broadcast %cst_48 : f32 to vector<32x32xf32>
    %69 = arith.mulf %68, %67 : vector<32x32xf32>
    %cst_49 = arith.constant 0.707106769 : f32
    %70 = vector.broadcast %cst_49 : f32 to vector<32x32xf32>
    %71 = arith.mulf %67, %70 : vector<32x32xf32>
    %cst_50 = arith.constant 0.000000e+00 : f32
    %72 = vector.broadcast %cst_50 : f32 to vector<32x32xf32>
    %73 = arith.cmpf oge, %71, %72 : vector<32x32xf32>
    %cst_51 = arith.constant 1.000000e+00 : f32
    %cst_52 = arith.constant -1.000000e+00 : f32
    %74 = vector.broadcast %cst_51 : f32 to vector<32x32xf32>
    %75 = vector.broadcast %cst_52 : f32 to vector<32x32xf32>
    %76 = arith.select %73, %74, %75 : vector<32x32xi1>, vector<32x32xf32>
    %77 = math.absf %71 : vector<32x32xf32>
    %cst_53 = arith.constant 0.327591091 : f32
    %78 = vector.broadcast %cst_53 : f32 to vector<32x32xf32>
    %79 = arith.mulf %78, %77 : vector<32x32xf32>
    %cst_54 = arith.constant 1.000000e+00 : f32
    %80 = vector.broadcast %cst_54 : f32 to vector<32x32xf32>
    %81 = arith.addf %80, %79 : vector<32x32xf32>
    %cst_55 = arith.constant 1.000000e+00 : f32
    %82 = vector.broadcast %cst_55 : f32 to vector<32x32xf32>
    %83 = arith.divf %82, %81 : vector<32x32xf32>
    %cst_56 = arith.constant 1.06140542 : f32
    %84 = vector.broadcast %cst_56 : f32 to vector<32x32xf32>
    %85 = arith.mulf %84, %83 : vector<32x32xf32>
    %cst_57 = arith.constant -1.45315206 : f32
    %86 = vector.broadcast %cst_57 : f32 to vector<32x32xf32>
    %87 = arith.addf %85, %86 : vector<32x32xf32>
    %88 = arith.mulf %87, %83 : vector<32x32xf32>
    %cst_58 = arith.constant 1.42141378 : f32
    %89 = vector.broadcast %cst_58 : f32 to vector<32x32xf32>
    %90 = arith.addf %88, %89 : vector<32x32xf32>
    %91 = arith.mulf %90, %83 : vector<32x32xf32>
    %cst_59 = arith.constant -0.284496725 : f32
    %92 = vector.broadcast %cst_59 : f32 to vector<32x32xf32>
    %93 = arith.addf %91, %92 : vector<32x32xf32>
    %94 = arith.mulf %93, %83 : vector<32x32xf32>
    %cst_60 = arith.constant 0.254829586 : f32
    %95 = vector.broadcast %cst_60 : f32 to vector<32x32xf32>
    %96 = arith.addf %94, %95 : vector<32x32xf32>
    %97 = arith.mulf %96, %83 : vector<32x32xf32>
    %cst_61 = arith.constant 0.000000e+00 : f32
    %98 = vector.broadcast %cst_61 : f32 to vector<32x32xf32>
    %99 = arith.subf %98, %77 : vector<32x32xf32>
    %100 = arith.mulf %99, %77 : vector<32x32xf32>
    %101 = math.exp %100 : vector<32x32xf32>
    %102 = arith.mulf %97, %101 : vector<32x32xf32>
    %cst_62 = arith.constant 1.000000e+00 : f32
    %103 = vector.broadcast %cst_62 : f32 to vector<32x32xf32>
    %104 = arith.subf %103, %102 : vector<32x32xf32>
    %105 = arith.mulf %76, %104 : vector<32x32xf32>
    %cst_63 = arith.constant 1.000000e+00 : f32
    %106 = vector.broadcast %cst_63 : f32 to vector<32x32xf32>
    %107 = arith.addf %106, %105 : vector<32x32xf32>
    %108 = arith.mulf %69, %107 : vector<32x32xf32>
    %c0_64 = arith.constant 0 : index
    %c0_65 = arith.constant 0 : index
    %c0_66 = arith.constant 0 : index
    %109 = vector.load %arg4[%c0_64, %c0_65, %c0_66] : memref<2x32x32xf32, #tpu.memory_space<vmem>>, vector<1x32x32xf32>
    %110 = vector.shape_cast %109 : vector<1x32x32xf32> to vector<32x32xf32>
    %cst_67 = arith.constant dense<0.000000e+00> : vector<32x32xf32>
    %111 = tpu.matmul %108, %110, %cst_67 {dimension_numbers = #tpu.dot_dimension_numbers<[1], [0], [0], [1], [0, 0, 1, 1], [], []>} : vector<32x32xf32>, vector<32x32xf32>, vector<32x32xf32> -> vector<32x32xf32>
    %112 = arith.addf %0, %111 : vector<32x32xf32>
    %cst_68 = arith.constant 0.000000e+00 : f32
    %113 = vector.broadcast %cst_68 : f32 to vector<32x32xf32>
    %c0_69 = arith.constant 0 : index
    %c0_70 = arith.constant 0 : index
    %c0_71 = arith.constant 0 : index
    %114 = vector.load %arg1[%c0_69, %c0_70, %c0_71] : memref<9x32x32xf32, #tpu.memory_space<vmem>>, vector<1x32x32xf32>
    %115 = vector.shape_cast %114 : vector<1x32x32xf32> to vector<32x32xf32>
    %c0_72 = arith.constant 0 : index
    %c1_73 = arith.constant 1 : index
    %c0_74 = arith.constant 0 : index
    %116 = vector.load %arg2[%c0_72, %c1_73, %c0_74] : memref<9x2x32xf32, #tpu.memory_space<vmem>>, vector<1x1x32xf32>
    %117 = vector.shape_cast %116 : vector<1x1x32xf32> to vector<1x32xf32>
    %118 = vector.broadcast %117 : vector<1x32xf32> to vector<32x32xf32>
    %119 = arith.mulf %115, %118 : vector<32x32xf32>
    %120 = arith.addf %113, %119 : vector<32x32xf32>
    %c1_75 = arith.constant 1 : index
    %c0_76 = arith.constant 0 : index
    %c0_77 = arith.constant 0 : index
    %121 = vector.load %arg1[%c1_75, %c0_76, %c0_77] : memref<9x32x32xf32, #tpu.memory_space<vmem>>, vector<1x32x32xf32>
    %122 = vector.shape_cast %121 : vector<1x32x32xf32> to vector<32x32xf32>
    %c1_78 = arith.constant 1 : index
    %c1_79 = arith.constant 1 : index
    %c0_80 = arith.constant 0 : index
    %123 = vector.load %arg2[%c1_78, %c1_79, %c0_80] : memref<9x2x32xf32, #tpu.memory_space<vmem>>, vector<1x1x32xf32>
    %124 = vector.shape_cast %123 : vector<1x1x32xf32> to vector<1x32xf32>
    %125 = vector.broadcast %124 : vector<1x32xf32> to vector<32x32xf32>
    %126 = arith.mulf %122, %125 : vector<32x32xf32>
    %127 = arith.addf %120, %126 : vector<32x32xf32>
    %c2_81 = arith.constant 2 : index
    %c0_82 = arith.constant 0 : index
    %c0_83 = arith.constant 0 : index
    %128 = vector.load %arg1[%c2_81, %c0_82, %c0_83] : memref<9x32x32xf32, #tpu.memory_space<vmem>>, vector<1x32x32xf32>
    %129 = vector.shape_cast %128 : vector<1x32x32xf32> to vector<32x32xf32>
    %c2_84 = arith.constant 2 : index
    %c1_85 = arith.constant 1 : index
    %c0_86 = arith.constant 0 : index
    %130 = vector.load %arg2[%c2_84, %c1_85, %c0_86] : memref<9x2x32xf32, #tpu.memory_space<vmem>>, vector<1x1x32xf32>
    %131 = vector.shape_cast %130 : vector<1x1x32xf32> to vector<1x32xf32>
    %132 = vector.broadcast %131 : vector<1x32xf32> to vector<32x32xf32>
    %133 = arith.mulf %129, %132 : vector<32x32xf32>
    %134 = arith.addf %127, %133 : vector<32x32xf32>
    %c3_87 = arith.constant 3 : index
    %c0_88 = arith.constant 0 : index
    %c0_89 = arith.constant 0 : index
    %135 = vector.load %arg1[%c3_87, %c0_88, %c0_89] : memref<9x32x32xf32, #tpu.memory_space<vmem>>, vector<1x32x32xf32>
    %136 = vector.shape_cast %135 : vector<1x32x32xf32> to vector<32x32xf32>
    %c3_90 = arith.constant 3 : index
    %c1_91 = arith.constant 1 : index
    %c0_92 = arith.constant 0 : index
    %137 = vector.load %arg2[%c3_90, %c1_91, %c0_92] : memref<9x2x32xf32, #tpu.memory_space<vmem>>, vector<1x1x32xf32>
    %138 = vector.shape_cast %137 : vector<1x1x32xf32> to vector<1x32xf32>
    %139 = vector.broadcast %138 : vector<1x32xf32> to vector<32x32xf32>
    %140 = arith.mulf %136, %139 : vector<32x32xf32>
    %141 = arith.addf %134, %140 : vector<32x32xf32>
    %c4_93 = arith.constant 4 : index
    %c0_94 = arith.constant 0 : index
    %c0_95 = arith.constant 0 : index
    %142 = vector.load %arg1[%c4_93, %c0_94, %c0_95] : memref<9x32x32xf32, #tpu.memory_space<vmem>>, vector<1x32x32xf32>
    %143 = vector.shape_cast %142 : vector<1x32x32xf32> to vector<32x32xf32>
    %c4_96 = arith.constant 4 : index
    %c1_97 = arith.constant 1 : index
    %c0_98 = arith.constant 0 : index
    %144 = vector.load %arg2[%c4_96, %c1_97, %c0_98] : memref<9x2x32xf32, #tpu.memory_space<vmem>>, vector<1x1x32xf32>
    %145 = vector.shape_cast %144 : vector<1x1x32xf32> to vector<1x32xf32>
    %146 = vector.broadcast %145 : vector<1x32xf32> to vector<32x32xf32>
    %147 = arith.mulf %143, %146 : vector<32x32xf32>
    %148 = arith.addf %141, %147 : vector<32x32xf32>
    %c5_99 = arith.constant 5 : index
    %c0_100 = arith.constant 0 : index
    %c0_101 = arith.constant 0 : index
    %149 = vector.load %arg1[%c5_99, %c0_100, %c0_101] : memref<9x32x32xf32, #tpu.memory_space<vmem>>, vector<1x32x32xf32>
    %150 = vector.shape_cast %149 : vector<1x32x32xf32> to vector<32x32xf32>
    %c5_102 = arith.constant 5 : index
    %c1_103 = arith.constant 1 : index
    %c0_104 = arith.constant 0 : index
    %151 = vector.load %arg2[%c5_102, %c1_103, %c0_104] : memref<9x2x32xf32, #tpu.memory_space<vmem>>, vector<1x1x32xf32>
    %152 = vector.shape_cast %151 : vector<1x1x32xf32> to vector<1x32xf32>
    %153 = vector.broadcast %152 : vector<1x32xf32> to vector<32x32xf32>
    %154 = arith.mulf %150, %153 : vector<32x32xf32>
    %155 = arith.addf %148, %154 : vector<32x32xf32>
    %c6_105 = arith.constant 6 : index
    %c0_106 = arith.constant 0 : index
    %c0_107 = arith.constant 0 : index
    %156 = vector.load %arg1[%c6_105, %c0_106, %c0_107] : memref<9x32x32xf32, #tpu.memory_space<vmem>>, vector<1x32x32xf32>
    %157 = vector.shape_cast %156 : vector<1x32x32xf32> to vector<32x32xf32>
    %c6_108 = arith.constant 6 : index
    %c1_109 = arith.constant 1 : index
    %c0_110 = arith.constant 0 : index
    %158 = vector.load %arg2[%c6_108, %c1_109, %c0_110] : memref<9x2x32xf32, #tpu.memory_space<vmem>>, vector<1x1x32xf32>
    %159 = vector.shape_cast %158 : vector<1x1x32xf32> to vector<1x32xf32>
    %160 = vector.broadcast %159 : vector<1x32xf32> to vector<32x32xf32>
    %161 = arith.mulf %157, %160 : vector<32x32xf32>
    %162 = arith.addf %155, %161 : vector<32x32xf32>
    %c7_111 = arith.constant 7 : index
    %c0_112 = arith.constant 0 : index
    %c0_113 = arith.constant 0 : index
    %163 = vector.load %arg1[%c7_111, %c0_112, %c0_113] : memref<9x32x32xf32, #tpu.memory_space<vmem>>, vector<1x32x32xf32>
    %164 = vector.shape_cast %163 : vector<1x32x32xf32> to vector<32x32xf32>
    %c7_114 = arith.constant 7 : index
    %c1_115 = arith.constant 1 : index
    %c0_116 = arith.constant 0 : index
    %165 = vector.load %arg2[%c7_114, %c1_115, %c0_116] : memref<9x2x32xf32, #tpu.memory_space<vmem>>, vector<1x1x32xf32>
    %166 = vector.shape_cast %165 : vector<1x1x32xf32> to vector<1x32xf32>
    %167 = vector.broadcast %166 : vector<1x32xf32> to vector<32x32xf32>
    %168 = arith.mulf %164, %167 : vector<32x32xf32>
    %169 = arith.addf %162, %168 : vector<32x32xf32>
    %c8_117 = arith.constant 8 : index
    %c0_118 = arith.constant 0 : index
    %c0_119 = arith.constant 0 : index
    %170 = vector.load %arg1[%c8_117, %c0_118, %c0_119] : memref<9x32x32xf32, #tpu.memory_space<vmem>>, vector<1x32x32xf32>
    %171 = vector.shape_cast %170 : vector<1x32x32xf32> to vector<32x32xf32>
    %c8_120 = arith.constant 8 : index
    %c1_121 = arith.constant 1 : index
    %c0_122 = arith.constant 0 : index
    %172 = vector.load %arg2[%c8_120, %c1_121, %c0_122] : memref<9x2x32xf32, #tpu.memory_space<vmem>>, vector<1x1x32xf32>
    %173 = vector.shape_cast %172 : vector<1x1x32xf32> to vector<1x32xf32>
    %174 = vector.broadcast %173 : vector<1x32xf32> to vector<32x32xf32>
    %175 = arith.mulf %171, %174 : vector<32x32xf32>
    %176 = arith.addf %169, %175 : vector<32x32xf32>
    %c1_123 = arith.constant 1 : index
    %c0_124 = arith.constant 0 : index
    %177 = vector.load %arg3[%c1_123, %c0_124] : memref<2x32xf32, #tpu.memory_space<vmem>>, vector<1x32xf32>
    %178 = vector.broadcast %177 : vector<1x32xf32> to vector<32x32xf32>
    %179 = arith.addf %176, %178 : vector<32x32xf32>
    %cst_125 = arith.constant 5.000000e-01 : f32
    %180 = vector.broadcast %cst_125 : f32 to vector<32x32xf32>
    %181 = arith.mulf %180, %179 : vector<32x32xf32>
    %cst_126 = arith.constant 0.707106769 : f32
    %182 = vector.broadcast %cst_126 : f32 to vector<32x32xf32>
    %183 = arith.mulf %179, %182 : vector<32x32xf32>
    %cst_127 = arith.constant 0.000000e+00 : f32
    %184 = vector.broadcast %cst_127 : f32 to vector<32x32xf32>
    %185 = arith.cmpf oge, %183, %184 : vector<32x32xf32>
    %cst_128 = arith.constant 1.000000e+00 : f32
    %cst_129 = arith.constant -1.000000e+00 : f32
    %186 = vector.broadcast %cst_128 : f32 to vector<32x32xf32>
    %187 = vector.broadcast %cst_129 : f32 to vector<32x32xf32>
    %188 = arith.select %185, %186, %187 : vector<32x32xi1>, vector<32x32xf32>
    %189 = math.absf %183 : vector<32x32xf32>
    %cst_130 = arith.constant 0.327591091 : f32
    %190 = vector.broadcast %cst_130 : f32 to vector<32x32xf32>
    %191 = arith.mulf %190, %189 : vector<32x32xf32>
    %cst_131 = arith.constant 1.000000e+00 : f32
    %192 = vector.broadcast %cst_131 : f32 to vector<32x32xf32>
    %193 = arith.addf %192, %191 : vector<32x32xf32>
    %cst_132 = arith.constant 1.000000e+00 : f32
    %194 = vector.broadcast %cst_132 : f32 to vector<32x32xf32>
    %195 = arith.divf %194, %193 : vector<32x32xf32>
    %cst_133 = arith.constant 1.06140542 : f32
    %196 = vector.broadcast %cst_133 : f32 to vector<32x32xf32>
    %197 = arith.mulf %196, %195 : vector<32x32xf32>
    %cst_134 = arith.constant -1.45315206 : f32
    %198 = vector.broadcast %cst_134 : f32 to vector<32x32xf32>
    %199 = arith.addf %197, %198 : vector<32x32xf32>
    %200 = arith.mulf %199, %195 : vector<32x32xf32>
    %cst_135 = arith.constant 1.42141378 : f32
    %201 = vector.broadcast %cst_135 : f32 to vector<32x32xf32>
    %202 = arith.addf %200, %201 : vector<32x32xf32>
    %203 = arith.mulf %202, %195 : vector<32x32xf32>
    %cst_136 = arith.constant -0.284496725 : f32
    %204 = vector.broadcast %cst_136 : f32 to vector<32x32xf32>
    %205 = arith.addf %203, %204 : vector<32x32xf32>
    %206 = arith.mulf %205, %195 : vector<32x32xf32>
    %cst_137 = arith.constant 0.254829586 : f32
    %207 = vector.broadcast %cst_137 : f32 to vector<32x32xf32>
    %208 = arith.addf %206, %207 : vector<32x32xf32>
    %209 = arith.mulf %208, %195 : vector<32x32xf32>
    %cst_138 = arith.constant 0.000000e+00 : f32
    %210 = vector.broadcast %cst_138 : f32 to vector<32x32xf32>
    %211 = arith.subf %210, %189 : vector<32x32xf32>
    %212 = arith.mulf %211, %189 : vector<32x32xf32>
    %213 = math.exp %212 : vector<32x32xf32>
    %214 = arith.mulf %209, %213 : vector<32x32xf32>
    %cst_139 = arith.constant 1.000000e+00 : f32
    %215 = vector.broadcast %cst_139 : f32 to vector<32x32xf32>
    %216 = arith.subf %215, %214 : vector<32x32xf32>
    %217 = arith.mulf %188, %216 : vector<32x32xf32>
    %cst_140 = arith.constant 1.000000e+00 : f32
    %218 = vector.broadcast %cst_140 : f32 to vector<32x32xf32>
    %219 = arith.addf %218, %217 : vector<32x32xf32>
    %220 = arith.mulf %181, %219 : vector<32x32xf32>
    %c1_141 = arith.constant 1 : index
    %c0_142 = arith.constant 0 : index
    %c0_143 = arith.constant 0 : index
    %221 = vector.load %arg4[%c1_141, %c0_142, %c0_143] : memref<2x32x32xf32, #tpu.memory_space<vmem>>, vector<1x32x32xf32>
    %222 = vector.shape_cast %221 : vector<1x32x32xf32> to vector<32x32xf32>
    %cst_144 = arith.constant dense<0.000000e+00> : vector<32x32xf32>
    %223 = tpu.matmul %220, %222, %cst_144 {dimension_numbers = #tpu.dot_dimension_numbers<[1], [0], [0], [1], [0, 0, 1, 1], [], []>} : vector<32x32xf32>, vector<32x32xf32>, vector<32x32xf32> -> vector<32x32xf32>
    %224 = arith.addf %112, %223 : vector<32x32xf32>
    %c0_145 = arith.constant 0 : index
    %c0_146 = arith.constant 0 : index
    %225 = vector.load %arg5[%c0_145, %c0_146] : memref<1x32xf32, #tpu.memory_space<vmem>>, vector<1x32xf32>
    %226 = vector.broadcast %225 : vector<1x32xf32> to vector<32x32xf32>
    %227 = arith.addf %224, %226 : vector<32x32xf32>
    %c0_147 = arith.constant 0 : index
    %c0_148 = arith.constant 0 : index
    %228 = vector.load %arg6[%c0_147, %c0_148] : memref<32x32xf32, #tpu.memory_space<vmem>>, vector<32x32xf32>
    %229 = arith.addf %227, %228 : vector<32x32xf32>
    %c0_149 = arith.constant 0 : index
    %c0_150 = arith.constant 0 : index
    %230 = vector.load %arg7[%c0_149, %c0_150] : memref<32x32xf32, #tpu.memory_space<vmem>>, vector<32x32xf32>
    tpu.vector_store %arg7[%c0_149, %c0_150], %229 {strides = array<i32>} : memref<32x32xf32, #tpu.memory_space<vmem>>, vector<32x32xf32>,
    return
  }
  func.func @transform_0(%arg0: i32) -> (i32, i32, i32) {
    %c0_i32 = arith.constant 0 : i32
    %c0_i32_0 = arith.constant 0 : i32
    %c0_i32_1 = arith.constant 0 : i32
    return %c0_i32, %arg0, %c0_i32_0 : i32, i32, i32
  }
  func.func @transform_1(%arg0: i32) -> (i32, i32, i32) {
    %c0_i32 = arith.constant 0 : i32
    %c0_i32_0 = arith.constant 0 : i32
    %c0_i32_1 = arith.constant 0 : i32
    %c0_i32_2 = arith.constant 0 : i32
    return %c0_i32, %c0_i32_0, %c0_i32_1 : i32, i32, i32
  }
  func.func @transform_2(%arg0: i32) -> (i32, i32) {
    %c0_i32 = arith.constant 0 : i32
    %c0_i32_0 = arith.constant 0 : i32
    %c0_i32_1 = arith.constant 0 : i32
    return %c0_i32, %c0_i32_0 : i32, i32
  }
  func.func @transform_3(%arg0: i32) -> (i32, i32, i32) {
    %c0_i32 = arith.constant 0 : i32
    %c0_i32_0 = arith.constant 0 : i32
    %c0_i32_1 = arith.constant 0 : i32
    %c0_i32_2 = arith.constant 0 : i32
    return %c0_i32, %c0_i32_0, %c0_i32_1 : i32, i32, i32
  }
  func.func @transform_4(%arg0: i32) -> (i32, i32) {
    %c0_i32 = arith.constant 0 : i32
    %c0_i32_0 = arith.constant 0 : i32
    %c0_i32_1 = arith.constant 0 : i32
    return %c0_i32, %c0_i32_0 : i32, i32
  }
  func.func @transform_5(%arg0: i32) -> (i32, i32) {
    %c0_i32 = arith.constant 0 : i32
    %c0_i32_0 = arith.constant 0 : i32
    return %arg0, %c0_i32 : i32, i32
  }
  func.func @transform_6(%arg0: i32) -> (i32, i32) {
    %c0_i32 = arith.constant 0 : i32
    %c0_i32_0 = arith.constant 0 : i32
    return %arg0, %c0_i32 : i32, i32
  }
}

</mosaic_0001>

<bundles_post_ra>
// kernel: _lambda_.16
= control target key start
LH: loop header
LB: loop body
LE: loop exit
PB: predicated region body
PF: predicated region fallthrough
CT: control target
= control target key end

     0   :  { %v643_v0 = vmov 0.0   ;;  %vm127_vm0 = vcmask 1042432   ;;  %vm78_vm1 = vcmask 154624   ;;  %vm278_vm2 = vcmask 130048   ;;  %s1184_s1 = inlined_call_operand.vmem [shape: f32[147,16], index: 1, kind: input, shape index: {}]   ;;  %s1185_s0 = inlined_call_operand.vmem [shape: f32[128,147], index: 0, kind: input, shape index: {}]   ;;  %s1186_s2 = inlined_call_operand.vmem [shape: f32[1,16], index: 2, kind: input, shape index: {}]   ;;  %s1187_s3 = inlined_call_operand.vmem [shape: f32[1,16], index: 3, kind: input, shape index: {}]   ;;  %s1188_s4 = inlined_call_operand.vmem [shape: f32[1,16], index: 4, kind: input, shape index: {}]   ;;  %s1189_s5 = inlined_call_operand.vmem [shape: f32[128,16], index: 5, kind: output, shape index: {}]  }
   0x1   :  { %131 = vmatprep.subr.mxu0 %v643_v0  ;;  %572 = vmatprep.subr.mxu1 %v643_v0  ;;  %v67_v1 = vld [vmem:[%s1184_s1 + $0x78] sm:$0xff]  ;;  %v66_v2 = vld [vmem:[%s1184_s1 + $0x70] sm:$0xff]  ;;  %v65_v3 = vld [vmem:[%s1184_s1 + $0x68] sm:$0xff] }
   0x2   :  { %132 = vmatpush1.msra.mxu0 %v67_v1  ;;  %591 = vmatpush1.msra.mxu1 %v67_v1  ;;  %v64_v4 = vld [vmem:[%s1184_s1 + $0x60] sm:$0xff]  ;;  %v63_v5 = vld [vmem:[%s1184_s1 + $0x58] sm:$0xff]  ;;  %v62_v6 = vld [vmem:[%s1184_s1 + $0x50] sm:$0xff] }
   0x3   :  { %133 = vmatprep.subr.mxu0 %v643_v0  ;;  %573 = vmatprep.subr.mxu1 %v643_v0  ;;  %v61_v7 = vld [vmem:[%s1184_s1 + $0x48] sm:$0xff]  ;;  %v60_v8 = vld [vmem:[%s1184_s1 + $0x40] sm:$0xff]  ;;  %v59_v9 = vld [vmem:[%s1184_s1 + $0x38] sm:$0xff] }
   0x4   :  { %134 = vmatpush1.msra.mxu0 %v66_v2  ;;  %592 = vmatpush1.msra.mxu1 %v66_v2  ;;  %v58_v10 = vld [vmem:[%s1184_s1 + $0x30] sm:$0xff]  ;;  %v57_v11 = vld [vmem:[%s1184_s1 + $0x28] sm:$0xff]  ;;  %v56_v12 = vld [vmem:[%s1184_s1 + $0x20] sm:$0xff] }
   0x5   :  { %135 = vmatprep.subr.mxu0 %v643_v0  ;;  %574 = vmatprep.subr.mxu1 %v643_v0  ;;  %v55_v13 = vld [vmem:[%s1184_s1 + $0x18] sm:$0xff]  ;;  %v54_v14 = vld [vmem:[%s1184_s1 + $0x10] sm:$0xff]  ;;  %v53_v15 = vld [vmem:[%s1184_s1 + $0x8] sm:$0xff] }
   0x6   :  { %136 = vmatpush1.msra.mxu0 %v65_v3  ;;  %593 = vmatpush1.msra.mxu1 %v65_v3  ;;  %v52_v16 = vld [vmem:[%s1184_s1] sm:$0xff]  ;;  %v70_v17 = vld [vmem:[%s1184_s1 + $0x90] sm:$0x7]  ;;  %v69_v18 = vld [vmem:[%s1184_s1 + $0x88] sm:$0xff] }
   0x7   :  { %137 = vmatprep.subr.mxu0 %v643_v0  ;;  %575 = vmatprep.subr.mxu1 %v643_v0  ;;  %v68_v19 = vld [vmem:[%s1184_s1 + $0x80] sm:$0xff]  ;;  %v21_v20 = vld [vmem:[%s1185_s0 + $0x8] sm:$0xff]  ;;  %v23_v24 = vld [vmem:[%s1185_s0 + $0x18] sm:$0xff] }
   0x8   :  { %138 = vmatpush1.msra.mxu0 %v64_v4  ;;  %594 = vmatpush1.msra.mxu1 %v64_v4  ;;  %v37_v21 = vld [vmem:[%s1185_s0 + $0x88] sm:$0xff]  ;;  %v20_v22 = vld [vmem:[%s1185_s0] sm:$0xff]  ;;  %v39_v25 = vld [vmem:[%s1185_s0 + $0x98] sm:$0xff] }
   0x9   :  { %139 = vmatprep.subr.mxu0 %v643_v0  ;;  %576 = vmatprep.subr.mxu1 %v643_v0  ;;  %v36_v23 = vld [vmem:[%s1185_s0 + $0x80] sm:$0xff]  ;;  %v22_v26 = vld [vmem:[%s1185_s0 + $0x10] sm:$0xff]  ;;  %v25_v28 = vld [vmem:[%s1185_s0 + $0x28] sm:$0xff] }
   0xa   :  { %140 = vmatpush1.msra.mxu0 %v63_v5  ;;  %595 = vmatpush1.msra.mxu1 %v63_v5  ;;  %v38_v27 = vld [vmem:[%s1185_s0 + $0x90] sm:$0xff]  ;;  %v41_v29 = vld [vmem:[%s1185_s0 + $0xa8] sm:$0xff]  ;;  %v24_v30 = vld [vmem:[%s1185_s0 + $0x20] sm:$0xff] }
   0xb   :  { %141 = vmatprep.subr.mxu0 %v643_v0  ;;  %577 = vmatprep.subr.mxu1 %v643_v0  ;;  %v40_v31 = vld [vmem:[%s1185_s0 + $0xa0] sm:$0xff]  ;;  %v27_v32 = vld [vmem:[%s1185_s0 + $0x38] sm:$0xff]  ;;  %v26_v34 = vld [vmem:[%s1185_s0 + $0x30] sm:$0xff] }
   0xc   :  { %142 = vmatpush1.msra.mxu0 %v62_v6  ;;  %596 = vmatpush1.msra.mxu1 %v62_v6  ;;  %v43_v33 = vld [vmem:[%s1185_s0 + $0xb8] sm:$0xff]  ;;  %v42_v35 = vld [vmem:[%s1185_s0 + $0xb0] sm:$0xff]  ;;  %v29_v36 = vld [vmem:[%s1185_s0 + $0x48] sm:$0xff] }
   0xd   :  { %143 = vmatprep.subr.mxu0 %v643_v0  ;;  %578 = vmatprep.subr.mxu1 %v643_v0  ;;  %v45_v37 = vld [vmem:[%s1185_s0 + $0xc8] sm:$0xff]  ;;  %v28_v38 = vld [vmem:[%s1185_s0 + $0x40] sm:$0xff]  ;;  %v31_v40 = vld [vmem:[%s1185_s0 + $0x58] sm:$0xff] }
   0xe   :  { %144 = vmatpush1.msra.mxu0 %v61_v7  ;;  %597 = vmatpush1.msra.mxu1 %v61_v7  ;;  %v44_v39 = vld [vmem:[%s1185_s0 + $0xc0] sm:$0xff]  ;;  %v47_v41 = vld [vmem:[%s1185_s0 + $0xd8] sm:$0xff]  ;;  %v30_v42 = vld [vmem:[%s1185_s0 + $0x50] sm:$0xff] }
   0xf   :  { %145 = vmatprep.subr.mxu0 %v643_v0  ;;  %579 = vmatprep.subr.mxu1 %v643_v0  ;;  %v46_v43 = vld [vmem:[%s1185_s0 + $0xd0] sm:$0xff]  ;;  %v33_v44 = vld [vmem:[%s1185_s0 + $0x68] sm:$0xff]  ;;  %v32_v46 = vld [vmem:[%s1185_s0 + $0x60] sm:$0xff] }
  0x10   :  { %146 = vmatpush1.msra.mxu0 %v60_v8  ;;  %598 = vmatpush1.msra.mxu1 %v60_v8  ;;  %v49_v45 = vld [vmem:[%s1185_s0 + $0xe8] sm:$0xff]  ;;  %v48_v47 = vld [vmem:[%s1185_s0 + $0xe0] sm:$0xff]  ;;  %v35_v48 = vld [vmem:[%s1185_s0 + $0x78] sm:$0xff] }
  0x11   :  { %147 = vmatprep.subr.mxu0 %v643_v0  ;;  %580 = vmatprep.subr.mxu1 %v643_v0  ;;  %v51_v49 = vld [vmem:[%s1185_s0 + $0xf8] sm:$0xff]  ;;  %v34_v50 = vld [vmem:[%s1185_s0 + $0x70] sm:$0xff]  ;;  %v884_v52 = vld [vmem:[%s1186_s2] ss:$0 sm:$0xff] }
  0x12   :  { %148 = vmatpush1.msra.mxu0 %v59_v9  ;;  %599 = vmatpush1.msra.mxu1 %v59_v9  ;;  %v50_v51 = vld [vmem:[%s1185_s0 + $0xf0] sm:$0xff] }
  0x13   :  { %149 = vmatprep.subr.mxu0 %v643_v0  ;;  %581 = vmatprep.subr.mxu1 %v643_v0 }
  0x14   :  { %150 = vmatpush1.msra.mxu0 %v58_v10  ;;  %600 = vmatpush1.msra.mxu1 %v58_v10 }
  0x15   :  { %151 = vmatprep.subr.mxu0 %v643_v0  ;;  %582 = vmatprep.subr.mxu1 %v643_v0 }
  0x16   :  { %152 = vmatpush1.msra.mxu0 %v57_v11  ;;  %601 = vmatpush1.msra.mxu1 %v57_v11 }
  0x17   :  { %153 = vmatprep.subr.mxu0 %v643_v0  ;;  %583 = vmatprep.subr.mxu1 %v643_v0 }
  0x18   :  { %154 = vmatpush1.msra.mxu0 %v56_v12  ;;  %602 = vmatpush1.msra.mxu1 %v56_v12 }
  0x19   :  { %155 = vmatprep.subr.mxu0 %v643_v0  ;;  %584 = vmatprep.subr.mxu1 %v643_v0 }
  0x1a   :  { %156 = vmatpush1.msra.mxu0 %v55_v13  ;;  %603 = vmatpush1.msra.mxu1 %v55_v13 }
  0x1b   :  { %157 = vmatprep.subr.mxu0 %v643_v0  ;;  %585 = vmatprep.subr.mxu1 %v643_v0 }
  0x1c   :  { %158 = vmatpush1.msra.mxu0 %v54_v14  ;;  %604 = vmatpush1.msra.mxu1 %v54_v14 }
  0x1d   :  { %159 = vmatprep.subr.mxu0 %v643_v0  ;;  %586 = vmatprep.subr.mxu1 %v643_v0 }
  0x1e   :  { %160 = vmatpush1.msra.mxu0 %v53_v15  ;;  %605 = vmatpush1.msra.mxu1 %v53_v15 }
  0x1f   :  { %161 = vmatprep.subr.mxu0 %v643_v0  ;;  %587 = vmatprep.subr.mxu1 %v643_v0 }
  0x20   :  { %162 = vmatpush1.msra.mxu0 %v52_v16  ;;  %606 = vmatpush1.msra.mxu1 %v52_v16 }
  0x21   :  { %189 = vmatprep.subr.mxu0 %v643_v0  ;;  %588 = vmatprep.subr.mxu1 %v643_v0 }
  0x22   :  { %553 = vmatpush2.msk.msra.mxu0 %vm127_vm0, %v70_v17  ;;  %607 = vmatpush2.msk.msra.mxu1 %vm127_vm0, %v70_v17 }
  0x23   :  { %191 = vmatprep.subr.mxu0 %v643_v0  ;;  %589 = vmatprep.subr.mxu1 %v643_v0 }
  0x24   :  { %192 = vmatpush2.msra.mxu0 %v69_v18  ;;  %608 = vmatpush2.msra.mxu1 %v69_v18 }
  0x25   :  { %193 = vmatprep.subr.mxu0 %v643_v0  ;;  %590 = vmatprep.subr.mxu1 %v643_v0 }
  0x26   :  { %194 = vmatpush2.msra.mxu0 %v68_v19  ;;  %609 = vmatpush2.msra.mxu1 %v68_v19 }
  0x27   :  { %554 = vmatprep.mubr.msk.f32.mxu0 %vm78_vm1, %v21_v20  ;;  %562 = vmatprep.mubr.msk.f32.mxu1 %vm78_vm1, %v37_v21 }
  0x28   :  { %196 = vmatmul.mubr.f32.vlgmr.msra.gmra.mxu0 %v20_v22  ;;  %236 = vmatmul.mubr.f32.vlgmr.msra.gmra.mxu1 %v36_v23 }
  0x29   :  { %555 = vmatprep.mubr.msk.f32.mxu0 %vm78_vm1, %v23_v24  ;;  %563 = vmatprep.mubr.msk.f32.mxu1 %vm78_vm1, %v39_v25 }
  0x2c   :  { %201 = vmatmul.mubr.f32.gmra.mxu0 %v22_v26  ;;  %241 = vmatmul.mubr.f32.gmra.mxu1 %v38_v27 }
  0x2d   :  { %556 = vmatprep.mubr.msk.f32.mxu0 %vm78_vm1, %v25_v28  ;;  %564 = vmatprep.mubr.msk.f32.mxu1 %vm78_vm1, %v41_v29 }
  0x30   :  { %206 = vmatmul.mubr.f32.gmra.mxu0 %v24_v30  ;;  %246 = vmatmul.mubr.f32.gmra.mxu1 %v40_v31 }
  0x31   :  { %557 = vmatprep.mubr.msk.f32.mxu0 %vm78_vm1, %v27_v32  ;;  %565 = vmatprep.mubr.msk.f32.mxu1 %vm78_vm1, %v43_v33 }
  0x34   :  { %211 = vmatmul.mubr.f32.gmra.mxu0 %v26_v34  ;;  %251 = vmatmul.mubr.f32.gmra.mxu1 %v42_v35 }
  0x35   :  { %558 = vmatprep.mubr.msk.f32.mxu0 %vm78_vm1, %v29_v36  ;;  %566 = vmatprep.mubr.msk.f32.mxu1 %vm78_vm1, %v45_v37 }
  0x38   :  { %216 = vmatmul.mubr.f32.gmra.mxu0 %v28_v38  ;;  %256 = vmatmul.mubr.f32.gmra.mxu1 %v44_v39 }
  0x39   :  { %559 = vmatprep.mubr.msk.f32.mxu0 %vm78_vm1, %v31_v40  ;;  %567 = vmatprep.mubr.msk.f32.mxu1 %vm78_vm1, %v47_v41 }
  0x3c   :  { %221 = vmatmul.mubr.f32.gmra.mxu0 %v30_v42  ;;  %261 = vmatmul.mubr.f32.gmra.mxu1 %v46_v43 }
  0x3d   :  { %560 = vmatprep.mubr.msk.f32.mxu0 %vm78_vm1, %v33_v44  ;;  %568 = vmatprep.mubr.msk.f32.mxu1 %vm78_vm1, %v49_v45 }
  0x40   :  { %226 = vmatmul.mubr.f32.gmra.mxu0 %v32_v46  ;;  %266 = vmatmul.mubr.f32.gmra.mxu1 %v48_v47 }
  0x41   :  { %561 = vmatprep.mubr.msk.f32.mxu0 %vm78_vm1, %v35_v48  ;;  %569 = vmatprep.mubr.msk.f32.mxu1 %vm78_vm1, %v51_v49 }
  0x44   :  { %231 = vmatmul.mubr.f32.gmra.mxu0 %v34_v50  ;;  %271 = vmatmul.mubr.f32.gmra.mxu1 %v50_v51 }
  0xe8   :  { %v197_v53 = vpop.f32.mrf.mxu0  ;;  %v237_v54 = vpop.f32.mrf.mxu1 }
  0xe9   :  { %v887_v55 = vadd.f32 %v884_v52, %v197_v53  ;;  %v890_v56 = vadd.f32 %v884_v52, %v237_v54 }
  0xea   :  { %v199_v57 = vpop.f32.mrf.mxu0  ;;  %v239_v58 = vpop.f32.mrf.mxu1 }
  0xeb   :  { %v279_v59 = vsel %vm278_vm2, %v887_v55, 0.0  ;;  %v303_v0 = vsel %vm278_vm2, %v890_v56, 0.0 }
  0xec   :  { %v202_v60 = vpop.f32.mrf.mxu0  ;;  %v242_v61 = vpop.f32.mrf.mxu1  ;;  %280 = vadd.xlane.f32.xlu0 %v279_v59 }
  0xed   :  { %v895_v62 = vadd.f32 %v884_v52, %v202_v60  ;;  %v898_v63 = vadd.f32 %v884_v52, %v242_v61 }
  0xee   :  { %v204_v1 = vpop.f32.mrf.mxu0  ;;  %v244_v2 = vpop.f32.mrf.mxu1 }
  0xef   :  { %v306_v3 = vsel %vm278_vm2, %v898_v63, 0.0  ;;  %v282_v8 = vsel %vm278_vm2, %v895_v62, 0.0 }
  0xf0   :  { %307 = vadd.xlane.f32.xlu1 %v306_v3  ;;  %v207_v4 = vpop.f32.mrf.mxu0  ;;  %304 = vadd.xlane.f32.xlu0 %v303_v0  ;;  %v247_v5 = vpop.f32.mrf.mxu1 }
  0xf1   :  { %v905_v6 = vadd.f32 %v884_v52, %v207_v4  ;;  %v908_v7 = vadd.f32 %v884_v52, %v247_v5 }
  0xf2   :  { %v209_v9 = vpop.f32.mrf.mxu0  ;;  %v249_v10 = vpop.f32.mrf.mxu1 }
  0xf3   :  { %v285_v11 = vsel %vm278_vm2, %v905_v6, 0.0  ;;  %v309_v16 = vsel %vm278_vm2, %v908_v7, 0.0 }
  0xf4   :  { %v212_v12 = vpop.f32.mrf.mxu0  ;;  %286 = vadd.xlane.f32.xlu1 %v285_v11  ;;  %283 = vadd.xlane.f32.xlu0 %v282_v8  ;;  %v252_v13 = vpop.f32.mrf.mxu1 }
  0xf5   :  { %v915_v14 = vadd.f32 %v884_v52, %v212_v12  ;;  %v918_v15 = vadd.f32 %v884_v52, %v252_v13 }
  0xf6   :  { %v214_v17 = vpop.f32.mrf.mxu0  ;;  %v254_v18 = vpop.f32.mrf.mxu1 }
  0xf7   :  { %v288_v19 = vsel %vm278_vm2, %v915_v14, 0.0  ;;  %v312_v24 = vsel %vm278_vm2, %v918_v15, 0.0 }
  0xf8   :  { %v217_v20 = vpop.f32.mrf.mxu0  ;;  %289 = vadd.xlane.f32.xlu1 %v288_v19  ;;  %310 = vadd.xlane.f32.xlu0 %v309_v16  ;;  %v257_v21 = vpop.f32.mrf.mxu1 }
  0xf9   :  { %v925_v22 = vadd.f32 %v884_v52, %v217_v20  ;;  %v928_v23 = vadd.f32 %v884_v52, %v257_v21 }
  0xfa   :  { %v219_v25 = vpop.f32.mrf.mxu0  ;;  %v259_v26 = vpop.f32.mrf.mxu1 }
  0xfb   :  { %v291_v27 = vsel %vm278_vm2, %v925_v22, 0.0  ;;  %v315_v32 = vsel %vm278_vm2, %v928_v23, 0.0 }
  0xfc   :  { %v222_v28 = vpop.f32.mrf.mxu0  ;;  %313 = vadd.xlane.f32.xlu1 %v312_v24  ;;  %292 = vadd.xlane.f32.xlu0 %v291_v27  ;;  %v262_v29 = vpop.f32.mrf.mxu1 }
  0xfd   :  { %v935_v30 = vadd.f32 %v884_v52, %v222_v28  ;;  %v938_v31 = vadd.f32 %v884_v52, %v262_v29 }
  0xfe   :  { %v224_v33 = vpop.f32.mrf.mxu0  ;;  %v264_v34 = vpop.f32.mrf.mxu1 }
  0xff   :  { %v294_v35 = vsel %vm278_vm2, %v935_v30, 0.0  ;;  %v318_v40 = vsel %vm278_vm2, %v938_v31, 0.0 }
 0x100   :  { %v227_v36 = vpop.f32.mrf.mxu0  ;;  %295 = vadd.xlane.f32.xlu1 %v294_v35  ;;  %316 = vadd.xlane.f32.xlu0 %v315_v32  ;;  %v267_v37 = vpop.f32.mrf.mxu1 }
 0x101   :  { %v945_v38 = vadd.f32 %v884_v52, %v227_v36  ;;  %v948_v39 = vadd.f32 %v884_v52, %v267_v37 }
 0x102   :  { %v229_v41 = vpop.f32.mrf.mxu0  ;;  %v269_v42 = vpop.f32.mrf.mxu1 }
 0x103   :  { %v297_v43 = vsel %vm278_vm2, %v945_v38, 0.0  ;;  %v321_v48 = vsel %vm278_vm2, %v948_v39, 0.0 }
 0x104   :  { %v232_v44 = vpop.f32.mrf.mxu0  ;;  %319 = vadd.xlane.f32.xlu1 %v318_v40  ;;  %298 = vadd.xlane.f32.xlu0 %v297_v43  ;;  %v272_v45 = vpop.f32.mrf.mxu1 }
 0x105   :  { %v955_v46 = vadd.f32 %v884_v52, %v232_v44  ;;  %v958_v47 = vadd.f32 %v884_v52, %v272_v45 }
 0x106   :  { %v234_v49 = vpop.f32.mrf.mxu0  ;;  %v274_v50 = vpop.f32.mrf.mxu1 }
 0x107   :  { %v300_v51 = vsel %vm278_vm2, %v955_v46, 0.0  ;;  %v324_v53 = vsel %vm278_vm2, %v958_v47, 0.0 }
 0x108   :  { %301 = vadd.xlane.f32.xlu1 %v300_v51  ;;  %322 = vadd.xlane.f32.xlu0 %v321_v48 }
 0x10c   :  { %325 = vadd.xlane.f32.xlu1 %v324_v53 }
 0x175   :  { %v281_v54 = vpop.xlane.xlu0 %280 }
 0x176   :  { %v328_v57 = vmul.f32 0.0625, %v281_v54 }
 0x178   :  { %v967_v58 = vsub.f32 %v887_v55, %v328_v57 }
 0x179   :  { %v308_v52 = vpop.xlane.xlu1 %307  ;;  %v305_v59 = vpop.xlane.xlu0 %304 }
 0x17a   :  { %v336_v60 = vmul.f32 0.0625, %v305_v59  ;;  %v360_v61 = vmul.f32 %v967_v58, %v967_v58  ;;  %v337_v0 = vmul.f32 0.0625, %v308_v52 }
 0x17c   :  { %v972_v1 = vsub.f32 %v890_v56, %v336_v60  ;;  %v376_v2 = vsel %vm278_vm2, %v360_v61, 0.0  ;;  %v978_v9 = vsub.f32 %v898_v63, %v337_v0 }
 0x17d   :  { %v287_v3 = vpop.xlane.xlu1 %286  ;;  %377 = vadd.xlane.f32.xlu0 %v376_v2  ;;  %v284_v4 = vpop.xlane.xlu0 %283 }
 0x17e   :  { %v330_v5 = vmul.f32 0.0625, %v287_v3  ;;  %v329_v8 = vmul.f32 0.0625, %v284_v4  ;;  %v368_v55 = vmul.f32 %v972_v1, %v972_v1 }
 0x180   :  { %v981_v10 = vsub.f32 %v905_v6, %v330_v5  ;;  %v984_v11 = vsub.f32 %v895_v62, %v329_v8  ;;  %v400_v56 = vsel %vm278_vm2, %v368_v55, 0.0  ;;  %v369_v6 = vmul.f32 %v978_v9, %v978_v9 }
 0x181   :  { %v290_v12 = vpop.xlane.xlu1 %289  ;;  %401 = vadd.xlane.f32.xlu0 %v400_v56  ;;  %v311_v13 = vpop.xlane.xlu0 %310 }
 0x182   :  { %v331_v16 = vmul.f32 0.0625, %v290_v12  ;;  %v338_v17 = vmul.f32 0.0625, %v311_v13  ;;  %v362_v18 = vmul.f32 %v981_v10, %v981_v10  ;;  %v361_v63 = vmul.f32 %v984_v11, %v984_v11 }
 0x183   :  { %v403_v32 = vsel %vm278_vm2, %v369_v6, 0.0 }
 0x184   :  { %v994_v19 = vsub.f32 %v915_v14, %v331_v16  ;;  %v997_v62 = vsub.f32 %v908_v7, %v338_v17  ;;  %v382_v20 = vsel %vm278_vm2, %v362_v18, 0.0  ;;  %v379_v21 = vsel %vm278_vm2, %v361_v63, 0.0 }
 0x185   :  { %v314_v24 = vpop.xlane.xlu1 %313  ;;  %383 = vadd.xlane.f32.xlu0 %v382_v20  ;;  %380 = vadd.xlane.f32.xlu1 %v379_v21  ;;  %v293_v25 = vpop.xlane.xlu0 %292 }
 0x186   :  { %v339_v26 = vmul.f32 0.0625, %v314_v24  ;;  %v332_v27 = vmul.f32 0.0625, %v293_v25  ;;  %v370_v28 = vmul.f32 %v997_v62, %v997_v62  ;;  %v363_v14 = vmul.f32 %v994_v19, %v994_v19 }
 0x188   :  { %v1006_v29 = vsub.f32 %v918_v15, %v339_v26  ;;  %v1009_v7 = vsub.f32 %v925_v22, %v332_v27  ;;  %v406_v33 = vsel %vm278_vm2, %v370_v28, 0.0  ;;  %v385_v41 = vsel %vm278_vm2, %v363_v14, 0.0 }
 0x189   :  { %v296_v34 = vpop.xlane.xlu1 %295  ;;  %404 = vadd.xlane.f32.xlu1 %v403_v32  ;;  %407 = vadd.xlane.f32.xlu0 %v406_v33  ;;  %v317_v35 = vpop.xlane.xlu0 %316 }
 0x18a   :  { %v333_v36 = vmul.f32 0.0625, %v296_v34  ;;  %v340_v37 = vmul.f32 0.0625, %v317_v35  ;;  %v364_v40 = vmul.f32 %v1009_v7, %v1009_v7  ;;  %v371_v43 = vmul.f32 %v1006_v29, %v1006_v29 }
 0x18c   :  { %v1017_v15 = vsub.f32 %v935_v30, %v333_v36  ;;  %v1020_v22 = vsub.f32 %v928_v23, %v340_v37  ;;  %v388_v42 = vsel %vm278_vm2, %v364_v40, 0.0  ;;  %v409_v53 = vsel %vm278_vm2, %v371_v43, 0.0 }
 0x18d   :  { %v320_v44 = vpop.xlane.xlu1 %319  ;;  %386 = vadd.xlane.f32.xlu1 %v385_v41  ;;  %389 = vadd.xlane.f32.xlu0 %v388_v42  ;;  %v299_v45 = vpop.xlane.xlu0 %298 }
 0x18e   :  { %v341_v48 = vmul.f32 0.0625, %v320_v44  ;;  %v334_v49 = vmul.f32 0.0625, %v299_v45  ;;  %v372_v50 = vmul.f32 %v1020_v22, %v1020_v22  ;;  %v365_v30 = vmul.f32 %v1017_v15, %v1017_v15  ;;  %v1065_v44 = vld [vmem:[%s1187_s3] ss:$0 sm:$0xff] }
 0x190   :  { %v1030_v23 = vsub.f32 %v938_v31, %v341_v48  ;;  %v1033_v51 = vsub.f32 %v945_v38, %v334_v49  ;;  %v412_v54 = vsel %vm278_vm2, %v372_v50, 0.0  ;;  %v391_v0 = vsel %vm278_vm2, %v365_v30, 0.0  ;;  %v1071_v50 = vld [vmem:[%s1188_s4] ss:$0 sm:$0xff] }
 0x191   :  { %v302_v57 = vpop.xlane.xlu1 %301  ;;  %410 = vadd.xlane.f32.xlu1 %v409_v53  ;;  %413 = vadd.xlane.f32.xlu0 %v412_v54  ;;  %v323_v52 = vpop.xlane.xlu0 %322 }
 0x192   :  { %v335_v59 = vmul.f32 0.0625, %v302_v57  ;;  %v342_v60 = vmul.f32 0.0625, %v323_v52  ;;  %v366_v61 = vmul.f32 %v1033_v51, %v1033_v51  ;;  %v373_v3 = vmul.f32 %v1030_v23, %v1030_v23 }
 0x194   :  { %v1041_v31 = vsub.f32 %v955_v46, %v335_v59  ;;  %v1044_v38 = vsub.f32 %v948_v39, %v342_v60  ;;  %v394_v2 = vsel %vm278_vm2, %v366_v61, 0.0  ;;  %v415_v46 = vsel %vm278_vm2, %v373_v3, 0.0 }
 0x195   :  { %v326_v4 = vpop.xlane.xlu1 %325  ;;  %392 = vadd.xlane.f32.xlu1 %v391_v0  ;;  %395 = vadd.xlane.f32.xlu0 %v394_v2 }
 0x196   :  { %v343_v5 = vmul.f32 0.0625, %v326_v4  ;;  %v374_v8 = vmul.f32 %v1044_v38, %v1044_v38  ;;  %v367_v56 = vmul.f32 %v1041_v31, %v1041_v31 }
 0x198   :  { %v1052_v55 = vsub.f32 %v958_v47, %v343_v5  ;;  %v418_v39 = vsel %vm278_vm2, %v374_v8, 0.0  ;;  %v397_v12 = vsel %vm278_vm2, %v367_v56, 0.0 }
 0x199   :  { %416 = vadd.xlane.f32.xlu1 %v415_v46  ;;  %419 = vadd.xlane.f32.xlu0 %v418_v39 }
 0x19a   :  { %v375_v13 = vmul.f32 %v1052_v55, %v1052_v55 }
 0x19c   :  { %v421_v16 = vsel %vm278_vm2, %v375_v13, 0.0 }
 0x19d   :  { %398 = vadd.xlane.f32.xlu1 %v397_v12 }
 0x1a1   :  { %422 = vadd.xlane.f32.xlu1 %v421_v16 }
 0x206   :  { %v378_v47 = vpop.xlane.xlu0 %377 }
 0x207   :  { %v424_v17 = vmul.f32 0.0625, %v378_v47 }
 0x209   :  { %v440_v18 = vadd.f32 1e-05, %v424_v17 }
 0x20a   :  { %v402_v63 = vpop.xlane.xlu0 %401 }
 0x20b   :  { %611 = vrsqrt.f32 %v440_v18  ;;  %v432_v6 = vmul.f32 0.0625, %v402_v63 }
 0x20d   :  { %v448_v20 = vadd.f32 1e-05, %v432_v6 }
 0x20e   :  { %v381_v21 = vpop.xlane.xlu1 %380  ;;  %v384_v24 = vpop.xlane.xlu0 %383 }
 0x20f   :  { %613 = vrsqrt.f32 %v448_v20  ;;  %v425_v25 = vmul.f32 0.0625, %v381_v21  ;;  %v426_v26 = vmul.f32 0.0625, %v384_v24 }
 0x211   :  { %v441_v27 = vadd.f32 1e-05, %v425_v25  ;;  %v442_v28 = vadd.f32 1e-05, %v426_v26 }
 0x212   :  { %v405_v14 = vpop.xlane.xlu1 %404  ;;  %v408_v32 = vpop.xlane.xlu0 %407 }
 0x213   :  { %615 = vrsqrt.f32 %v441_v27  ;;  %v433_v33 = vmul.f32 0.0625, %v405_v14  ;;  %v434_v34 = vmul.f32 0.0625, %v408_v32 }
 0x214   :  { %617 = vrsqrt.f32 %v442_v28 }
 0x215   :  { %v449_v35 = vadd.f32 1e-05, %v433_v33  ;;  %v450_v36 = vadd.f32 1e-05, %v434_v34 }
 0x216   :  { %v387_v37 = vpop.xlane.xlu1 %386  ;;  %v390_v40 = vpop.xlane.xlu0 %389 }
 0x217   :  { %619 = vrsqrt.f32 %v449_v35  ;;  %v427_v41 = vmul.f32 0.0625, %v387_v37  ;;  %v428_v42 = vmul.f32 0.0625, %v390_v40 }
 0x218   :  { %v612_v43 = vpop.eup %611  ;;  %621 = vrsqrt.f32 %v450_v36 }
 0x219   :  { %v472_v45 = vmul.f32 %v612_v43, %v967_v58  ;;  %v443_v48 = vadd.f32 1e-05, %v427_v41  ;;  %v444_v49 = vadd.f32 1e-05, %v428_v42 }
 0x21a   :  { %v411_v30 = vpop.xlane.xlu1 %410  ;;  %v414_v53 = vpop.xlane.xlu0 %413 }
 0x21b   :  { %v494_v54 = vmul.f32 %v1065_v44, %v472_v45  ;;  %623 = vrsqrt.f32 %v443_v48  ;;  %v435_v57 = vmul.f32 0.0625, %v411_v30  ;;  %v436_v52 = vmul.f32 0.0625, %v414_v53 }
 0x21c   :  { %v614_v59 = vpop.eup %613  ;;  %625 = vrsqrt.f32 %v444_v49 }
 0x21d   :  { %v516_v60 = vadd.f32 %v1071_v50, %v494_v54  ;;  %v480_v58 = vmul.f32 %v614_v59, %v972_v1  ;;  %v451_v61 = vadd.f32 1e-05, %v435_v57  ;;  %v452_v0 = vadd.f32 1e-05, %v436_v52 }
 0x21e   :  { %v393_v2 = vpop.xlane.xlu1 %392  ;;  %v396_v3 = vpop.xlane.xlu0 %395 }
 0x21f   :  { %532 = vst.msk [vmem:[%s1189_s5] sm:$0xff] %vm278_vm2, %v516_v60  ;;  %v502_v4 = vmul.f32 %v1065_v44, %v480_v58  ;;  %627 = vrsqrt.f32 %v451_v61  ;;  %v429_v5 = vmul.f32 0.0625, %v393_v2  ;;  %v430_v8 = vmul.f32 0.0625, %v396_v3 }
 0x220   :  { %v616_v46 = vpop.eup %615  ;;  %629 = vrsqrt.f32 %v452_v0 }
 0x221   :  { %v618_v39 = vpop.eup %617  ;;  %v524_v56 = vadd.f32 %v1071_v50, %v502_v4  ;;  %v473_v1 = vmul.f32 %v616_v46, %v984_v11  ;;  %v445_v12 = vadd.f32 1e-05, %v429_v5  ;;  %v446_v13 = vadd.f32 1e-05, %v430_v8 }
 0x222   :  { %v474_v16 = vmul.f32 %v618_v39, %v981_v10  ;;  %v417_v47 = vpop.xlane.xlu1 %416  ;;  %v420_v17 = vpop.xlane.xlu0 %419 }
 0x223   :  { %540 = vst.msk [vmem:[%s1189_s5 + $0x40] sm:$0xff] %vm278_vm2, %v524_v56  ;;  %v495_v18 = vmul.f32 %v1065_v44, %v473_v1  ;;  %631 = vrsqrt.f32 %v445_v12  ;;  %v437_v63 = vmul.f32 0.0625, %v417_v47  ;;  %v438_v6 = vmul.f32 0.0625, %v420_v17 }
 0x224   :  { %v620_v20 = vpop.eup %619  ;;  %v496_v21 = vmul.f32 %v1065_v44, %v474_v16  ;;  %633 = vrsqrt.f32 %v446_v13 }
 0x225   :  { %v622_v11 = vpop.eup %621  ;;  %v517_v24 = vadd.f32 %v1071_v50, %v495_v18  ;;  %v481_v10 = vmul.f32 %v620_v20, %v978_v9  ;;  %v453_v25 = vadd.f32 1e-05, %v437_v63  ;;  %v454_v26 = vadd.f32 1e-05, %v438_v6 }
 0x226   :  { %v518_v27 = vadd.f32 %v1071_v50, %v496_v21  ;;  %v482_v28 = vmul.f32 %v622_v11, %v997_v62  ;;  %v399_v14 = vpop.xlane.xlu1 %398 }
 0x227   :  { %533 = vst.msk [vmem:[%s1189_s5 + $0x8] sm:$0xff] %vm278_vm2, %v517_v24  ;;  %v503_v32 = vmul.f32 %v1065_v44, %v481_v10  ;;  %635 = vrsqrt.f32 %v453_v25  ;;  %v431_v33 = vmul.f32 0.0625, %v399_v14 }
 0x228   :  { %v624_v34 = vpop.eup %623  ;;  %534 = vst.msk [vmem:[%s1189_s5 + $0x10] sm:$0xff] %vm278_vm2, %v518_v27  ;;  %v504_v9 = vmul.f32 %v1065_v44, %v482_v28  ;;  %637 = vrsqrt.f32 %v454_v26 }
 0x229   :  { %v626_v62 = vpop.eup %625  ;;  %v525_v35 = vadd.f32 %v1071_v50, %v503_v32  ;;  %v475_v36 = vmul.f32 %v624_v34, %v994_v19  ;;  %v447_v37 = vadd.f32 1e-05, %v431_v33 }
 0x22a   :  { %v526_v40 = vadd.f32 %v1071_v50, %v504_v9  ;;  %v476_v41 = vmul.f32 %v626_v62, %v1009_v7  ;;  %v423_v42 = vpop.xlane.xlu1 %422 }
 0x22b   :  { %541 = vst.msk [vmem:[%s1189_s5 + $0x48] sm:$0xff] %vm278_vm2, %v525_v35  ;;  %v497_v43 = vmul.f32 %v1065_v44, %v475_v36  ;;  %639 = vrsqrt.f32 %v447_v37  ;;  %v439_v45 = vmul.f32 0.0625, %v423_v42 }
 0x22c   :  { %v628_v48 = vpop.eup %627  ;;  %542 = vst.msk [vmem:[%s1189_s5 + $0x50] sm:$0xff] %vm278_vm2, %v526_v40  ;;  %v498_v19 = vmul.f32 %v1065_v44, %v476_v41 }
 0x22d   :  { %v630_v49 = vpop.eup %629  ;;  %v519_v7 = vadd.f32 %v1071_v50, %v497_v43  ;;  %v483_v30 = vmul.f32 %v628_v48, %v1006_v29  ;;  %v455_v53 = vadd.f32 1e-05, %v439_v45 }
 0x22e   :  { %v520_v54 = vadd.f32 %v1071_v50, %v498_v19  ;;  %v484_v57 = vmul.f32 %v630_v49, %v1020_v22 }
 0x22f   :  { %535 = vst.msk [vmem:[%s1189_s5 + $0x18] sm:$0xff] %vm278_vm2, %v519_v7  ;;  %v505_v52 = vmul.f32 %v1065_v44, %v483_v30  ;;  %641 = vrsqrt.f32 %v455_v53 }
 0x230   :  { %v632_v59 = vpop.eup %631  ;;  %536 = vst.msk [vmem:[%s1189_s5 + $0x20] sm:$0xff] %vm278_vm2, %v520_v54  ;;  %v506_v29 = vmul.f32 %v1065_v44, %v484_v57 }
 0x231   :  { %v634_v60 = vpop.eup %633  ;;  %v527_v58 = vadd.f32 %v1071_v50, %v505_v52  ;;  %v477_v22 = vmul.f32 %v632_v59, %v1017_v15 }
 0x232   :  { %v528_v61 = vadd.f32 %v1071_v50, %v506_v29  ;;  %v478_v0 = vmul.f32 %v634_v60, %v1033_v51 }
 0x233   :  { %543 = vst.msk [vmem:[%s1189_s5 + $0x58] sm:$0xff] %vm278_vm2, %v527_v58  ;;  %v499_v2 = vmul.f32 %v1065_v44, %v477_v22 }
 0x234   :  { %v636_v3 = vpop.eup %635  ;;  %544 = vst.msk [vmem:[%s1189_s5 + $0x60] sm:$0xff] %vm278_vm2, %v528_v61  ;;  %v500_v4 = vmul.f32 %v1065_v44, %v478_v0 }
 0x235   :  { %v638_v15 = vpop.eup %637  ;;  %v521_v5 = vadd.f32 %v1071_v50, %v499_v2  ;;  %v485_v51 = vmul.f32 %v636_v3, %v1030_v23 }
 0x236   :  { %v522_v8 = vadd.f32 %v1071_v50, %v500_v4  ;;  %v486_v46 = vmul.f32 %v638_v15, %v1044_v38 }
 0x237   :  { %537 = vst.msk [vmem:[%s1189_s5 + $0x28] sm:$0xff] %vm278_vm2, %v521_v5  ;;  %v507_v39 = vmul.f32 %v1065_v44, %v485_v51 }
 0x238   :  { %v640_v56 = vpop.eup %639  ;;  %538 = vst.msk [vmem:[%s1189_s5 + $0x30] sm:$0xff] %vm278_vm2, %v522_v8  ;;  %v508_v1 = vmul.f32 %v1065_v44, %v486_v46 }
 0x239   :  { %v529_v23 = vadd.f32 %v1071_v50, %v507_v39  ;;  %v479_v12 = vmul.f32 %v640_v56, %v1041_v31 }
 0x23a   :  { %v530_v38 = vadd.f32 %v1071_v50, %v508_v1 }
 0x23b   :  { %545 = vst.msk [vmem:[%s1189_s5 + $0x68] sm:$0xff] %vm278_vm2, %v529_v23  ;;  %v501_v13 = vmul.f32 %v1065_v44, %v479_v12 }
 0x23c   :  { %v642_v16 = vpop.eup %641  ;;  %546 = vst.msk [vmem:[%s1189_s5 + $0x70] sm:$0xff] %vm278_vm2, %v530_v38 }
 0x23d   :  { %v523_v47 = vadd.f32 %v1071_v50, %v501_v13  ;;  %v487_v17 = vmul.f32 %v642_v16, %v1052_v55 }
 0x23f   :  { %539 = vst.msk [vmem:[%s1189_s5 + $0x38] sm:$0xff] %vm278_vm2, %v523_v47  ;;  %v509_v31 = vmul.f32 %v1065_v44, %v487_v17 }
 0x241   :  { %v531_v18 = vadd.f32 %v1071_v50, %v509_v31 }
 0x243   :  { %547 = vst.msk [vmem:[%s1189_s5 + $0x78] sm:$0xff] %vm278_vm2, %v531_v18 }

// kernel: _lambda_.17
= control target key start
LH: loop header
LB: loop body
LE: loop exit
PB: predicated region body
PF: predicated region fallthrough
CT: control target
= control target key end

     0   :  { %vm40_vm0 = vcmask 130048   ;;  %s1067_s0 = inlined_call_operand.vmem [shape: f32[128,16], index: 0, kind: input, shape index: {}]   ;;  %s1068_s1 = inlined_call_operand.vmem [shape: f32[16,16], index: 1, kind: input, shape index: {}]   ;;  %s1069_s3 = inlined_call_operand.vmem [shape: f32[1,16], index: 3, kind: input, shape index: {}]   ;;  %s1070_s4 = inlined_call_operand.vmem [shape: f32[1,16], index: 4, kind: input, shape index: {}]   ;;  %s1071_s6 = inlined_call_operand.vmem [shape: f32[128,16], index: 6, kind: output, shape index: {1}]   ;;  %s1072_s2 = inlined_call_operand.vmem [shape: f32[1,16], index: 2, kind: input, shape index: {}]   ;;  %s1073_s5 = inlined_call_operand.vmem [shape: f32[128,16], index: 5, kind: output, shape index: {0}]  }
   0x1   :  { %v22_v0 = vld [vmem:[%s1067_s0] sm:$0xff]  ;;  %v23_v1 = vld [vmem:[%s1067_s0 + $0x8] sm:$0xff]  ;;  %v24_v8 = vld [vmem:[%s1067_s0 + $0x10] sm:$0xff] }
   0x2   :  { %v30_v2 = vld [vmem:[%s1067_s0 + $0x40] sm:$0xff]  ;;  %v41_v3 = vsel %vm40_vm0, %v22_v0, 0.0  ;;  %v44_v4 = vsel %vm40_vm0, %v23_v1, 0.0  ;;  %v31_v5 = vld [vmem:[%s1067_s0 + $0x48] sm:$0xff]  ;;  %v32_v9 = vld [vmem:[%s1067_s0 + $0x50] sm:$0xff]  ;;  %v47_v10 = vsel %vm40_vm0, %v24_v8, 0.0 }
   0x3   :  { %42 = vadd.xlane.f32.xlu0 %v41_v3  ;;  %45 = vadd.xlane.f32.xlu1 %v44_v4  ;;  %v65_v6 = vsel %vm40_vm0, %v30_v2, 0.0  ;;  %v68_v7 = vsel %vm40_vm0, %v31_v5, 0.0  ;;  %v71_v11 = vsel %vm40_vm0, %v32_v9, 0.0  ;;  %v699_v12 = vld [vmem:[%s1067_s0 + $0x18] sm:$0xff]  ;;  %v713_v16 = vld [vmem:[%s1067_s0 + $0x20] sm:$0xff]  ;;  %v727_v20 = vld [vmem:[%s1067_s0 + $0x28] sm:$0xff] }
   0x4   :  { %v704_v13 = vld [vmem:[%s1067_s0 + $0x58] sm:$0xff]  ;;  %v50_v14 = vsel %vm40_vm0, %v699_v12, 0.0  ;;  %v718_v17 = vld [vmem:[%s1067_s0 + $0x60] sm:$0xff]  ;;  %v53_v18 = vsel %vm40_vm0, %v713_v16, 0.0  ;;  %v732_v21 = vld [vmem:[%s1067_s0 + $0x68] sm:$0xff]  ;;  %v56_v22 = vsel %vm40_vm0, %v727_v20, 0.0 }
   0x5   :  { %v74_v15 = vsel %vm40_vm0, %v704_v13, 0.0  ;;  %v77_v19 = vsel %vm40_vm0, %v718_v17, 0.0  ;;  %v80_v23 = vsel %vm40_vm0, %v732_v21, 0.0  ;;  %v741_v24 = vld [vmem:[%s1067_s0 + $0x30] sm:$0xff]  ;;  %v755_v28 = vld [vmem:[%s1067_s0 + $0x38] sm:$0xff] }
   0x6   :  { %v746_v25 = vld [vmem:[%s1067_s0 + $0x70] sm:$0xff]  ;;  %v59_v26 = vsel %vm40_vm0, %v741_v24, 0.0  ;;  %v760_v29 = vld [vmem:[%s1067_s0 + $0x78] sm:$0xff]  ;;  %v62_v30 = vsel %vm40_vm0, %v755_v28, 0.0 }
   0x7   :  { %66 = vadd.xlane.f32.xlu0 %v65_v6  ;;  %69 = vadd.xlane.f32.xlu1 %v68_v7  ;;  %v83_v27 = vsel %vm40_vm0, %v746_v25, 0.0  ;;  %v86_v31 = vsel %vm40_vm0, %v760_v29, 0.0 }
   0xb   :  { %48 = vadd.xlane.f32.xlu0 %v47_v10  ;;  %72 = vadd.xlane.f32.xlu1 %v71_v11 }
   0xf   :  { %51 = vadd.xlane.f32.xlu0 %v50_v14  ;;  %75 = vadd.xlane.f32.xlu1 %v74_v15 }
  0x13   :  { %54 = vadd.xlane.f32.xlu0 %v53_v18  ;;  %78 = vadd.xlane.f32.xlu1 %v77_v19 }
  0x17   :  { %57 = vadd.xlane.f32.xlu0 %v56_v22  ;;  %81 = vadd.xlane.f32.xlu1 %v80_v23 }
  0x1b   :  { %60 = vadd.xlane.f32.xlu0 %v59_v26  ;;  %84 = vadd.xlane.f32.xlu1 %v83_v27 }
  0x1f   :  { %63 = vadd.xlane.f32.xlu0 %v62_v30  ;;  %87 = vadd.xlane.f32.xlu1 %v86_v31 }
  0x8c   :  { %v43_v32 = vpop.xlane.xlu0 %42  ;;  %v46_v33 = vpop.xlane.xlu1 %45 }
  0x8d   :  { %v90_v34 = vmul.f32 0.0625, %v43_v32  ;;  %v91_v35 = vmul.f32 0.0625, %v46_v33 }
  0x8f   :  { %v766_v36 = vsub.f32 %v22_v0, %v90_v34  ;;  %v768_v37 = vsub.f32 %v23_v1, %v91_v35 }
  0x90   :  { %v67_v38 = vpop.xlane.xlu0 %66  ;;  %v70_v39 = vpop.xlane.xlu1 %69 }
  0x91   :  { %v98_v40 = vmul.f32 0.0625, %v67_v38  ;;  %v99_v41 = vmul.f32 0.0625, %v70_v39  ;;  %v122_v42 = vmul.f32 %v766_v36, %v766_v36  ;;  %v123_v43 = vmul.f32 %v768_v37, %v768_v37 }
  0x93   :  { %v774_v44 = vsub.f32 %v30_v2, %v98_v40  ;;  %v776_v45 = vsub.f32 %v31_v5, %v99_v41  ;;  %v138_v46 = vsel %vm40_vm0, %v122_v42, 0.0  ;;  %v141_v49 = vsel %vm40_vm0, %v123_v43, 0.0 }
  0x94   :  { %139 = vadd.xlane.f32.xlu0 %v138_v46  ;;  %v49_v47 = vpop.xlane.xlu0 %48  ;;  %v73_v48 = vpop.xlane.xlu1 %72 }
  0x95   :  { %v92_v50 = vmul.f32 0.0625, %v49_v47  ;;  %v100_v51 = vmul.f32 0.0625, %v73_v48  ;;  %v130_v52 = vmul.f32 %v774_v44, %v774_v44  ;;  %v131_v53 = vmul.f32 %v776_v45, %v776_v45 }
  0x97   :  { %v784_v54 = vsub.f32 %v24_v8, %v92_v50  ;;  %v786_v55 = vsub.f32 %v32_v9, %v100_v51  ;;  %v162_v56 = vsel %vm40_vm0, %v130_v52, 0.0  ;;  %v165_v59 = vsel %vm40_vm0, %v131_v53, 0.0  ;;  %v310_v53 = vld [vmem:[%s1068_s1] sm:$0xff] }
  0x98   :  { %142 = vadd.xlane.f32.xlu0 %v141_v49  ;;  %163 = vadd.xlane.f32.xlu1 %v162_v56  ;;  %v52_v57 = vpop.xlane.xlu0 %51  ;;  %v76_v58 = vpop.xlane.xlu1 %75 }
  0x99   :  { %v93_v60 = vmul.f32 0.0625, %v52_v57  ;;  %v101_v61 = vmul.f32 0.0625, %v76_v58  ;;  %v124_v62 = vmul.f32 %v784_v54, %v784_v54  ;;  %v132_v63 = vmul.f32 %v786_v55, %v786_v55 }
  0x9b   :  { %v795_v0 = vsub.f32 %v699_v12, %v93_v60  ;;  %v798_v1 = vsub.f32 %v704_v13, %v101_v61  ;;  %v144_v2 = vsel %vm40_vm0, %v124_v62, 0.0  ;;  %v168_v5 = vsel %vm40_vm0, %v132_v63, 0.0 }
  0x9c   :  { %166 = vadd.xlane.f32.xlu1 %v165_v59  ;;  %145 = vadd.xlane.f32.xlu0 %v144_v2  ;;  %v55_v3 = vpop.xlane.xlu0 %54  ;;  %v79_v4 = vpop.xlane.xlu1 %78 }
  0x9d   :  { %v94_v6 = vmul.f32 0.0625, %v55_v3  ;;  %v102_v7 = vmul.f32 0.0625, %v79_v4  ;;  %v125_v8 = vmul.f32 %v795_v0, %v795_v0  ;;  %v133_v9 = vmul.f32 %v798_v1, %v798_v1 }
  0x9f   :  { %v807_v10 = vsub.f32 %v713_v16, %v94_v6  ;;  %v810_v11 = vsub.f32 %v718_v17, %v102_v7  ;;  %v147_v12 = vsel %vm40_vm0, %v125_v8, 0.0  ;;  %v171_v15 = vsel %vm40_vm0, %v133_v9, 0.0 }
  0xa0   :  { %169 = vadd.xlane.f32.xlu1 %v168_v5  ;;  %148 = vadd.xlane.f32.xlu0 %v147_v12  ;;  %v58_v13 = vpop.xlane.xlu0 %57  ;;  %v82_v14 = vpop.xlane.xlu1 %81 }
  0xa1   :  { %v95_v18 = vmul.f32 0.0625, %v58_v13  ;;  %v103_v19 = vmul.f32 0.0625, %v82_v14  ;;  %v126_v22 = vmul.f32 %v807_v10, %v807_v10  ;;  %v134_v16 = vmul.f32 %v810_v11, %v810_v11 }
  0xa3   :  { %v819_v23 = vsub.f32 %v727_v20, %v95_v18  ;;  %v822_v17 = vsub.f32 %v732_v21, %v103_v19  ;;  %v150_v26 = vsel %vm40_vm0, %v126_v22, 0.0  ;;  %v174_v31 = vsel %vm40_vm0, %v134_v16, 0.0 }
  0xa4   :  { %172 = vadd.xlane.f32.xlu1 %v171_v15  ;;  %151 = vadd.xlane.f32.xlu0 %v150_v26  ;;  %v61_v27 = vpop.xlane.xlu0 %60  ;;  %v85_v30 = vpop.xlane.xlu1 %84 }
  0xa5   :  { %v96_v32 = vmul.f32 0.0625, %v61_v27  ;;  %v104_v33 = vmul.f32 0.0625, %v85_v30  ;;  %v127_v34 = vmul.f32 %v819_v23, %v819_v23  ;;  %v135_v20 = vmul.f32 %v822_v17, %v822_v17  ;;  %v865_v30 = vld [vmem:[%s1069_s3] ss:$0 sm:$0xff] }
  0xa7   :  { %v831_v35 = vsub.f32 %v741_v24, %v96_v32  ;;  %v834_v21 = vsub.f32 %v746_v25, %v104_v33  ;;  %v153_v38 = vsel %vm40_vm0, %v127_v34, 0.0  ;;  %v177_v41 = vsel %vm40_vm0, %v135_v20, 0.0 }
  0xa8   :  { %175 = vadd.xlane.f32.xlu1 %v174_v31  ;;  %154 = vadd.xlane.f32.xlu0 %v153_v38  ;;  %v64_v39 = vpop.xlane.xlu0 %63  ;;  %v88_v40 = vpop.xlane.xlu1 %87  ;;  %v871_v38 = vld [vmem:[%s1070_s4] ss:$0 sm:$0xff] }
  0xa9   :  { %v97_v42 = vmul.f32 0.0625, %v64_v39  ;;  %v105_v43 = vmul.f32 0.0625, %v88_v40  ;;  %v128_v46 = vmul.f32 %v831_v35, %v831_v35  ;;  %v136_v24 = vmul.f32 %v834_v21, %v834_v21 }
  0xab   :  { %v843_v47 = vsub.f32 %v755_v28, %v97_v42  ;;  %v846_v25 = vsub.f32 %v760_v29, %v105_v43  ;;  %v156_v48 = vsel %vm40_vm0, %v128_v46, 0.0  ;;  %v180_v49 = vsel %vm40_vm0, %v136_v24, 0.0  ;;  %v311_v29 = vld [vmem:[%s1068_s1 + $0x8] sm:$0xff] }
  0xac   :  { %178 = vadd.xlane.f32.xlu1 %v177_v41  ;;  %157 = vadd.xlane.f32.xlu0 %v156_v48 }
  0xad   :  { %v129_v50 = vmul.f32 %v843_v47, %v843_v47  ;;  %v137_v51 = vmul.f32 %v846_v25, %v846_v25  ;;  %573 = vmatprep.subr.mxu0 %v311_v29  ;;  %601 = vmatprep.subr.mxu1 %v311_v29 }
  0xae   :  { %574 = vmatpush3.msra.mxu0 %v311_v29  ;;  %603 = vmatpush3.msra.mxu1 %v311_v29 }
  0xaf   :  { %v159_v52 = vsel %vm40_vm0, %v129_v50, 0.0  ;;  %v183_v28 = vsel %vm40_vm0, %v137_v51, 0.0  ;;  %575 = vmatprep.subr.mxu0 %v310_v53  ;;  %602 = vmatprep.subr.mxu1 %v310_v53 }
  0xb0   :  { %181 = vadd.xlane.f32.xlu1 %v180_v49  ;;  %160 = vadd.xlane.f32.xlu0 %v159_v52 }
  0xb1   :  { %576 = vmatpush3.msra.mxu0 %v310_v53  ;;  %604 = vmatpush3.msra.mxu1 %v310_v53 }
  0xb4   :  { %184 = vadd.xlane.f32.xlu1 %v183_v28 }
 0x11d   :  { %v140_v56 = vpop.xlane.xlu0 %139 }
 0x11e   :  { %v186_v57 = vmul.f32 0.0625, %v140_v56 }
 0x120   :  { %v202_v58 = vadd.f32 1e-05, %v186_v57 }
 0x121   :  { %v164_v59 = vpop.xlane.xlu1 %163  ;;  %v143_v60 = vpop.xlane.xlu0 %142 }
 0x122   :  { %605 = vrsqrt.f32 %v202_v58  ;;  %v194_v61 = vmul.f32 0.0625, %v164_v59  ;;  %v187_v62 = vmul.f32 0.0625, %v143_v60 }
 0x124   :  { %v210_v63 = vadd.f32 1e-05, %v194_v61  ;;  %v203_v2 = vadd.f32 1e-05, %v187_v62 }
 0x125   :  { %v167_v3 = vpop.xlane.xlu1 %166  ;;  %v146_v4 = vpop.xlane.xlu0 %145 }
 0x126   :  { %607 = vrsqrt.f32 %v210_v63  ;;  %v195_v5 = vmul.f32 0.0625, %v167_v3  ;;  %v188_v6 = vmul.f32 0.0625, %v146_v4 }
 0x127   :  { %609 = vrsqrt.f32 %v203_v2 }
 0x128   :  { %v211_v7 = vadd.f32 1e-05, %v195_v5  ;;  %v204_v8 = vadd.f32 1e-05, %v188_v6 }
 0x129   :  { %v170_v9 = vpop.xlane.xlu1 %169  ;;  %v149_v12 = vpop.xlane.xlu0 %148 }
 0x12a   :  { %611 = vrsqrt.f32 %v211_v7  ;;  %v196_v13 = vmul.f32 0.0625, %v170_v9  ;;  %v189_v14 = vmul.f32 0.0625, %v149_v12 }
 0x12b   :  { %613 = vrsqrt.f32 %v204_v8 }
 0x12c   :  { %v212_v15 = vadd.f32 1e-05, %v196_v13  ;;  %v205_v18 = vadd.f32 1e-05, %v189_v14 }
 0x12d   :  { %v173_v19 = vpop.xlane.xlu1 %172  ;;  %v152_v22 = vpop.xlane.xlu0 %151 }
 0x12e   :  { %615 = vrsqrt.f32 %v212_v15  ;;  %v197_v16 = vmul.f32 0.0625, %v173_v19  ;;  %v190_v26 = vmul.f32 0.0625, %v152_v22 }
 0x12f   :  { %v606_v27 = vpop.eup %605  ;;  %617 = vrsqrt.f32 %v205_v18 }
 0x130   :  { %v213_v31 = vadd.f32 1e-05, %v197_v16  ;;  %v206_v32 = vadd.f32 1e-05, %v190_v26  ;;  %v234_v33 = vmul.f32 %v606_v27, %v766_v36 }
 0x131   :  { %v176_v34 = vpop.xlane.xlu1 %175  ;;  %v155_v20 = vpop.xlane.xlu0 %154 }
 0x132   :  { %619 = vrsqrt.f32 %v213_v31  ;;  %v198_v39 = vmul.f32 0.0625, %v176_v34  ;;  %v191_v40 = vmul.f32 0.0625, %v155_v20  ;;  %v256_v41 = vmul.f32 %v865_v30, %v234_v33 }
 0x133   :  { %v608_v42 = vpop.eup %607  ;;  %621 = vrsqrt.f32 %v206_v32 }
 0x134   :  { %v610_v43 = vpop.eup %609  ;;  %v214_v46 = vadd.f32 1e-05, %v198_v39  ;;  %v207_v24 = vadd.f32 1e-05, %v191_v40  ;;  %v278_v48 = vadd.f32 %v871_v38, %v256_v41  ;;  %v242_v36 = vmul.f32 %v608_v42, %v774_v44 }
 0x135   :  { %v179_v49 = vpop.xlane.xlu1 %178  ;;  %v158_v50 = vpop.xlane.xlu0 %157  ;;  %v235_v51 = vmul.f32 %v610_v43, %v768_v37 }
 0x136   :  { %623 = vrsqrt.f32 %v214_v46  ;;  %v199_v52 = vmul.f32 0.0625, %v179_v49  ;;  %v192_v28 = vmul.f32 0.0625, %v158_v50  ;;  %294 = vst.msk [vmem:[%s1071_s6] sm:$0xff] %vm40_vm0, %v278_v48  ;;  %577 = vmatprep.mubr.msk.f32.mxu0 %vm40_vm0, %v278_v48  ;;  %v264_v29 = vmul.f32 %v865_v30, %v242_v36 }
 0x137   :  { %v612_v53 = vpop.eup %611  ;;  %625 = vrsqrt.f32 %v207_v24  ;;  %v257_v44 = vmul.f32 %v865_v30, %v235_v51 }
 0x138   :  { %v614_v56 = vpop.eup %613  ;;  %v215_v57 = vadd.f32 1e-05, %v199_v52  ;;  %v208_v58 = vadd.f32 1e-05, %v192_v28  ;;  %v286_v37 = vadd.f32 %v871_v38, %v264_v29  ;;  %v243_v59 = vmul.f32 %v612_v53, %v776_v45 }
 0x139   :  { %v182_v60 = vpop.xlane.xlu1 %181  ;;  %v161_v61 = vpop.xlane.xlu0 %160  ;;  %v279_v62 = vadd.f32 %v871_v38, %v257_v44  ;;  %v236_v63 = vmul.f32 %v614_v56, %v784_v54 }
 0x13a   :  { %627 = vrsqrt.f32 %v215_v57  ;;  %v200_v2 = vmul.f32 0.0625, %v182_v60  ;;  %v193_v3 = vmul.f32 0.0625, %v161_v61  ;;  %302 = vst.msk [vmem:[%s1071_s6 + $0x40] sm:$0xff] %vm40_vm0, %v286_v37  ;;  %589 = vmatprep.mubr.msk.f32.mxu1 %vm40_vm0, %v286_v37  ;;  %v265_v4 = vmul.f32 %v865_v30, %v243_v59 }
 0x13b   :  { %v616_v5 = vpop.eup %615  ;;  %629 = vrsqrt.f32 %v208_v58  ;;  %295 = vst.msk [vmem:[%s1071_s6 + $0x8] sm:$0xff] %vm40_vm0, %v279_v62  ;;  %578 = vmatmul.mubr.msk.f32.vlgmr.msra.gmra.mxu0 %vm40_vm0, %v279_v62  ;;  %v258_v45 = vmul.f32 %v865_v30, %v236_v63 }
 0x13c   :  { %v618_v54 = vpop.eup %617  ;;  %v216_v6 = vadd.f32 1e-05, %v200_v2  ;;  %v209_v7 = vadd.f32 1e-05, %v193_v3  ;;  %v287_v8 = vadd.f32 %v871_v38, %v265_v4  ;;  %v244_v9 = vmul.f32 %v616_v5, %v786_v55 }
 0x13d   :  { %v185_v12 = vpop.xlane.xlu1 %184  ;;  %v280_v13 = vadd.f32 %v871_v38, %v258_v45  ;;  %v237_v14 = vmul.f32 %v618_v54, %v795_v0 }
 0x13e   :  { %631 = vrsqrt.f32 %v216_v6  ;;  %v201_v15 = vmul.f32 0.0625, %v185_v12  ;;  %303 = vst.msk [vmem:[%s1071_s6 + $0x48] sm:$0xff] %vm40_vm0, %v287_v8  ;;  %590 = vmatmul.mubr.msk.f32.vlgmr.msra.gmra.mxu1 %vm40_vm0, %v287_v8  ;;  %v266_v18 = vmul.f32 %v865_v30, %v244_v9 }
 0x13f   :  { %v620_v19 = vpop.eup %619  ;;  %633 = vrsqrt.f32 %v209_v7  ;;  %296 = vst.msk [vmem:[%s1071_s6 + $0x10] sm:$0xff] %vm40_vm0, %v280_v13  ;;  %580 = vmatprep.mubr.msk.f32.mxu0 %vm40_vm0, %v280_v13  ;;  %v259_v55 = vmul.f32 %v865_v30, %v237_v14 }
 0x140   :  { %v622_v0 = vpop.eup %621  ;;  %v217_v22 = vadd.f32 1e-05, %v201_v15  ;;  %v288_v16 = vadd.f32 %v871_v38, %v266_v18  ;;  %v245_v26 = vmul.f32 %v620_v19, %v798_v1 }
 0x141   :  { %v281_v27 = vadd.f32 %v871_v38, %v259_v55  ;;  %v238_v31 = vmul.f32 %v622_v0, %v807_v10 }
 0x142   :  { %635 = vrsqrt.f32 %v217_v22  ;;  %304 = vst.msk [vmem:[%s1071_s6 + $0x50] sm:$0xff] %vm40_vm0, %v288_v16  ;;  %592 = vmatprep.mubr.msk.f32.mxu1 %vm40_vm0, %v288_v16  ;;  %v267_v32 = vmul.f32 %v865_v30, %v245_v26 }
 0x143   :  { %v624_v33 = vpop.eup %623  ;;  %297 = vst.msk [vmem:[%s1071_s6 + $0x18] sm:$0xff] %vm40_vm0, %v281_v27  ;;  %581 = vmatmul.mubr.msk.f32.gmra.mxu0 %vm40_vm0, %v281_v27  ;;  %v260_v1 = vmul.f32 %v865_v30, %v238_v31 }
 0x144   :  { %v626_v10 = vpop.eup %625  ;;  %v289_v34 = vadd.f32 %v871_v38, %v267_v32  ;;  %v246_v20 = vmul.f32 %v624_v33, %v810_v11 }
 0x145   :  { %v282_v39 = vadd.f32 %v871_v38, %v260_v1  ;;  %v239_v40 = vmul.f32 %v626_v10, %v819_v23 }
 0x146   :  { %305 = vst.msk [vmem:[%s1071_s6 + $0x58] sm:$0xff] %vm40_vm0, %v289_v34  ;;  %593 = vmatmul.mubr.msk.f32.gmra.mxu1 %vm40_vm0, %v289_v34  ;;  %v268_v41 = vmul.f32 %v865_v30, %v246_v20 }
 0x147   :  { %v628_v42 = vpop.eup %627  ;;  %298 = vst.msk [vmem:[%s1071_s6 + $0x20] sm:$0xff] %vm40_vm0, %v282_v39  ;;  %583 = vmatprep.mubr.msk.f32.mxu0 %vm40_vm0, %v282_v39  ;;  %v261_v11 = vmul.f32 %v865_v30, %v239_v40 }
 0x148   :  { %v630_v23 = vpop.eup %629  ;;  %v290_v43 = vadd.f32 %v871_v38, %v268_v41  ;;  %v247_v46 = vmul.f32 %v628_v42, %v822_v17 }
 0x149   :  { %v283_v24 = vadd.f32 %v871_v38, %v261_v11  ;;  %v240_v48 = vmul.f32 %v630_v23, %v831_v35 }
 0x14a   :  { %306 = vst.msk [vmem:[%s1071_s6 + $0x60] sm:$0xff] %vm40_vm0, %v290_v43  ;;  %595 = vmatprep.mubr.msk.f32.mxu1 %vm40_vm0, %v290_v43  ;;  %v269_v36 = vmul.f32 %v865_v30, %v247_v46 }
 0x14b   :  { %v632_v49 = vpop.eup %631  ;;  %299 = vst.msk [vmem:[%s1071_s6 + $0x28] sm:$0xff] %vm40_vm0, %v283_v24  ;;  %584 = vmatmul.mubr.msk.f32.gmra.mxu0 %vm40_vm0, %v283_v24  ;;  %v262_v17 = vmul.f32 %v865_v30, %v240_v48 }
 0x14c   :  { %v634_v35 = vpop.eup %633  ;;  %v291_v50 = vadd.f32 %v871_v38, %v269_v36  ;;  %v248_v51 = vmul.f32 %v632_v49, %v834_v21 }
 0x14d   :  { %v284_v52 = vadd.f32 %v871_v38, %v262_v17  ;;  %v241_v28 = vmul.f32 %v634_v35, %v843_v47 }
 0x14e   :  { %307 = vst.msk [vmem:[%s1071_s6 + $0x68] sm:$0xff] %vm40_vm0, %v291_v50  ;;  %596 = vmatmul.mubr.msk.f32.gmra.mxu1 %vm40_vm0, %v291_v50  ;;  %v270_v29 = vmul.f32 %v865_v30, %v248_v51 }
 0x14f   :  { %v636_v53 = vpop.eup %635  ;;  %300 = vst.msk [vmem:[%s1071_s6 + $0x30] sm:$0xff] %vm40_vm0, %v284_v52  ;;  %586 = vmatprep.mubr.msk.f32.mxu0 %vm40_vm0, %v284_v52  ;;  %v263_v21 = vmul.f32 %v865_v30, %v241_v28 }
 0x150   :  { %v292_v47 = vadd.f32 %v871_v38, %v270_v29  ;;  %v249_v44 = vmul.f32 %v636_v53, %v846_v25 }
 0x151   :  { %v285_v56 = vadd.f32 %v871_v38, %v263_v21 }
 0x152   :  { %308 = vst.msk [vmem:[%s1071_s6 + $0x70] sm:$0xff] %vm40_vm0, %v292_v47  ;;  %598 = vmatprep.mubr.msk.f32.mxu1 %vm40_vm0, %v292_v47  ;;  %v271_v57 = vmul.f32 %v865_v30, %v249_v44  ;;  %v538_v30 = vld [vmem:[%s1072_s2] ss:$0 sm:$0xff] }
 0x153   :  { %301 = vst.msk [vmem:[%s1071_s6 + $0x38] sm:$0xff] %vm40_vm0, %v285_v56  ;;  %587 = vmatmul.mubr.msk.f32.gmra.mxu0 %vm40_vm0, %v285_v56 }
 0x154   :  { %v293_v25 = vadd.f32 %v871_v38, %v271_v57 }
 0x156   :  { %309 = vst.msk [vmem:[%s1071_s6 + $0x78] sm:$0xff] %vm40_vm0, %v293_v25  ;;  %599 = vmatmul.mubr.msk.f32.gmra.mxu1 %vm40_vm0, %v293_v25 }
 0x1fb   :  { %v579_v58 = vpop.f32.mrf.mxu0 }
 0x1fc   :  { %v439_v37 = vadd.f32 %v579_v58, %v538_v30 }
 0x1fd   :  { %v433_v59 = vpop.f32.mrf.mxu0 }
 0x1fe   :  { %513 = vst.msk [vmem:[%s1073_s5 + $0x8] sm:$0xff] %vm40_vm0, %v439_v37  ;;  %v434_v38 = vadd.f32 %v538_v30, %v433_v59  ;;  %v591_v60 = vpop.f32.mrf.mxu1 }
 0x1ff   :  { %v479_v61 = vadd.f32 %v591_v60, %v538_v30 }
 0x200   :  { %512 = vst.msk [vmem:[%s1073_s5] sm:$0xff] %vm40_vm0, %v434_v38  ;;  %v473_v62 = vpop.f32.mrf.mxu1 }
 0x201   :  { %521 = vst.msk [vmem:[%s1073_s5 + $0x48] sm:$0xff] %vm40_vm0, %v479_v61  ;;  %v474_v63 = vadd.f32 %v538_v30, %v473_v62 }
 0x203   :  { %520 = vst.msk [vmem:[%s1073_s5 + $0x40] sm:$0xff] %vm40_vm0, %v474_v63  ;;  %v582_v2 = vpop.f32.mrf.mxu0 }
 0x204   :  { %v449_v3 = vadd.f32 %v582_v2, %v538_v30 }
 0x205   :  { %v443_v4 = vpop.f32.mrf.mxu0 }
 0x206   :  { %515 = vst.msk [vmem:[%s1073_s5 + $0x18] sm:$0xff] %vm40_vm0, %v449_v3  ;;  %v444_v5 = vadd.f32 %v538_v30, %v443_v4  ;;  %v594_v45 = vpop.f32.mrf.mxu1 }
 0x207   :  { %v489_v54 = vadd.f32 %v594_v45, %v538_v30 }
 0x208   :  { %514 = vst.msk [vmem:[%s1073_s5 + $0x10] sm:$0xff] %vm40_vm0, %v444_v5  ;;  %v483_v6 = vpop.f32.mrf.mxu1 }
 0x209   :  { %523 = vst.msk [vmem:[%s1073_s5 + $0x58] sm:$0xff] %vm40_vm0, %v489_v54  ;;  %v484_v7 = vadd.f32 %v538_v30, %v483_v6 }
 0x20b   :  { %522 = vst.msk [vmem:[%s1073_s5 + $0x50] sm:$0xff] %vm40_vm0, %v484_v7  ;;  %v585_v8 = vpop.f32.mrf.mxu0 }
 0x20c   :  { %v459_v9 = vadd.f32 %v585_v8, %v538_v30 }
 0x20d   :  { %v453_v12 = vpop.f32.mrf.mxu0 }
 0x20e   :  { %517 = vst.msk [vmem:[%s1073_s5 + $0x28] sm:$0xff] %vm40_vm0, %v459_v9  ;;  %v454_v13 = vadd.f32 %v538_v30, %v453_v12  ;;  %v597_v14 = vpop.f32.mrf.mxu1 }
 0x20f   :  { %v499_v15 = vadd.f32 %v597_v14, %v538_v30 }
 0x210   :  { %516 = vst.msk [vmem:[%s1073_s5 + $0x20] sm:$0xff] %vm40_vm0, %v454_v13  ;;  %v493_v18 = vpop.f32.mrf.mxu1 }
 0x211   :  { %525 = vst.msk [vmem:[%s1073_s5 + $0x68] sm:$0xff] %vm40_vm0, %v499_v15  ;;  %v494_v19 = vadd.f32 %v538_v30, %v493_v18 }
 0x213   :  { %524 = vst.msk [vmem:[%s1073_s5 + $0x60] sm:$0xff] %vm40_vm0, %v494_v19  ;;  %v588_v55 = vpop.f32.mrf.mxu0 }
 0x214   :  { %v469_v0 = vadd.f32 %v588_v55, %v538_v30 }
 0x215   :  { %v463_v22 = vpop.f32.mrf.mxu0 }
 0x216   :  { %519 = vst.msk [vmem:[%s1073_s5 + $0x38] sm:$0xff] %vm40_vm0, %v469_v0  ;;  %v464_v16 = vadd.f32 %v538_v30, %v463_v22  ;;  %v600_v26 = vpop.f32.mrf.mxu1 }
 0x217   :  { %v509_v27 = vadd.f32 %v600_v26, %v538_v30 }
 0x218   :  { %518 = vst.msk [vmem:[%s1073_s5 + $0x30] sm:$0xff] %vm40_vm0, %v464_v16  ;;  %v503_v31 = vpop.f32.mrf.mxu1 }
 0x219   :  { %527 = vst.msk [vmem:[%s1073_s5 + $0x78] sm:$0xff] %vm40_vm0, %v509_v27  ;;  %v504_v32 = vadd.f32 %v538_v30, %v503_v31 }
 0x21b   :  { %526 = vst.msk [vmem:[%s1073_s5 + $0x70] sm:$0xff] %vm40_vm0, %v504_v32 }

// kernel: _lambda_.18
= control target key start
LH: loop header
LB: loop body
LE: loop exit
PB: predicated region body
PF: predicated region fallthrough
CT: control target
= control target key end

     0   :  { %vm125_vm0 = vcmask 130048   ;;  %s295_s1 = inlined_call_operand.vmem [shape: f32[256,16], index: 1, kind: input, shape index: {}]   ;;  %s296_s0 = inlined_call_operand.vmem [shape: f32[8,256], index: 0, kind: input, shape index: {}]   ;;  %s297_s2 = inlined_call_operand.vmem [shape: f32[1,16], index: 2, kind: input, shape index: {}]   ;;  %s298_s3 = inlined_call_operand.vmem [shape: f32[8,16], index: 3, kind: output, shape index: {}]  }
   0x1   :  { %v47_v0 = vld [vmem:[%s295_s1 + $0xf8] sm:$0xff]  ;;  %v46_v2 = vld [vmem:[%s295_s1 + $0xf0] sm:$0xff]  ;;  %v45_v4 = vld [vmem:[%s295_s1 + $0xe8] sm:$0xff] }
   0x2   :  { %v31_v1 = vld [vmem:[%s295_s1 + $0x78] sm:$0xff]  ;;  %132 = vmatprep.subr.mxu0 %v47_v0  ;;  %v30_v3 = vld [vmem:[%s295_s1 + $0x70] sm:$0xff]  ;;  %v29_v5 = vld [vmem:[%s295_s1 + $0x68] sm:$0xff] }
   0x3   :  { %133 = vmatpush3.msra.mxu0 %v31_v1  ;;  %v44_v6 = vld [vmem:[%s295_s1 + $0xe0] sm:$0xff]  ;;  %v43_v8 = vld [vmem:[%s295_s1 + $0xd8] sm:$0xff]  ;;  %v42_v10 = vld [vmem:[%s295_s1 + $0xd0] sm:$0xff] }
   0x4   :  { %134 = vmatprep.subr.mxu0 %v46_v2  ;;  %v28_v7 = vld [vmem:[%s295_s1 + $0x60] sm:$0xff]  ;;  %v27_v9 = vld [vmem:[%s295_s1 + $0x58] sm:$0xff]  ;;  %v26_v11 = vld [vmem:[%s295_s1 + $0x50] sm:$0xff] }
   0x5   :  { %135 = vmatpush3.msra.mxu0 %v30_v3  ;;  %v41_v12 = vld [vmem:[%s295_s1 + $0xc8] sm:$0xff]  ;;  %v40_v15 = vld [vmem:[%s295_s1 + $0xc0] sm:$0xff]  ;;  %v39_v17 = vld [vmem:[%s295_s1 + $0xb8] sm:$0xff] }
   0x6   :  { %136 = vmatprep.subr.mxu0 %v45_v4  ;;  %v15_v13 = vld [vmem:[%s296_s0 + $0x8] sm:$0xff]  ;;  %v24_v16 = vld [vmem:[%s295_s1 + $0x40] sm:$0xff]  ;;  %v23_v18 = vld [vmem:[%s295_s1 + $0x38] sm:$0xff] }
   0x7   :  { %137 = vmatpush3.msra.mxu0 %v29_v5  ;;  %v25_v14 = vld [vmem:[%s295_s1 + $0x48] sm:$0xff]  ;;  %119 = vmatprep.mubr.f32.mxu0 %v15_v13  ;;  %v38_v19 = vld [vmem:[%s295_s1 + $0xb0] sm:$0xff]  ;;  %v36_v23 = vld [vmem:[%s295_s1 + $0xa0] sm:$0xff] }
   0x8   :  { %138 = vmatprep.subr.mxu0 %v44_v6  ;;  %v22_v20 = vld [vmem:[%s295_s1 + $0x30] sm:$0xff]  ;;  %v37_v21 = vld [vmem:[%s295_s1 + $0xa8] sm:$0xff]  ;;  %v20_v24 = vld [vmem:[%s295_s1 + $0x20] sm:$0xff] }
   0x9   :  { %139 = vmatpush3.msra.mxu0 %v28_v7  ;;  %v21_v22 = vld [vmem:[%s295_s1 + $0x28] sm:$0xff]  ;;  %v35_v25 = vld [vmem:[%s295_s1 + $0x98] sm:$0xff]  ;;  %v34_v27 = vld [vmem:[%s295_s1 + $0x90] sm:$0xff] }
   0xa   :  { %140 = vmatprep.subr.mxu0 %v43_v8  ;;  %v19_v26 = vld [vmem:[%s295_s1 + $0x18] sm:$0xff]  ;;  %v18_v28 = vld [vmem:[%s295_s1 + $0x10] sm:$0xff]  ;;  %v33_v29 = vld [vmem:[%s295_s1 + $0x88] sm:$0xff] }
   0xb   :  { %141 = vmatpush3.msra.mxu0 %v27_v9  ;;  %v17_v30 = vld [vmem:[%s295_s1 + $0x8] sm:$0xff]  ;;  %v32_v31 = vld [vmem:[%s295_s1 + $0x80] sm:$0xff] }
   0xc   :  { %142 = vmatprep.subr.mxu0 %v42_v10  ;;  %v16_v32 = vld [vmem:[%s295_s1] sm:$0xff] }
   0xd   :  { %143 = vmatpush3.msra.mxu0 %v26_v11  ;;  %v14_v33 = vld [vmem:[%s296_s0] sm:$0xff] }
   0xe   :  { %144 = vmatprep.subr.mxu0 %v41_v12  ;;  %v131_v35 = vld [vmem:[%s297_s2] ss:$0 sm:$0xff] }
   0xf   :  { %145 = vmatpush3.msra.mxu0 %v25_v14 }
  0x10   :  { %146 = vmatprep.subr.mxu0 %v40_v15 }
  0x11   :  { %147 = vmatpush3.msra.mxu0 %v24_v16 }
  0x12   :  { %148 = vmatprep.subr.mxu0 %v39_v17 }
  0x13   :  { %149 = vmatpush3.msra.mxu0 %v23_v18 }
  0x14   :  { %150 = vmatprep.subr.mxu0 %v38_v19 }
  0x15   :  { %151 = vmatpush3.msra.mxu0 %v22_v20 }
  0x16   :  { %152 = vmatprep.subr.mxu0 %v37_v21 }
  0x17   :  { %153 = vmatpush3.msra.mxu0 %v21_v22 }
  0x18   :  { %154 = vmatprep.subr.mxu0 %v36_v23 }
  0x19   :  { %155 = vmatpush3.msra.mxu0 %v20_v24 }
  0x1a   :  { %156 = vmatprep.subr.mxu0 %v35_v25 }
  0x1b   :  { %157 = vmatpush3.msra.mxu0 %v19_v26 }
  0x1c   :  { %158 = vmatprep.subr.mxu0 %v34_v27 }
  0x1d   :  { %159 = vmatpush3.msra.mxu0 %v18_v28 }
  0x1e   :  { %160 = vmatprep.subr.mxu0 %v33_v29 }
  0x1f   :  { %161 = vmatpush3.msra.mxu0 %v17_v30 }
  0x20   :  { %162 = vmatprep.subr.mxu0 %v32_v31 }
  0x21   :  { %163 = vmatpush3.msra.mxu0 %v16_v32 }
  0x22   :  { %120 = vmatmul.mubr.f32.vlgmr.msra.gmra.mxu0 %v14_v33 }
  0xe2   :  { %v164_v34 = vpop.f32.mrf.mxu0 }
  0xe4   :  { %v165_v36 = vpop.f32.mrf.mxu0 }
  0xe5   :  { %v166_v37 = vadd.f32 %v165_v36, %v164_v34 }
  0xe7   :  { %v122_v38 = vadd.f32 %v166_v37, %v131_v35 }
  0xe9   :  { %126 = vst.msk [vmem:[%s298_s3] sm:$0xff] %vm125_vm0, %v122_v38 }

// kernel: _lambda_.19
= control target key start
LH: loop header
LB: loop body
LE: loop exit
PB: predicated region body
PF: predicated region fallthrough
CT: control target
= control target key end

     0   :  { %vm23_vm0 = vcmask 130048   ;;  %v158_v7 = vmov 0.0   ;;  %vm159_vm1 = vmmov 0   ;;  %vm134_vm2 = vcmask 261120   ;;  %s214_s0 = inlined_call_operand.vmem [shape: f32[8,16], index: 0, kind: input, shape index: {}]   ;;  %s215_s1 = inlined_call_operand.vmem [shape: f32[16,32], index: 1, kind: input, shape index: {}]   ;;  %s216_s3 = inlined_call_operand.vmem [shape: f32[1,16], index: 3, kind: input, shape index: {}]   ;;  %s217_s4 = inlined_call_operand.vmem [shape: f32[1,16], index: 4, kind: input, shape index: {}]   ;;  %s218_s2 = inlined_call_operand.vmem [shape: f32[1,32], index: 2, kind: input, shape index: {}]   ;;  %s219_s5 = inlined_call_operand.vmem [shape: f32[8,32], index: 5, kind: output, shape index: {}]  }
   0x1   :  { %v20_v0 = vld [vmem:[%s214_s0] sm:$0xff]  ;;  %147 = vmatprep.subr.mxu0 %v158_v7  ;;  %v53_v8 = vld [vmem:[%s215_s1 + $0x8] sm:$0xff]  ;;  %151 = vmatprep.mubr.msk.f32.mxu0 %vm159_vm1, %v158_v7 }
   0x2   :  { %v24_v1 = vsel %vm23_vm0, %v20_v0, 0.0  ;;  %v52_v9 = vld [vmem:[%s215_s1] sm:$0xff]  ;;  %148 = vmatpush3.msra.mxu0 %v53_v8 }
   0x3   :  { %25 = vadd.xlane.f32.xlu0 %v24_v1  ;;  %149 = vmatprep.subr.mxu0 %v158_v7  ;;  %v140_v14 = vld [vmem:[%s216_s3] ss:$0 sm:$0xff] }
   0x4   :  { %150 = vmatpush3.msra.mxu0 %v52_v9  ;;  %v141_v16 = vld [vmem:[%s217_s4] ss:$0 sm:$0xff] }
   0x5   :  { %v142_v19 = vld [vmem:[%s218_s2] ss:$0 sm:$0xff] }
  0x8c   :  { %v26_v2 = vpop.xlane.xlu0 %25 }
  0x8d   :  { %v28_v3 = vmul.f32 0.0625, %v26_v2 }
  0x8f   :  { %v29_v4 = vsub.f32 %v20_v0, %v28_v3 }
  0x91   :  { %v30_v5 = vmul.f32 %v29_v4, %v29_v4 }
  0x93   :  { %v31_v6 = vsel %vm23_vm0, %v30_v5, 0.0 }
  0x94   :  { %32 = vadd.xlane.f32.xlu0 %v31_v6 }
 0x11d   :  { %v33_v10 = vpop.xlane.xlu0 %32 }
 0x11e   :  { %v34_v11 = vmul.f32 0.0625, %v33_v10 }
 0x120   :  { %v35_v12 = vadd.f32 1e-05, %v34_v11 }
 0x122   :  { %156 = vrsqrt.f32 %v35_v12 }
 0x12f   :  { %v157_v13 = vpop.eup %156 }
 0x130   :  { %v37_v15 = vmul.f32 %v157_v13, %v29_v4 }
 0x132   :  { %v44_v17 = vmul.f32 %v140_v14, %v37_v15 }
 0x134   :  { %v51_v18 = vadd.f32 %v141_v16, %v44_v17 }
 0x136   :  { %152 = vmatmul.mubr.msk.f32.vlgmr.msra.gmra.mxu0 %vm23_vm0, %v51_v18 }
 0x1f6   :  { %v130_v20 = vpop.f32.mrf.mxu0 }
 0x1f7   :  { %v131_v21 = vadd.f32 %v142_v19, %v130_v20 }
 0x1f8   :  { %v153_v22 = vpop.f32.mrf.mxu0 }
 0x1f9   :  { %135 = vst.msk [vmem:[%s219_s5] sm:$0xff] %vm134_vm2, %v131_v21 }

// kernel: _lambda_.20
= control target key start
LH: loop header
LB: loop body
LE: loop exit
PB: predicated region body
PF: predicated region fallthrough
CT: control target
= control target key end

     0   :  { %s1750_s21 = smov 0   ;;  %s1990_s0 = inlined_call_operand.vmem [shape: f32[2,64,16], index: 0, kind: input, shape index: {}]   ;;  %s1991_s1 = inlined_call_operand.vmem [shape: f32[2,4,16], index: 1, kind: input, shape index: {}]   ;;  %s1992_s2 = inlined_call_operand.vmem [shape: f32[2,4,16], index: 2, kind: input, shape index: {}]   ;;  %s1993_s3 = inlined_call_operand.vmem [shape: f32[16,16], index: 3, kind: input, shape index: {}]   ;;  %s1994_s4 = inlined_call_operand.vmem [shape: f32[1,16], index: 4, kind: input, shape index: {}]   ;;  %s1995_s5 = inlined_call_operand.vmem [shape: f32[2,64,16], index: 5, kind: input, shape index: {}]   ;;  %s1996_s6 = inlined_call_operand.vmem [shape: f32[2,64,16], index: 6, kind: output, shape index: {}]  }
   0x1 LB: > { %s1424_s22 = sadd.s32 4294967295, %s1712_s21   ;;  %p1428_p0 = scmp.ge.s32.totalorder %s1712_s21, 1  ;;  %s1712_s21 = sphi %s1750_s21, %s16_s21  }
   0x2   : > { %p240_p1 = scmp.lt.s32.totalorder %s1712_s21, 3 }
   0x4   : > { %p241_p2 = pnand %p1428_p0, %p240_p1 }
   0x5   : > { %p283_p3 = scmp.lt.s32.totalorder (!%p241_p2), %s1424_s22, 1  ;;  %s1714_s10 = smov (!%p241_p2), 120  }
   0x6   : > { %244 = sbr.rel (%p241_p2) target bundleno = 1468 (0x5bc), region = 44 }
   0xb   : > { %s1998_s22 = smov (!%p283_p3, %s1424_s22), 1  ;;  %vm316_vm0 = vcmask 64512   ;;  %vm449_vm1 = vcmask 31744   ;;  %vm562_vm2 = vcmask 1043456   ;;  %vm1324_vm3 = vcmask 130048  }
   0xc   : > { %s1761_s23 = sshll.u32 %s1998_s22, 6  ;;  %s1431_s24 = sshll.u32 %s1998_s22, 2 }
   0xd   : > { %s287_s27 = scalar_lea.vmem %s1990_s0, %s1761_s23  ;;  %s291_s30 = scalar_lea.vmem %s1991_s1, %s1431_s24 }
   0xe   : > { %v1773_v0 = vld [vmem:[%s291_s30] sm:$0xf]  ;;  %v1783_v2 = vld [vmem:[%s287_s27 + $0x8] sm:$0xff]  ;;  %v1785_v3 = vld [vmem:[%s287_s27 + $0x10] sm:$0xff]  ;;  %s295_s9 = scalar_lea.vmem %s1992_s2, %s1431_s24  ;;  %s1952_s17 = scalar_lea.vmem %s1995_s5, %s1761_s23 }
   0xf   : > { %v1775_v1 = vld [vmem:[%s287_s27] sm:$0xff]  ;;  %1549 = vmatprep.subr.msk.mxu0 %vm316_vm0, %v1773_v0  ;;  %v1791_v4 = vld [vmem:[%s287_s27 + $0x18] sm:$0xff]  ;;  %v1799_v6 = vld [vmem:[%s287_s27 + $0x28] sm:$0xff]  ;;  %s1962_s24 = scalar_lea.vmem %s1996_s6, %s1761_s23 }
  0x10   : > { %1551 = vmatprep.mubr.msk.f32.mxu0 %vm316_vm0, %v1775_v1  ;;  %1550 = vmatpush3.xpose.msk.msra.mxu0 %vm316_vm0, %v1773_v0  ;;  %v1793_v5 = vld [vmem:[%s287_s27 + $0x20] sm:$0xff]  ;;  %v1801_v7 = vld [vmem:[%s287_s27 + $0x30] sm:$0xff]  ;;  %v1807_v8 = vld [vmem:[%s287_s27 + $0x38] sm:$0xff] }
  0x13   : > { %1552 = vmatmul.mubr.msk.f32.vlgmr.msra.gmra.mxu0 %vm316_vm0, %v1783_v2 }
  0x14   : > { %1554 = vmatprep.mubr.msk.f32.mxu0 %vm316_vm0, %v1785_v3 }
  0x17   : > { %1555 = vmatmul.mubr.msk.f32.gmra.mxu0 %vm316_vm0, %v1791_v4 }
  0x18   : > { %1557 = vmatprep.mubr.msk.f32.mxu0 %vm316_vm0, %v1793_v5 }
  0x1b   : > { %1558 = vmatmul.mubr.msk.f32.gmra.mxu0 %vm316_vm0, %v1799_v6 }
  0x1c   : > { %1560 = vmatprep.mubr.msk.f32.mxu0 %vm316_vm0, %v1801_v7 }
  0x1f   : > { %1561 = vmatmul.mubr.msk.f32.gmra.mxu0 %vm316_vm0, %v1807_v8 }
  0xd3   : > { %v1553_v9 = vpop.f32.mrf.mxu0 }
  0xd4   : > { %v453_v14 = vsel %vm449_vm1, %v1553_v9, -inf }
  0xd5   : > { %v410_v10 = vpop.f32.mrf.mxu0 }
  0xd6   : > { %v450_v11 = vsel %vm449_vm1, %v410_v10, -inf }
  0xd7   : > { %451 = vmax.xlane.f32.xlu0 %v450_v11  ;;  %v1556_v12 = vpop.f32.mrf.mxu0 }
  0xd8   : > { %v459_v18 = vsel %vm449_vm1, %v1556_v12, -inf }
  0xd9   : > { %v420_v13 = vpop.f32.mrf.mxu0 }
  0xda   : > { %v456_v15 = vsel %vm449_vm1, %v420_v13, -inf }
  0xdb   : > { %454 = vmax.xlane.f32.xlu0 %v453_v14  ;;  %457 = vmax.xlane.f32.xlu1 %v456_v15  ;;  %v1559_v16 = vpop.f32.mrf.mxu0 }
  0xdc   : > { %v465_v22 = vsel %vm449_vm1, %v1559_v16, -inf }
  0xdd   : > { %v430_v17 = vpop.f32.mrf.mxu0 }
  0xde   : > { %v462_v19 = vsel %vm449_vm1, %v430_v17, -inf }
  0xdf   : > { %460 = vmax.xlane.f32.xlu1 %v459_v18  ;;  %463 = vmax.xlane.f32.xlu0 %v462_v19  ;;  %v1562_v20 = vpop.f32.mrf.mxu0 }
  0xe0   : > { %v471_v24 = vsel %vm449_vm1, %v1562_v20, -inf }
  0xe1   : > { %v440_v21 = vpop.f32.mrf.mxu0 }
  0xe2   : > { %v468_v23 = vsel %vm449_vm1, %v440_v21, -inf }
  0xe3   : > { %466 = vmax.xlane.f32.xlu1 %v465_v22  ;;  %469 = vmax.xlane.f32.xlu0 %v468_v23 }
  0xe7   : > { %472 = vmax.xlane.f32.xlu1 %v471_v24 }
 0x160   : > { %v452_v25 = vpop.xlane.xlu0 %451 }
 0x161   : > { %v474_v26 = vsub.f32 %v410_v10, %v452_v25  ;;  %v1832_v10 = vld [vmem:[%s295_s9] sm:$0xf] }
 0x162   : > { %1563 = vmatprep.subr.msk.mxu1 %vm562_vm2, %v1832_v10 }
 0x163   : > { %v482_v27 = vmul.f32 1.442695, %v474_v26  ;;  %1564 = vmatpush3.msk.msra.mxu1 %vm562_vm2, %v1832_v10 }
 0x164   : > { %v455_v28 = vpop.xlane.xlu0 %454  ;;  %v458_v29 = vpop.xlane.xlu1 %457 }
 0x165   : > { %1642 = vpow2.f32 %v482_v27  ;;  %v475_v30 = vsub.f32 %v1553_v9, %v455_v28  ;;  %v476_v31 = vsub.f32 %v420_v13, %v458_v29 }
 0x167   : > { %v484_v32 = vmul.f32 1.442695, %v475_v30  ;;  %v486_v33 = vmul.f32 1.442695, %v476_v31 }
 0x168   : > { %v461_v34 = vpop.xlane.xlu1 %460  ;;  %v464_v35 = vpop.xlane.xlu0 %463 }
 0x169   : > { %1644 = vpow2.f32 %v484_v32  ;;  %v477_v36 = vsub.f32 %v1556_v12, %v461_v34  ;;  %v478_v37 = vsub.f32 %v430_v17, %v464_v35 }
 0x16a   : > { %1646 = vpow2.f32 %v486_v33 }
 0x16b   : > { %v488_v38 = vmul.f32 1.442695, %v477_v36  ;;  %v490_v39 = vmul.f32 1.442695, %v478_v37 }
 0x16c   : > { %v467_v40 = vpop.xlane.xlu1 %466  ;;  %v470_v41 = vpop.xlane.xlu0 %469 }
 0x16d   : > { %1648 = vpow2.f32 %v488_v38  ;;  %v479_v42 = vsub.f32 %v1559_v16, %v467_v40  ;;  %v480_v43 = vsub.f32 %v440_v21, %v470_v41 }
 0x16e   : > { %1650 = vpow2.f32 %v490_v39 }
 0x16f   : > { %v492_v44 = vmul.f32 1.442695, %v479_v42  ;;  %v494_v45 = vmul.f32 1.442695, %v480_v43 }
 0x170   : > { %v473_v46 = vpop.xlane.xlu1 %472 }
 0x171   : > { %1652 = vpow2.f32 %v492_v44  ;;  %v481_v47 = vsub.f32 %v1562_v20, %v473_v46 }
 0x172   : > { %v1643_v48 = vpop.eup %1642  ;;  %1654 = vpow2.f32 %v494_v45 }
 0x173   : > { %v496_v49 = vmul.f32 1.442695, %v481_v47  ;;  %v498_v50 = vsel %vm449_vm1, %v1643_v48, 0.0 }
 0x174   : > { %499 = vadd.xlane.f32.xlu0 %v498_v50 }
 0x175   : > { %1656 = vpow2.f32 %v496_v49 }
 0x176   : > { %v1645_v51 = vpop.eup %1644 }
 0x177   : > { %v1647_v52 = vpop.eup %1646  ;;  %v501_v53 = vsel %vm449_vm1, %v1645_v51, 0.0 }
 0x178   : > { %502 = vadd.xlane.f32.xlu1 %v501_v53  ;;  %v504_v54 = vsel %vm449_vm1, %v1647_v52, 0.0 }
 0x179   : > { %505 = vadd.xlane.f32.xlu0 %v504_v54 }
 0x17a   : > { %v1649_v55 = vpop.eup %1648 }
 0x17b   : > { %v1651_v56 = vpop.eup %1650  ;;  %v507_v57 = vsel %vm449_vm1, %v1649_v55, 0.0 }
 0x17c   : > { %508 = vadd.xlane.f32.xlu1 %v507_v57  ;;  %v510_v58 = vsel %vm449_vm1, %v1651_v56, 0.0 }
 0x17d   : > { %511 = vadd.xlane.f32.xlu0 %v510_v58 }
 0x17e   : > { %v1653_v59 = vpop.eup %1652 }
 0x17f   : > { %v1655_v60 = vpop.eup %1654  ;;  %v513_v61 = vsel %vm449_vm1, %v1653_v59, 0.0 }
 0x180   : > { %514 = vadd.xlane.f32.xlu1 %v513_v61  ;;  %v516_v62 = vsel %vm449_vm1, %v1655_v60, 0.0 }
 0x181   : > { %517 = vadd.xlane.f32.xlu0 %v516_v62 }
 0x182   : > { %v1657_v63 = vpop.eup %1656 }
 0x183   : > { %v519_v9 = vsel %vm449_vm1, %v1657_v63, 0.0 }
 0x184   : > { %520 = vadd.xlane.f32.xlu1 %v519_v9 }
 0x195   : > { %672 = vrot.lane.b32.xlu1 %v1775_v1, %s1714_s10 }
 0x197   : > { %688 = vrot.lane.b32.xlu0 %v1773_v0, %s1714_s10 }
 0x199   : > { %674 = vrot.lane.b32.xlu1 %v1783_v2, %s1714_s10 }
 0x19b   : > { %678 = vrot.lane.b32.xlu0 %v1791_v4, %s1714_s10 }
 0x19d   : > { %676 = vrot.lane.b32.xlu1 %v1785_v3, %s1714_s10 }
 0x19f   : > { %682 = vrot.lane.b32.xlu0 %v1799_v6, %s1714_s10 }
 0x1a1   : > { %680 = vrot.lane.b32.xlu1 %v1793_v5, %s1714_s10 }
 0x1a3   : > { %686 = vrot.lane.b32.xlu0 %v1807_v8, %s1714_s10 }
 0x1a5   : > { %684 = vrot.lane.b32.xlu1 %v1801_v7, %s1714_s10 }
 0x1fd   : > { %v500_v0 = vpop.xlane.xlu0 %499 }
 0x1fe   : > { %1658 = vrcp.f32 %v500_v0 }
 0x201   : > { %v503_v1 = vpop.xlane.xlu1 %502 }
 0x202   : > { %1660 = vrcp.f32 %v503_v1  ;;  %v506_v2 = vpop.xlane.xlu0 %505 }
 0x203   : > { %1662 = vrcp.f32 %v506_v2 }
 0x205   : > { %v509_v4 = vpop.xlane.xlu1 %508 }
 0x206   : > { %1664 = vrcp.f32 %v509_v4  ;;  %v512_v3 = vpop.xlane.xlu0 %511 }
 0x207   : > { %1666 = vrcp.f32 %v512_v3 }
 0x209   : > { %v515_v6 = vpop.xlane.xlu1 %514 }
 0x20a   : > { %1668 = vrcp.f32 %v515_v6  ;;  %v518_v11 = vpop.xlane.xlu0 %517 }
 0x20b   : > { %v1659_v5 = vpop.eup %1658  ;;  %1670 = vrcp.f32 %v518_v11 }
 0x20c   : > { %v530_v12 = vmul.f32 %v1659_v5, %v1643_v48 }
 0x20d   : > { %v521_v8 = vpop.xlane.xlu1 %520 }
 0x20e   : > { %1672 = vrcp.f32 %v521_v8  ;;  %1565 = vmatprep.mubr.msk.f32.mxu1 %vm449_vm1, %v530_v12  ;;  %v689_v7 = vpop.permute.xlu0 %688 }
 0x20f   : > { %v1661_v13 = vpop.eup %1660  ;;  %1577 = vmatprep.subr.msk.mxu1 %vm316_vm0, %v689_v7 }
 0x210   : > { %v1663_v14 = vpop.eup %1662  ;;  %v531_v15 = vmul.f32 %v1661_v13, %v1645_v51 }
 0x211   : > { %v532_v16 = vmul.f32 %v1663_v14, %v1647_v52  ;;  %v673_v17 = vpop.permute.xlu1 %672 }
 0x212   : > { %1566 = vmatmul.mubr.msk.f32.vlgmr.msra.gmra.mxu1 %vm449_vm1, %v531_v15  ;;  %v679_v30 = vpop.permute.xlu0 %678 }
 0x213   : > { %v1665_v18 = vpop.eup %1664  ;;  %1568 = vmatprep.mubr.msk.f32.mxu1 %vm449_vm1, %v532_v16  ;;  %1578 = vmatpush3.xpose.msk.msra.mxu1 %vm316_vm0, %v689_v7 }
 0x214   : > { %v1667_v19 = vpop.eup %1666  ;;  %v533_v20 = vmul.f32 %v1665_v18, %v1649_v55 }
 0x215   : > { %v534_v21 = vmul.f32 %v1667_v19, %v1651_v56  ;;  %v675_v22 = vpop.permute.xlu1 %674 }
 0x216   : > { %1569 = vmatmul.mubr.msk.f32.gmra.mxu1 %vm449_vm1, %v533_v20  ;;  %v683_v32 = vpop.permute.xlu0 %682 }
 0x217   : > { %v1669_v23 = vpop.eup %1668  ;;  %1571 = vmatprep.mubr.msk.f32.mxu1 %vm449_vm1, %v534_v21 }
 0x218   : > { %v1671_v24 = vpop.eup %1670  ;;  %v535_v25 = vmul.f32 %v1669_v23, %v1653_v59 }
 0x219   : > { %v536_v26 = vmul.f32 %v1671_v24, %v1655_v60  ;;  %v677_v29 = vpop.permute.xlu1 %676 }
 0x21a   : > { %1572 = vmatmul.mubr.msk.f32.gmra.mxu1 %vm449_vm1, %v535_v25  ;;  %v687_v34 = vpop.permute.xlu0 %686 }
 0x21b   : > { %v1673_v27 = vpop.eup %1672  ;;  %1574 = vmatprep.mubr.msk.f32.mxu1 %vm449_vm1, %v536_v26 }
 0x21c   : > { %v537_v28 = vmul.f32 %v1673_v27, %v1657_v63 }
 0x21d   : > { %v681_v31 = vpop.permute.xlu1 %680 }
 0x21e   : > { %1575 = vmatmul.mubr.msk.f32.gmra.mxu1 %vm449_vm1, %v537_v28 }
 0x21f   : > { %1579 = vmatprep.mubr.msk.f32.mxu1 %vm316_vm0, %v673_v17 }
 0x221   : > { %v685_v33 = vpop.permute.xlu1 %684 }
 0x222   : > { %1580 = vmatmul.mubr.msk.f32.vlgmr.msra.gmra.mxu1 %vm316_vm0, %v675_v22 }
 0x223   : > { %1582 = vmatprep.mubr.msk.f32.mxu1 %vm316_vm0, %v677_v29 }
 0x226   : > { %1583 = vmatmul.mubr.msk.f32.gmra.mxu1 %vm316_vm0, %v679_v30 }
 0x227   : > { %1585 = vmatprep.mubr.msk.f32.mxu1 %vm316_vm0, %v681_v31 }
 0x22a   : > { %1586 = vmatmul.mubr.msk.f32.gmra.mxu1 %vm316_vm0, %v683_v32 }
 0x22b   : > { %1588 = vmatprep.mubr.msk.f32.mxu1 %vm316_vm0, %v685_v33 }
 0x22e   : > { %1589 = vmatmul.mubr.msk.f32.gmra.mxu1 %vm316_vm0, %v687_v34 }
 0x2d2   : > { %v1874_v35 = vpop.f32.mrf.mxu1 }
 0x2d4   : > { %v1876_v36 = vpop.f32.mrf.mxu1 }
 0x2d6   : > { %v1878_v37 = vpop.f32.mrf.mxu1 }
 0x2d8   : > { %v1880_v38 = vpop.f32.mrf.mxu1 }
 0x2da   : > { %v1882_v39 = vpop.f32.mrf.mxu1 }
 0x2dc   : > { %v1884_v40 = vpop.f32.mrf.mxu1 }
 0x2de   : > { %v1886_v41 = vpop.f32.mrf.mxu1 }
 0x2e0   : > { %v1888_v42 = vpop.f32.mrf.mxu1 }
 0x2e2   : > { %v1581_v43 = vpop.f32.mrf.mxu1 }
 0x2e3   : > { %v816_v44 = vsel %vm449_vm1, %v1581_v43, -inf }
 0x2e4   : > { %817 = vmax.xlane.f32.xlu0 %v816_v44  ;;  %v774_v45 = vpop.f32.mrf.mxu1 }
 0x2e5   : > { %v813_v46 = vsel %vm449_vm1, %v774_v45, -inf }
 0x2e6   : > { %814 = vmax.xlane.f32.xlu1 %v813_v46  ;;  %v1584_v47 = vpop.f32.mrf.mxu1 }
 0x2e7   : > { %v822_v52 = vsel %vm449_vm1, %v1584_v47, -inf }
 0x2e8   : > { %v784_v48 = vpop.f32.mrf.mxu1 }
 0x2e9   : > { %v819_v49 = vsel %vm449_vm1, %v784_v48, -inf }
 0x2ea   : > { %820 = vmax.xlane.f32.xlu0 %v819_v49  ;;  %v1587_v50 = vpop.f32.mrf.mxu1 }
 0x2eb   : > { %v828_v56 = vsel %vm449_vm1, %v1587_v50, -inf }
 0x2ec   : > { %v794_v51 = vpop.f32.mrf.mxu1 }
 0x2ed   : > { %v825_v53 = vsel %vm449_vm1, %v794_v51, -inf }
 0x2ee   : > { %823 = vmax.xlane.f32.xlu0 %v822_v52  ;;  %826 = vmax.xlane.f32.xlu1 %v825_v53  ;;  %v1590_v54 = vpop.f32.mrf.mxu1 }
 0x2ef   : > { %v834_v58 = vsel %vm449_vm1, %v1590_v54, -inf }
 0x2f0   : > { %v804_v55 = vpop.f32.mrf.mxu1 }
 0x2f1   : > { %v831_v57 = vsel %vm449_vm1, %v804_v55, -inf }
 0x2f2   : > { %829 = vmax.xlane.f32.xlu0 %v828_v56  ;;  %832 = vmax.xlane.f32.xlu1 %v831_v57 }
 0x2f6   : > { %835 = vmax.xlane.f32.xlu0 %v834_v58 }
 0x36d   : > { %v818_v59 = vpop.xlane.xlu0 %817 }
 0x36e   : > { %v838_v60 = vsub.f32 %v1581_v43, %v818_v59 }
 0x36f   : > { %v815_v61 = vpop.xlane.xlu1 %814 }
 0x370   : > { %v847_v62 = vmul.f32 1.442695, %v838_v60  ;;  %v837_v63 = vsub.f32 %v774_v45, %v815_v61 }
 0x372   : > { %1674 = vpow2.f32 %v847_v62  ;;  %v845_v9 = vmul.f32 1.442695, %v837_v63 }
 0x373   : > { %v821_v0 = vpop.xlane.xlu0 %820 }
 0x374   : > { %1676 = vpow2.f32 %v845_v9  ;;  %v839_v1 = vsub.f32 %v784_v48, %v821_v0 }
 0x376   : > { %v849_v2 = vmul.f32 1.442695, %v839_v1 }
 0x377   : > { %v827_v4 = vpop.xlane.xlu1 %826  ;;  %v824_v3 = vpop.xlane.xlu0 %823 }
 0x378   : > { %1678 = vpow2.f32 %v849_v2  ;;  %v841_v6 = vsub.f32 %v794_v51, %v827_v4  ;;  %v840_v11 = vsub.f32 %v1584_v47, %v824_v3 }
 0x37a   : > { %v853_v5 = vmul.f32 1.442695, %v841_v6  ;;  %v851_v12 = vmul.f32 1.442695, %v840_v11 }
 0x37b   : > { %v833_v8 = vpop.xlane.xlu1 %832  ;;  %v830_v7 = vpop.xlane.xlu0 %829 }
 0x37c   : > { %1680 = vpow2.f32 %v853_v5  ;;  %v843_v13 = vsub.f32 %v804_v55, %v833_v8  ;;  %v842_v14 = vsub.f32 %v1587_v50, %v830_v7  ;;  %v1489_v8 = vld [vmem:[%s1994_s4] ss:$0 sm:$0xff] }
 0x37d   : > { %1682 = vpow2.f32 %v851_v12 }
 0x37e   : > { %v857_v15 = vmul.f32 1.442695, %v843_v13  ;;  %v855_v16 = vmul.f32 1.442695, %v842_v14  ;;  %v1309_v14 = vld [vmem:[%s1952_s17 + $0x8] sm:$0xff] }
 0x37f   : > { %v1675_v17 = vpop.eup %1674  ;;  %v836_v18 = vpop.xlane.xlu0 %835 }
 0x380   : > { %1684 = vpow2.f32 %v857_v15  ;;  %v844_v19 = vsub.f32 %v1590_v54, %v836_v18  ;;  %v864_v20 = vsel %vm449_vm1, %v1675_v17, 0.0  ;;  %v1308_v18 = vld [vmem:[%s1952_s17] sm:$0xff] }
 0x381   : > { %v1677_v21 = vpop.eup %1676  ;;  %1686 = vpow2.f32 %v855_v16  ;;  %865 = vadd.xlane.f32.xlu0 %v864_v20 }
 0x382   : > { %v859_v22 = vmul.f32 1.442695, %v844_v19  ;;  %v861_v23 = vsel %vm449_vm1, %v1677_v21, 0.0 }
 0x383   : > { %862 = vadd.xlane.f32.xlu1 %v861_v23 }
 0x384   : > { %1688 = vpow2.f32 %v859_v22 }
 0x385   : > { %v1679_v24 = vpop.eup %1678 }
 0x386   : > { %v867_v25 = vsel %vm449_vm1, %v1679_v24, 0.0 }
 0x387   : > { %868 = vadd.xlane.f32.xlu1 %v867_v25 }
 0x389   : > { %v1681_v26 = vpop.eup %1680 }
 0x38a   : > { %v1683_v27 = vpop.eup %1682  ;;  %v873_v28 = vsel %vm449_vm1, %v1681_v26, 0.0 }
 0x38b   : > { %874 = vadd.xlane.f32.xlu1 %v873_v28  ;;  %v870_v29 = vsel %vm449_vm1, %v1683_v27, 0.0 }
 0x38c   : > { %871 = vadd.xlane.f32.xlu0 %v870_v29 }
 0x38d   : > { %v1685_v30 = vpop.eup %1684 }
 0x38e   : > { %v1687_v31 = vpop.eup %1686  ;;  %v879_v32 = vsel %vm449_vm1, %v1685_v30, 0.0 }
 0x38f   : > { %880 = vadd.xlane.f32.xlu1 %v879_v32  ;;  %v876_v33 = vsel %vm449_vm1, %v1687_v31, 0.0 }
 0x390   : > { %877 = vadd.xlane.f32.xlu0 %v876_v33 }
 0x391   : > { %v1689_v34 = vpop.eup %1688 }
 0x392   : > { %v882_v43 = vsel %vm449_vm1, %v1689_v34, 0.0 }
 0x394   : > { %883 = vadd.xlane.f32.xlu0 %v882_v43 }
 0x3a0   : > { %901 = vrot.lane.b32.xlu1 %v1832_v10, %s1714_s10  ;;  %v671_v10 = vld [vmem:[%s1993_s3] sm:$0xff] }
 0x40a   : > { %v866_v44 = vpop.xlane.xlu0 %865 }
 0x40b   : > { %1690 = vrcp.f32 %v866_v44  ;;  %v1313_v44 = vld [vmem:[%s1952_s17 + $0x28] sm:$0xff] }
 0x40c   : > { %v863_v45 = vpop.xlane.xlu1 %862 }
 0x40d   : > { %1692 = vrcp.f32 %v863_v45 }
 0x410   : > { %v869_v46 = vpop.xlane.xlu1 %868 }
 0x411   : > { %1694 = vrcp.f32 %v869_v46 }
 0x414   : > { %v875_v47 = vpop.xlane.xlu1 %874 }
 0x415   : > { %1696 = vrcp.f32 %v875_v47  ;;  %v872_v48 = vpop.xlane.xlu0 %871 }
 0x416   : > { %1698 = vrcp.f32 %v872_v48 }
 0x418   : > { %v881_v49 = vpop.xlane.xlu1 %880  ;;  %v1691_v50 = vpop.eup %1690 }
 0x419   : > { %1700 = vrcp.f32 %v881_v49  ;;  %v878_v51 = vpop.xlane.xlu0 %877  ;;  %v894_v55 = vmul.f32 %v1691_v50, %v1675_v17  ;;  %v1312_v49 = vld [vmem:[%s1952_s17 + $0x20] sm:$0xff] }
 0x41a   : > { %v1693_v52 = vpop.eup %1692  ;;  %1702 = vrcp.f32 %v878_v51 }
 0x41b   : > { %v893_v53 = vmul.f32 %v1693_v52, %v1677_v21 }
 0x41c   : > { %v902_v54 = vpop.permute.xlu1 %901 }
 0x41d   : > { %v884_v56 = vpop.xlane.xlu0 %883  ;;  %1591 = vmatprep.subr.msk.mxu0 %vm562_vm2, %v902_v54  ;;  %1593 = vmatprep.mubr.msk.f32.mxu0 %vm449_vm1, %v893_v53 }
 0x41e   : > { %v1695_v57 = vpop.eup %1694  ;;  %1704 = vrcp.f32 %v884_v56  ;;  %1592 = vmatpush3.msk.msra.mxu0 %vm562_vm2, %v902_v54 }
 0x41f   : > { %1594 = vmatmul.mubr.msk.f32.vlgmr.msra.gmra.mxu0 %vm449_vm1, %v894_v55  ;;  %v895_v58 = vmul.f32 %v1695_v57, %v1679_v24  ;;  %1619 = vmatprep.subr.mxu0 %v671_v10 }
 0x420   : > { %1620 = vmatpush3.msra.mxu0 %v671_v10  ;;  %v1315_v10 = vld [vmem:[%s1952_s17 + $0x38] sm:$0xff] }
 0x421   : > { %1596 = vmatprep.mubr.msk.f32.mxu0 %vm449_vm1, %v895_v58 }
 0x422   : > { %v1697_v59 = vpop.eup %1696 }
 0x423   : > { %v1699_v60 = vpop.eup %1698  ;;  %v897_v61 = vmul.f32 %v1697_v59, %v1681_v26  ;;  %v1311_v26 = vld [vmem:[%s1952_s17 + $0x18] sm:$0xff]  ;;  %v1314_v59 = vld [vmem:[%s1952_s17 + $0x30] sm:$0xff] }
 0x424   : > { %v896_v62 = vmul.f32 %v1699_v60, %v1683_v27 }
 0x426   : > { %v1701_v63 = vpop.eup %1700  ;;  %1597 = vmatmul.mubr.msk.f32.gmra.mxu0 %vm449_vm1, %v896_v62 }
 0x427   : > { %v1703_v9 = vpop.eup %1702  ;;  %1599 = vmatprep.mubr.msk.f32.mxu0 %vm449_vm1, %v897_v61  ;;  %v899_v0 = vmul.f32 %v1701_v63, %v1685_v30  ;;  %v1310_v30 = vld [vmem:[%s1952_s17 + $0x10] sm:$0xff] }
 0x428   : > { %v898_v1 = vmul.f32 %v1703_v9, %v1687_v31 }
 0x42a   : > { %1600 = vmatmul.mubr.msk.f32.gmra.mxu0 %vm449_vm1, %v898_v1 }
 0x42b   : > { %v1705_v2 = vpop.eup %1704  ;;  %1602 = vmatprep.mubr.msk.f32.mxu0 %vm449_vm1, %v899_v0 }
 0x42c   : > { %v900_v4 = vmul.f32 %v1705_v2, %v1689_v34 }
 0x42e   : > { %1603 = vmatmul.mubr.msk.f32.gmra.mxu0 %vm449_vm1, %v900_v4 }
 0x42f   : > { %1621 = vmatprep.mubr.msk.f32.mxu0 %vm316_vm0, %v1876_v36 }
 0x432   : > { %1622 = vmatmul.mubr.msk.f32.vlgmr.msra.gmra.mxu0 %vm316_vm0, %v1874_v35  ;;  %v1034_v35 = vld [vmem:[%s1993_s3 + $0x8] sm:$0xff] }
 0x433   : > { %1624 = vmatprep.mubr.msk.f32.mxu0 %vm316_vm0, %v1880_v38  ;;  %1605 = vmatprep.subr.mxu1 %v1034_v35 }
 0x434   : > { %1606 = vmatpush3.msra.mxu1 %v1034_v35 }
 0x436   : > { %1625 = vmatmul.mubr.msk.f32.gmra.mxu0 %vm316_vm0, %v1878_v37 }
 0x437   : > { %1627 = vmatprep.mubr.msk.f32.mxu0 %vm316_vm0, %v1884_v40 }
 0x43a   : > { %1628 = vmatmul.mubr.msk.f32.gmra.mxu0 %vm316_vm0, %v1882_v39 }
 0x43b   : > { %1630 = vmatprep.mubr.msk.f32.mxu0 %vm316_vm0, %v1888_v42 }
 0x43e   : > { %1631 = vmatmul.mubr.msk.f32.gmra.mxu0 %vm316_vm0, %v1886_v41 }
 0x4df   : > { %v1595_v36 = vpop.f32.mrf.mxu0 }
 0x4e1   : > { %v995_v37 = vpop.f32.mrf.mxu0 }
 0x4e2   : > { %1607 = vmatprep.mubr.msk.f32.mxu1 %vm316_vm0, %v995_v37 }
 0x4e3   : > { %1608 = vmatmul.mubr.msk.f32.vlgmr.msra.gmra.mxu1 %vm316_vm0, %v1595_v36 }
 0x4e6   : > { %v1598_v38 = vpop.f32.mrf.mxu0 }
 0x4e8   : > { %v1005_v39 = vpop.f32.mrf.mxu0 }
 0x4e9   : > { %1610 = vmatprep.mubr.msk.f32.mxu1 %vm316_vm0, %v1005_v39 }
 0x4ea   : > { %v1601_v40 = vpop.f32.mrf.mxu0  ;;  %1611 = vmatmul.mubr.msk.f32.gmra.mxu1 %vm316_vm0, %v1598_v38 }
 0x4ec   : > { %v1015_v41 = vpop.f32.mrf.mxu0 }
 0x4ed   : > { %1613 = vmatprep.mubr.msk.f32.mxu1 %vm316_vm0, %v1015_v41 }
 0x4ee   : > { %v1604_v42 = vpop.f32.mrf.mxu0  ;;  %1614 = vmatmul.mubr.msk.f32.gmra.mxu1 %vm316_vm0, %v1601_v40 }
 0x4f0   : > { %v1025_v3 = vpop.f32.mrf.mxu0 }
 0x4f1   : > { %1616 = vmatprep.mubr.msk.f32.mxu1 %vm316_vm0, %v1025_v3 }
 0x4f2   : > { %1617 = vmatmul.mubr.msk.f32.gmra.mxu1 %vm316_vm0, %v1604_v42  ;;  %v1623_v6 = vpop.f32.mrf.mxu0 }
 0x4f4   : > { %v1254_v11 = vpop.f32.mrf.mxu0 }
 0x4f6   : > { %v1626_v5 = vpop.f32.mrf.mxu0 }
 0x4f8   : > { %v1264_v7 = vpop.f32.mrf.mxu0 }
 0x4fa   : > { %v1629_v19 = vpop.f32.mrf.mxu0 }
 0x4fc   : > { %v1274_v25 = vpop.f32.mrf.mxu0 }
 0x4fe   : > { %v1632_v43 = vpop.f32.mrf.mxu0 }
 0x500   : > { %v1284_v54 = vpop.f32.mrf.mxu0 }
 0x5a3   : > { %v1609_v12 = vpop.f32.mrf.mxu1 }
 0x5a4   : > { %v1260_v13 = vadd.f32 %v1623_v6, %v1609_v12 }
 0x5a5   : > { %v1125_v15 = vpop.f32.mrf.mxu1 }
 0x5a6   : > { %v1301_v16 = vadd.f32 %v1489_v8, %v1260_v13  ;;  %v1255_v17 = vadd.f32 %v1254_v11, %v1125_v15 }
 0x5a8   : > { %v1317_v20 = vadd.f32 %v1309_v14, %v1301_v16  ;;  %v1300_v21 = vadd.f32 %v1489_v8, %v1255_v17 }
 0x5aa   : > { %1326 = vst.msk [vmem:[%s1962_s24 + $0x8] sm:$0xff] %vm1324_vm3, %v1317_v20  ;;  %v1316_v22 = vadd.f32 %v1308_v18, %v1300_v21  ;;  %v1612_v23 = vpop.f32.mrf.mxu1 }
 0x5ab   : > { %v1270_v24 = vadd.f32 %v1626_v5, %v1612_v23 }
 0x5ac   : > { %1325 = vst.msk [vmem:[%s1962_s24] sm:$0xff] %vm1324_vm3, %v1316_v22  ;;  %v1135_v27 = vpop.f32.mrf.mxu1 }
 0x5ad   : > { %v1303_v28 = vadd.f32 %v1489_v8, %v1270_v24  ;;  %v1265_v29 = vadd.f32 %v1264_v7, %v1135_v27 }
 0x5ae   : > { %v1615_v31 = vpop.f32.mrf.mxu1 }
 0x5af   : > { %v1319_v32 = vadd.f32 %v1311_v26, %v1303_v28  ;;  %v1302_v33 = vadd.f32 %v1489_v8, %v1265_v29  ;;  %v1280_v34 = vadd.f32 %v1629_v19, %v1615_v31 }
 0x5b0   : > { %v1145_v45 = vpop.f32.mrf.mxu1 }
 0x5b1   : > { %1328 = vst.msk [vmem:[%s1962_s24 + $0x18] sm:$0xff] %vm1324_vm3, %v1319_v32  ;;  %v1318_v46 = vadd.f32 %v1310_v30, %v1302_v33  ;;  %v1305_v47 = vadd.f32 %v1489_v8, %v1280_v34  ;;  %v1275_v48 = vadd.f32 %v1274_v25, %v1145_v45 }
 0x5b2   : > { %v1618_v50 = vpop.f32.mrf.mxu1 }
 0x5b3   : > { %1327 = vst.msk [vmem:[%s1962_s24 + $0x10] sm:$0xff] %vm1324_vm3, %v1318_v46  ;;  %v1321_v51 = vadd.f32 %v1313_v44, %v1305_v47  ;;  %v1304_v52 = vadd.f32 %v1489_v8, %v1275_v48  ;;  %v1290_v53 = vadd.f32 %v1632_v43, %v1618_v50 }
 0x5b4   : > { %v1155_v55 = vpop.f32.mrf.mxu1 }
 0x5b5   : > { %1330 = vst.msk [vmem:[%s1962_s24 + $0x28] sm:$0xff] %vm1324_vm3, %v1321_v51  ;;  %v1320_v56 = vadd.f32 %v1312_v49, %v1304_v52  ;;  %v1307_v57 = vadd.f32 %v1489_v8, %v1290_v53  ;;  %v1285_v58 = vadd.f32 %v1284_v54, %v1155_v55 }
 0x5b7   : > { %1329 = vst.msk [vmem:[%s1962_s24 + $0x20] sm:$0xff] %vm1324_vm3, %v1320_v56  ;;  %v1323_v60 = vadd.f32 %v1315_v10, %v1307_v57  ;;  %v1306_v61 = vadd.f32 %v1489_v8, %v1285_v58 }
 0x5b9   : > { %1332 = vst.msk [vmem:[%s1962_s24 + $0x38] sm:$0xff] %vm1324_vm3, %v1323_v60  ;;  %v1322_v62 = vadd.f32 %v1314_v59, %v1306_v61 }
 0x5bb   : > { %1331 = vst.msk [vmem:[%s1962_s24 + $0x30] sm:$0xff] %vm1324_vm3, %v1322_v62 }
 0x5bc PF: > { %s16_s21 = sadd.s32 1, %s1712_s21  }
 0x5bd   : > { %p13_p4 = scmp.ge.s32.totalorder %s16_s21, 4  }
 0x5bf   :  { %15 = sbr.rel (!%p13_p4) target bundleno = 1 (0x1), region = 83 }

// kernel: _lambda_.21
= control target key start
LH: loop header
LB: loop body
LE: loop exit
PB: predicated region body
PF: predicated region fallthrough
CT: control target
= control target key end

     0   :  { %vm38_vm0 = vcmask 130048   ;;  %s976_s0 = inlined_call_operand.vmem [shape: f32[128,16], index: 0, kind: input, shape index: {}]   ;;  %s977_s1 = inlined_call_operand.vmem [shape: f32[16,16], index: 1, kind: input, shape index: {}]   ;;  %s978_s3 = inlined_call_operand.vmem [shape: f32[1,16], index: 3, kind: input, shape index: {}]   ;;  %s979_s4 = inlined_call_operand.vmem [shape: f32[1,16], index: 4, kind: input, shape index: {}]   ;;  %s980_s2 = inlined_call_operand.vmem [shape: f32[1,16], index: 2, kind: input, shape index: {}]   ;;  %s981_s5 = inlined_call_operand.vmem [shape: f32[128,16], index: 5, kind: output, shape index: {}]  }
   0x1   :  { %v20_v0 = vld [vmem:[%s976_s0] sm:$0xff]  ;;  %v21_v1 = vld [vmem:[%s976_s0 + $0x8] sm:$0xff]  ;;  %v22_v8 = vld [vmem:[%s976_s0 + $0x10] sm:$0xff] }
   0x2   :  { %v28_v2 = vld [vmem:[%s976_s0 + $0x40] sm:$0xff]  ;;  %v39_v3 = vsel %vm38_vm0, %v20_v0, 0.0  ;;  %v42_v4 = vsel %vm38_vm0, %v21_v1, 0.0  ;;  %v29_v5 = vld [vmem:[%s976_s0 + $0x48] sm:$0xff]  ;;  %v30_v9 = vld [vmem:[%s976_s0 + $0x50] sm:$0xff]  ;;  %v45_v10 = vsel %vm38_vm0, %v22_v8, 0.0 }
   0x3   :  { %40 = vadd.xlane.f32.xlu0 %v39_v3  ;;  %43 = vadd.xlane.f32.xlu1 %v42_v4  ;;  %v63_v6 = vsel %vm38_vm0, %v28_v2, 0.0  ;;  %v66_v7 = vsel %vm38_vm0, %v29_v5, 0.0  ;;  %v69_v11 = vsel %vm38_vm0, %v30_v9, 0.0  ;;  %v672_v12 = vld [vmem:[%s976_s0 + $0x18] sm:$0xff]  ;;  %v686_v16 = vld [vmem:[%s976_s0 + $0x20] sm:$0xff]  ;;  %v700_v20 = vld [vmem:[%s976_s0 + $0x28] sm:$0xff] }
   0x4   :  { %v677_v13 = vld [vmem:[%s976_s0 + $0x58] sm:$0xff]  ;;  %v48_v14 = vsel %vm38_vm0, %v672_v12, 0.0  ;;  %v691_v17 = vld [vmem:[%s976_s0 + $0x60] sm:$0xff]  ;;  %v51_v18 = vsel %vm38_vm0, %v686_v16, 0.0  ;;  %v705_v21 = vld [vmem:[%s976_s0 + $0x68] sm:$0xff]  ;;  %v54_v22 = vsel %vm38_vm0, %v700_v20, 0.0 }
   0x5   :  { %v72_v15 = vsel %vm38_vm0, %v677_v13, 0.0  ;;  %v75_v19 = vsel %vm38_vm0, %v691_v17, 0.0  ;;  %v78_v23 = vsel %vm38_vm0, %v705_v21, 0.0  ;;  %v714_v24 = vld [vmem:[%s976_s0 + $0x30] sm:$0xff]  ;;  %v728_v28 = vld [vmem:[%s976_s0 + $0x38] sm:$0xff] }
   0x6   :  { %v719_v25 = vld [vmem:[%s976_s0 + $0x70] sm:$0xff]  ;;  %v57_v26 = vsel %vm38_vm0, %v714_v24, 0.0  ;;  %v733_v29 = vld [vmem:[%s976_s0 + $0x78] sm:$0xff]  ;;  %v60_v30 = vsel %vm38_vm0, %v728_v28, 0.0 }
   0x7   :  { %64 = vadd.xlane.f32.xlu0 %v63_v6  ;;  %67 = vadd.xlane.f32.xlu1 %v66_v7  ;;  %v81_v27 = vsel %vm38_vm0, %v719_v25, 0.0  ;;  %v84_v31 = vsel %vm38_vm0, %v733_v29, 0.0 }
   0xb   :  { %46 = vadd.xlane.f32.xlu0 %v45_v10  ;;  %70 = vadd.xlane.f32.xlu1 %v69_v11 }
   0xf   :  { %49 = vadd.xlane.f32.xlu0 %v48_v14  ;;  %73 = vadd.xlane.f32.xlu1 %v72_v15 }
  0x13   :  { %52 = vadd.xlane.f32.xlu0 %v51_v18  ;;  %76 = vadd.xlane.f32.xlu1 %v75_v19 }
  0x17   :  { %55 = vadd.xlane.f32.xlu0 %v54_v22  ;;  %79 = vadd.xlane.f32.xlu1 %v78_v23 }
  0x1b   :  { %58 = vadd.xlane.f32.xlu0 %v57_v26  ;;  %82 = vadd.xlane.f32.xlu1 %v81_v27 }
  0x1f   :  { %61 = vadd.xlane.f32.xlu0 %v60_v30  ;;  %85 = vadd.xlane.f32.xlu1 %v84_v31 }
  0x8c   :  { %v41_v32 = vpop.xlane.xlu0 %40  ;;  %v44_v33 = vpop.xlane.xlu1 %43 }
  0x8d   :  { %v88_v34 = vmul.f32 0.0625, %v41_v32  ;;  %v89_v35 = vmul.f32 0.0625, %v44_v33 }
  0x8f   :  { %v739_v36 = vsub.f32 %v20_v0, %v88_v34  ;;  %v741_v37 = vsub.f32 %v21_v1, %v89_v35 }
  0x90   :  { %v65_v38 = vpop.xlane.xlu0 %64  ;;  %v68_v39 = vpop.xlane.xlu1 %67 }
  0x91   :  { %v96_v40 = vmul.f32 0.0625, %v65_v38  ;;  %v97_v41 = vmul.f32 0.0625, %v68_v39  ;;  %v120_v42 = vmul.f32 %v739_v36, %v739_v36  ;;  %v121_v43 = vmul.f32 %v741_v37, %v741_v37 }
  0x93   :  { %v747_v44 = vsub.f32 %v28_v2, %v96_v40  ;;  %v749_v45 = vsub.f32 %v29_v5, %v97_v41  ;;  %v136_v46 = vsel %vm38_vm0, %v120_v42, 0.0  ;;  %v139_v49 = vsel %vm38_vm0, %v121_v43, 0.0 }
  0x94   :  { %137 = vadd.xlane.f32.xlu0 %v136_v46  ;;  %v47_v47 = vpop.xlane.xlu0 %46  ;;  %v71_v48 = vpop.xlane.xlu1 %70 }
  0x95   :  { %v90_v50 = vmul.f32 0.0625, %v47_v47  ;;  %v98_v51 = vmul.f32 0.0625, %v71_v48  ;;  %v128_v52 = vmul.f32 %v747_v44, %v747_v44  ;;  %v129_v53 = vmul.f32 %v749_v45, %v749_v45 }
  0x97   :  { %v757_v54 = vsub.f32 %v22_v8, %v90_v50  ;;  %v759_v55 = vsub.f32 %v30_v9, %v98_v51  ;;  %v160_v56 = vsel %vm38_vm0, %v128_v52, 0.0  ;;  %v163_v59 = vsel %vm38_vm0, %v129_v53, 0.0  ;;  %v292_v53 = vld [vmem:[%s977_s1] sm:$0xff] }
  0x98   :  { %140 = vadd.xlane.f32.xlu0 %v139_v49  ;;  %161 = vadd.xlane.f32.xlu1 %v160_v56  ;;  %v50_v57 = vpop.xlane.xlu0 %49  ;;  %v74_v58 = vpop.xlane.xlu1 %73 }
  0x99   :  { %v91_v60 = vmul.f32 0.0625, %v50_v57  ;;  %v99_v61 = vmul.f32 0.0625, %v74_v58  ;;  %v122_v62 = vmul.f32 %v757_v54, %v757_v54  ;;  %v130_v63 = vmul.f32 %v759_v55, %v759_v55 }
  0x9b   :  { %v768_v0 = vsub.f32 %v672_v12, %v91_v60  ;;  %v771_v1 = vsub.f32 %v677_v13, %v99_v61  ;;  %v142_v2 = vsel %vm38_vm0, %v122_v62, 0.0  ;;  %v166_v5 = vsel %vm38_vm0, %v130_v63, 0.0 }
  0x9c   :  { %164 = vadd.xlane.f32.xlu1 %v163_v59  ;;  %143 = vadd.xlane.f32.xlu0 %v142_v2  ;;  %v53_v3 = vpop.xlane.xlu0 %52  ;;  %v77_v4 = vpop.xlane.xlu1 %76 }
  0x9d   :  { %v92_v6 = vmul.f32 0.0625, %v53_v3  ;;  %v100_v7 = vmul.f32 0.0625, %v77_v4  ;;  %v123_v8 = vmul.f32 %v768_v0, %v768_v0  ;;  %v131_v9 = vmul.f32 %v771_v1, %v771_v1 }
  0x9f   :  { %v780_v10 = vsub.f32 %v686_v16, %v92_v6  ;;  %v783_v11 = vsub.f32 %v691_v17, %v100_v7  ;;  %v145_v12 = vsel %vm38_vm0, %v123_v8, 0.0  ;;  %v169_v15 = vsel %vm38_vm0, %v131_v9, 0.0 }
  0xa0   :  { %167 = vadd.xlane.f32.xlu1 %v166_v5  ;;  %146 = vadd.xlane.f32.xlu0 %v145_v12  ;;  %v56_v13 = vpop.xlane.xlu0 %55  ;;  %v80_v14 = vpop.xlane.xlu1 %79 }
  0xa1   :  { %v93_v18 = vmul.f32 0.0625, %v56_v13  ;;  %v101_v19 = vmul.f32 0.0625, %v80_v14  ;;  %v124_v22 = vmul.f32 %v780_v10, %v780_v10  ;;  %v132_v16 = vmul.f32 %v783_v11, %v783_v11 }
  0xa3   :  { %v792_v23 = vsub.f32 %v700_v20, %v93_v18  ;;  %v795_v17 = vsub.f32 %v705_v21, %v101_v19  ;;  %v148_v26 = vsel %vm38_vm0, %v124_v22, 0.0  ;;  %v172_v31 = vsel %vm38_vm0, %v132_v16, 0.0 }
  0xa4   :  { %170 = vadd.xlane.f32.xlu1 %v169_v15  ;;  %149 = vadd.xlane.f32.xlu0 %v148_v26  ;;  %v59_v27 = vpop.xlane.xlu0 %58  ;;  %v83_v30 = vpop.xlane.xlu1 %82 }
  0xa5   :  { %v94_v32 = vmul.f32 0.0625, %v59_v27  ;;  %v102_v33 = vmul.f32 0.0625, %v83_v30  ;;  %v125_v34 = vmul.f32 %v792_v23, %v792_v23  ;;  %v133_v20 = vmul.f32 %v795_v17, %v795_v17  ;;  %v838_v30 = vld [vmem:[%s978_s3] ss:$0 sm:$0xff] }
  0xa7   :  { %v804_v35 = vsub.f32 %v714_v24, %v94_v32  ;;  %v807_v21 = vsub.f32 %v719_v25, %v102_v33  ;;  %v151_v38 = vsel %vm38_vm0, %v125_v34, 0.0  ;;  %v175_v41 = vsel %vm38_vm0, %v133_v20, 0.0 }
  0xa8   :  { %173 = vadd.xlane.f32.xlu1 %v172_v31  ;;  %152 = vadd.xlane.f32.xlu0 %v151_v38  ;;  %v62_v39 = vpop.xlane.xlu0 %61  ;;  %v86_v40 = vpop.xlane.xlu1 %85  ;;  %v844_v38 = vld [vmem:[%s979_s4] ss:$0 sm:$0xff] }
  0xa9   :  { %v95_v42 = vmul.f32 0.0625, %v62_v39  ;;  %v103_v43 = vmul.f32 0.0625, %v86_v40  ;;  %v126_v46 = vmul.f32 %v804_v35, %v804_v35  ;;  %v134_v24 = vmul.f32 %v807_v21, %v807_v21 }
  0xab   :  { %v816_v47 = vsub.f32 %v728_v28, %v95_v42  ;;  %v819_v25 = vsub.f32 %v733_v29, %v103_v43  ;;  %v154_v48 = vsel %vm38_vm0, %v126_v46, 0.0  ;;  %v178_v49 = vsel %vm38_vm0, %v134_v24, 0.0  ;;  %v293_v29 = vld [vmem:[%s977_s1 + $0x8] sm:$0xff] }
  0xac   :  { %176 = vadd.xlane.f32.xlu1 %v175_v41  ;;  %155 = vadd.xlane.f32.xlu0 %v154_v48 }
  0xad   :  { %v127_v50 = vmul.f32 %v816_v47, %v816_v47  ;;  %v135_v51 = vmul.f32 %v819_v25, %v819_v25  ;;  %551 = vmatprep.subr.mxu0 %v293_v29  ;;  %579 = vmatprep.subr.mxu1 %v293_v29 }
  0xae   :  { %552 = vmatpush3.msra.mxu0 %v293_v29  ;;  %581 = vmatpush3.msra.mxu1 %v293_v29 }
  0xaf   :  { %v157_v52 = vsel %vm38_vm0, %v127_v50, 0.0  ;;  %v181_v28 = vsel %vm38_vm0, %v135_v51, 0.0  ;;  %553 = vmatprep.subr.mxu0 %v292_v53  ;;  %580 = vmatprep.subr.mxu1 %v292_v53 }
  0xb0   :  { %179 = vadd.xlane.f32.xlu1 %v178_v49  ;;  %158 = vadd.xlane.f32.xlu0 %v157_v52 }
  0xb1   :  { %554 = vmatpush3.msra.mxu0 %v292_v53  ;;  %582 = vmatpush3.msra.mxu1 %v292_v53 }
  0xb4   :  { %182 = vadd.xlane.f32.xlu1 %v181_v28 }
 0x11d   :  { %v138_v56 = vpop.xlane.xlu0 %137 }
 0x11e   :  { %v184_v57 = vmul.f32 0.0625, %v138_v56 }
 0x120   :  { %v200_v58 = vadd.f32 1e-05, %v184_v57 }
 0x121   :  { %v162_v59 = vpop.xlane.xlu1 %161  ;;  %v141_v60 = vpop.xlane.xlu0 %140 }
 0x122   :  { %583 = vrsqrt.f32 %v200_v58  ;;  %v192_v61 = vmul.f32 0.0625, %v162_v59  ;;  %v185_v62 = vmul.f32 0.0625, %v141_v60 }
 0x124   :  { %v208_v63 = vadd.f32 1e-05, %v192_v61  ;;  %v201_v2 = vadd.f32 1e-05, %v185_v62 }
 0x125   :  { %v165_v3 = vpop.xlane.xlu1 %164  ;;  %v144_v4 = vpop.xlane.xlu0 %143 }
 0x126   :  { %585 = vrsqrt.f32 %v208_v63  ;;  %v193_v5 = vmul.f32 0.0625, %v165_v3  ;;  %v186_v6 = vmul.f32 0.0625, %v144_v4 }
 0x127   :  { %587 = vrsqrt.f32 %v201_v2 }
 0x128   :  { %v209_v7 = vadd.f32 1e-05, %v193_v5  ;;  %v202_v8 = vadd.f32 1e-05, %v186_v6 }
 0x129   :  { %v168_v9 = vpop.xlane.xlu1 %167  ;;  %v147_v12 = vpop.xlane.xlu0 %146 }
 0x12a   :  { %589 = vrsqrt.f32 %v209_v7  ;;  %v194_v13 = vmul.f32 0.0625, %v168_v9  ;;  %v187_v14 = vmul.f32 0.0625, %v147_v12 }
 0x12b   :  { %591 = vrsqrt.f32 %v202_v8 }
 0x12c   :  { %v210_v15 = vadd.f32 1e-05, %v194_v13  ;;  %v203_v18 = vadd.f32 1e-05, %v187_v14 }
 0x12d   :  { %v171_v19 = vpop.xlane.xlu1 %170  ;;  %v150_v22 = vpop.xlane.xlu0 %149 }
 0x12e   :  { %593 = vrsqrt.f32 %v210_v15  ;;  %v195_v16 = vmul.f32 0.0625, %v171_v19  ;;  %v188_v26 = vmul.f32 0.0625, %v150_v22 }
 0x12f   :  { %v584_v27 = vpop.eup %583  ;;  %595 = vrsqrt.f32 %v203_v18 }
 0x130   :  { %v211_v31 = vadd.f32 1e-05, %v195_v16  ;;  %v204_v32 = vadd.f32 1e-05, %v188_v26  ;;  %v232_v33 = vmul.f32 %v584_v27, %v739_v36 }
 0x131   :  { %v174_v34 = vpop.xlane.xlu1 %173  ;;  %v153_v20 = vpop.xlane.xlu0 %152 }
 0x132   :  { %597 = vrsqrt.f32 %v211_v31  ;;  %v196_v39 = vmul.f32 0.0625, %v174_v34  ;;  %v189_v40 = vmul.f32 0.0625, %v153_v20  ;;  %v254_v41 = vmul.f32 %v838_v30, %v232_v33 }
 0x133   :  { %v586_v42 = vpop.eup %585  ;;  %599 = vrsqrt.f32 %v204_v32 }
 0x134   :  { %v588_v43 = vpop.eup %587  ;;  %v212_v46 = vadd.f32 1e-05, %v196_v39  ;;  %v205_v24 = vadd.f32 1e-05, %v189_v40  ;;  %v276_v48 = vadd.f32 %v844_v38, %v254_v41  ;;  %v240_v36 = vmul.f32 %v586_v42, %v747_v44 }
 0x135   :  { %v177_v49 = vpop.xlane.xlu1 %176  ;;  %v156_v50 = vpop.xlane.xlu0 %155  ;;  %v233_v51 = vmul.f32 %v588_v43, %v741_v37 }
 0x136   :  { %601 = vrsqrt.f32 %v212_v46  ;;  %v197_v52 = vmul.f32 0.0625, %v177_v49  ;;  %v190_v28 = vmul.f32 0.0625, %v156_v50  ;;  %555 = vmatprep.mubr.msk.f32.mxu0 %vm38_vm0, %v276_v48  ;;  %v262_v29 = vmul.f32 %v838_v30, %v240_v36 }
 0x137   :  { %v590_v53 = vpop.eup %589  ;;  %603 = vrsqrt.f32 %v205_v24  ;;  %v255_v56 = vmul.f32 %v838_v30, %v233_v51 }
 0x138   :  { %v592_v57 = vpop.eup %591  ;;  %v213_v58 = vadd.f32 1e-05, %v197_v52  ;;  %v206_v59 = vadd.f32 1e-05, %v190_v28  ;;  %v284_v44 = vadd.f32 %v844_v38, %v262_v29  ;;  %v241_v60 = vmul.f32 %v590_v53, %v749_v45 }
 0x139   :  { %v180_v61 = vpop.xlane.xlu1 %179  ;;  %v159_v37 = vpop.xlane.xlu0 %158  ;;  %v277_v62 = vadd.f32 %v844_v38, %v255_v56  ;;  %v234_v63 = vmul.f32 %v592_v57, %v757_v54 }
 0x13a   :  { %605 = vrsqrt.f32 %v213_v58  ;;  %v198_v2 = vmul.f32 0.0625, %v180_v61  ;;  %v191_v3 = vmul.f32 0.0625, %v159_v37  ;;  %567 = vmatprep.mubr.msk.f32.mxu1 %vm38_vm0, %v284_v44  ;;  %v263_v4 = vmul.f32 %v838_v30, %v241_v60  ;;  %v516_v44 = vld [vmem:[%s980_s2] ss:$0 sm:$0xff] }
 0x13b   :  { %v594_v5 = vpop.eup %593  ;;  %607 = vrsqrt.f32 %v206_v59  ;;  %556 = vmatmul.mubr.msk.f32.vlgmr.msra.gmra.mxu0 %vm38_vm0, %v277_v62  ;;  %v256_v6 = vmul.f32 %v838_v30, %v234_v63 }
 0x13c   :  { %v596_v45 = vpop.eup %595  ;;  %v214_v7 = vadd.f32 1e-05, %v198_v2  ;;  %v207_v8 = vadd.f32 1e-05, %v191_v3  ;;  %v285_v9 = vadd.f32 %v844_v38, %v263_v4  ;;  %v242_v54 = vmul.f32 %v594_v5, %v759_v55 }
 0x13d   :  { %v183_v12 = vpop.xlane.xlu1 %182  ;;  %v278_v13 = vadd.f32 %v844_v38, %v256_v6  ;;  %v235_v14 = vmul.f32 %v596_v45, %v768_v0 }
 0x13e   :  { %609 = vrsqrt.f32 %v214_v7  ;;  %v199_v15 = vmul.f32 0.0625, %v183_v12  ;;  %568 = vmatmul.mubr.msk.f32.vlgmr.msra.gmra.mxu1 %vm38_vm0, %v285_v9  ;;  %v264_v18 = vmul.f32 %v838_v30, %v242_v54 }
 0x13f   :  { %v598_v19 = vpop.eup %597  ;;  %611 = vrsqrt.f32 %v207_v8  ;;  %558 = vmatprep.mubr.msk.f32.mxu0 %vm38_vm0, %v278_v13  ;;  %v257_v22 = vmul.f32 %v838_v30, %v235_v14 }
 0x140   :  { %v600_v16 = vpop.eup %599  ;;  %v215_v26 = vadd.f32 1e-05, %v199_v15  ;;  %v286_v55 = vadd.f32 %v844_v38, %v264_v18  ;;  %v243_v27 = vmul.f32 %v598_v19, %v771_v1 }
 0x141   :  { %v279_v0 = vadd.f32 %v844_v38, %v257_v22  ;;  %v236_v31 = vmul.f32 %v600_v16, %v780_v10 }
 0x142   :  { %613 = vrsqrt.f32 %v215_v26  ;;  %570 = vmatprep.mubr.msk.f32.mxu1 %vm38_vm0, %v286_v55  ;;  %v265_v32 = vmul.f32 %v838_v30, %v243_v27 }
 0x143   :  { %v602_v33 = vpop.eup %601  ;;  %559 = vmatmul.mubr.msk.f32.gmra.mxu0 %vm38_vm0, %v279_v0  ;;  %v258_v34 = vmul.f32 %v838_v30, %v236_v31 }
 0x144   :  { %v604_v20 = vpop.eup %603  ;;  %v287_v39 = vadd.f32 %v844_v38, %v265_v32  ;;  %v244_v40 = vmul.f32 %v602_v33, %v783_v11 }
 0x145   :  { %v280_v1 = vadd.f32 %v844_v38, %v258_v34  ;;  %v237_v41 = vmul.f32 %v604_v20, %v792_v23 }
 0x146   :  { %571 = vmatmul.mubr.msk.f32.gmra.mxu1 %vm38_vm0, %v287_v39  ;;  %v266_v10 = vmul.f32 %v838_v30, %v244_v40 }
 0x147   :  { %v606_v42 = vpop.eup %605  ;;  %561 = vmatprep.mubr.msk.f32.mxu0 %vm38_vm0, %v280_v1  ;;  %v259_v43 = vmul.f32 %v838_v30, %v237_v41 }
 0x148   :  { %v608_v46 = vpop.eup %607  ;;  %v288_v24 = vadd.f32 %v844_v38, %v266_v10  ;;  %v245_v48 = vmul.f32 %v606_v42, %v795_v17 }
 0x149   :  { %v281_v11 = vadd.f32 %v844_v38, %v259_v43  ;;  %v238_v36 = vmul.f32 %v608_v46, %v804_v35 }
 0x14a   :  { %573 = vmatprep.mubr.msk.f32.mxu1 %vm38_vm0, %v288_v24  ;;  %v267_v23 = vmul.f32 %v838_v30, %v245_v48 }
 0x14b   :  { %v610_v49 = vpop.eup %609  ;;  %562 = vmatmul.mubr.msk.f32.gmra.mxu0 %vm38_vm0, %v281_v11  ;;  %v260_v50 = vmul.f32 %v838_v30, %v238_v36 }
 0x14c   :  { %v612_v51 = vpop.eup %611  ;;  %v289_v52 = vadd.f32 %v844_v38, %v267_v23  ;;  %v246_v28 = vmul.f32 %v610_v49, %v807_v21 }
 0x14d   :  { %v282_v17 = vadd.f32 %v844_v38, %v260_v50  ;;  %v239_v29 = vmul.f32 %v612_v51, %v816_v47 }
 0x14e   :  { %574 = vmatmul.mubr.msk.f32.gmra.mxu1 %vm38_vm0, %v289_v52  ;;  %v268_v35 = vmul.f32 %v838_v30, %v246_v28 }
 0x14f   :  { %v614_v53 = vpop.eup %613  ;;  %564 = vmatprep.mubr.msk.f32.mxu0 %vm38_vm0, %v282_v17  ;;  %v261_v56 = vmul.f32 %v838_v30, %v239_v29 }
 0x150   :  { %v290_v57 = vadd.f32 %v844_v38, %v268_v35  ;;  %v247_v58 = vmul.f32 %v614_v53, %v819_v25 }
 0x151   :  { %v283_v59 = vadd.f32 %v844_v38, %v261_v56 }
 0x152   :  { %576 = vmatprep.mubr.msk.f32.mxu1 %vm38_vm0, %v290_v57  ;;  %v269_v21 = vmul.f32 %v838_v30, %v247_v58 }
 0x153   :  { %565 = vmatmul.mubr.msk.f32.gmra.mxu0 %vm38_vm0, %v283_v59 }
 0x154   :  { %v291_v47 = vadd.f32 %v844_v38, %v269_v21 }
 0x156   :  { %577 = vmatmul.mubr.msk.f32.gmra.mxu1 %vm38_vm0, %v291_v47 }
 0x1fb   :  { %v557_v60 = vpop.f32.mrf.mxu0 }
 0x1fc   :  { %v421_v61 = vadd.f32 %v557_v60, %v516_v44 }
 0x1fd   :  { %v415_v37 = vpop.f32.mrf.mxu0 }
 0x1fe   :  { %495 = vst.msk [vmem:[%s981_s5 + $0x8] sm:$0xff] %vm38_vm0, %v421_v61  ;;  %v416_v25 = vadd.f32 %v516_v44, %v415_v37  ;;  %v569_v30 = vpop.f32.mrf.mxu1 }
 0x1ff   :  { %v461_v62 = vadd.f32 %v569_v30, %v516_v44 }
 0x200   :  { %494 = vst.msk [vmem:[%s981_s5] sm:$0xff] %vm38_vm0, %v416_v25  ;;  %v455_v38 = vpop.f32.mrf.mxu1 }
 0x201   :  { %503 = vst.msk [vmem:[%s981_s5 + $0x48] sm:$0xff] %vm38_vm0, %v461_v62  ;;  %v456_v63 = vadd.f32 %v516_v44, %v455_v38 }
 0x203   :  { %502 = vst.msk [vmem:[%s981_s5 + $0x40] sm:$0xff] %vm38_vm0, %v456_v63  ;;  %v560_v2 = vpop.f32.mrf.mxu0 }
 0x204   :  { %v431_v3 = vadd.f32 %v560_v2, %v516_v44 }
 0x205   :  { %v425_v4 = vpop.f32.mrf.mxu0 }
 0x206   :  { %497 = vst.msk [vmem:[%s981_s5 + $0x18] sm:$0xff] %vm38_vm0, %v431_v3  ;;  %v426_v5 = vadd.f32 %v516_v44, %v425_v4  ;;  %v572_v6 = vpop.f32.mrf.mxu1 }
 0x207   :  { %v471_v45 = vadd.f32 %v572_v6, %v516_v44 }
 0x208   :  { %496 = vst.msk [vmem:[%s981_s5 + $0x10] sm:$0xff] %vm38_vm0, %v426_v5  ;;  %v465_v7 = vpop.f32.mrf.mxu1 }
 0x209   :  { %505 = vst.msk [vmem:[%s981_s5 + $0x58] sm:$0xff] %vm38_vm0, %v471_v45  ;;  %v466_v8 = vadd.f32 %v516_v44, %v465_v7 }
 0x20b   :  { %504 = vst.msk [vmem:[%s981_s5 + $0x50] sm:$0xff] %vm38_vm0, %v466_v8  ;;  %v563_v9 = vpop.f32.mrf.mxu0 }
 0x20c   :  { %v441_v54 = vadd.f32 %v563_v9, %v516_v44 }
 0x20d   :  { %v435_v12 = vpop.f32.mrf.mxu0 }
 0x20e   :  { %499 = vst.msk [vmem:[%s981_s5 + $0x28] sm:$0xff] %vm38_vm0, %v441_v54  ;;  %v436_v13 = vadd.f32 %v516_v44, %v435_v12  ;;  %v575_v14 = vpop.f32.mrf.mxu1 }
 0x20f   :  { %v481_v15 = vadd.f32 %v575_v14, %v516_v44 }
 0x210   :  { %498 = vst.msk [vmem:[%s981_s5 + $0x20] sm:$0xff] %vm38_vm0, %v436_v13  ;;  %v475_v18 = vpop.f32.mrf.mxu1 }
 0x211   :  { %507 = vst.msk [vmem:[%s981_s5 + $0x68] sm:$0xff] %vm38_vm0, %v481_v15  ;;  %v476_v19 = vadd.f32 %v516_v44, %v475_v18 }
 0x213   :  { %506 = vst.msk [vmem:[%s981_s5 + $0x60] sm:$0xff] %vm38_vm0, %v476_v19  ;;  %v566_v22 = vpop.f32.mrf.mxu0 }
 0x214   :  { %v451_v16 = vadd.f32 %v566_v22, %v516_v44 }
 0x215   :  { %v445_v26 = vpop.f32.mrf.mxu0 }
 0x216   :  { %501 = vst.msk [vmem:[%s981_s5 + $0x38] sm:$0xff] %vm38_vm0, %v451_v16  ;;  %v446_v55 = vadd.f32 %v516_v44, %v445_v26  ;;  %v578_v27 = vpop.f32.mrf.mxu1 }
 0x217   :  { %v491_v0 = vadd.f32 %v578_v27, %v516_v44 }
 0x218   :  { %500 = vst.msk [vmem:[%s981_s5 + $0x30] sm:$0xff] %vm38_vm0, %v446_v55  ;;  %v485_v31 = vpop.f32.mrf.mxu1 }
 0x219   :  { %509 = vst.msk [vmem:[%s981_s5 + $0x78] sm:$0xff] %vm38_vm0, %v491_v0  ;;  %v486_v32 = vadd.f32 %v516_v44, %v485_v31 }
 0x21b   :  { %508 = vst.msk [vmem:[%s981_s5 + $0x70] sm:$0xff] %vm38_vm0, %v486_v32 }

// kernel: _lambda_.23
= control target key start
LH: loop header
LB: loop body
LE: loop exit
PB: predicated region body
PF: predicated region fallthrough
CT: control target
= control target key end

     0   :  { %vm32_vm0 = vcmask 130048   ;;  %s666_s0 = inlined_call_operand.vmem [shape: f32[128,16], index: 0, kind: input, shape index: {}]   ;;  %s667_s1 = inlined_call_operand.vmem [shape: f32[1,16], index: 1, kind: input, shape index: {}]   ;;  %s668_s2 = inlined_call_operand.vmem [shape: f32[1,16], index: 2, kind: input, shape index: {}]   ;;  %s669_s3 = inlined_call_operand.vmem [shape: f32[128,16], index: 3, kind: output, shape index: {}]  }
   0x1   :  { %v14_v0 = vld [vmem:[%s666_s0] sm:$0xff]  ;;  %v16_v1 = vld [vmem:[%s666_s0 + $0x10] sm:$0xff]  ;;  %v15_v2 = vld [vmem:[%s666_s0 + $0x8] sm:$0xff] }
   0x2   :  { %v33_v3 = vsel %vm32_vm0, %v14_v0, 0.0  ;;  %v39_v4 = vsel %vm32_vm0, %v16_v1, 0.0  ;;  %v17_v5 = vld [vmem:[%s666_s0 + $0x18] sm:$0xff]  ;;  %v36_v6 = vsel %vm32_vm0, %v15_v2, 0.0  ;;  %v18_v8 = vld [vmem:[%s666_s0 + $0x20] sm:$0xff]  ;;  %v19_v9 = vld [vmem:[%s666_s0 + $0x28] sm:$0xff] }
   0x3   :  { %34 = vadd.xlane.f32.xlu0 %v33_v3  ;;  %40 = vadd.xlane.f32.xlu1 %v39_v4  ;;  %v42_v7 = vsel %vm32_vm0, %v17_v5, 0.0  ;;  %v45_v10 = vsel %vm32_vm0, %v18_v8, 0.0  ;;  %v48_v11 = vsel %vm32_vm0, %v19_v9, 0.0  ;;  %v387_v12 = vld [vmem:[%s666_s0 + $0x30] sm:$0xff]  ;;  %v392_v13 = vld [vmem:[%s666_s0 + $0x38] sm:$0xff]  ;;  %v401_v16 = vld [vmem:[%s666_s0 + $0x40] sm:$0xff] }
   0x4   :  { %v51_v14 = vsel %vm32_vm0, %v387_v12, 0.0  ;;  %v54_v15 = vsel %vm32_vm0, %v392_v13, 0.0  ;;  %v406_v17 = vld [vmem:[%s666_s0 + $0x48] sm:$0xff]  ;;  %v57_v18 = vsel %vm32_vm0, %v401_v16, 0.0  ;;  %v415_v20 = vld [vmem:[%s666_s0 + $0x50] sm:$0xff]  ;;  %v420_v21 = vld [vmem:[%s666_s0 + $0x58] sm:$0xff] }
   0x5   :  { %v60_v19 = vsel %vm32_vm0, %v406_v17, 0.0  ;;  %v63_v22 = vsel %vm32_vm0, %v415_v20, 0.0  ;;  %v66_v23 = vsel %vm32_vm0, %v420_v21, 0.0  ;;  %v429_v24 = vld [vmem:[%s666_s0 + $0x60] sm:$0xff]  ;;  %v434_v25 = vld [vmem:[%s666_s0 + $0x68] sm:$0xff]  ;;  %v443_v28 = vld [vmem:[%s666_s0 + $0x70] sm:$0xff] }
   0x6   :  { %v69_v26 = vsel %vm32_vm0, %v429_v24, 0.0  ;;  %v72_v27 = vsel %vm32_vm0, %v434_v25, 0.0  ;;  %v448_v29 = vld [vmem:[%s666_s0 + $0x78] sm:$0xff]  ;;  %v75_v30 = vsel %vm32_vm0, %v443_v28, 0.0 }
   0x7   :  { %37 = vadd.xlane.f32.xlu0 %v36_v6  ;;  %43 = vadd.xlane.f32.xlu1 %v42_v7  ;;  %v78_v31 = vsel %vm32_vm0, %v448_v29, 0.0 }
   0xb   :  { %46 = vadd.xlane.f32.xlu0 %v45_v10  ;;  %49 = vadd.xlane.f32.xlu1 %v48_v11 }
   0xf   :  { %52 = vadd.xlane.f32.xlu0 %v51_v14  ;;  %55 = vadd.xlane.f32.xlu1 %v54_v15 }
  0x13   :  { %58 = vadd.xlane.f32.xlu0 %v57_v18  ;;  %61 = vadd.xlane.f32.xlu1 %v60_v19 }
  0x17   :  { %64 = vadd.xlane.f32.xlu0 %v63_v22  ;;  %67 = vadd.xlane.f32.xlu1 %v66_v23 }
  0x1b   :  { %70 = vadd.xlane.f32.xlu0 %v69_v26  ;;  %73 = vadd.xlane.f32.xlu1 %v72_v27 }
  0x1f   :  { %76 = vadd.xlane.f32.xlu0 %v75_v30  ;;  %79 = vadd.xlane.f32.xlu1 %v78_v31 }
  0x8c   :  { %v35_v32 = vpop.xlane.xlu0 %34  ;;  %v41_v33 = vpop.xlane.xlu1 %40 }
  0x8d   :  { %v82_v34 = vmul.f32 0.0625, %v35_v32  ;;  %v84_v35 = vmul.f32 0.0625, %v41_v33 }
  0x8f   :  { %v454_v36 = vsub.f32 %v14_v0, %v82_v34  ;;  %v456_v37 = vsub.f32 %v16_v1, %v84_v35 }
  0x90   :  { %v38_v38 = vpop.xlane.xlu0 %37  ;;  %v44_v39 = vpop.xlane.xlu1 %43 }
  0x91   :  { %v83_v40 = vmul.f32 0.0625, %v38_v38  ;;  %v85_v41 = vmul.f32 0.0625, %v44_v39  ;;  %v114_v42 = vmul.f32 %v454_v36, %v454_v36  ;;  %v116_v43 = vmul.f32 %v456_v37, %v456_v37 }
  0x93   :  { %v462_v44 = vsub.f32 %v15_v2, %v83_v40  ;;  %v464_v45 = vsub.f32 %v17_v5, %v85_v41  ;;  %v130_v46 = vsel %vm32_vm0, %v114_v42, 0.0  ;;  %v136_v49 = vsel %vm32_vm0, %v116_v43, 0.0 }
  0x94   :  { %131 = vadd.xlane.f32.xlu0 %v130_v46  ;;  %v47_v47 = vpop.xlane.xlu0 %46  ;;  %v50_v48 = vpop.xlane.xlu1 %49 }
  0x95   :  { %v86_v50 = vmul.f32 0.0625, %v47_v47  ;;  %v87_v51 = vmul.f32 0.0625, %v50_v48  ;;  %v115_v52 = vmul.f32 %v462_v44, %v462_v44  ;;  %v117_v53 = vmul.f32 %v464_v45, %v464_v45 }
  0x97   :  { %v472_v54 = vsub.f32 %v18_v8, %v86_v50  ;;  %v474_v55 = vsub.f32 %v19_v9, %v87_v51  ;;  %v133_v56 = vsel %vm32_vm0, %v115_v52, 0.0  ;;  %v139_v59 = vsel %vm32_vm0, %v117_v53, 0.0 }
  0x98   :  { %137 = vadd.xlane.f32.xlu0 %v136_v49  ;;  %134 = vadd.xlane.f32.xlu1 %v133_v56  ;;  %v53_v57 = vpop.xlane.xlu0 %52  ;;  %v56_v58 = vpop.xlane.xlu1 %55 }
  0x99   :  { %v88_v60 = vmul.f32 0.0625, %v53_v57  ;;  %v89_v61 = vmul.f32 0.0625, %v56_v58  ;;  %v118_v62 = vmul.f32 %v472_v54, %v472_v54  ;;  %v119_v63 = vmul.f32 %v474_v55, %v474_v55 }
  0x9b   :  { %v483_v0 = vsub.f32 %v387_v12, %v88_v60  ;;  %v486_v1 = vsub.f32 %v392_v13, %v89_v61  ;;  %v142_v2 = vsel %vm32_vm0, %v118_v62, 0.0  ;;  %v145_v5 = vsel %vm32_vm0, %v119_v63, 0.0 }
  0x9c   :  { %140 = vadd.xlane.f32.xlu1 %v139_v59  ;;  %143 = vadd.xlane.f32.xlu0 %v142_v2  ;;  %v59_v3 = vpop.xlane.xlu0 %58  ;;  %v62_v4 = vpop.xlane.xlu1 %61 }
  0x9d   :  { %v90_v6 = vmul.f32 0.0625, %v59_v3  ;;  %v91_v7 = vmul.f32 0.0625, %v62_v4  ;;  %v120_v8 = vmul.f32 %v483_v0, %v483_v0  ;;  %v121_v9 = vmul.f32 %v486_v1, %v486_v1 }
  0x9f   :  { %v495_v10 = vsub.f32 %v401_v16, %v90_v6  ;;  %v498_v11 = vsub.f32 %v406_v17, %v91_v7  ;;  %v148_v12 = vsel %vm32_vm0, %v120_v8, 0.0  ;;  %v151_v15 = vsel %vm32_vm0, %v121_v9, 0.0 }
  0xa0   :  { %146 = vadd.xlane.f32.xlu1 %v145_v5  ;;  %149 = vadd.xlane.f32.xlu0 %v148_v12  ;;  %v65_v13 = vpop.xlane.xlu0 %64  ;;  %v68_v14 = vpop.xlane.xlu1 %67 }
  0xa1   :  { %v92_v18 = vmul.f32 0.0625, %v65_v13  ;;  %v93_v19 = vmul.f32 0.0625, %v68_v14  ;;  %v122_v22 = vmul.f32 %v495_v10, %v495_v10  ;;  %v123_v16 = vmul.f32 %v498_v11, %v498_v11 }
  0xa3   :  { %v507_v23 = vsub.f32 %v415_v20, %v92_v18  ;;  %v510_v17 = vsub.f32 %v420_v21, %v93_v19  ;;  %v154_v26 = vsel %vm32_vm0, %v122_v22, 0.0  ;;  %v157_v31 = vsel %vm32_vm0, %v123_v16, 0.0 }
  0xa4   :  { %152 = vadd.xlane.f32.xlu1 %v151_v15  ;;  %155 = vadd.xlane.f32.xlu0 %v154_v26  ;;  %v71_v27 = vpop.xlane.xlu0 %70  ;;  %v74_v30 = vpop.xlane.xlu1 %73  ;;  %v547_v26 = vld [vmem:[%s667_s1] ss:$0 sm:$0xff] }
  0xa5   :  { %v94_v32 = vmul.f32 0.0625, %v71_v27  ;;  %v95_v33 = vmul.f32 0.0625, %v74_v30  ;;  %v124_v34 = vmul.f32 %v507_v23, %v507_v23  ;;  %v125_v20 = vmul.f32 %v510_v17, %v510_v17 }
  0xa7   :  { %v519_v35 = vsub.f32 %v429_v24, %v94_v32  ;;  %v522_v21 = vsub.f32 %v434_v25, %v95_v33  ;;  %v160_v38 = vsel %vm32_vm0, %v124_v34, 0.0  ;;  %v163_v41 = vsel %vm32_vm0, %v125_v20, 0.0  ;;  %v553_v32 = vld [vmem:[%s668_s2] ss:$0 sm:$0xff] }
  0xa8   :  { %158 = vadd.xlane.f32.xlu1 %v157_v31  ;;  %161 = vadd.xlane.f32.xlu0 %v160_v38  ;;  %v77_v39 = vpop.xlane.xlu0 %76  ;;  %v80_v40 = vpop.xlane.xlu1 %79 }
  0xa9   :  { %v96_v42 = vmul.f32 0.0625, %v77_v39  ;;  %v97_v43 = vmul.f32 0.0625, %v80_v40  ;;  %v126_v46 = vmul.f32 %v519_v35, %v519_v35  ;;  %v127_v24 = vmul.f32 %v522_v21, %v522_v21 }
  0xab   :  { %v531_v47 = vsub.f32 %v443_v28, %v96_v42  ;;  %v534_v25 = vsub.f32 %v448_v29, %v97_v43  ;;  %v166_v48 = vsel %vm32_vm0, %v126_v46, 0.0  ;;  %v169_v49 = vsel %vm32_vm0, %v127_v24, 0.0 }
  0xac   :  { %164 = vadd.xlane.f32.xlu1 %v163_v41  ;;  %167 = vadd.xlane.f32.xlu0 %v166_v48 }
  0xad   :  { %v128_v50 = vmul.f32 %v531_v47, %v531_v47  ;;  %v129_v51 = vmul.f32 %v534_v25, %v534_v25 }
  0xaf   :  { %v172_v52 = vsel %vm32_vm0, %v128_v50, 0.0  ;;  %v175_v28 = vsel %vm32_vm0, %v129_v51, 0.0 }
  0xb0   :  { %170 = vadd.xlane.f32.xlu1 %v169_v49  ;;  %173 = vadd.xlane.f32.xlu0 %v172_v52 }
  0xb4   :  { %176 = vadd.xlane.f32.xlu1 %v175_v28 }
 0x11d   :  { %v132_v29 = vpop.xlane.xlu0 %131 }
 0x11e   :  { %v178_v53 = vmul.f32 0.0625, %v132_v29 }
 0x120   :  { %v194_v56 = vadd.f32 1e-05, %v178_v53 }
 0x121   :  { %v135_v57 = vpop.xlane.xlu1 %134  ;;  %v138_v58 = vpop.xlane.xlu0 %137 }
 0x122   :  { %308 = vrsqrt.f32 %v194_v56  ;;  %v179_v59 = vmul.f32 0.0625, %v135_v57  ;;  %v180_v60 = vmul.f32 0.0625, %v138_v58 }
 0x124   :  { %v195_v61 = vadd.f32 1e-05, %v179_v59  ;;  %v196_v62 = vadd.f32 1e-05, %v180_v60 }
 0x125   :  { %v141_v63 = vpop.xlane.xlu1 %140  ;;  %v144_v2 = vpop.xlane.xlu0 %143 }
 0x126   :  { %310 = vrsqrt.f32 %v195_v61  ;;  %v181_v3 = vmul.f32 0.0625, %v141_v63  ;;  %v182_v4 = vmul.f32 0.0625, %v144_v2 }
 0x127   :  { %312 = vrsqrt.f32 %v196_v62 }
 0x128   :  { %v197_v5 = vadd.f32 1e-05, %v181_v3  ;;  %v198_v6 = vadd.f32 1e-05, %v182_v4 }
 0x129   :  { %v147_v7 = vpop.xlane.xlu1 %146  ;;  %v150_v8 = vpop.xlane.xlu0 %149 }
 0x12a   :  { %314 = vrsqrt.f32 %v197_v5  ;;  %v183_v9 = vmul.f32 0.0625, %v147_v7  ;;  %v184_v12 = vmul.f32 0.0625, %v150_v8 }
 0x12b   :  { %316 = vrsqrt.f32 %v198_v6 }
 0x12c   :  { %v199_v13 = vadd.f32 1e-05, %v183_v9  ;;  %v200_v14 = vadd.f32 1e-05, %v184_v12 }
 0x12d   :  { %v153_v15 = vpop.xlane.xlu1 %152  ;;  %v156_v18 = vpop.xlane.xlu0 %155 }
 0x12e   :  { %318 = vrsqrt.f32 %v199_v13  ;;  %v185_v19 = vmul.f32 0.0625, %v153_v15  ;;  %v186_v22 = vmul.f32 0.0625, %v156_v18 }
 0x12f   :  { %v309_v16 = vpop.eup %308  ;;  %320 = vrsqrt.f32 %v200_v14 }
 0x130   :  { %v226_v27 = vmul.f32 %v309_v16, %v454_v36  ;;  %v201_v30 = vadd.f32 1e-05, %v185_v19  ;;  %v202_v31 = vadd.f32 1e-05, %v186_v22 }
 0x131   :  { %v159_v33 = vpop.xlane.xlu1 %158  ;;  %v162_v34 = vpop.xlane.xlu0 %161 }
 0x132   :  { %v248_v20 = vmul.f32 %v547_v26, %v226_v27  ;;  %322 = vrsqrt.f32 %v201_v30  ;;  %v187_v38 = vmul.f32 0.0625, %v159_v33  ;;  %v188_v39 = vmul.f32 0.0625, %v162_v34 }
 0x133   :  { %v311_v40 = vpop.eup %310  ;;  %324 = vrsqrt.f32 %v202_v31 }
 0x134   :  { %v313_v41 = vpop.eup %312  ;;  %v270_v42 = vadd.f32 %v553_v32, %v248_v20  ;;  %v227_v36 = vmul.f32 %v311_v40, %v462_v44  ;;  %v203_v43 = vadd.f32 1e-05, %v187_v38  ;;  %v204_v46 = vadd.f32 1e-05, %v188_v39 }
 0x135   :  { %v228_v24 = vmul.f32 %v313_v41, %v456_v37  ;;  %v165_v48 = vpop.xlane.xlu1 %164  ;;  %v168_v49 = vpop.xlane.xlu0 %167 }
 0x136   :  { %286 = vst.msk [vmem:[%s669_s3] sm:$0xff] %vm32_vm0, %v270_v42  ;;  %v249_v50 = vmul.f32 %v547_v26, %v227_v36  ;;  %326 = vrsqrt.f32 %v203_v43  ;;  %v189_v51 = vmul.f32 0.0625, %v165_v48  ;;  %v190_v52 = vmul.f32 0.0625, %v168_v49 }
 0x137   :  { %v315_v28 = vpop.eup %314  ;;  %v250_v29 = vmul.f32 %v547_v26, %v228_v24  ;;  %328 = vrsqrt.f32 %v204_v46 }
 0x138   :  { %v317_v44 = vpop.eup %316  ;;  %v271_v53 = vadd.f32 %v553_v32, %v249_v50  ;;  %v229_v37 = vmul.f32 %v315_v28, %v464_v45  ;;  %v205_v56 = vadd.f32 1e-05, %v189_v51  ;;  %v206_v57 = vadd.f32 1e-05, %v190_v52 }
 0x139   :  { %v272_v58 = vadd.f32 %v553_v32, %v250_v29  ;;  %v230_v59 = vmul.f32 %v317_v44, %v472_v54  ;;  %v171_v60 = vpop.xlane.xlu1 %170  ;;  %v174_v61 = vpop.xlane.xlu0 %173 }
 0x13a   :  { %287 = vst.msk [vmem:[%s669_s3 + $0x8] sm:$0xff] %vm32_vm0, %v271_v53  ;;  %v251_v62 = vmul.f32 %v547_v26, %v229_v37  ;;  %330 = vrsqrt.f32 %v205_v56  ;;  %v191_v63 = vmul.f32 0.0625, %v171_v60  ;;  %v192_v2 = vmul.f32 0.0625, %v174_v61 }
 0x13b   :  { %v319_v3 = vpop.eup %318  ;;  %288 = vst.msk [vmem:[%s669_s3 + $0x10] sm:$0xff] %vm32_vm0, %v272_v58  ;;  %v252_v45 = vmul.f32 %v547_v26, %v230_v59  ;;  %332 = vrsqrt.f32 %v206_v57 }
 0x13c   :  { %v321_v54 = vpop.eup %320  ;;  %v273_v4 = vadd.f32 %v553_v32, %v251_v62  ;;  %v231_v5 = vmul.f32 %v319_v3, %v474_v55  ;;  %v207_v6 = vadd.f32 1e-05, %v191_v63  ;;  %v208_v7 = vadd.f32 1e-05, %v192_v2 }
 0x13d   :  { %v274_v8 = vadd.f32 %v553_v32, %v252_v45  ;;  %v232_v9 = vmul.f32 %v321_v54, %v483_v0  ;;  %v177_v12 = vpop.xlane.xlu1 %176 }
 0x13e   :  { %289 = vst.msk [vmem:[%s669_s3 + $0x18] sm:$0xff] %vm32_vm0, %v273_v4  ;;  %v253_v13 = vmul.f32 %v547_v26, %v231_v5  ;;  %334 = vrsqrt.f32 %v207_v6  ;;  %v193_v14 = vmul.f32 0.0625, %v177_v12 }
 0x13f   :  { %v323_v15 = vpop.eup %322  ;;  %290 = vst.msk [vmem:[%s669_s3 + $0x20] sm:$0xff] %vm32_vm0, %v274_v8  ;;  %v254_v55 = vmul.f32 %v547_v26, %v232_v9  ;;  %336 = vrsqrt.f32 %v208_v7 }
 0x140   :  { %v325_v0 = vpop.eup %324  ;;  %v275_v18 = vadd.f32 %v553_v32, %v253_v13  ;;  %v233_v19 = vmul.f32 %v323_v15, %v486_v1  ;;  %v209_v22 = vadd.f32 1e-05, %v193_v14 }
 0x141   :  { %v276_v16 = vadd.f32 %v553_v32, %v254_v55  ;;  %v234_v27 = vmul.f32 %v325_v0, %v495_v10 }
 0x142   :  { %291 = vst.msk [vmem:[%s669_s3 + $0x28] sm:$0xff] %vm32_vm0, %v275_v18  ;;  %v255_v30 = vmul.f32 %v547_v26, %v233_v19  ;;  %338 = vrsqrt.f32 %v209_v22 }
 0x143   :  { %v327_v31 = vpop.eup %326  ;;  %292 = vst.msk [vmem:[%s669_s3 + $0x30] sm:$0xff] %vm32_vm0, %v276_v16  ;;  %v256_v1 = vmul.f32 %v547_v26, %v234_v27 }
 0x144   :  { %v329_v33 = vpop.eup %328  ;;  %v277_v34 = vadd.f32 %v553_v32, %v255_v30  ;;  %v235_v10 = vmul.f32 %v327_v31, %v498_v11 }
 0x145   :  { %v278_v20 = vadd.f32 %v553_v32, %v256_v1  ;;  %v236_v38 = vmul.f32 %v329_v33, %v507_v23 }
 0x146   :  { %293 = vst.msk [vmem:[%s669_s3 + $0x38] sm:$0xff] %vm32_vm0, %v277_v34  ;;  %v257_v39 = vmul.f32 %v547_v26, %v235_v10 }
 0x147   :  { %v331_v40 = vpop.eup %330  ;;  %294 = vst.msk [vmem:[%s669_s3 + $0x40] sm:$0xff] %vm32_vm0, %v278_v20  ;;  %v258_v41 = vmul.f32 %v547_v26, %v236_v38 }
 0x148   :  { %v333_v11 = vpop.eup %332  ;;  %v279_v42 = vadd.f32 %v553_v32, %v257_v39  ;;  %v237_v23 = vmul.f32 %v331_v40, %v510_v17 }
 0x149   :  { %v280_v36 = vadd.f32 %v553_v32, %v258_v41  ;;  %v238_v43 = vmul.f32 %v333_v11, %v519_v35 }
 0x14a   :  { %295 = vst.msk [vmem:[%s669_s3 + $0x48] sm:$0xff] %vm32_vm0, %v279_v42  ;;  %v259_v46 = vmul.f32 %v547_v26, %v237_v23 }
 0x14b   :  { %v335_v24 = vpop.eup %334  ;;  %296 = vst.msk [vmem:[%s669_s3 + $0x50] sm:$0xff] %vm32_vm0, %v280_v36  ;;  %v260_v48 = vmul.f32 %v547_v26, %v238_v43 }
 0x14c   :  { %v337_v17 = vpop.eup %336  ;;  %v281_v49 = vadd.f32 %v553_v32, %v259_v46  ;;  %v239_v35 = vmul.f32 %v335_v24, %v522_v21 }
 0x14d   :  { %v282_v50 = vadd.f32 %v553_v32, %v260_v48  ;;  %v240_v51 = vmul.f32 %v337_v17, %v531_v47 }
 0x14e   :  { %297 = vst.msk [vmem:[%s669_s3 + $0x58] sm:$0xff] %vm32_vm0, %v281_v49  ;;  %v261_v52 = vmul.f32 %v547_v26, %v239_v35 }
 0x14f   :  { %v339_v28 = vpop.eup %338  ;;  %298 = vst.msk [vmem:[%s669_s3 + $0x60] sm:$0xff] %vm32_vm0, %v282_v50  ;;  %v262_v29 = vmul.f32 %v547_v26, %v240_v51 }
 0x150   :  { %v283_v21 = vadd.f32 %v553_v32, %v261_v52  ;;  %v241_v44 = vmul.f32 %v339_v28, %v534_v25 }
 0x151   :  { %v284_v47 = vadd.f32 %v553_v32, %v262_v29 }
 0x152   :  { %299 = vst.msk [vmem:[%s669_s3 + $0x68] sm:$0xff] %vm32_vm0, %v283_v21  ;;  %v263_v53 = vmul.f32 %v547_v26, %v241_v44 }
 0x153   :  { %300 = vst.msk [vmem:[%s669_s3 + $0x70] sm:$0xff] %vm32_vm0, %v284_v47 }
 0x154   :  { %v285_v37 = vadd.f32 %v553_v32, %v263_v53 }
 0x156   :  { %301 = vst.msk [vmem:[%s669_s3 + $0x78] sm:$0xff] %vm32_vm0, %v285_v37 }

// kernel: _lambda_.22
= control target key start
LH: loop header
LB: loop body
LE: loop exit
PB: predicated region body
PF: predicated region fallthrough
CT: control target
= control target key end

     0   :  { %vm1760_vm4 = vcmask 130048   ;;  %s4871_s3 = inlined_call_operand.vmem [shape: f32[2,16,16], index: 3, kind: input, shape index: {}]   ;;  %s4872_s0 = inlined_call_operand.vmem [shape: f32[9,128,16], index: 0, kind: input, shape index: {}]   ;;  %s4873_s1 = inlined_call_operand.vmem [shape: f32[9,2,16], index: 1, kind: input, shape index: {}]   ;;  %s4874_s2 = inlined_call_operand.vmem [shape: f32[2,16], index: 2, kind: input, shape index: {}]   ;;  %s4875_s4 = inlined_call_operand.vmem [shape: f32[1,16], index: 4, kind: input, shape index: {}]   ;;  %s4876_s5 = inlined_call_operand.vmem [shape: f32[128,16], index: 5, kind: input, shape index: {}]   ;;  %s4877_s6 = inlined_call_operand.vmem [shape: f32[128,16], index: 6, kind: output, shape index: {}]  }
   0x1   :  { %v2387_v0 = vld [vmem:[%s4871_s3 + $0x18] sm:$0xff]  ;;  %v970_v1 = vld [vmem:[%s4871_s3 + $0x8] sm:$0xff]  ;;  %v2386_v2 = vld [vmem:[%s4871_s3 + $0x10] sm:$0xff] }
   0x2   :  { %2457 = vmatprep.subr.mxu0 %v2387_v0  ;;  %2485 = vmatprep.subr.mxu1 %v970_v1  ;;  %v969_v3 = vld [vmem:[%s4871_s3] sm:$0xff]  ;;  %v2777_v18 = vld [vmem:[%s4873_s1 + $0x9] ss:$0 sm:$0xff]  ;;  %v2783_v21 = vld [vmem:[%s4873_s1 + $0xb] ss:$0 sm:$0xff] }
   0x3   :  { %2458 = vmatpush3.msra.mxu0 %v2387_v0  ;;  %2486 = vmatpush3.msra.mxu1 %v970_v1  ;;  %v23_v4 = vld [vmem:[%s4872_s0] sm:$0xff]  ;;  %v2788_v22 = vld [vmem:[%s4873_s1 + $0xd] ss:$0 sm:$0xff]  ;;  %v2821_v32 = vld [vmem:[%s4873_s1 + $0xf] ss:$0 sm:$0xff] }
   0x4   :  { %v2223_v5 = vld [vmem:[%s4872_s0 + $0x80] sm:$0xff]  ;;  %2459 = vmatprep.subr.mxu0 %v2386_v2  ;;  %2487 = vmatprep.subr.mxu1 %v969_v3  ;;  %v2829_v36 = vld [vmem:[%s4873_s1 + $0x11] ss:$0 sm:$0xff]  ;;  %v2834_v37 = vld [vmem:[%s4873_s1 + $0x8] ss:$0 sm:$0xff] }
   0x5   :  { %v2241_v6 = vld [vmem:[%s4872_s0 + $0x100] sm:$0xff]  ;;  %2460 = vmatpush3.msra.mxu0 %v2386_v2  ;;  %2488 = vmatpush3.msra.mxu1 %v969_v3  ;;  %4894 = vst [vmem:[#allocation4_spill] sm:$0xff] %v2829_v36  ;;  %4895 = vst [vmem:[#allocation5_spill] sm:$0xff] %v2834_v37  ;;  %v2839_v38 = vld [vmem:[%s4873_s1 + $0xa] ss:$0 sm:$0xff] }
   0x6   :  { %v2259_v7 = vld [vmem:[%s4872_s0 + $0x180] sm:$0xff]  ;;  %v24_v43 = vld [vmem:[%s4872_s0 + $0x8] sm:$0xff]  ;;  %v2881_v1 = vld [vmem:[%s4873_s1 + $0x10] ss:$0 sm:$0xff] }
   0x7   :  { %v2745_v8 = vld [vmem:[%s4873_s1 + $0x1] ss:$0 sm:$0xff]  ;;  %v2750_v9 = vld [vmem:[%s4873_s1 + $0x3] ss:$0 sm:$0xff]  ;;  %v2760_v13 = vld [vmem:[%s4873_s1 + $0x5] ss:$0 sm:$0xff] }
   0x8   :  { %v2277_v10 = vld [vmem:[%s4872_s0 + $0x200] sm:$0xff]  ;;  %v976_v11 = vmul.f32 %v2745_v8, %v23_v4  ;;  %v1013_v12 = vmul.f32 %v2750_v9, %v2223_v5  ;;  %v1050_v17 = vmul.f32 %v2760_v13, %v2241_v6  ;;  %v2224_v44 = vld [vmem:[%s4872_s0 + $0x88] sm:$0xff]  ;;  %v977_v49 = vmul.f32 %v2745_v8, %v24_v43 }
   0x9   :  { %v2765_v14 = vld [vmem:[%s4873_s1 + $0x7] ss:$0 sm:$0xff]  ;;  %v2793_v23 = vld [vmem:[%s4873_s1] ss:$0 sm:$0xff]  ;;  %v2799_v25 = vld [vmem:[%s4873_s1 + $0x2] ss:$0 sm:$0xff]  ;;  %v1124_v31 = vmul.f32 %v2777_v18, %v2277_v10  ;;  %v1014_v50 = vmul.f32 %v2750_v9, %v2224_v44  ;;  %v264_v54 = vmul.f32 %v2834_v37, %v2277_v10 }
   0xa   :  { %v2295_v15 = vld [vmem:[%s4872_s0 + $0x280] sm:$0xff]  ;;  %v1029_v19 = vadd.f32 %v1013_v12, %v976_v11  ;;  %v1087_v20 = vmul.f32 %v2765_v14, %v2259_v7  ;;  %v44_v24 = vmul.f32 %v2793_v23, %v23_v4  ;;  %v99_v33 = vmul.f32 %v2799_v25, %v2223_v5  ;;  %v2242_v45 = vld [vmem:[%s4872_s0 + $0x108] sm:$0xff]  ;;  %v25_v10 = vld [vmem:[%s4872_s0 + $0x10] sm:$0xff] }
   0xb   :  { %v2313_v16 = vld [vmem:[%s4872_s0 + $0x300] sm:$0xff]  ;;  %v1161_v35 = vmul.f32 %v2783_v21, %v2295_v15  ;;  %v2856_v47 = vld [vmem:[%s4873_s1 + $0xc] ss:$0 sm:$0xff]  ;;  %v1051_v51 = vmul.f32 %v2760_v13, %v2242_v45  ;;  %v2868_v55 = vld [vmem:[%s4873_s1 + $0xe] ss:$0 sm:$0xff]  ;;  %v45_v57 = vmul.f32 %v2793_v23, %v24_v43  ;;  %v319_v59 = vmul.f32 %v2839_v38, %v2295_v15 }
   0xc   :  { %v2804_v26 = vld [vmem:[%s4873_s1 + $0x4] ss:$0 sm:$0xff]  ;;  %v2809_v27 = vld [vmem:[%s4873_s1 + $0x6] ss:$0 sm:$0xff]  ;;  %v1066_v30 = vadd.f32 %v1050_v17, %v1029_v19  ;;  %v1198_v40 = vmul.f32 %v2788_v22, %v2313_v16  ;;  %v115_v41 = vadd.f32 %v99_v33, %v44_v24  ;;  %v2260_v48 = vld [vmem:[%s4872_s0 + $0x188] sm:$0xff]  ;;  %v1030_v60 = vadd.f32 %v1014_v50, %v977_v49 }
   0xd   :  { %4892 = vst [vmem:[#allocation2_spill] sm:$0xff] %v2804_v26  ;;  %4893 = vst [vmem:[#allocation3_spill] sm:$0xff] %v2809_v27  ;;  %v2331_v28 = vld [vmem:[%s4872_s0 + $0x380] sm:$0xff]  ;;  %v154_v34 = vmul.f32 %v2804_v26, %v2241_v6  ;;  %v209_v42 = vmul.f32 %v2809_v27, %v2259_v7  ;;  %v2278_v56 = vld [vmem:[%s4872_s0 + $0x208] sm:$0xff]  ;;  %v1088_v61 = vmul.f32 %v2765_v14, %v2260_v48 }
   0xe   :  { %v2349_v29 = vld [vmem:[%s4872_s0 + $0x400] sm:$0xff]  ;;  %v1103_v39 = vadd.f32 %v1087_v20, %v1066_v30  ;;  %v1235_v46 = vmul.f32 %v2821_v32, %v2331_v28  ;;  %v374_v0 = vmul.f32 %v2856_v47, %v2313_v16  ;;  %v2296_v2 = vld [vmem:[%s4872_s0 + $0x288] sm:$0xff]  ;;  %v100_v3 = vmul.f32 %v2799_v25, %v2224_v44  ;;  %v2225_v19 = vld [vmem:[%s4872_s0 + $0x90] sm:$0xff] }
   0xf   :  { %v170_v53 = vadd.f32 %v154_v34, %v115_v41  ;;  %v1272_v58 = vmul.f32 %v2829_v36, %v2349_v29  ;;  %v429_v4 = vmul.f32 %v2868_v55, %v2331_v28  ;;  %v1067_v5 = vadd.f32 %v1051_v51, %v1030_v60  ;;  %v2314_v15 = vld [vmem:[%s4872_s0 + $0x308] sm:$0xff]  ;;  %v2243_v20 = vld [vmem:[%s4872_s0 + $0x110] sm:$0xff] }
  0x10   :  { %v1140_v52 = vadd.f32 %v1124_v31, %v1103_v39  ;;  %v1125_v6 = vmul.f32 %v2777_v18, %v2278_v56  ;;  %v155_v7 = vmul.f32 %v2804_v26, %v2242_v45  ;;  %v116_v16 = vadd.f32 %v100_v3, %v45_v57  ;;  %v2350_v49 = vld [vmem:[%s4872_s0 + $0x408] sm:$0xff] }
  0x11   :  { %v225_v63 = vadd.f32 %v209_v42, %v170_v53  ;;  %v210_v17 = vmul.f32 %v2809_v27, %v2260_v48  ;;  %v484_v24 = vmul.f32 %v2881_v1, %v2349_v29  ;;  %v1104_v28 = vadd.f32 %v1088_v61, %v1067_v5  ;;  %v2918_v29 = vld [vmem:[%s4874_s2 + $0x1] ss:$0 sm:$0xff] }
  0x12   :  { %v1177_v62 = vadd.f32 %v1161_v35, %v1140_v52  ;;  %v1162_v30 = vmul.f32 %v2783_v21, %v2296_v2  ;;  %v265_v31 = vmul.f32 %v2834_v37, %v2278_v56  ;;  %v2332_v35 = vld [vmem:[%s4872_s0 + $0x388] sm:$0xff]  ;;  %v171_v39 = vadd.f32 %v155_v7, %v116_v16  ;;  %v2930_v52 = vld [vmem:[%s4872_s0 + $0x210] sm:$0xff] }
  0x13   :  { %v280_v12 = vadd.f32 %v264_v54, %v225_v63  ;;  %v978_v41 = vmul.f32 %v2745_v8, %v25_v10  ;;  %v1141_v42 = vadd.f32 %v1125_v6, %v1104_v28  ;;  %v1199_v43 = vmul.f32 %v2788_v22, %v2314_v15  ;;  %v2945_v63 = vld [vmem:[%s4874_s2] ss:$0 sm:$0xff] }
  0x14   :  { %v1214_v11 = vadd.f32 %v1198_v40, %v1177_v62  ;;  %v2912_v40 = vld [vmem:[%s4872_s0 + $0x190] sm:$0xff]  ;;  %v1015_v44 = vmul.f32 %v2750_v9, %v2225_v19  ;;  %v1052_v45 = vmul.f32 %v2760_v13, %v2243_v20  ;;  %v226_v50 = vadd.f32 %v210_v17, %v171_v39 }
  0x15   :  { %v335_v34 = vadd.f32 %v319_v59, %v280_v12  ;;  %v320_v51 = vmul.f32 %v2839_v38, %v2296_v2  ;;  %v1178_v53 = vadd.f32 %v1162_v30, %v1141_v42  ;;  %v1236_v54 = vmul.f32 %v2821_v32, %v2332_v35  ;;  %v2940_v62 = vld [vmem:[%s4872_s0 + $0x290] sm:$0xff] }
  0x16   :  { %v1251_v33 = vadd.f32 %v1235_v46, %v1214_v11  ;;  %v1031_v56 = vadd.f32 %v1015_v44, %v978_v41  ;;  %v1089_v57 = vmul.f32 %v2765_v14, %v2912_v40  ;;  %v281_v60 = vadd.f32 %v265_v31, %v226_v50  ;;  %v2966_v44 = vld [vmem:[%s4872_s0 + $0x390] sm:$0xff] }
  0x17   :  { %v390_v48 = vadd.f32 %v374_v0, %v335_v34  ;;  %v375_v61 = vmul.f32 %v2856_v47, %v2314_v15  ;;  %v1215_v0 = vadd.f32 %v1199_v43, %v1178_v53  ;;  %v1273_v2 = vmul.f32 %v2829_v36, %v2350_v49 }
  0x18   :  { %v1288_v46 = vadd.f32 %v1272_v58, %v1251_v33  ;;  %v1068_v3 = vadd.f32 %v1052_v45, %v1031_v56  ;;  %v336_v7 = vadd.f32 %v320_v51, %v281_v60  ;;  %v430_v11 = vmul.f32 %v2868_v55, %v2332_v35  ;;  %v2958_v33 = vld [vmem:[%s4872_s0 + $0x310] sm:$0xff] }
  0x19   :  { %v445_v59 = vadd.f32 %v429_v4, %v390_v48  ;;  %v1126_v4 = vmul.f32 %v2777_v18, %v2930_v52  ;;  %v1252_v12 = vadd.f32 %v1236_v54, %v1215_v0  ;;  %v1163_v16 = vmul.f32 %v2783_v21, %v2940_v62  ;;  %v2976_v54 = vld [vmem:[%s4872_s0 + $0x410] sm:$0xff] }
  0x1a   :  { %v1309_v58 = vadd.f32 %v2918_v29, %v1288_v46  ;;  %v1105_v15 = vadd.f32 %v1089_v57, %v1068_v3  ;;  %v46_v17 = vmul.f32 %v2793_v23, %v25_v10  ;;  %v391_v31 = vadd.f32 %v375_v61, %v336_v7 }
  0x1b   :  { %v500_v6 = vadd.f32 %v484_v24, %v445_v59  ;;  %v101_v24 = vmul.f32 %v2799_v25, %v2225_v19  ;;  %v1289_v34 = vadd.f32 %v1273_v2, %v1252_v12  ;;  %v485_v35 = vmul.f32 %v2881_v1, %v2350_v49 }
  0x1c   :  { %v1341_v5 = vmul.f32 0.70710677, %v1309_v58  ;;  %v1142_v39 = vadd.f32 %v1126_v4, %v1105_v15  ;;  %v446_v10 = vadd.f32 %v430_v11, %v391_v31  ;;  %v1200_v46 = vmul.f32 %v2788_v22, %v2958_v33 }
  0x1d   :  { %v521_v30 = vadd.f32 %v2945_v63, %v500_v6  ;;  %v1310_v43 = vadd.f32 %v2918_v29, %v1289_v34  ;;  %v117_v50 = vadd.f32 %v101_v24, %v46_v17  ;;  %v156_v49 = vmul.f32 %v2804_v26, %v2243_v20 }
  0x1e   :  { %v1389_v28 = vand.u32 2147483647, %v1341_v5  ;;  %v1179_v45 = vadd.f32 %v1163_v16, %v1142_v39  ;;  %v501_v53 = vadd.f32 %v485_v35, %v446_v10  ;;  %vm1357_vm0 = vcmp.ge.f32.partialorder %v1341_v5, 0.0 }
  0x1f   :  { %v553_v42 = vmul.f32 0.70710677, %v521_v30  ;;  %v2971_v51 = vmul.f32 0.70710677, %v1310_v43  ;;  %v1237_v57 = vmul.f32 %v2821_v32, %v2966_v44  ;;  %v1274_v3 = vmul.f32 %v2829_v36, %v2976_v54 }
  0x20   :  { %v1405_v41 = vmul.f32 0.3275911, %v1389_v28  ;;  %v1613_v59 = vsub.f32 0.0, %v1389_v28  ;;  %v2982_v61 = vadd.f32 %v2945_v63, %v501_v53  ;;  %v1216_v20 = vadd.f32 %v1200_v46, %v1179_v45 }
  0x21   :  { %v601_v19 = vand.u32 2147483647, %v553_v42  ;;  %v1390_v60 = vand.u32 2147483647, %v2971_v51  ;;  %v172_v4 = vadd.f32 %v156_v49, %v117_v50  ;;  %v2986_v6 = vmul.f32 0.5, %v1309_v58 }
  0x22   :  { %v1421_v48 = vadd.f32 1.0, %v1405_v41  ;;  %v4878_v5 = vmov -1.0   ;;  %v2992_v12 = vmul.f32 0.70710677, %v2982_v61  ;;  %vm569_vm1 = vcmp.ge.f32.partialorder %v553_v42, 0.0 }
  0x23   :  { %v617_v56 = vmul.f32 0.3275911, %v601_v19  ;;  %v825_v2 = vsub.f32 0.0, %v601_v19  ;;  %v2989_v7 = vsel %vm1357_vm0, 1.0, %v4878_v5  ;;  %v1406_v11 = vmul.f32 0.3275911, %v1390_v60 }
  0x24   :  { %2514 = vrcp.f32 %v1421_v48  ;;  %v1253_v15 = vadd.f32 %v1237_v57, %v1216_v20  ;;  %v211_v16 = vmul.f32 %v2809_v27, %v2912_v40  ;;  %v1629_v17 = vmul.f32 %v1613_v59, %v1389_v28  ;;  %v26_v48 = vld [vmem:[%s4872_s0 + $0x18] sm:$0xff] }
  0x25   :  { %v633_v0 = vadd.f32 1.0, %v617_v56  ;;  %v1422_v31 = vadd.f32 1.0, %v1406_v11  ;;  %v1614_v24 = vsub.f32 0.0, %v1390_v60  ;;  %v602_v58 = vand.u32 2147483647, %v2992_v12  ;;  %v2262_v59 = vld [vmem:[%s4872_s0 + $0x198] sm:$0xff] }
  0x26   :  { %v2997_v34 = vmul.f32 0.5, %v521_v30  ;;  %v841_v35 = vmul.f32 %v825_v2, %v601_v19  ;;  %v1290_v39 = vadd.f32 %v1274_v3, %v1253_v15  ;;  %v227_v41 = vadd.f32 %v211_v16, %v172_v4  ;;  %v2226_v19 = vld [vmem:[%s4872_s0 + $0x98] sm:$0xff] }
  0x27   :  { %2516 = vrcp.f32 %v633_v0  ;;  %v3000_v10 = vsel %vm569_vm1, 1.0, %v4878_v5  ;;  %v618_v42 = vmul.f32 0.3275911, %v602_v58  ;;  %v826_v45 = vsub.f32 0.0, %v602_v58 }
  0x28   :  { %2518 = vrcp.f32 %v1422_v31  ;;  %v3002_v46 = vmul.f32 0.5, %v1310_v43  ;;  %v3005_v40 = vadd.f32 %v2918_v29, %v1290_v39  ;;  %v266_v28 = vmul.f32 %v2834_v37, %v2930_v52  ;;  %v2244_v52 = vld [vmem:[%s4872_s0 + $0x118] sm:$0xff] }
  0x29   :  { %v321_v30 = vmul.f32 %v2839_v38, %v2940_v62  ;;  %v1645_v50 = vmul.f32 1.442695, %v1629_v17  ;;  %vm1358_vm2 = vcmp.ge.f32.partialorder %v2971_v51, 0.0  ;;  %v1630_v43 = vmul.f32 %v1614_v24, %v1390_v60  ;;  %v3050_v39 = vld [vmem:[%s4872_s0 + $0x298] sm:$0xff] }
  0x2a   :  { %v634_v49 = vadd.f32 1.0, %v618_v42  ;;  %v857_v53 = vmul.f32 1.442695, %v841_v35  ;;  %v3022_v62 = vmul.f32 0.70710677, %v3005_v40  ;;  %v282_v56 = vadd.f32 %v266_v28, %v227_v41 }
  0x2b   :  { %v376_v57 = vmul.f32 %v2856_v47, %v2958_v33  ;;  %v842_v20 = vmul.f32 %v826_v45, %v602_v58  ;;  %v979_v60 = vmul.f32 %v2745_v8, %v26_v48  ;;  %v1016_v0 = vmul.f32 %v2750_v9, %v2226_v19  ;;  %v2280_v33 = vld [vmem:[%s4872_s0 + $0x218] sm:$0xff] }
  0x2c   :  { %2520 = vrcp.f32 %v634_v49  ;;  %v1391_v2 = vand.u32 2147483647, %v3022_v62  ;;  %v337_v3 = vadd.f32 %v321_v30, %v282_v56  ;;  %v431_v4 = vmul.f32 %v2868_v55, %v2966_v44 }
  0x2d   :  { %v1053_v11 = vmul.f32 %v2760_v13, %v2244_v52  ;;  %2522 = vpow2.f32 %v1645_v50  ;;  %v1647_v16 = vmul.f32 1.442695, %v1630_v43  ;;  %v1032_v17 = vadd.f32 %v1016_v0, %v979_v60  ;;  %v3058_v43 = vld [vmem:[%s4872_s0 + $0x318] sm:$0xff] }
  0x2e   :  { %v1090_v31 = vmul.f32 %v2765_v14, %v2262_v59  ;;  %v3045_v58 = vsel %vm1358_vm2, 1.0, %v4878_v5  ;;  %v1407_v44 = vmul.f32 0.3275911, %v1391_v2  ;;  %v392_v35 = vadd.f32 %v376_v57, %v337_v3  ;;  %v3070_v3 = vld [vmem:[%s4872_s0 + $0x398] sm:$0xff] }
  0x2f   :  { %2524 = vpow2.f32 %v857_v53  ;;  %v486_v41 = vmul.f32 %v2881_v1, %v2976_v54  ;;  %v1069_v42 = vadd.f32 %v1053_v11, %v1032_v17  ;;  %v1127_v45 = vmul.f32 %v2777_v18, %v2280_v33 }
  0x30   :  { %v859_v30 = vmul.f32 1.442695, %v842_v20  ;;  %v1423_v50 = vadd.f32 1.0, %v1407_v44  ;;  %v447_v51 = vadd.f32 %v431_v4, %v392_v35  ;;  %2526 = vpow2.f32 %v1647_v16 }
  0x31   :  { %v3038_v15 = vpop.eup %2514  ;;  %v1106_v56 = vadd.f32 %v1090_v31, %v1069_v42  ;;  %v1164_v53 = vmul.f32 %v2783_v21, %v3050_v39  ;;  %v47_v54 = vmul.f32 %v2793_v23, %v26_v48  ;;  %v1615_v60 = vsub.f32 0.0, %v1391_v2 }
  0x32   :  { %v1469_v24 = vmul.f32 1.0614054, %v3038_v15  ;;  %2528 = vrcp.f32 %v1423_v50  ;;  %v502_v0 = vadd.f32 %v486_v41, %v447_v51  ;;  %v1201_v11 = vmul.f32 %v2788_v22, %v3058_v43  ;;  %v3085_v41 = vld [vmem:[%s4872_s0 + $0x418] sm:$0xff] }
  0x33   :  { %v1143_v4 = vadd.f32 %v1127_v45, %v1106_v56  ;;  %v102_v16 = vmul.f32 %v2799_v25, %v2226_v19  ;;  %2530 = vpow2.f32 %v859_v30  ;;  %v1631_v50 = vmul.f32 %v1615_v60, %v1391_v2 }
  0x34   :  { %v1485_v28 = vadd.f32 -1.4531521, %v1469_v24  ;;  %v3060_v49 = vpop.eup %2516  ;;  %v157_v24 = vmul.f32 %v2804_v26, %v2244_v52  ;;  %v3080_v35 = vadd.f32 %v2945_v63, %v502_v0  ;;  %v1238_v52 = vmul.f32 %v2821_v32, %v3070_v3 }
  0x35   :  { %v681_v20 = vmul.f32 1.0614054, %v3060_v49  ;;  %v3075_v17 = vpop.eup %2518  ;;  %v1180_v42 = vadd.f32 %v1164_v53, %v1143_v4  ;;  %v118_v45 = vadd.f32 %v102_v16, %v47_v54  ;;  %vm570_vm3 = vcmp.ge.f32.partialorder %v2992_v12, 0.0 }
  0x36   :  { %v1501_v57 = vmul.f32 %v3038_v15, %v1485_v28  ;;  %v1470_v44 = vmul.f32 1.0614054, %v3075_v17  ;;  %v3092_v51 = vmul.f32 0.70710677, %v3080_v35  ;;  %v1275_v54 = vmul.f32 %v2829_v36, %v3085_v41 }
  0x37   :  { %v697_v31 = vadd.f32 -1.4531521, %v681_v20  ;;  %v1217_v56 = vadd.f32 %v1201_v11, %v1180_v42  ;;  %v173_v2 = vadd.f32 %v157_v24, %v118_v45  ;;  %v267_v11 = vmul.f32 %v2834_v37, %v2280_v33 }
  0x38   :  { %v1517_v48 = vadd.f32 1.4214138, %v1501_v57  ;;  %v1486_v30 = vadd.f32 -1.4531521, %v1470_v44  ;;  %4896 = vst [vmem:[#allocation6_spill] sm:$0xff] %v3092_v51  ;;  %v212_v57 = vmul.f32 %v2809_v27, %v2262_v59  ;;  %vm1359_vm5 = vcmp.ge.f32.partialorder %v3022_v62, 0.0 }
  0x39   :  { %v713_v28 = vmul.f32 %v3060_v49, %v697_v31  ;;  %v3095_v20 = vpop.eup %2520  ;;  %v603_v16 = vand.u32 2147483647, %v3092_v51  ;;  %v1649_v44 = vmul.f32 1.442695, %v1631_v50  ;;  %v1254_v42 = vadd.f32 %v1238_v52, %v1217_v56  ;;  %v3211_v62 = vld [vmem:[%s4872_s0 + $0x3a0] sm:$0xff] }
  0x3a   :  { %v1533_v19 = vmul.f32 %v3038_v15, %v1517_v48  ;;  %v1502_v60 = vmul.f32 %v3075_v17, %v1486_v30  ;;  %v682_v4 = vmul.f32 1.0614054, %v3095_v20  ;;  %v2523_v48 = vpop.eup %2522  ;;  %v228_v27 = vadd.f32 %v212_v57, %v173_v2 }
  0x3b   :  { %v729_v53 = vadd.f32 1.4214138, %v713_v28  ;;  %v619_v5 = vmul.f32 0.3275911, %v603_v16  ;;  %v1291_v36 = vadd.f32 %v1275_v54, %v1254_v42  ;;  %v322_v51 = vmul.f32 %v2839_v38, %v3050_v39 }
  0x3c   :  { %v1549_v0 = vadd.f32 -0.28449672, %v1533_v19  ;;  %v1518_v19 = vadd.f32 1.4214138, %v1502_v60  ;;  %v698_v28 = vadd.f32 -1.4531521, %v682_v4  ;;  %v2525_v24 = vpop.eup %2524  ;;  %v283_v26 = vadd.f32 %v267_v11, %v228_v27 }
  0x3d   :  { %v745_v31 = vmul.f32 %v3060_v49, %v729_v53  ;;  %v2527_v53 = vpop.eup %2526  ;;  %v3113_v56 = vadd.f32 %v2918_v29, %v1291_v36  ;;  %v377_v57 = vmul.f32 %v2856_v47, %v3058_v43  ;;  %v827_v60 = vsub.f32 0.0, %v603_v16 }
  0x3e   :  { %v1565_v59 = vmul.f32 %v3038_v15, %v1549_v0  ;;  %v1534_v33 = vmul.f32 %v3075_v17, %v1518_v19  ;;  %v714_v37 = vmul.f32 %v3095_v20, %v698_v28  ;;  %v635_v0 = vadd.f32 1.0, %v619_v5 }
  0x3f   :  { %v761_v30 = vadd.f32 -0.28449672, %v745_v31  ;;  %v3117_v54 = vpop.eup %2528  ;;  %v3122_v36 = vmul.f32 0.5, %v2982_v61  ;;  %v3126_v31 = vmul.f32 0.70710677, %v3113_v56  ;;  %v4897_v28 = vmov -1.0  }
  0x40   :  { %v1581_v45 = vadd.f32 0.2548296, %v1565_v59  ;;  %v1550_v39 = vadd.f32 -0.28449672, %v1534_v33  ;;  %v730_v2 = vadd.f32 1.4214138, %v714_v37  ;;  %2532 = vrcp.f32 %v635_v0  ;;  %v2531_v11 = vpop.eup %2530 }
  0x41   :  { %v777_v52 = vmul.f32 %v3060_v49, %v761_v30  ;;  %v1471_v4 = vmul.f32 1.0614054, %v3117_v54  ;;  %2534 = vpow2.f32 %v1649_v44  ;;  %v432_v44 = vmul.f32 %v2868_v55, %v3070_v3 }
  0x42   :  { %v1597_v50 = vmul.f32 %v3038_v15, %v1581_v45  ;;  %v338_v15 = vadd.f32 %v322_v51, %v283_v26  ;;  %v1566_v59 = vmul.f32 %v3075_v17, %v1550_v39  ;;  %v746_v43 = vmul.f32 %v3095_v20, %v730_v2 }
  0x43   :  { %v793_v27 = vadd.f32 0.2548296, %v777_v52  ;;  %v1487_v19 = vadd.f32 -1.4531521, %v1471_v4  ;;  %v586_v26 = vsel %vm570_vm3, 1.0, %v4897_v28  ;;  %v843_v45 = vmul.f32 %v827_v60, %v603_v16 }
  0x44   :  { %v1677_v5 = vmul.f32 %v2523_v48, %v1597_v50  ;;  %v1582_v48 = vadd.f32 0.2548296, %v1566_v59  ;;  %v762_v51 = vadd.f32 -0.28449672, %v746_v43  ;;  %v393_v0 = vadd.f32 %v377_v57, %v338_v15 }
  0x45   :  { %v809_v37 = vmul.f32 %v3060_v49, %v793_v27  ;;  %v1503_v33 = vmul.f32 %v3117_v54, %v1487_v19  ;;  %v1392_v49 = vand.u32 2147483647, %v3126_v31  ;;  %v487_v16 = vmul.f32 %v2881_v1, %v3085_v41 }
  0x46   :  { %v1693_v42 = vsub.f32 1.0, %v1677_v5  ;;  %v1598_v50 = vmul.f32 %v3075_v17, %v1582_v48  ;;  %v778_v52 = vmul.f32 %v3095_v20, %v762_v51  ;;  %v3142_v60 = vmul.f32 0.5, %v3005_v40  ;;  %v3147_v17 = vld [vmem:[%s4872_s0 + $0x20] sm:$0xff] }
  0x47   :  { %v889_v30 = vmul.f32 %v2525_v24, %v809_v37  ;;  %v1519_v2 = vadd.f32 1.4214138, %v1503_v33  ;;  %v1408_v57 = vmul.f32 0.3275911, %v1392_v49  ;;  %v448_v4 = vadd.f32 %v432_v44, %v393_v0  ;;  %v3156_v40 = vld [vmem:[%s4872_s0 + $0xa0] sm:$0xff] }
  0x48   :  { %v1709_v61 = vmul.f32 %v1693_v42, %v2989_v7  ;;  %v1678_v7 = vmul.f32 %v2527_v53, %v1598_v50  ;;  %v794_v24 = vadd.f32 0.2548296, %v778_v52  ;;  %v861_v53 = vmul.f32 1.442695, %v843_v45 }
  0x49   :  { %v905_v12 = vsub.f32 1.0, %v889_v30  ;;  %v1535_v27 = vmul.f32 %v3117_v54, %v1519_v2  ;;  %v1424_v59 = vadd.f32 1.0, %v1408_v57  ;;  %v2245_v30 = vld [vmem:[%s4872_s0 + $0x120] sm:$0xff]  ;;  %v1017_v33 = vmul.f32 %v2750_v9, %v3156_v40 }
  0x4a   :  { %v1725_v39 = vadd.f32 1.0, %v1709_v61  ;;  %v1694_v15 = vsub.f32 1.0, %v1678_v7  ;;  %v810_v41 = vmul.f32 %v3095_v20, %v794_v24  ;;  %v1616_v20 = vsub.f32 0.0, %v1392_v49  ;;  %v2281_v7 = vld [vmem:[%s4872_s0 + $0x220] sm:$0xff] }
  0x4b   :  { %v921_v3 = vmul.f32 %v905_v12, %v3000_v10  ;;  %v1551_v42 = vadd.f32 -0.28449672, %v1535_v27  ;;  %v980_v10 = vmul.f32 %v2745_v8, %v3147_v17  ;;  %2536 = vrcp.f32 %v1424_v59  ;;  %v3193_v27 = vld [vmem:[%s4872_s0 + $0x2a0] sm:$0xff] }
  0x4c   :  { %v1741_v5 = vmul.f32 %v1725_v39, %v2986_v6  ;;  %v503_v6 = vadd.f32 %v487_v16, %v448_v4  ;;  %v1710_v37 = vmul.f32 %v1694_v15, %v3045_v58  ;;  %v890_v19 = vmul.f32 %v2531_v11, %v810_v41  ;;  %v3204_v59 = vld [vmem:[%s4872_s0 + $0x320] sm:$0xff] }
  0x4d   :  { %v937_v43 = vadd.f32 1.0, %v921_v3  ;;  %v3162_v48 = vpop.eup %2532  ;;  %v1567_v45 = vmul.f32 %v3117_v54, %v1551_v42  ;;  %2538 = vpow2.f32 %v861_v53  ;;  %v1033_v44 = vadd.f32 %v1017_v33, %v980_v10 }
  0x4e   :  { %2461 = vmatprep.mubr.msk.f32.mxu0 %vm1760_vm4, %v1741_v5  ;;  %v3167_v61 = vadd.f32 %v2945_v63, %v503_v6  ;;  %v1726_v58 = vadd.f32 1.0, %v1710_v37  ;;  %v906_v11 = vsub.f32 1.0, %v890_v19  ;;  %v683_v0 = vmul.f32 1.0614054, %v3162_v48  ;;  %v2535_v39 = vpop.eup %2534 }
  0x4f   :  { %v953_v51 = vmul.f32 %v937_v43, %v2997_v34  ;;  %v2263_v34 = vld [vmem:[%s4872_s0 + $0x1a0] sm:$0xff]  ;;  %v1583_v50 = vadd.f32 0.2548296, %v1567_v45  ;;  %v1054_v24 = vmul.f32 %v2760_v13, %v2245_v30  ;;  %v1632_v5 = vmul.f32 %v1616_v20, %v1392_v49 }
  0x50   :  { %v3181_v52 = vmul.f32 0.70710677, %v3167_v61  ;;  %v1742_v12 = vmul.f32 %v1726_v58, %v3002_v46  ;;  %v922_v2 = vmul.f32 %v906_v11, %v586_v26  ;;  %v699_v16 = vadd.f32 -1.4531521, %v683_v0  ;;  %v3223_v58 = vld [vmem:[%s4872_s0 + $0x420] sm:$0xff] }
  0x51   :  { %2489 = vmatprep.mubr.msk.f32.mxu1 %vm1760_vm4, %v953_v51  ;;  %v1599_v57 = vmul.f32 %v3117_v54, %v1583_v50  ;;  %v1091_v46 = vmul.f32 %v2765_v14, %v2263_v34  ;;  %v1375_v4 = vsel %vm1359_vm5, 1.0, %v4897_v28  ;;  %v1070_v54 = vadd.f32 %v1054_v24, %v1033_v44 }
  0x52   :  { %v604_v3 = vand.u32 2147483647, %v3181_v52  ;;  %2462 = vmatmul.mubr.msk.f32.vlgmr.msra.gmra.mxu0 %vm1760_vm4, %v1742_v12  ;;  %v938_v26 = vadd.f32 1.0, %v922_v2  ;;  %v715_v15 = vmul.f32 %v3162_v48, %v699_v16  ;;  %v1128_v43 = vmul.f32 %v2777_v18, %v2281_v7  ;;  %v4898_v16 = vld [vmem:[#allocation2_spill] sm:$0xff] }
  0x53   :  { %v1679_v49 = vmul.f32 %v2535_v39, %v1599_v57  ;;  %v1107_v10 = vadd.f32 %v1091_v46, %v1070_v54  ;;  %v1165_v37 = vmul.f32 %v2783_v21, %v3193_v27  ;;  %v3216_v20 = vmul.f32 0.5, %v3080_v35  ;;  %v4900_v46 = vld [vmem:[#allocation4_spill] sm:$0xff] }
  0x54   :  { %v620_v41 = vmul.f32 0.3275911, %v604_v3  ;;  %v828_v53 = vsub.f32 0.0, %v604_v3  ;;  %v954_v42 = vmul.f32 %v938_v26, %v3122_v36  ;;  %v731_v6 = vadd.f32 1.4214138, %v715_v15 }
  0x55   :  { %v1695_v19 = vsub.f32 1.0, %v1679_v49  ;;  %v1651_v51 = vmul.f32 1.442695, %v1632_v5  ;;  %v1144_v11 = vadd.f32 %v1128_v43, %v1107_v10  ;;  %v1202_v0 = vmul.f32 %v2788_v22, %v3204_v59 }
  0x56   :  { %v636_v45 = vadd.f32 1.0, %v620_v41  ;;  %2490 = vmatmul.mubr.msk.f32.vlgmr.msra.gmra.mxu1 %vm1760_vm4, %v954_v42  ;;  %v747_v36 = vmul.f32 %v3162_v48, %v731_v6  ;;  %v844_v33 = vmul.f32 %v828_v53, %v604_v3  ;;  %v1239_v35 = vmul.f32 %v2821_v32, %v3211_v62  ;;  %v4899_v3 = vld [vmem:[#allocation6_spill] sm:$0xff]  ;;  %v3251_v53 = vld [vmem:[%s4872_s0 + $0x128] sm:$0xff]  ;;  %v4902_v42 = vld [vmem:[#allocation5_spill] sm:$0xff] }
  0x57   :  { %v1711_v50 = vmul.f32 %v1695_v19, %v1375_v4  ;;  %v48_v44 = vmul.f32 %v2793_v23, %v3147_v17  ;;  %v1181_v12 = vadd.f32 %v1165_v37, %v1144_v11  ;;  %v103_v2 = vmul.f32 %v2799_v25, %v3156_v40  ;;  %v4901_v4 = vld [vmem:[#allocation3_spill] sm:$0xff] }
  0x58   :  { %2540 = vrcp.f32 %v636_v45  ;;  %v763_v39 = vadd.f32 -0.28449672, %v747_v36  ;;  %v158_v24 = vmul.f32 %v4898_v16, %v2245_v30  ;;  %v3234_v57 = vpop.eup %2536  ;;  %vm571_vm6 = vcmp.ge.f32.partialorder %v4899_v3, 0.0  ;;  %v28_v40 = vld [vmem:[%s4872_s0 + $0x28] sm:$0xff] }
  0x59   :  { %v1727_v5 = vadd.f32 1.0, %v1711_v50  ;;  %v1276_v26 = vmul.f32 %v4900_v46, %v3223_v58  ;;  %v213_v15 = vmul.f32 %v4901_v4, %v2263_v34  ;;  %v1472_v17 = vmul.f32 1.0614054, %v3234_v57  ;;  %v2228_v30 = vld [vmem:[%s4872_s0 + $0xa8] sm:$0xff] }
  0x5a   :  { %v779_v54 = vmul.f32 %v3162_v48, %v763_v39  ;;  %v1218_v49 = vadd.f32 %v1202_v0, %v1181_v12  ;;  %v119_v41 = vadd.f32 %v103_v2, %v48_v44  ;;  %2542 = vpow2.f32 %v1651_v51  ;;  %v2539_v10 = vpop.eup %2538  ;;  %v3258_v11 = vld [vmem:[%s4872_s0 + $0x1a8] sm:$0xff] }
  0x5b   :  { %v1743_v34 = vmul.f32 %v1727_v5, %v3142_v60  ;;  %v863_v43 = vmul.f32 1.442695, %v844_v33  ;;  %v268_v6 = vmul.f32 %v4902_v42, %v2281_v7  ;;  %v1488_v19 = vadd.f32 -1.4531521, %v1472_v17  ;;  %v3273_v39 = vld [vmem:[%s4872_s0 + $0x228] sm:$0xff] }
  0x5c   :  { %v795_v37 = vadd.f32 0.2548296, %v779_v54  ;;  %v1255_v45 = vadd.f32 %v1239_v35, %v1218_v49  ;;  %v174_v36 = vadd.f32 %v158_v24, %v119_v41  ;;  %v587_v60 = vsel %vm571_vm6, 1.0, %v4897_v28  ;;  %v2318_v49 = vld [vmem:[%s4872_s0 + $0x328] sm:$0xff] }
  0x5d   :  { %2464 = vmatprep.mubr.msk.f32.mxu0 %vm1760_vm4, %v1743_v34  ;;  %v981_v51 = vmul.f32 %v2745_v8, %v28_v40  ;;  %v1018_v7 = vmul.f32 %v2750_v9, %v2228_v30  ;;  %v1055_v33 = vmul.f32 %v2760_v13, %v3251_v53  ;;  %v1504_v50 = vmul.f32 %v3234_v57, %v1488_v19  ;;  %v3280_v9 = vld [vmem:[%s4872_s0 + $0x2a8] sm:$0xff] }
  0x5e   :  { %v811_v0 = vmul.f32 %v3162_v48, %v795_v37  ;;  %v1292_v35 = vadd.f32 %v1276_v26, %v1255_v45  ;;  %v229_v44 = vadd.f32 %v213_v15, %v174_v36  ;;  %2544 = vpow2.f32 %v863_v43 }
  0x5f   :  { %v323_v8 = vmul.f32 %v2839_v38, %v3193_v27  ;;  %v1034_v13 = vadd.f32 %v1018_v7, %v981_v51  ;;  %v1092_v48 = vmul.f32 %v2765_v14, %v3258_v11  ;;  %v1520_v2 = vadd.f32 1.4214138, %v1504_v50  ;;  %v2354_v51 = vld [vmem:[%s4872_s0 + $0x428] sm:$0xff] }
  0x60   :  { %v891_v12 = vmul.f32 %v2539_v10, %v811_v0  ;;  %v3285_v24 = vadd.f32 %v2918_v29, %v1292_v35  ;;  %v284_v5 = vadd.f32 %v268_v6, %v229_v44  ;;  %vm1360_vm7 = vcmp.ge.f32.partialorder %v3126_v31, 0.0 }
  0x61   :  { %v378_v27 = vmul.f32 %v2856_v47, %v3204_v59  ;;  %v433_v3 = vmul.f32 %v2868_v55, %v3211_v62  ;;  %v1071_v26 = vadd.f32 %v1055_v33, %v1034_v13  ;;  %v1129_v15 = vmul.f32 %v2777_v18, %v3273_v39  ;;  %v3306_v62 = vld [vmem:[%s4872_s0 + $0x3a8] sm:$0xff] }
  0x62   :  { %v907_v54 = vsub.f32 1.0, %v891_v12  ;;  %v1536_v14 = vmul.f32 %v3234_v57, %v1520_v2  ;;  %v3296_v17 = vmul.f32 0.70710677, %v3285_v24  ;;  %v1166_v59 = vmul.f32 %v2783_v21, %v3280_v9 }
  0x63   :  { %v339_v41 = vadd.f32 %v323_v8, %v284_v5  ;;  %v1108_v18 = vadd.f32 %v1092_v48, %v1071_v26  ;;  %v49_v34 = vmul.f32 %v2793_v23, %v28_v40  ;;  %v104_v43 = vmul.f32 %v2799_v25, %v2228_v30 }
  0x64   :  { %v923_v10 = vmul.f32 %v907_v54, %v587_v60  ;;  %v1552_v37 = vadd.f32 -0.28449672, %v1536_v14  ;;  %v1393_v19 = vand.u32 2147483647, %v3296_v17  ;;  %v488_v21 = vmul.f32 %v2881_v1, %v3223_v58 }
  0x65   :  { %v3310_v6 = vpop.eup %2540  ;;  %v394_v36 = vadd.f32 %v378_v27, %v339_v41  ;;  %v1145_v7 = vadd.f32 %v1129_v15, %v1108_v18  ;;  %v1203_v23 = vmul.f32 %v2788_v22, %v2318_v49  ;;  %v1240_v60 = vmul.f32 %v2821_v32, %v3306_v62 }
  0x66   :  { %v684_v45 = vmul.f32 1.0614054, %v3310_v6  ;;  %v939_v25 = vadd.f32 1.0, %v923_v10  ;;  %v1568_v40 = vmul.f32 %v3234_v57, %v1552_v37  ;;  %v1409_v30 = vmul.f32 0.3275911, %v1393_v19  ;;  %v3357_v10 = vld [vmem:[%s4872_s0 + $0x30] sm:$0xff] }
  0x67   :  { %v449_v0 = vadd.f32 %v433_v3, %v394_v36  ;;  %v1182_v58 = vadd.f32 %v1166_v59, %v1145_v7  ;;  %v120_v50 = vadd.f32 %v104_v43, %v49_v34  ;;  %v2543_v35 = vpop.eup %2542  ;;  %v1277_v48 = vmul.f32 %v4900_v46, %v2354_v51 }
  0x68   :  { %v700_v33 = vadd.f32 -1.4531521, %v684_v45  ;;  %v955_v44 = vmul.f32 %v939_v25, %v3216_v20  ;;  %v1584_v8 = vadd.f32 0.2548296, %v1568_v40  ;;  %v1425_v13 = vadd.f32 1.0, %v1409_v30 }
  0x69   :  { %v504_v12 = vadd.f32 %v488_v21, %v449_v0  ;;  %v1219_v2 = vadd.f32 %v1203_v23, %v1182_v58  ;;  %v159_v5 = vmul.f32 %v4898_v16, %v3251_v53  ;;  %v214_v27 = vmul.f32 %v4901_v4, %v3258_v11  ;;  %v2247_v58 = vld [vmem:[%s4872_s0 + $0x130] sm:$0xff] }
  0x6a   :  { %v716_v22 = vmul.f32 %v3310_v6, %v700_v33  ;;  %2492 = vmatprep.mubr.msk.f32.mxu1 %vm1760_vm4, %v955_v44  ;;  %v1600_v32 = vmul.f32 %v3234_v57, %v1584_v8  ;;  %2546 = vrcp.f32 %v1425_v13  ;;  %v1376_v54 = vsel %vm1360_vm7, 1.0, %v4897_v28 }
  0x6b   :  { %v3333_v3 = vadd.f32 %v2945_v63, %v504_v12  ;;  %v1256_v46 = vadd.f32 %v1240_v60, %v1219_v2  ;;  %v175_v26 = vadd.f32 %v159_v5, %v120_v50  ;;  %v2545_v15 = vpop.eup %2544  ;;  %v269_v53 = vmul.f32 %v4902_v42, %v3273_v39  ;;  %v3418_v5 = vld [vmem:[%s4873_s1 + $0x7] ss:$0 sm:$0xff] }
  0x6c   :  { %v732_v20 = vadd.f32 1.4214138, %v716_v22  ;;  %v1680_v16 = vmul.f32 %v2543_v35, %v1600_v32  ;;  %v1617_v14 = vsub.f32 0.0, %v1393_v19  ;;  %v1328_v59 = vmul.f32 0.5, %v3113_v56 }
  0x6d   :  { %v3342_v4 = vmul.f32 0.70710677, %v3333_v3  ;;  %v1293_v11 = vadd.f32 %v1277_v48, %v1256_v46  ;;  %v230_v18 = vadd.f32 %v214_v27, %v175_v26  ;;  %v324_v34 = vmul.f32 %v2839_v38, %v3280_v9  ;;  %v3404_v48 = vld [vmem:[%s4872_s0 + $0x230] sm:$0xff] }
  0x6e   :  { %v748_v57 = vmul.f32 %v3310_v6, %v732_v20  ;;  %v1696_v41 = vsub.f32 1.0, %v1680_v16  ;;  %v3348_v31 = vmul.f32 0.5, %v3167_v61  ;;  %vm572_vm8 = vcmp.ge.f32.partialorder %v3181_v52, 0.0  ;;  %v3364_v61 = vld [vmem:[%s4872_s0 + $0xb0] sm:$0xff]  ;;  %v3412_v52 = vld [vmem:[%s4873_s1 + $0x5] ss:$0 sm:$0xff] }
  0x6f   :  { %v605_v42 = vand.u32 2147483647, %v3342_v4  ;;  %v3352_v39 = vadd.f32 %v2918_v29, %v1293_v11  ;;  %v285_v37 = vadd.f32 %v269_v53, %v230_v18  ;;  %v379_v38 = vmul.f32 %v2856_v47, %v2318_v49  ;;  %v3375_v47 = vld [vmem:[%s4873_s1 + $0x1] ss:$0 sm:$0xff]  ;;  %v3431_v53 = vld [vmem:[%s4873_s1 + $0x9] ss:$0 sm:$0xff] }
  0x70   :  { %v764_v43 = vadd.f32 -0.28449672, %v748_v57  ;;  %v1712_v56 = vmul.f32 %v1696_v41, %v1376_v54  ;;  %v1633_v29 = vmul.f32 %v1617_v14, %v1393_v19  ;;  %v434_v45 = vmul.f32 %v2868_v55, %v3306_v62  ;;  %v3383_v55 = vld [vmem:[%s4873_s1 + $0x3] ss:$0 sm:$0xff]  ;;  %v3441_v41 = vld [vmem:[%s4872_s0 + $0x330] sm:$0xff] }
  0x71   :  { %v621_v21 = vmul.f32 0.3275911, %v605_v42  ;;  %v3370_v7 = vmul.f32 0.70710677, %v3352_v39  ;;  %v340_v23 = vadd.f32 %v324_v34, %v285_v37  ;;  %v982_v49 = vmul.f32 %v3375_v47, %v3357_v10 }
  0x72   :  { %v780_v9 = vmul.f32 %v3310_v6, %v764_v43  ;;  %v1728_v36 = vadd.f32 1.0, %v1712_v56  ;;  %v489_v19 = vmul.f32 %v2881_v1, %v2354_v51  ;;  %v1019_v62 = vmul.f32 %v3383_v55, %v3364_v61  ;;  %v3394_v1 = vld [vmem:[%s4872_s0 + $0x1b0] sm:$0xff] }
  0x73   :  { %v637_v40 = vadd.f32 1.0, %v621_v21  ;;  %v829_v60 = vsub.f32 0.0, %v605_v42  ;;  %v1394_v33 = vand.u32 2147483647, %v3370_v7  ;;  %v395_v0 = vadd.f32 %v379_v38, %v340_v23  ;;  %v3470_v21 = vld [vmem:[%s4872_s0 + $0x430] sm:$0xff] }
  0x74   :  { %v796_v25 = vadd.f32 0.2548296, %v780_v9  ;;  %v1744_v30 = vmul.f32 %v1728_v36, %v1328_v59  ;;  %v588_v51 = vsel %vm572_vm8, 1.0, %v4897_v28  ;;  %v1653_v35 = vmul.f32 1.442695, %v1633_v29  ;;  %v3465_v9 = vld [vmem:[%s4872_s0 + $0x3b0] sm:$0xff] }
  0x75   :  { %2548 = vrcp.f32 %v637_v40  ;;  %v1410_v44 = vmul.f32 0.3275911, %v1394_v33  ;;  %v1618_v8 = vsub.f32 0.0, %v1394_v33  ;;  %v450_v13 = vadd.f32 %v434_v45, %v395_v0  ;;  %v3475_v45 = vld [vmem:[%s4873_s1 + $0xd] ss:$0 sm:$0xff] }
  0x76   :  { %v812_v50 = vmul.f32 %v3310_v6, %v796_v25  ;;  %2465 = vmatmul.mubr.msk.f32.gmra.mxu0 %vm1760_vm4, %v1744_v30  ;;  %v1035_v22 = vadd.f32 %v1019_v62, %v982_v49  ;;  %vm1361_vm9 = vcmp.ge.f32.partialorder %v3296_v17, 0.0  ;;  %v1056_v6 = vmul.f32 %v3412_v52, %v2247_v58  ;;  %v3482_v23 = vld [vmem:[%s4873_s1] ss:$0 sm:$0xff]  ;;  %v3490_v62 = vld [vmem:[%s4873_s1 + $0x2] ss:$0 sm:$0xff] }
  0x77   :  { %v3406_v12 = vpop.eup %2546  ;;  %v1093_v32 = vmul.f32 %v3418_v5, %v3394_v1  ;;  %v845_v20 = vmul.f32 %v829_v60, %v605_v42  ;;  %v1426_v46 = vadd.f32 1.0, %v1410_v44  ;;  %v505_v26 = vadd.f32 %v489_v19, %v450_v13  ;;  %v3449_v42 = vld [vmem:[%s4873_s1 + $0xb] ss:$0 sm:$0xff]  ;;  %v3498_v0 = vld [vmem:[%s4873_s1 + $0xf] ss:$0 sm:$0xff] }
  0x78   :  { %v892_v2 = vmul.f32 %v2545_v15, %v812_v50  ;;  %v1473_v27 = vmul.f32 1.0614054, %v3406_v12  ;;  %v3426_v15 = vld [vmem:[%s4872_s0 + $0x2b0] sm:$0xff]  ;;  %2550 = vpow2.f32 %v1653_v35  ;;  %v1072_v16 = vadd.f32 %v1056_v6, %v1035_v22 }
  0x79   :  { %v1130_v57 = vmul.f32 %v3431_v53, %v3404_v48  ;;  %2552 = vrcp.f32 %v1426_v46  ;;  %v1634_v11 = vmul.f32 %v1618_v8, %v1394_v33  ;;  %v3436_v59 = vadd.f32 %v2945_v63, %v505_v26  ;;  %v3513_v13 = vld [vmem:[%s4873_s1 + $0x11] ss:$0 sm:$0xff]  ;;  %v3529_v46 = vld [vmem:[%s4873_s1 + $0x8] ss:$0 sm:$0xff] }
  0x7a   :  { %v908_v54 = vsub.f32 1.0, %v892_v2  ;;  %v1489_v14 = vadd.f32 -1.4531521, %v1473_v27  ;;  %v3444_v34 = vmul.f32 0.5, %v3285_v24  ;;  %v1109_v43 = vadd.f32 %v1093_v32, %v1072_v16 }
  0x7b   :  { %v1167_v56 = vmul.f32 %v3449_v42, %v3426_v15  ;;  %v3456_v63 = vsel %vm1361_vm9, 1.0, %v4897_v28  ;;  %v865_v38 = vmul.f32 1.442695, %v845_v20  ;;  %v3460_v24 = vmul.f32 0.70710677, %v3436_v59 }
  0x7c   :  { %v924_v18 = vmul.f32 %v908_v54, %v588_v51  ;;  %v1505_v37 = vmul.f32 %v3406_v12, %v1489_v14  ;;  %v1146_v17 = vadd.f32 %v1130_v57, %v1109_v43  ;;  %v1204_v36 = vmul.f32 %v3475_v45, %v3441_v41  ;;  %v3505_v51 = vld [vmem:[%s4873_s1 + $0x4] ss:$0 sm:$0xff]  ;;  %v3536_v54 = vld [vmem:[%s4872_s0 + $0x38] sm:$0xff] }
  0x7d   :  { %v50_v49 = vmul.f32 %v3482_v23, %v3357_v10  ;;  %v1655_v40 = vmul.f32 1.442695, %v1634_v11  ;;  %v606_v19 = vand.u32 2147483647, %v3460_v24  ;;  %v105_v30 = vmul.f32 %v3490_v62, %v3364_v61  ;;  %v3543_v57 = vld [vmem:[%s4872_s0 + $0xb8] sm:$0xff] }
  0x7e   :  { %v940_v29 = vadd.f32 1.0, %v924_v18  ;;  %v1521_v25 = vadd.f32 1.4214138, %v1505_v37  ;;  %v1183_v33 = vadd.f32 %v1167_v56, %v1146_v17  ;;  %v1241_v10 = vmul.f32 %v3498_v0, %v3465_v9  ;;  %v3549_v11 = vld [vmem:[%s4873_s1 + $0xa] ss:$0 sm:$0xff]  ;;  %v3556_v43 = vld [vmem:[%s4872_s0 + $0x138] sm:$0xff] }
  0x7f   :  { %v160_v50 = vmul.f32 %v3505_v51, %v2247_v58  ;;  %2554 = vpow2.f32 %v865_v38  ;;  %v121_v35 = vadd.f32 %v105_v30, %v50_v49  ;;  %v830_v44 = vsub.f32 0.0, %v606_v19  ;;  %v3520_v58 = vld [vmem:[%s4873_s1 + $0x6] ss:$0 sm:$0xff] }
  0x80   :  { %v956_v60 = vmul.f32 %v940_v29, %v3348_v31  ;;  %v1537_v61 = vmul.f32 %v3406_v12, %v1521_v25  ;;  %v622_v31 = vmul.f32 0.3275911, %v606_v19  ;;  %v1220_v8 = vadd.f32 %v1204_v36, %v1183_v33  ;;  %v3563_v25 = vld [vmem:[%s4873_s1 + $0xc] ss:$0 sm:$0xff]  ;;  %v3580_v33 = vld [vmem:[%s4874_s2 + $0x1] ss:$0 sm:$0xff] }
  0x81   :  { %v1278_v22 = vmul.f32 %v3513_v13, %v3470_v21  ;;  %v215_v2 = vmul.f32 %v3520_v58, %v3394_v1  ;;  %v176_v20 = vadd.f32 %v160_v50, %v121_v35  ;;  %v270_v26 = vmul.f32 %v3529_v46, %v3404_v48 }
  0x82   :  { %2493 = vmatmul.mubr.msk.f32.gmra.mxu1 %vm1760_vm4, %v956_v60  ;;  %v3524_v6 = vpop.eup %2548  ;;  %v1553_v32 = vadd.f32 -0.28449672, %v1537_v61  ;;  %v638_v27 = vadd.f32 1.0, %v622_v31  ;;  %vm573_vm10 = vcmp.ge.f32.partialorder %v3342_v4, 0.0  ;;  %2556 = vpow2.f32 %v1655_v40  ;;  %v3570_v40 = vld [vmem:[%s4872_s0 + $0x1b8] sm:$0xff] }
  0x83   :  { %v685_v1 = vmul.f32 1.0614054, %v3524_v6  ;;  %v1257_v16 = vadd.f32 %v1241_v10, %v1220_v8  ;;  %v231_v48 = vadd.f32 %v215_v2, %v176_v20  ;;  %v325_v18 = vmul.f32 %v3549_v11, %v3426_v15  ;;  %v3599_v8 = vld [vmem:[%s4872_s0 + $0x238] sm:$0xff] }
  0x84   :  { %v1569_v14 = vmul.f32 %v3406_v12, %v1553_v32  ;;  %2558 = vrcp.f32 %v638_v27  ;;  %v846_v37 = vmul.f32 %v830_v44, %v606_v19  ;;  %v983_v29 = vmul.f32 %v3375_v47, %v3536_v54 }
  0x85   :  { %v701_v56 = vadd.f32 -1.4531521, %v685_v1  ;;  %v1294_v38 = vadd.f32 %v1278_v22, %v1257_v16  ;;  %v2551_v17 = vpop.eup %2550  ;;  %v286_v49 = vadd.f32 %v270_v26, %v231_v48  ;;  %v380_v15 = vmul.f32 %v3563_v25, %v3441_v41  ;;  %v3588_v41 = vld [vmem:[%s4873_s1 + $0xe] ss:$0 sm:$0xff]  ;;  %v3616_v16 = vld [vmem:[%s4872_s0 + $0x2b8] sm:$0xff] }
  0x86   :  { %v1585_v36 = vadd.f32 0.2548296, %v1569_v14  ;;  %v1020_v19 = vmul.f32 %v3383_v55, %v3543_v57  ;;  %v3574_v30 = vpop.eup %2552  ;;  %v435_v50 = vmul.f32 %v3588_v41, %v3465_v9  ;;  %v1057_v61 = vmul.f32 %v3412_v52, %v3556_v43  ;;  %v3607_v9 = vld [vmem:[%s4873_s1 + $0x10] ss:$0 sm:$0xff] }
  0x87   :  { %v717_v60 = vmul.f32 %v3524_v6, %v701_v56  ;;  %v3583_v10 = vadd.f32 %v3580_v33, %v1294_v38  ;;  %v1474_v35 = vmul.f32 1.0614054, %v3574_v30  ;;  %v341_v44 = vadd.f32 %v325_v18, %v286_v49 }
  0x88   :  { %v1601_v31 = vmul.f32 %v3406_v12, %v1585_v36  ;;  %v1036_v22 = vadd.f32 %v1020_v19, %v983_v29  ;;  %v490_v12 = vmul.f32 %v3607_v9, %v3470_v21  ;;  %v1094_v27 = vmul.f32 %v3418_v5, %v3570_v40 }
  0x89   :  { %v733_v2 = vadd.f32 1.4214138, %v717_v60  ;;  %v3602_v32 = vmul.f32 0.70710677, %v3583_v10  ;;  %v1490_v26 = vadd.f32 -1.4531521, %v1474_v35  ;;  %v396_v1 = vadd.f32 %v380_v15, %v341_v44 }
  0x8a   :  { %v1681_v20 = vmul.f32 %v2551_v17, %v1601_v31  ;;  %v1073_v14 = vadd.f32 %v1057_v61, %v1036_v22  ;;  %v3619_v48 = vmul.f32 0.5, %v3333_v3  ;;  %v1131_v21 = vmul.f32 %v3431_v53, %v3599_v8  ;;  %v3632_v3 = vld [vmem:[%s4872_s0 + $0x338] sm:$0xff] }
  0x8b   :  { %v749_v18 = vmul.f32 %v3524_v6, %v733_v2  ;;  %v1395_v56 = vand.u32 2147483647, %v3602_v32  ;;  %v589_v29 = vsel %vm573_vm10, 1.0, %v4897_v28  ;;  %v1506_v17 = vmul.f32 %v3574_v30, %v1490_v26 }
  0x8c   :  { %v1697_v38 = vsub.f32 1.0, %v1681_v20  ;;  %v451_v36 = vadd.f32 %v435_v50, %v396_v1  ;;  %v2555_v49 = vpop.eup %2554  ;;  %v1110_v60 = vadd.f32 %v1094_v27, %v1073_v14  ;;  %v1168_v61 = vmul.f32 %v3449_v42, %v3616_v16  ;;  %v3640_v50 = vld [vmem:[%s4872_s0 + $0x3b8] sm:$0xff] }
  0x8d   :  { %v765_v15 = vadd.f32 -0.28449672, %v749_v18  ;;  %v1411_v19 = vmul.f32 0.3275911, %v1395_v56  ;;  %v1522_v35 = vadd.f32 1.4214138, %v1506_v17  ;;  %v1205_v27 = vmul.f32 %v3475_v45, %v3632_v3 }
  0x8e   :  { %v1713_v31 = vmul.f32 %v1697_v38, %v3456_v63  ;;  %v867_v4 = vmul.f32 1.442695, %v846_v37  ;;  %v506_v44 = vadd.f32 %v490_v12, %v451_v36  ;;  %v1147_v20 = vadd.f32 %v1131_v21, %v1110_v60  ;;  %v3650_v37 = vld [vmem:[%s4874_s2] ss:$0 sm:$0xff]  ;;  %v3660_v21 = vld [vmem:[%s4872_s0 + $0x438] sm:$0xff] }
  0x8f   :  { %v781_v22 = vmul.f32 %v3524_v6, %v765_v15  ;;  %v1427_v2 = vadd.f32 1.0, %v1411_v19  ;;  %v2557_v26 = vpop.eup %2556  ;;  %vm1362_vm11 = vcmp.ge.f32.partialorder %v3370_v7, 0.0  ;;  %v1538_v63 = vmul.f32 %v3574_v30, %v1522_v35 }
  0x90   :  { %v1729_v1 = vadd.f32 1.0, %v1713_v31  ;;  %v3653_v12 = vadd.f32 %v3650_v37, %v506_v44  ;;  %v1184_v38 = vadd.f32 %v1168_v61, %v1147_v20  ;;  %v1242_v17 = vmul.f32 %v3498_v0, %v3640_v50 }
  0x91   :  { %v3655_v14 = vpop.eup %2558  ;;  %v797_v18 = vadd.f32 0.2548296, %v781_v22  ;;  %2560 = vrcp.f32 %v1427_v2  ;;  %v1554_v15 = vadd.f32 -0.28449672, %v1538_v63  ;;  %v1619_v31 = vsub.f32 0.0, %v1395_v56 }
  0x92   :  { %4903 = vst [vmem:[#allocation2_spill] sm:$0xff] %v3653_v12  ;;  %v1745_v36 = vmul.f32 %v1729_v1, %v3444_v34  ;;  %v686_v19 = vmul.f32 1.0614054, %v3655_v14  ;;  %2562 = vpow2.f32 %v867_v4  ;;  %v3668_v35 = vmul.f32 0.70710677, %v3653_v12 }
  0x93   :  { %v813_v60 = vmul.f32 %v3524_v6, %v797_v18  ;;  %v1221_v44 = vadd.f32 %v1205_v27, %v1184_v38  ;;  %v1570_v61 = vmul.f32 %v3574_v30, %v1554_v15  ;;  %v1279_v2 = vmul.f32 %v3513_v13, %v3660_v21 }
  0x94   :  { %2467 = vmatprep.mubr.msk.f32.mxu0 %vm1760_vm4, %v1745_v36  ;;  %v702_v22 = vadd.f32 -1.4531521, %v686_v19  ;;  %v51_v34 = vmul.f32 %v3482_v23, %v3536_v54  ;;  %v1330_v4 = vmul.f32 0.5, %v3352_v39  ;;  %v607_v6 = vand.u32 2147483647, %v3668_v35 }
  0x95   :  { %v893_v20 = vmul.f32 %v2555_v49, %v813_v60  ;;  %v1258_v1 = vadd.f32 %v1242_v17, %v1221_v44  ;;  %v1378_v27 = vsel %vm1362_vm11, 1.0, %v4897_v28  ;;  %v1586_v63 = vadd.f32 0.2548296, %v1570_v61 }
  0x96   :  { %v718_v18 = vmul.f32 %v3655_v14, %v702_v22  ;;  %v106_v38 = vmul.f32 %v3490_v62, %v3543_v57  ;;  %v1635_v15 = vmul.f32 %v1619_v31, %v1395_v56  ;;  %v623_v19 = vmul.f32 0.3275911, %v607_v6 }
  0x97   :  { %v909_v36 = vsub.f32 1.0, %v893_v20  ;;  %v1295_v54 = vadd.f32 %v1279_v2, %v1258_v1  ;;  %v1602_v49 = vmul.f32 %v3574_v30, %v1586_v63  ;;  %v161_v17 = vmul.f32 %v3505_v51, %v3556_v43 }
  0x98   :  { %v734_v39 = vadd.f32 1.4214138, %v718_v18  ;;  %v122_v60 = vadd.f32 %v106_v38, %v51_v34  ;;  %v639_v7 = vadd.f32 1.0, %v623_v19  ;;  %v831_v12 = vsub.f32 0.0, %v607_v6 }
  0x99   :  { %v925_v44 = vmul.f32 %v909_v36, %v589_v29  ;;  %v3688_v61 = vadd.f32 %v3580_v33, %v1295_v54  ;;  %v1682_v22 = vmul.f32 %v2557_v26, %v1602_v49  ;;  %v216_v56 = vmul.f32 %v3520_v58, %v3570_v40 }
  0x9a   :  { %v750_v57 = vmul.f32 %v3655_v14, %v734_v39  ;;  %v177_v20 = vadd.f32 %v161_v17, %v122_v60  ;;  %vm574_vm12 = vcmp.ge.f32.partialorder %v3460_v24, 0.0  ;;  %v1657_v30 = vmul.f32 1.442695, %v1635_v15 }
  0x9b   :  { %v941_v31 = vadd.f32 1.0, %v925_v44  ;;  %2564 = vrcp.f32 %v639_v7  ;;  %v1698_v2 = vsub.f32 1.0, %v1682_v22  ;;  %v3695_v29 = vmul.f32 0.70710677, %v3688_v61 }
  0x9c   :  { %v766_v43 = vadd.f32 -0.28449672, %v750_v57  ;;  %v232_v34 = vadd.f32 %v216_v56, %v177_v20  ;;  %v847_v26 = vmul.f32 %v831_v12, %v607_v6  ;;  %v271_v63 = vmul.f32 %v3529_v46, %v3599_v8  ;;  %v2231_v6 = vld [vmem:[%s4872_s0 + $0xc0] sm:$0xff] }
  0x9d   :  { %v957_v1 = vmul.f32 %v941_v31, %v3619_v48  ;;  %v326_v40 = vmul.f32 %v3549_v11, %v3616_v16  ;;  %v1714_v24 = vmul.f32 %v1698_v2, %v1378_v27  ;;  %v590_v38 = vsel %vm574_vm12, 1.0, %v4897_v28  ;;  %v31_v16 = vld [vmem:[%s4872_s0 + $0x40] sm:$0xff] }
  0x9e   :  { %v3702_v18 = vpop.eup %2560  ;;  %v782_v36 = vmul.f32 %v3655_v14, %v766_v43  ;;  %v1396_v15 = vand.u32 2147483647, %v3695_v29  ;;  %2566 = vpow2.f32 %v1657_v30  ;;  %v287_v12 = vadd.f32 %v271_v63, %v232_v34  ;;  %v2267_v31 = vld [vmem:[%s4872_s0 + $0x1c0] sm:$0xff] }
  0x9f   :  { %v2563_v19 = vpop.eup %2562  ;;  %2495 = vmatprep.mubr.msk.f32.mxu1 %vm1760_vm4, %v957_v1  ;;  %v1475_v48 = vmul.f32 1.0614054, %v3702_v18  ;;  %v381_v8 = vmul.f32 %v3563_v25, %v3632_v3  ;;  %v1730_v27 = vadd.f32 1.0, %v1714_v24  ;;  %v869_v17 = vmul.f32 1.442695, %v847_v26  ;;  %v2249_v3 = vld [vmem:[%s4872_s0 + $0x140] sm:$0xff] }
  0xa0   :  { %v798_v54 = vadd.f32 0.2548296, %v782_v36  ;;  %v1412_v49 = vmul.f32 0.3275911, %v1396_v15  ;;  %v1620_v39 = vsub.f32 0.0, %v1396_v15  ;;  %v342_v44 = vadd.f32 %v326_v40, %v287_v12  ;;  %v2285_v26 = vld [vmem:[%s4872_s0 + $0x240] sm:$0xff] }
  0xa1   :  { %v1491_v60 = vadd.f32 -1.4531521, %v1475_v48  ;;  %v436_v7 = vmul.f32 %v3588_v41, %v3640_v50  ;;  %v1746_v22 = vmul.f32 %v1730_v27, %v1330_v4  ;;  %v491_v56 = vmul.f32 %v3607_v9, %v3660_v21  ;;  %v2303_v12 = vld [vmem:[%s4872_s0 + $0x2c0] sm:$0xff] }
  0xa2   :  { %v814_v57 = vmul.f32 %v3655_v14, %v798_v54  ;;  %v1428_v20 = vadd.f32 1.0, %v1412_v49  ;;  %v397_v2 = vadd.f32 %v381_v8, %v342_v44  ;;  %v984_v50 = vmul.f32 %v3375_v47, %v31_v16 }
  0xa3   :  { %v1507_v30 = vmul.f32 %v3702_v18, %v1491_v60  ;;  %v1021_v43 = vmul.f32 %v3383_v55, %v2231_v6  ;;  %2468 = vmatmul.mubr.msk.f32.gmra.mxu0 %vm1760_vm4, %v1746_v22  ;;  %v1636_v14 = vmul.f32 %v1620_v39, %v1396_v15  ;;  %v1058_v34 = vmul.f32 %v3412_v52, %v2249_v3 }
  0xa4   :  { %v894_v4 = vmul.f32 %v2563_v19, %v814_v57  ;;  %2568 = vrcp.f32 %v1428_v20  ;;  %v452_v21 = vadd.f32 %v436_v7, %v397_v2  ;;  %v1095_v40 = vmul.f32 %v3418_v5, %v2267_v31 }
  0xa5   :  { %v1523_v1 = vadd.f32 1.4214138, %v1507_v30  ;;  %v1037_v63 = vadd.f32 %v1021_v43, %v984_v50  ;;  %v542_v24 = vmul.f32 0.5, %v3436_v59  ;;  %v3739_v48 = vmul.f32 0.5, %v3583_v10  ;;  %v2321_v59 = vld [vmem:[%s4872_s0 + $0x340] sm:$0xff] }
  0xa6   :  { %v910_v36 = vsub.f32 1.0, %v894_v4  ;;  %vm1363_vm13 = vcmp.ge.f32.partialorder %v3602_v32, 0.0  ;;  %2570 = vpow2.f32 %v869_v17  ;;  %v507_v19 = vadd.f32 %v491_v56, %v452_v21 }
  0xa7   :  { %v1539_v15 = vmul.f32 %v3702_v18, %v1523_v1  ;;  %v1074_v8 = vadd.f32 %v1058_v34, %v1037_v63  ;;  %v1659_v49 = vmul.f32 1.442695, %v1636_v14  ;;  %v1132_v10 = vmul.f32 %v3431_v53, %v2285_v26 }
  0xa8   :  { %v3746_v27 = vpop.eup %2564  ;;  %v926_v54 = vmul.f32 %v910_v36, %v590_v38  ;;  %v52_v39 = vmul.f32 %v3482_v23, %v31_v16  ;;  %v3755_v44 = vadd.f32 %v3650_v37, %v507_v19  ;;  %v1169_v57 = vmul.f32 %v3449_v42, %v2303_v12  ;;  %v2339_v16 = vld [vmem:[%s4872_s0 + $0x3c0] sm:$0xff] }
  0xa9   :  { %v1555_v60 = vadd.f32 -0.28449672, %v1539_v15  ;;  %v687_v17 = vmul.f32 1.0614054, %v3746_v27  ;;  %v1111_v7 = vadd.f32 %v1095_v40, %v1074_v8  ;;  %v107_v38 = vmul.f32 %v3490_v62, %v2231_v6  ;;  %v2357_v40 = vld [vmem:[%s4872_s0 + $0x440] sm:$0xff] }
  0xaa   :  { %v942_v22 = vadd.f32 1.0, %v926_v54  ;;  %v162_v20 = vmul.f32 %v3505_v51, %v2249_v3  ;;  %v3762_v2 = vmul.f32 0.70710677, %v3755_v44  ;;  %v1206_v50 = vmul.f32 %v3475_v45, %v2321_v59 }
  0xab   :  { %v1571_v56 = vmul.f32 %v3702_v18, %v1555_v60  ;;  %v703_v30 = vadd.f32 -1.4531521, %v687_v17  ;;  %v2567_v43 = vpop.eup %2566  ;;  %v1148_v14 = vadd.f32 %v1132_v10, %v1111_v7  ;;  %v123_v34 = vadd.f32 %v107_v38, %v52_v39 }
  0xac   :  { %v958_v4 = vmul.f32 %v942_v22, %v542_v24  ;;  %v217_v6 = vmul.f32 %v3520_v58, %v2267_v31  ;;  %v1379_v3 = vsel %vm1363_vm13, 1.0, %v4897_v28  ;;  %v3774_v63 = vand.u32 2147483647, %v3762_v2 }
  0xad   :  { %v1587_v1 = vadd.f32 0.2548296, %v1571_v56  ;;  %v719_v21 = vmul.f32 %v3746_v27, %v703_v30  ;;  %v1185_v24 = vadd.f32 %v1169_v57, %v1148_v14  ;;  %v1243_v36 = vmul.f32 %v3498_v0, %v2339_v16 }
  0xae   :  { %2496 = vmatmul.mubr.msk.f32.gmra.mxu1 %vm1760_vm4, %v958_v4  ;;  %v178_v31 = vadd.f32 %v162_v20, %v123_v34  ;;  %v272_v15 = vmul.f32 %v3529_v46, %v2285_v26  ;;  %2572 = vpow2.f32 %v1659_v49  ;;  %v624_v8 = vmul.f32 0.3275911, %v3774_v63  ;;  %v3806_v4 = vld [vmem:[%s4872_s0 + $0x148] sm:$0xff] }
  0xaf   :  { %v1603_v32 = vmul.f32 %v3702_v18, %v1587_v1  ;;  %v735_v19 = vadd.f32 1.4214138, %v719_v21  ;;  %v1222_v54 = vadd.f32 %v1206_v50, %v1185_v24  ;;  %v1280_v10 = vmul.f32 %v3513_v13, %v2357_v40  ;;  %v3793_v18 = vld [vmem:[%s4872_s0 + $0x48] sm:$0xff] }
  0xb0   :  { %v233_v39 = vadd.f32 %v217_v6, %v178_v31  ;;  %v327_v60 = vmul.f32 %v3549_v11, %v2303_v12  ;;  %v640_v57 = vadd.f32 1.0, %v624_v8  ;;  %v832_v26 = vsub.f32 0.0, %v3774_v63  ;;  %v3800_v12 = vld [vmem:[%s4872_s0 + $0xc8] sm:$0xff] }
  0xb1   :  { %v3786_v17 = vpop.eup %2568  ;;  %v1683_v7 = vmul.f32 %v2567_v43, %v1603_v32  ;;  %v751_v22 = vmul.f32 %v3746_v27, %v735_v19  ;;  %v1259_v38 = vadd.f32 %v1243_v36, %v1222_v54  ;;  %v382_v56 = vmul.f32 %v3563_v25, %v2321_v59  ;;  %v3811_v59 = vld [vmem:[%s4872_s0 + $0x1c8] sm:$0xff] }
  0xb2   :  { %v1476_v49 = vmul.f32 1.0614054, %v3786_v17  ;;  %v288_v20 = vadd.f32 %v272_v15, %v233_v39  ;;  %2574 = vrcp.f32 %v640_v57  ;;  %v437_v43 = vmul.f32 %v3588_v41, %v2339_v16  ;;  %v3826_v8 = vld [vmem:[%s4872_s0 + $0x248] sm:$0xff] }
  0xb3   :  { %v1699_v30 = vsub.f32 1.0, %v1683_v7  ;;  %v767_v50 = vadd.f32 -0.28449672, %v751_v22  ;;  %v2571_v14 = vpop.eup %2570  ;;  %v1296_v6 = vadd.f32 %v1280_v10, %v1259_v38  ;;  %v985_v21 = vmul.f32 %v3375_v47, %v3793_v18  ;;  %v3839_v57 = vld [vmem:[%s4872_s0 + $0x2c8] sm:$0xff] }
  0xb4   :  { %v1492_v34 = vadd.f32 -1.4531521, %v1476_v49  ;;  %v343_v1 = vadd.f32 %v327_v60, %v288_v20  ;;  %v492_v36 = vmul.f32 %v3607_v9, %v2357_v40  ;;  %v1022_v31 = vmul.f32 %v3383_v55, %v3800_v12 }
  0xb5   :  { %v1715_v24 = vmul.f32 %v1699_v30, %v1379_v3  ;;  %v783_v16 = vmul.f32 %v3746_v27, %v767_v50  ;;  %v3821_v32 = vadd.f32 %v3580_v33, %v1296_v6  ;;  %v1059_v3 = vmul.f32 %v3412_v52, %v3806_v4 }
  0xb6   :  { %v1508_v15 = vmul.f32 %v3786_v17, %v1492_v34  ;;  %v398_v19 = vadd.f32 %v382_v56, %v343_v1  ;;  %v1038_v40 = vadd.f32 %v1022_v31, %v985_v21  ;;  %v1096_v39 = vmul.f32 %v3418_v5, %v3811_v59 }
  0xb7   :  { %v1731_v54 = vadd.f32 1.0, %v1715_v24  ;;  %v799_v10 = vadd.f32 0.2548296, %v783_v16  ;;  %vm575_vm14 = vcmp.ge.f32.partialorder %v3668_v35, 0.0  ;;  %v3834_v7 = vmul.f32 0.70710677, %v3821_v32 }
  0xb8   :  { %v1524_v60 = vadd.f32 1.4214138, %v1508_v15  ;;  %v453_v22 = vadd.f32 %v437_v43, %v398_v19  ;;  %v1075_v20 = vadd.f32 %v1059_v3, %v1038_v40  ;;  %v1133_v56 = vmul.f32 %v3431_v53, %v3826_v8  ;;  %v3867_v15 = vld [vmem:[%s4872_s0 + $0x3c8] sm:$0xff] }
  0xb9   :  { %v1747_v49 = vmul.f32 %v1731_v54, %v3739_v48  ;;  %v815_v38 = vmul.f32 %v3746_v27, %v799_v10  ;;  %vm1364_vm15 = vcmp.ge.f32.partialorder %v3695_v29, 0.0  ;;  %v1397_v50 = vand.u32 2147483647, %v3834_v7  ;;  %v3853_v48 = vld [vmem:[%s4872_s0 + $0x348] sm:$0xff] }
  0xba   :  { %v1540_v30 = vmul.f32 %v3786_v17, %v1524_v60  ;;  %v508_v43 = vadd.f32 %v492_v36, %v453_v22  ;;  %v848_v6 = vmul.f32 %v832_v26, %v3774_v63  ;;  %v1112_v27 = vadd.f32 %v1096_v39, %v1075_v20  ;;  %v4904_v63 = vld [vmem:[#allocation2_spill] sm:$0xff]  ;;  %v3881_v22 = vld [vmem:[%s4872_s0 + $0x448] sm:$0xff] }
  0xbb   :  { %2470 = vmatprep.mubr.msk.f32.mxu0 %vm1760_vm4, %v1747_v49  ;;  %v895_v34 = vmul.f32 %v2571_v14, %v815_v38  ;;  %v1170_v1 = vmul.f32 %v3449_v42, %v3839_v57  ;;  %v2573_v21 = vpop.eup %2572  ;;  %v591_v24 = vsel %vm575_vm14, 1.0, %v4897_v28  ;;  %v1413_v36 = vmul.f32 0.3275911, %v1397_v50 }
  0xbc   :  { %v1556_v16 = vadd.f32 -0.28449672, %v1540_v30  ;;  %v3861_v14 = vadd.f32 %v3650_v37, %v508_v43  ;;  %v543_v26 = vmul.f32 0.5, %v4904_v63  ;;  %v1149_v19 = vadd.f32 %v1133_v56, %v1112_v27 }
  0xbd   :  { %v911_v31 = vsub.f32 1.0, %v895_v34  ;;  %v1380_v3 = vsel %vm1364_vm15, 1.0, %v4897_v28  ;;  %v1429_v54 = vadd.f32 1.0, %v1413_v36  ;;  %v1207_v10 = vmul.f32 %v3475_v45, %v3853_v48 }
  0xbe   :  { %v1572_v35 = vmul.f32 %v3786_v17, %v1556_v16  ;;  %v871_v39 = vmul.f32 1.442695, %v848_v6  ;;  %v3876_v60 = vmul.f32 0.70710677, %v3861_v14  ;;  %v1186_v49 = vadd.f32 %v1170_v1, %v1149_v19 }
  0xbf   :  { %v927_v40 = vmul.f32 %v911_v31, %v591_v24  ;;  %v3883_v38 = vpop.eup %2574  ;;  %vm576_vm0 = vcmp.ge.f32.partialorder %v3762_v2, 0.0  ;;  %2576 = vrcp.f32 %v1429_v54  ;;  %v1244_v20 = vmul.f32 %v3498_v0, %v3867_v15 }
  0xc0   :  { %v1588_v29 = vadd.f32 0.2548296, %v1572_v35  ;;  %v688_v30 = vmul.f32 1.0614054, %v3883_v38  ;;  %v1621_v43 = vsub.f32 0.0, %v1397_v50  ;;  %v1223_v27 = vadd.f32 %v1207_v10, %v1186_v49 }
  0xc1   :  { %v943_v56 = vadd.f32 1.0, %v927_v40  ;;  %v609_v34 = vand.u32 2147483647, %v3876_v60  ;;  %v1281_v1 = vmul.f32 %v3513_v13, %v3881_v22  ;;  %v53_v24 = vmul.f32 %v3482_v23, %v3793_v18 }
  0xc2   :  { %v1604_v6 = vmul.f32 %v3786_v17, %v1588_v29  ;;  %v704_v36 = vadd.f32 -1.4531521, %v688_v30  ;;  %2578 = vpow2.f32 %v871_v39  ;;  %v1260_v19 = vadd.f32 %v1244_v20, %v1223_v27 }
  0xc3   :  { %v959_v16 = vmul.f32 %v943_v56, %v543_v26  ;;  %v625_v63 = vmul.f32 0.3275911, %v609_v34  ;;  %v108_v35 = vmul.f32 %v3490_v62, %v3800_v12  ;;  %v163_v54 = vmul.f32 %v3505_v51, %v3806_v4 }
  0xc4   :  { %v1684_v31 = vmul.f32 %v2573_v21, %v1604_v6  ;;  %v720_v17 = vmul.f32 %v3883_v38, %v704_v36  ;;  %v1637_v10 = vmul.f32 %v1621_v43, %v1397_v50  ;;  %v833_v49 = vsub.f32 0.0, %v609_v34  ;;  %v33_v43 = vld [vmem:[%s4872_s0 + $0x50] sm:$0xff] }
  0xc5   :  { %2498 = vmatprep.mubr.msk.f32.mxu1 %vm1760_vm4, %v959_v16  ;;  %v641_v40 = vadd.f32 1.0, %v625_v63  ;;  %v1297_v26 = vadd.f32 %v1281_v1, %v1260_v19  ;;  %v124_v29 = vadd.f32 %v108_v35, %v53_v24  ;;  %v218_v21 = vmul.f32 %v3520_v58, %v3811_v59  ;;  %v2269_v36 = vld [vmem:[%s4872_s0 + $0x1d0] sm:$0xff] }
  0xc6   :  { %v1700_v18 = vsub.f32 1.0, %v1684_v31  ;;  %v1332_v39 = vmul.f32 0.5, %v3688_v61  ;;  %v3905_v12 = vmul.f32 0.5, %v3755_v44  ;;  %v736_v20 = vadd.f32 1.4214138, %v720_v17  ;;  %v2233_v61 = vld [vmem:[%s4872_s0 + $0xd0] sm:$0xff] }
  0xc7   :  { %2580 = vrcp.f32 %v641_v40  ;;  %v3908_v56 = vadd.f32 %v3580_v33, %v1297_v26  ;;  %v179_v50 = vadd.f32 %v163_v54, %v124_v29  ;;  %v273_v30 = vmul.f32 %v3529_v46, %v3826_v8  ;;  %v3921_v44 = vld [vmem:[%s4872_s0 + $0x150] sm:$0xff] }
  0xc8   :  { %v1716_v4 = vmul.f32 %v1700_v18, %v1380_v3  ;;  %v3926_v59 = vsel %vm576_vm0, 1.0, %v4897_v28  ;;  %v752_v8 = vmul.f32 %v3883_v38, %v736_v20  ;;  %v1661_v3 = vmul.f32 1.442695, %v1637_v10  ;;  %v2287_v17 = vld [vmem:[%s4872_s0 + $0x250] sm:$0xff] }
  0xc9   :  { %v849_v6 = vmul.f32 %v833_v49, %v609_v34  ;;  %v3930_v1 = vmul.f32 0.70710677, %v3908_v56  ;;  %v234_v24 = vadd.f32 %v218_v21, %v179_v50  ;;  %v328_v16 = vmul.f32 %v3549_v11, %v3839_v57  ;;  %v2305_v29 = vld [vmem:[%s4872_s0 + $0x2d0] sm:$0xff] }
  0xca   :  { %v1732_v27 = vadd.f32 1.0, %v1716_v4  ;;  %v768_v63 = vadd.f32 -0.28449672, %v752_v8  ;;  %v986_v2 = vmul.f32 %v3375_v47, %v33_v43  ;;  %v1023_v31 = vmul.f32 %v3383_v55, %v2233_v61 }
  0xcb   :  { %v1060_v34 = vmul.f32 %v3412_v52, %v3921_v44  ;;  %v3942_v35 = vand.u32 2147483647, %v3930_v1  ;;  %v289_v54 = vadd.f32 %v273_v30, %v234_v24  ;;  %v383_v57 = vmul.f32 %v3563_v25, %v3853_v48 }
  0xcc   :  { %v1748_v19 = vmul.f32 %v1732_v27, %v1332_v39  ;;  %v3949_v10 = vpop.eup %2576  ;;  %v784_v47 = vmul.f32 %v3883_v38, %v768_v63  ;;  %v873_v55 = vmul.f32 1.442695, %v849_v6  ;;  %v1039_v40 = vadd.f32 %v1023_v31, %v986_v2 }
  0xcd   :  { %v1097_v52 = vmul.f32 %v3418_v5, %v2269_v36  ;;  %v1477_v49 = vmul.f32 1.0614054, %v3949_v10  ;;  %v1414_v18 = vmul.f32 0.3275911, %v3942_v35  ;;  %v344_v26 = vadd.f32 %v328_v16, %v289_v54 }
  0xce   :  { %2471 = vmatmul.mubr.msk.f32.gmra.mxu0 %vm1760_vm4, %v1748_v19  ;;  %v438_v48 = vmul.f32 %v3588_v41, %v3867_v15  ;;  %v800_v21 = vadd.f32 0.2548296, %v784_v47  ;;  %2582 = vpow2.f32 %v1661_v3  ;;  %v1076_v39 = vadd.f32 %v1060_v34, %v1039_v40  ;;  %v2323_v15 = vld [vmem:[%s4872_s0 + $0x350] sm:$0xff] }
  0xcf   :  { %v1134_v20 = vmul.f32 %v3431_v53, %v2287_v17  ;;  %v2579_v5 = vpop.eup %2578  ;;  %v1493_v4 = vadd.f32 -1.4531521, %v1477_v49  ;;  %v1430_v50 = vadd.f32 1.0, %v1414_v18  ;;  %v399_v30 = vadd.f32 %v383_v57, %v344_v26  ;;  %v3971_v3 = vld [vmem:[%s4872_s0 + $0x3d0] sm:$0xff] }
  0xd0   :  { %v493_v8 = vmul.f32 %v3607_v9, %v3881_v22  ;;  %v816_v6 = vmul.f32 %v3883_v38, %v800_v21  ;;  %2584 = vpow2.f32 %v873_v55  ;;  %v1113_v53 = vadd.f32 %v1097_v52, %v1076_v39 }
  0xd1   :  { %v1171_v27 = vmul.f32 %v3449_v42, %v2305_v29  ;;  %vm1365_vm1 = vcmp.ge.f32.partialorder %v3834_v7, 0.0  ;;  %v1509_v24 = vmul.f32 %v3949_v10, %v1493_v4  ;;  %2586 = vrcp.f32 %v1430_v50  ;;  %v2359_v42 = vld [vmem:[%s4872_s0 + $0x450] sm:$0xff] }
  0xd2   :  { %v1622_v22 = vsub.f32 0.0, %v3942_v35  ;;  %v454_v16 = vadd.f32 %v438_v48, %v399_v30  ;;  %v896_v63 = vmul.f32 %v2579_v5, %v816_v6  ;;  %v1150_v2 = vadd.f32 %v1134_v20, %v1113_v53 }
  0xd3   :  { %v1208_v38 = vmul.f32 %v3475_v45, %v2323_v15  ;;  %v54_v31 = vmul.f32 %v3482_v23, %v33_v43  ;;  %v1525_v19 = vadd.f32 1.4214138, %v1509_v24  ;;  %v1245_v57 = vmul.f32 %v3498_v0, %v3971_v3 }
  0xd4   :  { %v3979_v34 = vpop.eup %2580  ;;  %v509_v54 = vadd.f32 %v493_v8, %v454_v16  ;;  %v109_v47 = vmul.f32 %v3490_v62, %v2233_v61  ;;  %v912_v55 = vsub.f32 1.0, %v896_v63  ;;  %v1187_v52 = vadd.f32 %v1171_v27, %v1150_v2 }
  0xd5   :  { %v689_v40 = vmul.f32 1.0614054, %v3979_v34  ;;  %v164_v45 = vmul.f32 %v3505_v51, %v3921_v44  ;;  %v1541_v23 = vmul.f32 %v3949_v10, %v1525_v19  ;;  %v219_v18 = vmul.f32 %v3520_v58, %v2269_v36 }
  0xd6   :  { %v3992_v43 = vadd.f32 %v3650_v37, %v509_v54  ;;  %v125_v49 = vadd.f32 %v109_v47, %v54_v31  ;;  %v928_v26 = vmul.f32 %v912_v55, %v3926_v59  ;;  %v1224_v48 = vadd.f32 %v1208_v38, %v1187_v52 }
  0xd7   :  { %v705_v0 = vadd.f32 -1.4531521, %v689_v40  ;;  %v1282_v62 = vmul.f32 %v3513_v13, %v2359_v42  ;;  %v1557_v61 = vadd.f32 -0.28449672, %v1541_v23  ;;  %v274_v51 = vmul.f32 %v3529_v46, %v2287_v17 }
  0xd8   :  { %v3998_v21 = vmul.f32 0.70710677, %v3992_v43  ;;  %v180_v39 = vadd.f32 %v164_v45, %v125_v49  ;;  %v944_v44 = vadd.f32 1.0, %v928_v26  ;;  %v1638_v5 = vmul.f32 %v1622_v22, %v3942_v35 }
  0xd9   :  { %v721_v20 = vmul.f32 %v3979_v34, %v705_v0  ;;  %v1261_v4 = vadd.f32 %v1245_v57, %v1224_v48  ;;  %v1573_v58 = vmul.f32 %v3949_v10, %v1557_v61  ;;  %v329_v50 = vmul.f32 %v3549_v11, %v2305_v29  ;;  %v4052_v0 = vld [vmem:[%s4873_s1 + $0x1] ss:$0 sm:$0xff] }
  0xda   :  { %v610_v59 = vand.u32 2147483647, %v3998_v21  ;;  %v235_v36 = vadd.f32 %v219_v18, %v180_v39  ;;  %v960_v30 = vmul.f32 %v944_v44, %v3905_v12  ;;  %v4008_v8 = vmul.f32 0.5, %v3821_v32 }
  0xdb   :  { %v737_v6 = vadd.f32 1.4214138, %v721_v20  ;;  %v1298_v46 = vadd.f32 %v1282_v62, %v1261_v4  ;;  %v2583_v17 = vpop.eup %2582  ;;  %v1589_v53 = vadd.f32 0.2548296, %v1573_v58  ;;  %v1381_v22 = vsel %vm1365_vm1, 1.0, %v4897_v28 }
  0xdc   :  { %v626_v27 = vmul.f32 0.3275911, %v610_v59  ;;  %v834_v24 = vsub.f32 0.0, %v610_v59  ;;  %v290_v35 = vadd.f32 %v274_v51, %v235_v36  ;;  %2499 = vmatmul.mubr.msk.f32.gmra.mxu1 %vm1760_vm4, %v960_v30  ;;  %v384_v32 = vmul.f32 %v3563_v25, %v2323_v15  ;;  %v4059_v62 = vld [vmem:[%s4873_s1 + $0x3] ss:$0 sm:$0xff] }
  0xdd   :  { %v753_v11 = vmul.f32 %v3979_v34, %v737_v6  ;;  %v4016_v12 = vadd.f32 %v3580_v33, %v1298_v46  ;;  %v2585_v29 = vpop.eup %2584  ;;  %v1605_v16 = vmul.f32 %v3949_v10, %v1589_v53  ;;  %v1663_v63 = vmul.f32 1.442695, %v1638_v5  ;;  %v4067_v5 = vld [vmem:[%s4872_s0 + $0x1d8] sm:$0xff]  ;;  %v4072_v36 = vld [vmem:[%s4873_s1 + $0x5] ss:$0 sm:$0xff] }
  0xde   :  { %v642_v2 = vadd.f32 1.0, %v626_v27  ;;  %v345_v38 = vadd.f32 %v329_v50, %v290_v35  ;;  %v4020_v31 = vpop.eup %2586  ;;  %vm577_vm2 = vcmp.ge.f32.partialorder %v3876_v60, 0.0  ;;  %v439_v33 = vmul.f32 %v3588_v41, %v3971_v3  ;;  %v4035_v60 = vld [vmem:[%s4872_s0 + $0x58] sm:$0xff]  ;;  %v4099_v35 = vld [vmem:[%s4873_s1 + $0x7] ss:$0 sm:$0xff] }
  0xdf   :  { %v769_v19 = vadd.f32 -0.28449672, %v753_v11  ;;  %v4024_v7 = vmul.f32 0.70710677, %v4016_v12  ;;  %v1685_v54 = vmul.f32 %v2583_v17, %v1605_v16  ;;  %v1478_v25 = vmul.f32 1.0614054, %v4020_v31 }
  0xe0   :  { %2588 = vrcp.f32 %v642_v2  ;;  %v850_v15 = vmul.f32 %v834_v24, %v610_v59  ;;  %v400_v47 = vadd.f32 %v384_v32, %v345_v38  ;;  %v494_v55 = vmul.f32 %v3607_v9, %v2359_v42  ;;  %v4040_v41 = vld [vmem:[%s4872_s0 + $0xd8] sm:$0xff]  ;;  %v4122_v2 = vld [vmem:[%s4873_s1 + $0x9] ss:$0 sm:$0xff] }
  0xe1   :  { %v785_v10 = vmul.f32 %v3979_v34, %v769_v19  ;;  %v1399_v57 = vand.u32 2147483647, %v4024_v7  ;;  %v1701_v3 = vsub.f32 1.0, %v1685_v54  ;;  %v593_v40 = vsel %vm577_vm2, 1.0, %v4897_v28  ;;  %v4046_v9 = vld [vmem:[%s4872_s0 + $0x158] sm:$0xff] }
  0xe2   :  { %v1494_v52 = vadd.f32 -1.4531521, %v1478_v25  ;;  %2590 = vpow2.f32 %v1663_v63  ;;  %v455_v18 = vadd.f32 %v439_v33, %v400_v47  ;;  %v987_v48 = vmul.f32 %v4052_v0, %v4035_v60  ;;  %v4082_v46 = vld [vmem:[%s4872_s0 + $0x258] sm:$0xff]  ;;  %v4129_v19 = vld [vmem:[%s4873_s1 + $0xb] ss:$0 sm:$0xff] }
  0xe3   :  { %v801_v45 = vadd.f32 0.2548296, %v785_v10  ;;  %v1415_v23 = vmul.f32 0.3275911, %v1399_v57  ;;  %v1623_v49 = vsub.f32 0.0, %v1399_v57  ;;  %v1717_v42 = vmul.f32 %v1701_v3, %v1381_v22  ;;  %v4087_v17 = vld [vmem:[%s4872_s0 + $0x2d8] sm:$0xff] }
  0xe4   :  { %v1510_v26 = vmul.f32 %v4020_v31, %v1494_v52  ;;  %v1024_v61 = vmul.f32 %v4059_v62, %v4040_v41  ;;  %v875_v51 = vmul.f32 1.442695, %v850_v15  ;;  %v510_v20 = vadd.f32 %v494_v55, %v455_v18  ;;  %v4094_v24 = vld [vmem:[%s4872_s0 + $0x358] sm:$0xff]  ;;  %v4138_v47 = vld [vmem:[%s4873_s1 + $0xd] ss:$0 sm:$0xff] }
  0xe5   :  { %v817_v39 = vmul.f32 %v3979_v34, %v801_v45  ;;  %v1431_v44 = vadd.f32 1.0, %v1415_v23  ;;  %v1733_v4 = vadd.f32 1.0, %v1717_v42  ;;  %v1061_v50 = vmul.f32 %v4072_v36, %v4046_v9  ;;  %v4117_v63 = vld [vmem:[%s4872_s0 + $0x458] sm:$0xff]  ;;  %v4145_v3 = vld [vmem:[%s4873_s1 + $0xf] ss:$0 sm:$0xff] }
  0xe6   :  { %v1526_v58 = vadd.f32 1.4214138, %v1510_v26  ;;  %v1040_v59 = vadd.f32 %v1024_v61, %v987_v48  ;;  %v1639_v30 = vmul.f32 %v1623_v49, %v1399_v57  ;;  %v4077_v6 = vadd.f32 %v3650_v37, %v510_v20  ;;  %v4157_v61 = vld [vmem:[%s4873_s1] ss:$0 sm:$0xff] }
  0xe7   :  { %v897_v34 = vmul.f32 %v2585_v29, %v817_v39  ;;  %2592 = vrcp.f32 %v1431_v44  ;;  %v1749_v53 = vmul.f32 %v1733_v4, %v4008_v8  ;;  %v1098_v22 = vmul.f32 %v4099_v35, %v4067_v5  ;;  %v4111_v29 = vld [vmem:[%s4872_s0 + $0x3d8] sm:$0xff] }
  0xe8   :  { %v1542_v27 = vmul.f32 %v4020_v31, %v1526_v58  ;;  %v1077_v37 = vadd.f32 %v1061_v50, %v1040_v59  ;;  %v545_v11 = vmul.f32 0.5, %v3861_v14  ;;  %vm1366_vm3 = vcmp.ge.f32.partialorder %v3930_v1, 0.0 }
  0xe9   :  { %v913_v32 = vsub.f32 1.0, %v897_v34  ;;  %v4106_v8 = vmul.f32 0.70710677, %v4077_v6  ;;  %2473 = vmatprep.mubr.msk.f32.mxu0 %vm1760_vm4, %v1749_v53  ;;  %v1135_v38 = vmul.f32 %v4122_v2, %v4082_v46  ;;  %v1172_v33 = vmul.f32 %v4129_v19, %v4087_v17 }
  0xea   :  { %v1558_v16 = vadd.f32 -0.28449672, %v1542_v27  ;;  %v1114_v14 = vadd.f32 %v1098_v22, %v1077_v37  ;;  %2594 = vpow2.f32 %v875_v51  ;;  %v1665_v25 = vmul.f32 1.442695, %v1639_v30 }
  0xeb   :  { %v929_v54 = vmul.f32 %v913_v32, %v593_v40  ;;  %v611_v15 = vand.u32 2147483647, %v4106_v8  ;;  %v1209_v55 = vmul.f32 %v4138_v47, %v4094_v24  ;;  %v1246_v40 = vmul.f32 %v4145_v3, %v4111_v29 }
  0xec   :  { %v1574_v10 = vmul.f32 %v4020_v31, %v1558_v16  ;;  %v1151_v57 = vadd.f32 %v1135_v38, %v1114_v14  ;;  %v1283_v18 = vmul.f32 %v3513_v13, %v4117_v63  ;;  %v55_v39 = vmul.f32 %v4157_v61, %v4035_v60  ;;  %v4164_v13 = vld [vmem:[%s4873_s1 + $0x2] ss:$0 sm:$0xff]  ;;  %v4172_v60 = vld [vmem:[%s4873_s1 + $0x4] ss:$0 sm:$0xff] }
  0xed   :  { %v4149_v52 = vpop.eup %2588  ;;  %v945_v45 = vadd.f32 1.0, %v929_v54  ;;  %v627_v23 = vmul.f32 0.3275911, %v611_v15  ;;  %v835_v49 = vsub.f32 0.0, %v611_v15  ;;  %v110_v58 = vmul.f32 %v4164_v13, %v4040_v41  ;;  %v4205_v16 = vld [vmem:[%s4872_s0 + $0xe0] sm:$0xff] }
  0xee   :  { %v1590_v42 = vadd.f32 0.2548296, %v1574_v10  ;;  %v690_v26 = vmul.f32 1.0614054, %v4149_v52  ;;  %v1188_v48 = vadd.f32 %v1172_v33, %v1151_v57  ;;  %v165_v30 = vmul.f32 %v4172_v60, %v4046_v9 }
  0xef   :  { %v2591_v51 = vpop.eup %2590  ;;  %v961_v44 = vmul.f32 %v945_v45, %v545_v11  ;;  %v643_v20 = vadd.f32 1.0, %v627_v23  ;;  %v851_v4 = vmul.f32 %v835_v49, %v611_v15  ;;  %v1334_v53 = vmul.f32 0.5, %v3908_v56  ;;  %v4192_v56 = vld [vmem:[%s4872_s0 + $0x60] sm:$0xff] }
  0xf0   :  { %v1606_v59 = vmul.f32 %v4020_v31, %v1590_v42  ;;  %v706_v50 = vadd.f32 -1.4531521, %v690_v26  ;;  %v1225_v34 = vadd.f32 %v1209_v55, %v1188_v48  ;;  %v126_v27 = vadd.f32 %v110_v58, %v55_v39  ;;  %v4181_v31 = vld [vmem:[%s4873_s1 + $0x6] ss:$0 sm:$0xff]  ;;  %v4228_v49 = vld [vmem:[%s4874_s2 + $0x1] ss:$0 sm:$0xff] }
  0xf1   :  { %2501 = vmatprep.mubr.msk.f32.mxu1 %vm1760_vm4, %v961_v44  ;;  %2596 = vrcp.f32 %v643_v20  ;;  %v220_v41 = vmul.f32 %v4181_v31, %v4067_v5  ;;  %v1382_v37 = vsel %vm1366_vm3, 1.0, %v4897_v28  ;;  %vm578_vm5 = vcmp.ge.f32.partialorder %v3998_v21, 0.0  ;;  %v4198_v5 = vld [vmem:[%s4873_s1 + $0x8] ss:$0 sm:$0xff]  ;;  %v4212_v15 = vld [vmem:[%s4872_s0 + $0x160] sm:$0xff] }
  0xf2   :  { %v1686_v22 = vmul.f32 %v2591_v51, %v1606_v59  ;;  %v722_v9 = vmul.f32 %v4149_v52, %v706_v50  ;;  %v1262_v11 = vadd.f32 %v1246_v40, %v1225_v34  ;;  %2598 = vpow2.f32 %v1665_v25  ;;  %v4236_v42 = vld [vmem:[%s4872_s0 + $0x1e0] sm:$0xff]  ;;  %v4243_v39 = vld [vmem:[%s4873_s1 + $0xc] ss:$0 sm:$0xff]  ;;  %v4255_v50 = vld [vmem:[%s4873_s1 + $0xe] ss:$0 sm:$0xff] }
  0xf3   :  { %v181_v32 = vadd.f32 %v165_v30, %v126_v27  ;;  %v275_v1 = vmul.f32 %v4198_v5, %v4082_v46  ;;  %v877_v54 = vmul.f32 1.442695, %v851_v4  ;;  %v4218_v46 = vld [vmem:[%s4873_s1 + $0xa] ss:$0 sm:$0xff]  ;;  %v988_v40 = vmul.f32 %v4052_v0, %v4192_v56 }
  0xf4   :  { %v4207_v14 = vpop.eup %2592  ;;  %v1702_v38 = vsub.f32 1.0, %v1686_v22  ;;  %v738_v33 = vadd.f32 1.4214138, %v722_v9  ;;  %v1299_v25 = vadd.f32 %v1283_v18, %v1262_v11  ;;  %v330_v55 = vmul.f32 %v4218_v46, %v4087_v17 }
  0xf5   :  { %v1479_v10 = vmul.f32 1.0614054, %v4207_v14  ;;  %v236_v57 = vadd.f32 %v220_v41, %v181_v32  ;;  %v1025_v17 = vmul.f32 %v4059_v62, %v4205_v16  ;;  %v385_v51 = vmul.f32 %v4243_v39, %v4094_v24  ;;  %v4262_v24 = vld [vmem:[%s4872_s0 + $0x260] sm:$0xff] }
  0xf6   :  { %v1718_v45 = vmul.f32 %v1702_v38, %v1382_v37  ;;  %v754_v23 = vmul.f32 %v4149_v52, %v738_v33  ;;  %v4231_v18 = vadd.f32 %v4228_v49, %v1299_v25  ;;  %v1062_v44 = vmul.f32 %v4072_v36, %v4212_v15 }
  0xf7   :  { %v1495_v26 = vadd.f32 -1.4531521, %v1479_v10  ;;  %v291_v48 = vadd.f32 %v275_v1, %v236_v57  ;;  %v2595_v20 = vpop.eup %2594  ;;  %v440_v34 = vmul.f32 %v4255_v50, %v4111_v29  ;;  %v1041_v41 = vadd.f32 %v1025_v17, %v988_v40  ;;  %v4272_v29 = vld [vmem:[%s4873_s1 + $0x10] ss:$0 sm:$0xff]  ;;  %v4279_v1 = vld [vmem:[%s4872_s0 + $0x2e0] sm:$0xff] }
  0xf8   :  { %v1734_v4 = vadd.f32 1.0, %v1718_v45  ;;  %v770_v58 = vadd.f32 -0.28449672, %v754_v23  ;;  %v4250_v59 = vmul.f32 0.70710677, %v4231_v18  ;;  %v1099_v37 = vmul.f32 %v4099_v35, %v4236_v42  ;;  %v4292_v23 = vld [vmem:[%s4872_s0 + $0x360] sm:$0xff] }
  0xf9   :  { %v1511_v30 = vmul.f32 %v4207_v14, %v1495_v26  ;;  %v346_v27 = vadd.f32 %v330_v55, %v291_v48  ;;  %v495_v32 = vmul.f32 %v4272_v29, %v4117_v63  ;;  %v1136_v25 = vmul.f32 %v4122_v2, %v4262_v24 }
  0xfa   :  { %v1750_v22 = vmul.f32 %v1734_v4, %v1334_v53  ;;  %v786_v9 = vmul.f32 %v4149_v52, %v770_v58  ;;  %v1400_v11 = vand.u32 2147483647, %v4250_v59  ;;  %v1078_v53 = vadd.f32 %v1062_v44, %v1041_v41  ;;  %v4304_v58 = vld [vmem:[%s4872_s0 + $0x3e0] sm:$0xff] }
  0xfb   :  { %v1527_v38 = vadd.f32 1.4214138, %v1511_v30  ;;  %v401_v33 = vadd.f32 %v385_v51, %v346_v27  ;;  %v546_v10 = vmul.f32 0.5, %v3992_v43  ;;  %v594_v57 = vsel %vm578_vm5, 1.0, %v4897_v28 }
  0xfc   :  { %2474 = vmatmul.mubr.msk.f32.gmra.mxu0 %vm1760_vm4, %v1750_v22  ;;  %v802_v63 = vadd.f32 0.2548296, %v786_v9  ;;  %v1416_v55 = vmul.f32 0.3275911, %v1400_v11  ;;  %v1115_v17 = vadd.f32 %v1099_v37, %v1078_v53  ;;  %v1173_v26 = vmul.f32 %v4129_v19, %v4279_v1  ;;  %v4317_v9 = vld [vmem:[%s4874_s2] ss:$0 sm:$0xff] }
  0xfd   :  { %v1543_v40 = vmul.f32 %v4207_v14, %v1527_v38  ;;  %v456_v45 = vadd.f32 %v440_v34, %v401_v33  ;;  %vm1367_vm6 = vcmp.ge.f32.partialorder %v4024_v7, 0.0  ;;  %2600 = vpow2.f32 %v877_v54 }
  0xfe   :  { %v4296_v48 = vpop.eup %2596  ;;  %v818_v43 = vmul.f32 %v4149_v52, %v802_v63  ;;  %v1432_v21 = vadd.f32 1.0, %v1416_v55  ;;  %v1152_v34 = vadd.f32 %v1136_v25, %v1115_v17  ;;  %v1624_v41 = vsub.f32 0.0, %v1400_v11  ;;  %v4309_v52 = vld [vmem:[%s4872_s0 + $0x460] sm:$0xff] }
  0xff   :  { %v1559_v51 = vadd.f32 -0.28449672, %v1543_v40  ;;  %v691_v44 = vmul.f32 1.0614054, %v4296_v48  ;;  %v511_v4 = vadd.f32 %v495_v32, %v456_v45  ;;  %v2599_v30 = vpop.eup %2598  ;;  %v1210_v54 = vmul.f32 %v4138_v47, %v4292_v23  ;;  %v4335_v45 = vld [vmem:[%s4873_s1 + $0x11] ss:$0 sm:$0xff] }
 0x100   :  { %v898_v27 = vmul.f32 %v2595_v20, %v818_v43  ;;  %2602 = vrcp.f32 %v1432_v21  ;;  %v1189_v32 = vadd.f32 %v1173_v26, %v1152_v34  ;;  %v1247_v33 = vmul.f32 %v4145_v3, %v4304_v58 }
 0x101   :  { %v1575_v37 = vmul.f32 %v4207_v14, %v1559_v51  ;;  %v707_v22 = vadd.f32 -1.4531521, %v691_v44  ;;  %v4320_v20 = vadd.f32 %v4317_v9, %v511_v4  ;;  %v56_v53 = vmul.f32 %v4157_v61, %v4192_v56 }
 0x102   :  { %v914_v38 = vsub.f32 1.0, %v898_v27  ;;  %v111_v25 = vmul.f32 %v4164_v13, %v4205_v16  ;;  %v1284_v17 = vmul.f32 %v4335_v45, %v4309_v52  ;;  %v1226_v43 = vadd.f32 %v1210_v54, %v1189_v32 }
 0x103   :  { %v1591_v63 = vadd.f32 0.2548296, %v1575_v37  ;;  %v723_v55 = vmul.f32 %v4296_v48, %v707_v22  ;;  %v4330_v40 = vmul.f32 0.70710677, %v4320_v20  ;;  %v166_v16 = vmul.f32 %v4172_v60, %v4212_v15 }
 0x104   :  { %v930_v26 = vmul.f32 %v914_v38, %v594_v57  ;;  %v127_v56 = vadd.f32 %v111_v25, %v56_v53  ;;  %v1335_v21 = vmul.f32 0.5, %v4016_v12  ;;  %v1383_v27 = vsel %vm1367_vm6, 1.0, %v4897_v28 }
 0x105   :  { %v1607_v51 = vmul.f32 %v4207_v14, %v1591_v63  ;;  %v739_v44 = vadd.f32 1.4214138, %v723_v55  ;;  %v612_v4 = vand.u32 2147483647, %v4330_v40  ;;  %v1263_v37 = vadd.f32 %v1247_v33, %v1226_v43 }
 0x106   :  { %v946_v34 = vadd.f32 1.0, %v930_v26  ;;  %v182_v22 = vadd.f32 %v166_v16, %v127_v56  ;;  %v1640_v32 = vmul.f32 %v1624_v41, %v1400_v11  ;;  %v221_v12 = vmul.f32 %v4181_v31, %v4236_v42 }
 0x107   :  { %v1687_v57 = vmul.f32 %v2599_v30, %v1607_v51  ;;  %v755_v54 = vmul.f32 %v4296_v48, %v739_v44  ;;  %v628_v38 = vmul.f32 0.3275911, %v612_v4  ;;  %v1300_v53 = vadd.f32 %v1284_v17, %v1263_v37 }
 0x108   :  { %v962_v15 = vmul.f32 %v946_v34, %v546_v10  ;;  %v276_v14 = vmul.f32 %v4198_v5, %v4262_v24  ;;  %v836_v7 = vsub.f32 0.0, %v612_v4  ;;  %vm579_vm7 = vcmp.ge.f32.partialorder %v4106_v8, 0.0 }
 0x109   :  { %v1703_v25 = vsub.f32 1.0, %v1687_v57  ;;  %v771_v63 = vadd.f32 -0.28449672, %v755_v54  ;;  %v644_v55 = vadd.f32 1.0, %v628_v38  ;;  %v4355_v30 = vadd.f32 %v4228_v49, %v1300_v53  ;;  %v2236_v57 = vld [vmem:[%s4872_s0 + $0xe8] sm:$0xff] }
 0x10a   :  { %2502 = vmatmul.mubr.msk.f32.gmra.mxu1 %vm1760_vm4, %v962_v15  ;;  %v237_v11 = vadd.f32 %v221_v12, %v182_v22  ;;  %v331_v10 = vmul.f32 %v4218_v46, %v4279_v1  ;;  %v2601_v41 = vpop.eup %2600  ;;  %v1667_v24 = vmul.f32 1.442695, %v1640_v32  ;;  %v4361_v17 = vmul.f32 0.5, %v4077_v6  ;;  %v36_v1 = vld [vmem:[%s4872_s0 + $0x68] sm:$0xff] }
 0x10b   :  { %v1719_v42 = vmul.f32 %v1703_v25, %v1383_v27  ;;  %v787_v33 = vmul.f32 %v4296_v48, %v771_v63  ;;  %2604 = vrcp.f32 %v644_v55  ;;  %v4364_v26 = vmul.f32 0.70710677, %v4355_v30  ;;  %v2254_v54 = vld [vmem:[%s4872_s0 + $0x168] sm:$0xff] }
 0x10c   :  { %v292_v43 = vadd.f32 %v276_v14, %v237_v11  ;;  %v386_v56 = vmul.f32 %v4243_v39, %v4292_v23  ;;  %v595_v44 = vsel %vm579_vm7, 1.0, %v4897_v28  ;;  %v852_v34 = vmul.f32 %v836_v7, %v612_v4  ;;  %v2272_v12 = vld [vmem:[%s4872_s0 + $0x1e8] sm:$0xff] }
 0x10d   :  { %v4371_v16 = vpop.eup %2602  ;;  %v1735_v51 = vadd.f32 1.0, %v1719_v42  ;;  %v803_v6 = vadd.f32 0.2548296, %v787_v33  ;;  %v1401_v37 = vand.u32 2147483647, %v4364_v26  ;;  %v441_v23 = vmul.f32 %v4255_v50, %v4304_v58 }
 0x10e   :  { %v1480_v27 = vmul.f32 1.0614054, %v4371_v16  ;;  %v347_v22 = vadd.f32 %v331_v10, %v292_v43  ;;  %2606 = vpow2.f32 %v1667_v24  ;;  %v989_v4 = vmul.f32 %v4052_v0, %v36_v1 }
 0x10f   :  { %v1751_v8 = vmul.f32 %v1735_v51, %v1335_v21  ;;  %v819_v32 = vmul.f32 %v4296_v48, %v803_v6  ;;  %v1417_v15 = vmul.f32 0.3275911, %v1401_v37  ;;  %v496_v58 = vmul.f32 %v4272_v29, %v4309_v52  ;;  %v2290_v52 = vld [vmem:[%s4872_s0 + $0x268] sm:$0xff] }
 0x110   :  { %v1496_v38 = vadd.f32 -1.4531521, %v1480_v27  ;;  %v402_v53 = vadd.f32 %v386_v56, %v347_v22  ;;  %v879_v25 = vmul.f32 1.442695, %v852_v34  ;;  %v1026_v21 = vmul.f32 %v4059_v62, %v2236_v57  ;;  %v2326_v6 = vld [vmem:[%s4872_s0 + $0x368] sm:$0xff] }
 0x111   :  { %2476 = vmatprep.mubr.msk.f32.mxu0 %vm1760_vm4, %v1751_v8  ;;  %v899_v14 = vmul.f32 %v2601_v41, %v819_v32  ;;  %v1063_v48 = vmul.f32 %v4072_v36, %v2254_v54  ;;  %v1433_v55 = vadd.f32 1.0, %v1417_v15  ;;  %v1625_v7 = vsub.f32 0.0, %v1401_v37  ;;  %v2308_v41 = vld [vmem:[%s4872_s0 + $0x2e8] sm:$0xff] }
 0x112   :  { %v1512_v63 = vmul.f32 %v4371_v16, %v1496_v38  ;;  %v457_v11 = vadd.f32 %v441_v23, %v402_v53  ;;  %v4401_v42 = vmul.f32 0.5, %v4231_v18  ;;  %v1042_v33 = vadd.f32 %v1026_v21, %v989_v4 }
 0x113   :  { %v915_v10 = vsub.f32 1.0, %v899_v14  ;;  %v1100_v24 = vmul.f32 %v4099_v35, %v2272_v12  ;;  %vm1368_vm8 = vcmp.ge.f32.partialorder %v4250_v59, 0.0  ;;  %2608 = vrcp.f32 %v1433_v55 }
 0x114   :  { %v1528_v43 = vadd.f32 1.4214138, %v1512_v63  ;;  %v512_v56 = vadd.f32 %v496_v58, %v457_v11  ;;  %2610 = vpow2.f32 %v879_v25  ;;  %v1079_v18 = vadd.f32 %v1063_v48, %v1042_v33 }
 0x115   :  { %v931_v51 = vmul.f32 %v915_v10, %v595_v44  ;;  %v1137_v34 = vmul.f32 %v4122_v2, %v2290_v52  ;;  %v1641_v22 = vmul.f32 %v1625_v7, %v1401_v37  ;;  %v1174_v8 = vmul.f32 %v4129_v19, %v2308_v41  ;;  %v2344_v37 = vld [vmem:[%s4872_s0 + $0x3e8] sm:$0xff] }
 0x116   :  { %v1544_v27 = vmul.f32 %v4371_v16, %v1528_v43  ;;  %v4414_v23 = vadd.f32 %v4317_v9, %v512_v56  ;;  %v1116_v4 = vadd.f32 %v1100_v24, %v1079_v18  ;;  %v57_v44 = vmul.f32 %v4157_v61, %v36_v1 }
 0x117   :  { %v947_v32 = vadd.f32 1.0, %v931_v51  ;;  %v112_v38 = vmul.f32 %v4164_v13, %v2236_v57  ;;  %v1211_v14 = vmul.f32 %v4138_v47, %v2326_v6  ;;  %v167_v25 = vmul.f32 %v4172_v60, %v2254_v54  ;;  %v2362_v57 = vld [vmem:[%s4872_s0 + $0x468] sm:$0xff] }
 0x118   :  { %v4419_v15 = vpop.eup %2604  ;;  %v1560_v53 = vadd.f32 -0.28449672, %v1544_v27  ;;  %v4422_v58 = vmul.f32 0.70710677, %v4414_v23  ;;  %v1153_v48 = vadd.f32 %v1137_v34, %v1116_v4  ;;  %v1669_v7 = vmul.f32 1.442695, %v1641_v22 }
 0x119   :  { %v963_v21 = vmul.f32 %v947_v32, %v4361_v17  ;;  %v692_v1 = vmul.f32 1.0614054, %v4419_v15  ;;  %v128_v63 = vadd.f32 %v112_v38, %v57_v44  ;;  %v222_v10 = vmul.f32 %v4181_v31, %v2272_v12  ;;  %v4450_v38 = vld [vmem:[%s4872_s0 + $0x70] sm:$0xff] }
 0x11a   :  { %v1576_v55 = vmul.f32 %v4371_v16, %v1560_v53  ;;  %v613_v11 = vand.u32 2147483647, %v4422_v58  ;;  %v1190_v33 = vadd.f32 %v1174_v8, %v1153_v48  ;;  %v1248_v17 = vmul.f32 %v4145_v3, %v2344_v37 }
 0x11b   :  { %2504 = vmatprep.mubr.msk.f32.mxu1 %vm1760_vm4, %v963_v21  ;;  %v708_v54 = vadd.f32 -1.4531521, %v692_v1  ;;  %v183_v24 = vadd.f32 %v167_v25, %v128_v63  ;;  %v2607_v43 = vpop.eup %2606  ;;  %v1285_v18 = vmul.f32 %v4335_v45, %v2362_v57  ;;  %v277_v34 = vmul.f32 %v4198_v5, %v2290_v52  ;;  %v4462_v1 = vld [vmem:[%s4872_s0 + $0x170] sm:$0xff] }
 0x11c   :  { %v1592_v56 = vadd.f32 0.2548296, %v1576_v55  ;;  %v629_v51 = vmul.f32 0.3275911, %v613_v11  ;;  %v1227_v22 = vadd.f32 %v1211_v14, %v1190_v33  ;;  %v332_v12 = vmul.f32 %v4218_v46, %v2308_v41  ;;  %v4456_v41 = vld [vmem:[%s4872_s0 + $0xf0] sm:$0xff] }
 0x11d   :  { %v724_v27 = vmul.f32 %v4419_v15, %v708_v54  ;;  %v238_v32 = vadd.f32 %v222_v10, %v183_v24  ;;  %v1384_v8 = vsel %vm1368_vm8, 1.0, %v4897_v28  ;;  %2612 = vpow2.f32 %v1669_v7  ;;  %v4470_v7 = vld [vmem:[%s4872_s0 + $0x1f0] sm:$0xff] }
 0x11e   :  { %v1608_v4 = vmul.f32 %v4371_v16, %v1592_v56  ;;  %v645_v44 = vadd.f32 1.0, %v629_v51  ;;  %v1264_v53 = vadd.f32 %v1248_v17, %v1227_v22  ;;  %v387_v14 = vmul.f32 %v4243_v39, %v2326_v6 }
 0x11f   :  { %v740_v52 = vadd.f32 1.4214138, %v724_v27  ;;  %v293_v25 = vadd.f32 %v277_v34, %v238_v32  ;;  %v837_v16 = vsub.f32 0.0, %v613_v11  ;;  %v442_v21 = vmul.f32 %v4255_v50, %v2344_v37 }
 0x120   :  { %v1688_v59 = vmul.f32 %v2607_v43, %v1608_v4  ;;  %2614 = vrcp.f32 %v645_v44  ;;  %v4464_v48 = vpop.eup %2608  ;;  %v1301_v6 = vadd.f32 %v1285_v18, %v1264_v53  ;;  %v990_v10 = vmul.f32 %v4052_v0, %v4450_v38  ;;  %v4484_v18 = vld [vmem:[%s4872_s0 + $0x270] sm:$0xff] }
 0x121   :  { %v756_v63 = vmul.f32 %v4419_v15, %v740_v52  ;;  %v348_v55 = vadd.f32 %v332_v12, %v293_v25  ;;  %v2611_v37 = vpop.eup %2610  ;;  %v1481_v33 = vmul.f32 1.0614054, %v4464_v48  ;;  %v497_v17 = vmul.f32 %v4272_v29, %v2362_v57 }
 0x122   :  { %v1704_v54 = vsub.f32 1.0, %v1688_v59  ;;  %v1027_v24 = vmul.f32 %v4059_v62, %v4456_v41  ;;  %v4479_v56 = vadd.f32 %v4228_v49, %v1301_v6  ;;  %v1064_v34 = vmul.f32 %v4072_v36, %v4462_v1 }
 0x123   :  { %v772_v43 = vadd.f32 -0.28449672, %v756_v63  ;;  %v403_v51 = vadd.f32 %v387_v14, %v348_v55  ;;  %v1497_v22 = vadd.f32 -1.4531521, %v1481_v33  ;;  %v1101_v57 = vmul.f32 %v4099_v35, %v4470_v7  ;;  %v4501_v55 = vld [vmem:[%s4872_s0 + $0x2f0] sm:$0xff] }
 0x124   :  { %v1720_v27 = vmul.f32 %v1704_v54, %v1384_v8  ;;  %v1043_v32 = vadd.f32 %v1027_v24, %v990_v10  ;;  %v853_v4 = vmul.f32 %v837_v16, %v613_v11  ;;  %v4492_v44 = vmul.f32 0.70710677, %v4479_v56  ;;  %v4508_v10 = vld [vmem:[%s4872_s0 + $0x370] sm:$0xff] }
 0x125   :  { %v788_v12 = vmul.f32 %v4419_v15, %v772_v43  ;;  %v458_v52 = vadd.f32 %v442_v21, %v403_v51  ;;  %v1513_v25 = vmul.f32 %v4464_v48, %v1497_v22  ;;  %v1138_v59 = vmul.f32 %v4122_v2, %v4484_v18  ;;  %v4520_v43 = vld [vmem:[%s4872_s0 + $0x3f0] sm:$0xff] }
 0x126   :  { %v1736_v53 = vadd.f32 1.0, %v1720_v27  ;;  %v1080_v14 = vadd.f32 %v1064_v34, %v1043_v32  ;;  %v1402_v63 = vand.u32 2147483647, %v4492_v44  ;;  %v548_v16 = vmul.f32 0.5, %v4320_v20 }
 0x127   :  { %v804_v8 = vadd.f32 0.2548296, %v788_v12  ;;  %v513_v6 = vadd.f32 %v497_v17, %v458_v52  ;;  %v1529_v21 = vadd.f32 1.4214138, %v1513_v25  ;;  %vm580_vm9 = vcmp.ge.f32.partialorder %v4330_v40, 0.0  ;;  %v4533_v52 = vld [vmem:[%s4872_s0 + $0x470] sm:$0xff] }
 0x128   :  { %v1752_v11 = vmul.f32 %v1736_v53, %v4401_v42  ;;  %v1117_v54 = vadd.f32 %v1101_v57, %v1080_v14  ;;  %v1418_v17 = vmul.f32 0.3275911, %v1402_v63  ;;  %v881_v20 = vmul.f32 1.442695, %v853_v4 }
 0x129   :  { %v820_v33 = vmul.f32 %v4419_v15, %v804_v8  ;;  %v4513_v24 = vadd.f32 %v4317_v9, %v513_v6  ;;  %v1545_v42 = vmul.f32 %v4464_v48, %v1529_v21  ;;  %v1175_v40 = vmul.f32 %v4129_v19, %v4501_v55 }
 0x12a   :  { %2477 = vmatmul.mubr.msk.f32.gmra.mxu0 %vm1760_vm4, %v1752_v11  ;;  %v1154_v51 = vadd.f32 %v1138_v59, %v1117_v54  ;;  %v2613_v34 = vpop.eup %2612  ;;  %v1434_v27 = vadd.f32 1.0, %v1418_v17  ;;  %v1626_v22 = vsub.f32 0.0, %v1402_v63  ;;  %v1212_v32 = vmul.f32 %v4138_v47, %v4508_v10 }
 0x12b   :  { %4905 = vst [vmem:[#allocation6_spill] sm:$0xff] %v4513_v24  ;;  %v900_v15 = vmul.f32 %v2611_v37, %v820_v33  ;;  %v596_v57 = vsel %vm580_vm9, 1.0, %v4897_v28  ;;  %v1561_v12 = vadd.f32 -0.28449672, %v1545_v42  ;;  %v4528_v4 = vmul.f32 0.70710677, %v4513_v24 }
 0x12c   :  { %v1191_v53 = vadd.f32 %v1175_v40, %v1154_v51  ;;  %vm1369_vm10 = vcmp.ge.f32.partialorder %v4364_v26, 0.0  ;;  %2616 = vrcp.f32 %v1434_v27  ;;  %v1249_v14 = vmul.f32 %v4145_v3, %v4520_v43 }
 0x12d   :  { %v4535_v25 = vpop.eup %2614  ;;  %v916_v37 = vsub.f32 1.0, %v900_v15  ;;  %v1577_v59 = vmul.f32 %v4464_v48, %v1561_v12  ;;  %2618 = vpow2.f32 %v881_v20  ;;  %v614_v6 = vand.u32 2147483647, %v4528_v4 }
 0x12e   :  { %v693_v8 = vmul.f32 1.0614054, %v4535_v25  ;;  %v1642_v21 = vmul.f32 %v1626_v22, %v1402_v63  ;;  %v1228_v54 = vadd.f32 %v1212_v32, %v1191_v53  ;;  %v1286_v33 = vmul.f32 %v4335_v45, %v4533_v52 }
 0x12f   :  { %v932_v11 = vmul.f32 %v916_v37, %v596_v57  ;;  %v1593_v17 = vadd.f32 0.2548296, %v1577_v59  ;;  %v630_v51 = vmul.f32 0.3275911, %v614_v6  ;;  %v58_v40 = vmul.f32 %v4157_v61, %v4450_v38 }
 0x130   :  { %v709_v42 = vadd.f32 -1.4531521, %v693_v8  ;;  %v838_v27 = vsub.f32 0.0, %v614_v6  ;;  %v1265_v12 = vadd.f32 %v1249_v14, %v1228_v54  ;;  %v113_v20 = vmul.f32 %v4164_v13, %v4456_v41 }
 0x131   :  { %v948_v15 = vadd.f32 1.0, %v932_v11  ;;  %v1609_v24 = vmul.f32 %v4464_v48, %v1593_v17  ;;  %v646_v22 = vadd.f32 1.0, %v630_v51  ;;  %v168_v32 = vmul.f32 %v4172_v60, %v4462_v1 }
 0x132   :  { %v725_v63 = vmul.f32 %v4535_v25, %v709_v42  ;;  %v1671_v53 = vmul.f32 1.442695, %v1642_v21  ;;  %v1302_v37 = vadd.f32 %v1286_v33, %v1265_v12  ;;  %v129_v59 = vadd.f32 %v113_v20, %v58_v40 }
 0x133   :  { %v964_v57 = vmul.f32 %v948_v15, %v548_v16  ;;  %v1689_v8 = vmul.f32 %v2613_v34, %v1609_v24  ;;  %2620 = vrcp.f32 %v646_v22  ;;  %v223_v14 = vmul.f32 %v4181_v31, %v4470_v7  ;;  %v4569_v7 = vld [vmem:[%s4872_s0 + $0x78] sm:$0xff] }
 0x134   :  { %v741_v38 = vadd.f32 1.4214138, %v725_v63  ;;  %v1385_v41 = vsel %vm1369_vm10, 1.0, %v4897_v28  ;;  %v4560_v48 = vadd.f32 %v4228_v49, %v1302_v37  ;;  %v184_v1 = vadd.f32 %v168_v32, %v129_v59  ;;  %v4607_v37 = vld [vmem:[%s4872_s0 + $0x278] sm:$0xff] }
 0x135   :  { %2505 = vmatmul.mubr.msk.f32.gmra.mxu1 %vm1760_vm4, %v964_v57  ;;  %v278_v16 = vmul.f32 %v4198_v5, %v4484_v18  ;;  %v1337_v24 = vmul.f32 0.5, %v4355_v30  ;;  %v1705_v34 = vsub.f32 1.0, %v1689_v8  ;;  %v854_v21 = vmul.f32 %v838_v27, %v614_v6  ;;  %v2238_v30 = vld [vmem:[%s4872_s0 + $0xf8] sm:$0xff] }
 0x136   :  { %v757_v11 = vmul.f32 %v4535_v25, %v741_v38  ;;  %v4572_v26 = vmul.f32 0.5, %v4414_v23  ;;  %v4575_v54 = vmul.f32 0.70710677, %v4560_v48  ;;  %v239_v33 = vadd.f32 %v223_v14, %v184_v1 }
 0x137   :  { %v333_v18 = vmul.f32 %v4218_v46, %v4501_v55  ;;  %v1721_v6 = vmul.f32 %v1705_v34, %v1385_v41  ;;  %vm581_vm11 = vcmp.ge.f32.partialorder %v4422_v58, 0.0  ;;  %2622 = vpow2.f32 %v1671_v53  ;;  %v2256_v55 = vld [vmem:[%s4872_s0 + $0x178] sm:$0xff] }
 0x138   :  { %v773_v17 = vadd.f32 -0.28449672, %v757_v11  ;;  %v4584_v42 = vand.u32 2147483647, %v4575_v54  ;;  %v294_v23 = vadd.f32 %v278_v16, %v239_v33  ;;  %v388_v51 = vmul.f32 %v4243_v39, %v4508_v10  ;;  %v2310_v16 = vld [vmem:[%s4872_s0 + $0x2f8] sm:$0xff] }
 0x139   :  { %v991_v40 = vmul.f32 %v4052_v0, %v4569_v7  ;;  %v4593_v15 = vpop.eup %2616  ;;  %v1737_v27 = vadd.f32 1.0, %v1721_v6  ;;  %v883_v20 = vmul.f32 1.442695, %v854_v21  ;;  %v1028_v63 = vmul.f32 %v4059_v62, %v2238_v30  ;;  %v2274_v0 = vld [vmem:[%s4872_s0 + $0x1f8] sm:$0xff] }
 0x13a   :  { %v789_v12 = vmul.f32 %v4535_v25, %v773_v17  ;;  %v2619_v22 = vpop.eup %2618  ;;  %v1482_v32 = vmul.f32 1.0614054, %v4593_v15  ;;  %v1419_v10 = vmul.f32 0.3275911, %v4584_v42  ;;  %v349_v57 = vadd.f32 %v333_v18, %v294_v23 }
 0x13b   :  { %v443_v53 = vmul.f32 %v4255_v50, %v4520_v43  ;;  %v1753_v59 = vmul.f32 %v1737_v27, %v1337_v24  ;;  %v1044_v8 = vadd.f32 %v1028_v63, %v991_v40  ;;  %v1065_v38 = vmul.f32 %v4072_v36, %v2256_v55  ;;  %v4620_v24 = vld [vmem:[%s4872_s0 + $0x378] sm:$0xff] }
 0x13c   :  { %v805_v62 = vadd.f32 0.2548296, %v789_v12  ;;  %v1498_v14 = vadd.f32 -1.4531521, %v1482_v32  ;;  %v1435_v41 = vadd.f32 1.0, %v1419_v10  ;;  %v404_v1 = vadd.f32 %v388_v51, %v349_v57  ;;  %v4644_v63 = vld [vmem:[%s4872_s0 + $0x478] sm:$0xff] }
 0x13d   :  { %v498_v43 = vmul.f32 %v4272_v29, %v4533_v52  ;;  %2479 = vmatprep.mubr.msk.f32.mxu0 %vm1760_vm4, %v1753_v59  ;;  %v1081_v36 = vadd.f32 %v1065_v38, %v1044_v8  ;;  %v1102_v11 = vmul.f32 %v4099_v35, %v2274_v0  ;;  %v1139_v21 = vmul.f32 %v4122_v2, %v4607_v37 }
 0x13e   :  { %v821_v34 = vmul.f32 %v4535_v25, %v805_v62  ;;  %v597_v52 = vsel %vm581_vm11, 1.0, %v4897_v28  ;;  %v1514_v33 = vmul.f32 %v4593_v15, %v1498_v14  ;;  %2624 = vrcp.f32 %v1435_v41  ;;  %v4632_v25 = vld [vmem:[%s4872_s0 + $0x3f8] sm:$0xff] }
 0x13f   :  { %v459_v18 = vadd.f32 %v443_v53, %v404_v1  ;;  %2626 = vpow2.f32 %v883_v20  ;;  %v1118_v17 = vadd.f32 %v1102_v11, %v1081_v36  ;;  %v1176_v35 = vmul.f32 %v4129_v19, %v2310_v16  ;;  %v2463_v11 = vpop.f32.mrf.mxu0 }
 0x140   :  { %v901_v6 = vmul.f32 %v2619_v22, %v821_v34  ;;  %v4635_v23 = vpop.eup %2620  ;;  %v1530_v2 = vadd.f32 1.4214138, %v1514_v33  ;;  %v1627_v58 = vsub.f32 0.0, %v4584_v42  ;;  %v1213_v40 = vmul.f32 %v4138_v47, %v4620_v24 }
 0x141   :  { %v514_v51 = vadd.f32 %v498_v43, %v459_v18  ;;  %v694_v12 = vmul.f32 1.0614054, %v4635_v23  ;;  %v1155_v20 = vadd.f32 %v1139_v21, %v1118_v17  ;;  %v1250_v19 = vmul.f32 %v4145_v3, %v4632_v25  ;;  %v2491_v21 = vpop.f32.mrf.mxu1 }
 0x142   :  { %v917_v27 = vsub.f32 1.0, %v901_v6  ;;  %v1546_v22 = vmul.f32 %v4593_v15, %v1530_v2  ;;  %v59_v47 = vmul.f32 %v4157_v61, %v4569_v7  ;;  %v114_v10 = vmul.f32 %v4164_v13, %v2238_v30 }
 0x143   :  { %v4650_v32 = vadd.f32 %v4317_v9, %v514_v51  ;;  %v710_v53 = vadd.f32 -1.4531521, %v694_v12  ;;  %v1192_v59 = vadd.f32 %v1176_v35, %v1155_v20  ;;  %v169_v62 = vmul.f32 %v4172_v60, %v2256_v55  ;;  %v1875_v12 = vpop.f32.mrf.mxu0 }
 0x144   :  { %v933_v57 = vmul.f32 %v917_v27, %v597_v52  ;;  %v2623_v8 = vpop.eup %2622  ;;  %v1562_v38 = vadd.f32 -0.28449672, %v1546_v22  ;;  %v1287_v3 = vmul.f32 %v4335_v45, %v4644_v63  ;;  %v130_v41 = vadd.f32 %v114_v10, %v59_v47 }
 0x145   :  { %v4657_v14 = vmul.f32 0.70710677, %v4650_v32  ;;  %v726_v43 = vmul.f32 %v4635_v23, %v710_v53  ;;  %v1229_v61 = vadd.f32 %v1213_v40, %v1192_v59  ;;  %v224_v13 = vmul.f32 %v4181_v31, %v2274_v0  ;;  %v4702_v59 = vld [vmem:[%s4875_s4] ss:$0 sm:$0xff] }
 0x146   :  { %v949_v1 = vadd.f32 1.0, %v933_v57  ;;  %v1578_v7 = vmul.f32 %v4593_v15, %v1562_v38  ;;  %v1643_v30 = vmul.f32 %v1627_v58, %v4584_v42  ;;  %v185_v55 = vadd.f32 %v169_v62, %v130_v41  ;;  %v2466_v62 = vpop.f32.mrf.mxu0 }
 0x147   :  { %v4666_v60 = vand.u32 2147483647, %v4657_v14  ;;  %vm1370_vm12 = vcmp.ge.f32.partialorder %v4492_v44, 0.0  ;;  %v742_v45 = vadd.f32 1.4214138, %v726_v43  ;;  %v1266_v36 = vadd.f32 %v1250_v19, %v1229_v61  ;;  %v2171_v43 = vld [vmem:[%s4876_s5 + $0x8] sm:$0xff] }
 0x148   :  { %v965_v34 = vmul.f32 %v949_v1, %v4572_v26  ;;  %v1594_v52 = vadd.f32 0.2548296, %v1578_v7  ;;  %v240_v31 = vadd.f32 %v224_v13, %v185_v55  ;;  %v279_v18 = vmul.f32 %v4198_v5, %v4607_v37  ;;  %v2068_v5 = vpop.f32.mrf.mxu1 }
 0x149   :  { %v631_v33 = vmul.f32 0.3275911, %v4666_v60  ;;  %v758_v42 = vmul.f32 %v4635_v23, %v742_v45  ;;  %v1303_v0 = vadd.f32 %v1287_v3, %v1266_v36  ;;  %v334_v26 = vmul.f32 %v4218_v46, %v2310_v16  ;;  %v1885_v45 = vpop.f32.mrf.mxu0 }
 0x14a   :  { %2507 = vmatprep.mubr.msk.f32.mxu1 %vm1760_vm4, %v965_v34  ;;  %v1386_v44 = vsel %vm1370_vm12, 1.0, %v4897_v28  ;;  %v1610_v6 = vmul.f32 %v4593_v15, %v1594_v52  ;;  %v1673_v17 = vmul.f32 1.442695, %v1643_v30  ;;  %v295_v40 = vadd.f32 %v279_v18, %v240_v31 }
 0x14b   :  { %v647_v35 = vadd.f32 1.0, %v631_v33  ;;  %v4678_v2 = vpop.eup %2624  ;;  %v774_v58 = vadd.f32 -0.28449672, %v758_v42  ;;  %v4681_v51 = vadd.f32 %v4228_v49, %v1303_v0  ;;  %v389_v27 = vmul.f32 %v4243_v39, %v4620_v24 }
 0x14c   :  { %v2627_v37 = vpop.eup %2626  ;;  %v1690_v46 = vmul.f32 %v2623_v8, %v1610_v6  ;;  %vm582_vm13 = vcmp.ge.f32.partialorder %v4528_v4, 0.0  ;;  %v1483_v15 = vmul.f32 1.0614054, %v4678_v2  ;;  %v350_v49 = vadd.f32 %v334_v26, %v295_v40 }
 0x14d   :  { %2628 = vrcp.f32 %v647_v35  ;;  %v790_v16 = vmul.f32 %v4635_v23, %v774_v58  ;;  %v4689_v20 = vmul.f32 0.70710677, %v4681_v51  ;;  %v444_v19 = vmul.f32 %v4255_v50, %v4632_v25  ;;  %v2494_v50 = vpop.f32.mrf.mxu1 }
 0x14e   :  { %v1706_v22 = vsub.f32 1.0, %v1690_v46  ;;  %v1499_v39 = vadd.f32 -1.4531521, %v1483_v15  ;;  %2630 = vpow2.f32 %v1673_v17  ;;  %v839_v24 = vsub.f32 0.0, %v4666_v60 }
 0x14f   :  { %v806_v47 = vadd.f32 0.2548296, %v790_v16  ;;  %v4695_v10 = vand.u32 2147483647, %v4689_v20  ;;  %v405_v57 = vadd.f32 %v389_v27, %v350_v49  ;;  %v499_v53 = vmul.f32 %v4272_v29, %v4644_v63  ;;  %v2078_v36 = vpop.f32.mrf.mxu1 }
 0x150   :  { %v1338_v25 = vmul.f32 0.5, %v4479_v56  ;;  %v1722_v8 = vmul.f32 %v1706_v22, %v1386_v44  ;;  %v1515_v38 = vmul.f32 %v4678_v2, %v1499_v39  ;;  %v2074_v3 = vadd.f32 %v2491_v21, %v2463_v11  ;;  %v4906_v44 = vld [vmem:[#allocation6_spill] sm:$0xff] }
 0x151   :  { %v598_v41 = vsel %vm582_vm13, 1.0, %v4897_v28  ;;  %v822_v1 = vmul.f32 %v4635_v23, %v806_v47  ;;  %v1420_v29 = vmul.f32 0.3275911, %v4695_v10  ;;  %v460_v63 = vadd.f32 %v444_v19, %v405_v57  ;;  %v2170_v23 = vld [vmem:[%s4876_s5] sm:$0xff] }
 0x152   :  { %v1738_v61 = vadd.f32 1.0, %v1722_v8  ;;  %v1531_v13 = vadd.f32 1.4214138, %v1515_v38  ;;  %v2155_v56 = vadd.f32 %v4702_v59, %v2074_v3  ;;  %v2069_v7 = vadd.f32 %v2068_v5, %v1875_v12  ;;  %v2172_v5 = vld [vmem:[%s4876_s5 + $0x10] sm:$0xff] }
 0x153   :  { %v902_v30 = vmul.f32 %v2627_v37, %v822_v1  ;;  %v855_v55 = vmul.f32 %v839_v24, %v4666_v60  ;;  %v1436_v34 = vadd.f32 1.0, %v1420_v29  ;;  %v515_v4 = vadd.f32 %v499_v53, %v460_v63 }
 0x154   :  { %v1754_v11 = vmul.f32 %v1738_v61, %v1338_v25  ;;  %v1547_v21 = vmul.f32 %v4678_v2, %v1531_v13  ;;  %v2187_v52 = vadd.f32 %v2171_v43, %v2155_v56  ;;  %v2154_v33 = vadd.f32 %v4702_v59, %v2069_v7 }
 0x155   :  { %v918_v31 = vsub.f32 1.0, %v902_v30  ;;  %2632 = vrcp.f32 %v1436_v34  ;;  %v4722_v42 = vadd.f32 %v4317_v9, %v515_v4  ;;  %v2084_v18 = vadd.f32 %v2494_v50, %v2466_v62  ;;  %v2173_v9 = vld [vmem:[%s4876_s5 + $0x18] sm:$0xff] }
 0x156   :  { %2480 = vmatmul.mubr.msk.f32.gmra.mxu0 %vm1760_vm4, %v1754_v11  ;;  %v1563_v60 = vadd.f32 -0.28449672, %v1547_v21  ;;  %2203 = vst.msk [vmem:[%s4877_s6 + $0x8] sm:$0xff] %vm1760_vm4, %v2187_v52  ;;  %v2186_v0 = vadd.f32 %v2170_v23, %v2154_v33  ;;  %v2079_v26 = vadd.f32 %v2078_v36, %v1885_v45  ;;  %v550_v6 = vmul.f32 0.5, %v4906_v44 }
 0x157   :  { %v934_v17 = vmul.f32 %v918_v31, %v598_v41  ;;  %v4731_v35 = vmul.f32 0.70710677, %v4722_v42  ;;  %v885_v40 = vmul.f32 1.442695, %v855_v55  ;;  %v2157_v27 = vadd.f32 %v4702_v59, %v2084_v18 }
 0x158   :  { %v1579_v58 = vmul.f32 %v4678_v2, %v1563_v60  ;;  %2202 = vst.msk [vmem:[%s4877_s6] sm:$0xff] %vm1760_vm4, %v2186_v0  ;;  %v2156_v12 = vadd.f32 %v4702_v59, %v2079_v26  ;;  %v1628_v15 = vsub.f32 0.0, %v4695_v10  ;;  %vm1371_vm14 = vcmp.ge.f32.partialorder %v4575_v54, 0.0 }
 0x159   :  { %v950_v46 = vadd.f32 1.0, %v934_v17  ;;  %v616_v16 = vand.u32 2147483647, %v4731_v35  ;;  %v2189_v22 = vadd.f32 %v2173_v9, %v2157_v27  ;;  %2634 = vpow2.f32 %v885_v40 }
 0x15a   :  { %v2629_v37 = vpop.eup %2628  ;;  %v1595_v49 = vadd.f32 0.2548296, %v1579_v58  ;;  %v2188_v57 = vadd.f32 %v2172_v5, %v2156_v12  ;;  %v1644_v50 = vmul.f32 %v1628_v15, %v4695_v10  ;;  %v1339_v29 = vmul.f32 0.5, %v4560_v48 }
 0x15b   :  { %v695_v19 = vmul.f32 1.0614054, %v2629_v37  ;;  %v2631_v39 = vpop.eup %2630  ;;  %v966_v24 = vmul.f32 %v950_v46, %v550_v6  ;;  %v632_v47 = vmul.f32 0.3275911, %v616_v16  ;;  %2205 = vst.msk [vmem:[%s4877_s6 + $0x18] sm:$0xff] %vm1760_vm4, %v2189_v22  ;;  %v840_v61 = vsub.f32 0.0, %v616_v16 }
 0x15c   :  { %v1611_v53 = vmul.f32 %v4678_v2, %v1595_v49  ;;  %2204 = vst.msk [vmem:[%s4877_s6 + $0x10] sm:$0xff] %vm1760_vm4, %v2188_v57  ;;  %v1387_v2 = vsel %vm1371_vm14, 1.0, %v4897_v28  ;;  %v1675_v41 = vmul.f32 1.442695, %v1644_v50  ;;  %vm583_vm15 = vcmp.ge.f32.partialorder %v4657_v14, 0.0  ;;  %v2175_v14 = vld [vmem:[%s4876_s5 + $0x28] sm:$0xff] }
 0x15d   :  { %v711_v62 = vadd.f32 -1.4531521, %v695_v19  ;;  %2508 = vmatmul.mubr.msk.f32.gmra.mxu1 %vm1760_vm4, %v966_v24  ;;  %v648_v25 = vadd.f32 1.0, %v632_v47  ;;  %v856_v4 = vmul.f32 %v840_v61, %v616_v16  ;;  %v599_v60 = vsel %vm583_vm15, 1.0, %v4897_v28  ;;  %v2174_v16 = vld [vmem:[%s4876_s5 + $0x20] sm:$0xff] }
 0x15e   :  { %v1691_v54 = vmul.f32 %v2631_v39, %v1611_v53  ;;  %v551_v27 = vmul.f32 0.5, %v4650_v32  ;;  %vm1372_vm0 = vcmp.ge.f32.partialorder %v4689_v20, 0.0  ;;  %vm584_vm1 = vcmp.ge.f32.partialorder %v4731_v35, 0.0  ;;  %v2177_v35 = vld [vmem:[%s4876_s5 + $0x38] sm:$0xff] }
 0x15f   :  { %v727_v8 = vmul.f32 %v2629_v37, %v711_v62  ;;  %2636 = vrcp.f32 %v648_v25  ;;  %v887_v52 = vmul.f32 1.442695, %v856_v4  ;;  %v1388_v50 = vsel %vm1372_vm0, 1.0, %v4897_v28 }
 0x160   :  { %v1707_v38 = vsub.f32 1.0, %v1691_v54  ;;  %2638 = vpow2.f32 %v1675_v41  ;;  %v1340_v54 = vmul.f32 0.5, %v4681_v51  ;;  %v552_v61 = vmul.f32 0.5, %v4722_v42  ;;  %v2176_v42 = vld [vmem:[%s4876_s5 + $0x30] sm:$0xff] }
 0x161   :  { %v743_v3 = vadd.f32 1.4214138, %v727_v8  ;;  %2640 = vpow2.f32 %v887_v52 }
 0x162   :  { %v2633_v1 = vpop.eup %2632  ;;  %v1723_v63 = vmul.f32 %v1707_v38, %v1387_v2 }
 0x163   :  { %v759_v43 = vmul.f32 %v2629_v37, %v743_v3  ;;  %v1484_v10 = vmul.f32 1.0614054, %v2633_v1  ;;  %v2469_v11 = vpop.f32.mrf.mxu0 }
 0x164   :  { %v1739_v13 = vadd.f32 1.0, %v1723_v63 }
 0x165   :  { %v775_v56 = vadd.f32 -0.28449672, %v759_v43  ;;  %v1500_v7 = vadd.f32 -1.4531521, %v1484_v10  ;;  %v1895_v44 = vpop.f32.mrf.mxu0  ;;  %v600_v43 = vsel %vm584_vm1, 1.0, %v4897_v28 }
 0x166   :  { %v1755_v30 = vmul.f32 %v1739_v13, %v1339_v29  ;;  %v2635_v45 = vpop.eup %2634 }
 0x167   :  { %v791_v55 = vmul.f32 %v2629_v37, %v775_v56  ;;  %v1516_v34 = vmul.f32 %v2633_v1, %v1500_v7 }
 0x168   :  { %2482 = vmatprep.mubr.msk.f32.mxu0 %vm1760_vm4, %v1755_v30 }
 0x169   :  { %v807_v23 = vadd.f32 0.2548296, %v791_v55  ;;  %v1532_v36 = vadd.f32 1.4214138, %v1516_v34 }
 0x16b   :  { %v823_v48 = vmul.f32 %v2629_v37, %v807_v23  ;;  %v1548_v21 = vmul.f32 %v2633_v1, %v1532_v36 }
 0x16c   :  { %v2637_v33 = vpop.eup %2636 }
 0x16d   :  { %v903_v31 = vmul.f32 %v2635_v45, %v823_v48  ;;  %v1564_v0 = vadd.f32 -0.28449672, %v1548_v21  ;;  %v696_v18 = vmul.f32 1.0614054, %v2637_v33  ;;  %v2639_v49 = vpop.eup %2638 }
 0x16e   :  { %v2497_v26 = vpop.f32.mrf.mxu1  ;;  %v2641_v41 = vpop.eup %2640 }
 0x16f   :  { %v919_v6 = vsub.f32 1.0, %v903_v31  ;;  %v2094_v17 = vadd.f32 %v2497_v26, %v2469_v11  ;;  %v1580_v9 = vmul.f32 %v2633_v1, %v1564_v0  ;;  %v712_v58 = vadd.f32 -1.4531521, %v696_v18  ;;  %v2179_v31 = vld [vmem:[%s4876_s5 + $0x48] sm:$0xff]  ;;  %v2178_v26 = vld [vmem:[%s4876_s5 + $0x40] sm:$0xff] }
 0x170   :  { %v2088_v40 = vpop.f32.mrf.mxu1 }
 0x171   :  { %v935_v12 = vmul.f32 %v919_v6, %v599_v60  ;;  %v2159_v5 = vadd.f32 %v4702_v59, %v2094_v17  ;;  %v2089_v37 = vadd.f32 %v2088_v40, %v1895_v44  ;;  %v1596_v46 = vadd.f32 0.2548296, %v1580_v9 }
 0x172   :  { %v728_v15 = vmul.f32 %v2637_v33, %v712_v58 }
 0x173   :  { %v951_v19 = vadd.f32 1.0, %v935_v12  ;;  %v2191_v22 = vadd.f32 %v2175_v14, %v2159_v5  ;;  %v2158_v39 = vadd.f32 %v4702_v59, %v2089_v37  ;;  %v1612_v24 = vmul.f32 %v2633_v1, %v1596_v46  ;;  %v2180_v46 = vld [vmem:[%s4876_s5 + $0x50] sm:$0xff] }
 0x174   :  { %v744_v47 = vadd.f32 1.4214138, %v728_v15 }
 0x175   :  { %v967_v32 = vmul.f32 %v951_v19, %v551_v27  ;;  %2207 = vst.msk [vmem:[%s4877_s6 + $0x28] sm:$0xff] %vm1760_vm4, %v2191_v22  ;;  %v2190_v57 = vadd.f32 %v2174_v16, %v2158_v39  ;;  %v1692_v53 = vmul.f32 %v2639_v49, %v1612_v24  ;;  %v2181_v27 = vld [vmem:[%s4876_s5 + $0x58] sm:$0xff] }
 0x176   :  { %v760_v62 = vmul.f32 %v2637_v33, %v744_v47  ;;  %v2183_v47 = vld [vmem:[%s4876_s5 + $0x68] sm:$0xff] }
 0x177   :  { %2510 = vmatprep.mubr.msk.f32.mxu1 %vm1760_vm4, %v967_v32  ;;  %2206 = vst.msk [vmem:[%s4877_s6 + $0x20] sm:$0xff] %vm1760_vm4, %v2190_v57  ;;  %v1708_v20 = vsub.f32 1.0, %v1692_v53 }
 0x178   :  { %v776_v25 = vadd.f32 -0.28449672, %v760_v62  ;;  %v2182_v62 = vld [vmem:[%s4876_s5 + $0x60] sm:$0xff] }
 0x179   :  { %v1724_v8 = vmul.f32 %v1708_v20, %v1388_v50 }
 0x17a   :  { %v792_v2 = vmul.f32 %v2637_v33, %v776_v25 }
 0x17b   :  { %v1740_v38 = vadd.f32 1.0, %v1724_v8 }
 0x17c   :  { %v808_v3 = vadd.f32 0.2548296, %v792_v2 }
 0x17d   :  { %v1756_v1 = vmul.f32 %v1740_v38, %v1340_v54 }
 0x17e   :  { %v824_v29 = vmul.f32 %v2637_v33, %v808_v3  ;;  %v2185_v3 = vld [vmem:[%s4876_s5 + $0x78] sm:$0xff] }
 0x17f   :  { %2483 = vmatmul.mubr.msk.f32.gmra.mxu0 %vm1760_vm4, %v1756_v1 }
 0x180   :  { %v904_v63 = vmul.f32 %v2641_v41, %v824_v29 }
 0x182   :  { %v920_v10 = vsub.f32 1.0, %v904_v63  ;;  %v2184_v63 = vld [vmem:[%s4876_s5 + $0x70] sm:$0xff] }
 0x184   :  { %v936_v13 = vmul.f32 %v920_v10, %v600_v43 }
 0x186   :  { %v952_v56 = vadd.f32 1.0, %v936_v13 }
 0x188   :  { %v968_v51 = vmul.f32 %v952_v56, %v552_v61 }
 0x18a   :  { %2511 = vmatmul.mubr.msk.f32.gmra.mxu1 %vm1760_vm4, %v968_v51 }
 0x18e   :  { %v2472_v7 = vpop.f32.mrf.mxu0 }
 0x190   :  { %v1905_v55 = vpop.f32.mrf.mxu0 }
 0x19c   :  { %v2500_v30 = vpop.f32.mrf.mxu1 }
 0x19d   :  { %v2104_v34 = vadd.f32 %v2500_v30, %v2472_v7 }
 0x19e   :  { %v2098_v4 = vpop.f32.mrf.mxu1 }
 0x19f   :  { %v2161_v23 = vadd.f32 %v4702_v59, %v2104_v34  ;;  %v2099_v28 = vadd.f32 %v2098_v4, %v1905_v55 }
 0x1a1   :  { %v2193_v45 = vadd.f32 %v2177_v35, %v2161_v23  ;;  %v2160_v36 = vadd.f32 %v4702_v59, %v2099_v28 }
 0x1a3   :  { %2209 = vst.msk [vmem:[%s4877_s6 + $0x38] sm:$0xff] %vm1760_vm4, %v2193_v45  ;;  %v2192_v11 = vadd.f32 %v2176_v42, %v2160_v36 }
 0x1a5   :  { %2208 = vst.msk [vmem:[%s4877_s6 + $0x30] sm:$0xff] %vm1760_vm4, %v2192_v11 }
 0x1bc   :  { %v2475_v48 = vpop.f32.mrf.mxu0 }
 0x1be   :  { %v1915_v52 = vpop.f32.mrf.mxu0 }
 0x1ca   :  { %v2503_v21 = vpop.f32.mrf.mxu1 }
 0x1cb   :  { %v2114_v33 = vadd.f32 %v2503_v21, %v2475_v48 }
 0x1cc   :  { %v2108_v60 = vpop.f32.mrf.mxu1 }
 0x1cd   :  { %v2163_v0 = vadd.f32 %v4702_v59, %v2114_v33  ;;  %v2109_v18 = vadd.f32 %v2108_v60, %v1915_v52 }
 0x1cf   :  { %v2195_v44 = vadd.f32 %v2179_v31, %v2163_v0  ;;  %v2162_v6 = vadd.f32 %v4702_v59, %v2109_v18 }
 0x1d1   :  { %2211 = vst.msk [vmem:[%s4877_s6 + $0x48] sm:$0xff] %vm1760_vm4, %v2195_v44  ;;  %v2194_v17 = vadd.f32 %v2178_v26, %v2162_v6 }
 0x1d3   :  { %2210 = vst.msk [vmem:[%s4877_s6 + $0x40] sm:$0xff] %vm1760_vm4, %v2194_v17 }
 0x1ea   :  { %v2478_v9 = vpop.f32.mrf.mxu0 }
 0x1ec   :  { %v1925_v14 = vpop.f32.mrf.mxu0 }
 0x1f5   :  { %v2506_v58 = vpop.f32.mrf.mxu1 }
 0x1f6   :  { %v2124_v40 = vadd.f32 %v2506_v58, %v2478_v9 }
 0x1f7   :  { %v2118_v12 = vpop.f32.mrf.mxu1 }
 0x1f8   :  { %v2165_v5 = vadd.f32 %v4702_v59, %v2124_v40  ;;  %v2119_v37 = vadd.f32 %v2118_v12, %v1925_v14 }
 0x1fa   :  { %v2197_v15 = vadd.f32 %v2181_v27, %v2165_v5  ;;  %v2164_v16 = vadd.f32 %v4702_v59, %v2119_v37 }
 0x1fc   :  { %2213 = vst.msk [vmem:[%s4877_s6 + $0x58] sm:$0xff] %vm1760_vm4, %v2197_v15  ;;  %v2196_v49 = vadd.f32 %v2180_v46, %v2164_v16 }
 0x1fe   :  { %2212 = vst.msk [vmem:[%s4877_s6 + $0x50] sm:$0xff] %vm1760_vm4, %v2196_v49 }
 0x216   :  { %v2481_v19 = vpop.f32.mrf.mxu0 }
 0x218   :  { %v1935_v39 = vpop.f32.mrf.mxu0 }
 0x21d   :  { %v2509_v22 = vpop.f32.mrf.mxu1 }
 0x21e   :  { %v2134_v24 = vadd.f32 %v2509_v22, %v2481_v19 }
 0x21f   :  { %v2128_v32 = vpop.f32.mrf.mxu1 }
 0x220   :  { %v2167_v57 = vadd.f32 %v4702_v59, %v2134_v24  ;;  %v2129_v53 = vadd.f32 %v2128_v32, %v1935_v39 }
 0x222   :  { %v2199_v50 = vadd.f32 %v2183_v47, %v2167_v57  ;;  %v2166_v20 = vadd.f32 %v4702_v59, %v2129_v53 }
 0x224   :  { %2215 = vst.msk [vmem:[%s4877_s6 + $0x68] sm:$0xff] %vm1760_vm4, %v2199_v50  ;;  %v2198_v25 = vadd.f32 %v2182_v62, %v2166_v20 }
 0x226   :  { %2214 = vst.msk [vmem:[%s4877_s6 + $0x60] sm:$0xff] %vm1760_vm4, %v2198_v25 }
 0x23f   :  { %v2484_v54 = vpop.f32.mrf.mxu0 }
 0x241   :  { %v1945_v2 = vpop.f32.mrf.mxu0 }
 0x24a   :  { %v2512_v8 = vpop.f32.mrf.mxu1 }
 0x24b   :  { %v2144_v38 = vadd.f32 %v2512_v8, %v2484_v54 }
 0x24c   :  { %v2138_v41 = vpop.f32.mrf.mxu1 }
 0x24d   :  { %v2169_v1 = vadd.f32 %v4702_v59, %v2144_v38  ;;  %v2139_v29 = vadd.f32 %v2138_v41, %v1945_v2 }
 0x24f   :  { %v2201_v43 = vadd.f32 %v2185_v3, %v2169_v1  ;;  %v2168_v10 = vadd.f32 %v4702_v59, %v2139_v29 }
 0x251   :  { %2217 = vst.msk [vmem:[%s4877_s6 + $0x78] sm:$0xff] %vm1760_vm4, %v2201_v43  ;;  %v2200_v61 = vadd.f32 %v2184_v63, %v2168_v10 }
 0x253   :  { %2216 = vst.msk [vmem:[%s4877_s6 + $0x70] sm:$0xff] %vm1760_vm4, %v2200_v61 }

// kernel: _lambda_.24
= control target key start
LH: loop header
LB: loop body
LE: loop exit
PB: predicated region body
PF: predicated region fallthrough
CT: control target
= control target key end

     0   :  { %v287_v0 = vmov 0.0   ;;  %vm53_vm0 = vcmask 130048   ;;  %vm153_vm1 = vcmask 261120   ;;  %s465_s1 = inlined_call_operand.vmem [shape: f32[144,32], index: 1, kind: input, shape index: {}]   ;;  %s466_s0 = inlined_call_operand.vmem [shape: f32[32,144], index: 0, kind: input, shape index: {}]   ;;  %s467_s2 = inlined_call_operand.vmem [shape: f32[1,32], index: 2, kind: input, shape index: {}]   ;;  %s468_s3 = inlined_call_operand.vmem [shape: f32[1,32], index: 3, kind: input, shape index: {}]   ;;  %s469_s4 = inlined_call_operand.vmem [shape: f32[1,32], index: 4, kind: input, shape index: {}]   ;;  %s470_s5 = inlined_call_operand.vmem [shape: f32[32,32], index: 5, kind: output, shape index: {}]  }
   0x1   :  { %66 = vmatprep.subr.mxu0 %v287_v0  ;;  %242 = vmatprep.subr.mxu1 %v287_v0  ;;  %v43_v1 = vld [vmem:[%s465_s1 + $0x78] sm:$0xff]  ;;  %v42_v2 = vld [vmem:[%s465_s1 + $0x70] sm:$0xff]  ;;  %v41_v3 = vld [vmem:[%s465_s1 + $0x68] sm:$0xff] }
   0x2   :  { %67 = vmatpush1.msra.mxu0 %v43_v1  ;;  %260 = vmatpush1.msra.mxu1 %v43_v1  ;;  %v40_v4 = vld [vmem:[%s465_s1 + $0x60] sm:$0xff]  ;;  %v39_v5 = vld [vmem:[%s465_s1 + $0x58] sm:$0xff]  ;;  %v38_v6 = vld [vmem:[%s465_s1 + $0x50] sm:$0xff] }
   0x3   :  { %68 = vmatprep.subr.mxu0 %v287_v0  ;;  %243 = vmatprep.subr.mxu1 %v287_v0  ;;  %v37_v7 = vld [vmem:[%s465_s1 + $0x48] sm:$0xff]  ;;  %v36_v8 = vld [vmem:[%s465_s1 + $0x40] sm:$0xff]  ;;  %v35_v9 = vld [vmem:[%s465_s1 + $0x38] sm:$0xff] }
   0x4   :  { %69 = vmatpush1.msra.mxu0 %v42_v2  ;;  %261 = vmatpush1.msra.mxu1 %v42_v2  ;;  %v34_v10 = vld [vmem:[%s465_s1 + $0x30] sm:$0xff]  ;;  %v33_v11 = vld [vmem:[%s465_s1 + $0x28] sm:$0xff]  ;;  %v32_v12 = vld [vmem:[%s465_s1 + $0x20] sm:$0xff] }
   0x5   :  { %70 = vmatprep.subr.mxu0 %v287_v0  ;;  %244 = vmatprep.subr.mxu1 %v287_v0  ;;  %v31_v13 = vld [vmem:[%s465_s1 + $0x18] sm:$0xff]  ;;  %v30_v14 = vld [vmem:[%s465_s1 + $0x10] sm:$0xff]  ;;  %v29_v15 = vld [vmem:[%s465_s1 + $0x8] sm:$0xff] }
   0x6   :  { %71 = vmatpush1.msra.mxu0 %v41_v3  ;;  %262 = vmatpush1.msra.mxu1 %v41_v3  ;;  %v28_v16 = vld [vmem:[%s465_s1] sm:$0xff]  ;;  %v45_v17 = vld [vmem:[%s465_s1 + $0x88] sm:$0xff]  ;;  %v23_v23 = vld [vmem:[%s466_s0 + $0x18] sm:$0xff] }
   0x7   :  { %72 = vmatprep.subr.mxu0 %v287_v0  ;;  %245 = vmatprep.subr.mxu1 %v287_v0  ;;  %v44_v18 = vld [vmem:[%s465_s1 + $0x80] sm:$0xff]  ;;  %v21_v19 = vld [vmem:[%s466_s0 + $0x8] sm:$0xff]  ;;  %v27_v24 = vld [vmem:[%s466_s0 + $0x38] sm:$0xff] }
   0x8   :  { %73 = vmatpush1.msra.mxu0 %v40_v4  ;;  %263 = vmatpush1.msra.mxu1 %v40_v4  ;;  %v25_v20 = vld [vmem:[%s466_s0 + $0x28] sm:$0xff]  ;;  %v20_v21 = vld [vmem:[%s466_s0] sm:$0xff]  ;;  %v22_v25 = vld [vmem:[%s466_s0 + $0x10] sm:$0xff] }
   0x9   :  { %74 = vmatprep.subr.mxu0 %v287_v0  ;;  %246 = vmatprep.subr.mxu1 %v287_v0  ;;  %v24_v22 = vld [vmem:[%s466_s0 + $0x20] sm:$0xff]  ;;  %v26_v26 = vld [vmem:[%s466_s0 + $0x30] sm:$0xff] }
   0xa   :  { %75 = vmatpush1.msra.mxu0 %v39_v5  ;;  %264 = vmatpush1.msra.mxu1 %v39_v5  ;;  %v235_v27 = vld [vmem:[%s467_s2] ss:$0 sm:$0xff] }
   0xb   :  { %76 = vmatprep.subr.mxu0 %v287_v0  ;;  %247 = vmatprep.subr.mxu1 %v287_v0 }
   0xc   :  { %77 = vmatpush1.msra.mxu0 %v38_v6  ;;  %265 = vmatpush1.msra.mxu1 %v38_v6 }
   0xd   :  { %78 = vmatprep.subr.mxu0 %v287_v0  ;;  %248 = vmatprep.subr.mxu1 %v287_v0 }
   0xe   :  { %79 = vmatpush1.msra.mxu0 %v37_v7  ;;  %266 = vmatpush1.msra.mxu1 %v37_v7 }
   0xf   :  { %80 = vmatprep.subr.mxu0 %v287_v0  ;;  %249 = vmatprep.subr.mxu1 %v287_v0 }
  0x10   :  { %81 = vmatpush1.msra.mxu0 %v36_v8  ;;  %267 = vmatpush1.msra.mxu1 %v36_v8 }
  0x11   :  { %82 = vmatprep.subr.mxu0 %v287_v0  ;;  %250 = vmatprep.subr.mxu1 %v287_v0 }
  0x12   :  { %83 = vmatpush1.msra.mxu0 %v35_v9  ;;  %268 = vmatpush1.msra.mxu1 %v35_v9 }
  0x13   :  { %84 = vmatprep.subr.mxu0 %v287_v0  ;;  %251 = vmatprep.subr.mxu1 %v287_v0 }
  0x14   :  { %85 = vmatpush1.msra.mxu0 %v34_v10  ;;  %269 = vmatpush1.msra.mxu1 %v34_v10 }
  0x15   :  { %86 = vmatprep.subr.mxu0 %v287_v0  ;;  %252 = vmatprep.subr.mxu1 %v287_v0 }
  0x16   :  { %87 = vmatpush1.msra.mxu0 %v33_v11  ;;  %270 = vmatpush1.msra.mxu1 %v33_v11 }
  0x17   :  { %88 = vmatprep.subr.mxu0 %v287_v0  ;;  %253 = vmatprep.subr.mxu1 %v287_v0 }
  0x18   :  { %89 = vmatpush1.msra.mxu0 %v32_v12  ;;  %271 = vmatpush1.msra.mxu1 %v32_v12 }
  0x19   :  { %90 = vmatprep.subr.mxu0 %v287_v0  ;;  %254 = vmatprep.subr.mxu1 %v287_v0 }
  0x1a   :  { %91 = vmatpush1.msra.mxu0 %v31_v13  ;;  %272 = vmatpush1.msra.mxu1 %v31_v13  ;;  %v240_v13 = vld [vmem:[%s468_s3] ss:$0 sm:$0xff] }
  0x1b   :  { %92 = vmatprep.subr.mxu0 %v287_v0  ;;  %255 = vmatprep.subr.mxu1 %v287_v0 }
  0x1c   :  { %93 = vmatpush1.msra.mxu0 %v30_v14  ;;  %273 = vmatpush1.msra.mxu1 %v30_v14 }
  0x1d   :  { %94 = vmatprep.subr.mxu0 %v287_v0  ;;  %256 = vmatprep.subr.mxu1 %v287_v0 }
  0x1e   :  { %95 = vmatpush1.msra.mxu0 %v29_v15  ;;  %274 = vmatpush1.msra.mxu1 %v29_v15  ;;  %v241_v15 = vld [vmem:[%s469_s4] ss:$0 sm:$0xff] }
  0x1f   :  { %96 = vmatprep.subr.mxu0 %v287_v0  ;;  %257 = vmatprep.subr.mxu1 %v287_v0 }
  0x20   :  { %97 = vmatpush1.msra.mxu0 %v28_v16  ;;  %275 = vmatpush1.msra.mxu1 %v28_v16 }
  0x21   :  { %126 = vmatprep.subr.mxu0 %v287_v0  ;;  %258 = vmatprep.subr.mxu1 %v287_v0 }
  0x22   :  { %127 = vmatpush2.msra.mxu0 %v45_v17  ;;  %276 = vmatpush2.msra.mxu1 %v45_v17 }
  0x23   :  { %128 = vmatprep.subr.mxu0 %v287_v0  ;;  %259 = vmatprep.subr.mxu1 %v287_v0 }
  0x24   :  { %129 = vmatpush2.msra.mxu0 %v44_v18  ;;  %277 = vmatpush2.msra.mxu1 %v44_v18 }
  0x25   :  { %236 = vmatprep.mubr.msk.f32.mxu0 %vm53_vm0, %v21_v19  ;;  %238 = vmatprep.mubr.msk.f32.mxu1 %vm53_vm0, %v25_v20 }
  0x26   :  { %131 = vmatmul.mubr.f32.vlgmr.msra.gmra.mxu0 %v20_v21  ;;  %141 = vmatmul.mubr.f32.vlgmr.msra.gmra.mxu1 %v24_v22 }
  0x27   :  { %237 = vmatprep.mubr.msk.f32.mxu0 %vm53_vm0, %v23_v23  ;;  %239 = vmatprep.mubr.msk.f32.mxu1 %vm53_vm0, %v27_v24 }
  0x2a   :  { %136 = vmatmul.mubr.f32.gmra.mxu0 %v22_v25  ;;  %146 = vmatmul.mubr.f32.gmra.mxu1 %v26_v26 }
  0xe6   :  { %v132_v28 = vpop.f32.mrf.mxu0  ;;  %v142_v29 = vpop.f32.mrf.mxu1 }
  0xe7   :  { %v133_v30 = vadd.f32 %v235_v27, %v132_v28  ;;  %v143_v31 = vadd.f32 %v235_v27, %v142_v29 }
  0xe8   :  { %v134_v32 = vpop.f32.mrf.mxu0  ;;  %v144_v33 = vpop.f32.mrf.mxu1 }
  0xe9   :  { %v160_v34 = vsel %vm153_vm1, %v143_v31, 0.0  ;;  %v154_v35 = vsel %vm153_vm1, %v133_v30, 0.0 }
  0xea   :  { %v147_v36 = vpop.f32.mrf.mxu1  ;;  %161 = vadd.xlane.f32.xlu1 %v160_v34  ;;  %v137_v37 = vpop.f32.mrf.mxu0  ;;  %155 = vadd.xlane.f32.xlu0 %v154_v35 }
  0xeb   :  { %v148_v38 = vadd.f32 %v235_v27, %v147_v36  ;;  %v138_v39 = vadd.f32 %v235_v27, %v137_v37 }
  0xec   :  { %v139_v40 = vpop.f32.mrf.mxu0  ;;  %v149_v41 = vpop.f32.mrf.mxu1 }
  0xed   :  { %v163_v42 = vsel %vm153_vm1, %v148_v38, 0.0  ;;  %v157_v43 = vsel %vm153_vm1, %v138_v39, 0.0 }
  0xee   :  { %164 = vadd.xlane.f32.xlu1 %v163_v42  ;;  %158 = vadd.xlane.f32.xlu0 %v157_v43 }
 0x173   :  { %v162_v44 = vpop.xlane.xlu1 %161  ;;  %v156_v45 = vpop.xlane.xlu0 %155 }
 0x174   :  { %v169_v46 = vmul.f32 0.03125, %v162_v44  ;;  %v167_v47 = vmul.f32 0.03125, %v156_v45 }
 0x176   :  { %v173_v48 = vsub.f32 %v143_v31, %v169_v46  ;;  %v171_v49 = vsub.f32 %v133_v30, %v167_v47 }
 0x177   :  { %v165_v50 = vpop.xlane.xlu1 %164  ;;  %v159_v51 = vpop.xlane.xlu0 %158 }
 0x178   :  { %v170_v52 = vmul.f32 0.03125, %v165_v50  ;;  %v168_v53 = vmul.f32 0.03125, %v159_v51  ;;  %v175_v54 = vmul.f32 %v171_v49, %v171_v49  ;;  %v177_v58 = vmul.f32 %v173_v48, %v173_v48 }
 0x17a   :  { %v174_v55 = vsub.f32 %v148_v38, %v170_v52  ;;  %v172_v56 = vsub.f32 %v138_v39, %v168_v53  ;;  %v179_v57 = vsel %vm153_vm1, %v175_v54, 0.0  ;;  %v185_v60 = vsel %vm153_vm1, %v177_v58, 0.0 }
 0x17b   :  { %180 = vadd.xlane.f32.xlu0 %v179_v57 }
 0x17c   :  { %v176_v59 = vmul.f32 %v172_v56, %v172_v56  ;;  %v178_v62 = vmul.f32 %v174_v55, %v174_v55 }
 0x17e   :  { %v182_v61 = vsel %vm153_vm1, %v176_v59, 0.0  ;;  %v188_v63 = vsel %vm153_vm1, %v178_v62, 0.0 }
 0x17f   :  { %186 = vadd.xlane.f32.xlu0 %v185_v60  ;;  %183 = vadd.xlane.f32.xlu1 %v182_v61 }
 0x183   :  { %189 = vadd.xlane.f32.xlu1 %v188_v63 }
 0x204   :  { %v181_v0 = vpop.xlane.xlu0 %180 }
 0x205   :  { %v191_v1 = vmul.f32 0.03125, %v181_v0 }
 0x207   :  { %v195_v2 = vadd.f32 1e-05, %v191_v1 }
 0x208   :  { %v184_v3 = vpop.xlane.xlu1 %183  ;;  %v187_v4 = vpop.xlane.xlu0 %186 }
 0x209   :  { %279 = vrsqrt.f32 %v195_v2  ;;  %v192_v5 = vmul.f32 0.03125, %v184_v3  ;;  %v193_v6 = vmul.f32 0.03125, %v187_v4 }
 0x20b   :  { %v196_v7 = vadd.f32 1e-05, %v192_v5  ;;  %v197_v8 = vadd.f32 1e-05, %v193_v6 }
 0x20c   :  { %v190_v9 = vpop.xlane.xlu1 %189 }
 0x20d   :  { %281 = vrsqrt.f32 %v196_v7  ;;  %v194_v10 = vmul.f32 0.03125, %v190_v9 }
 0x20e   :  { %283 = vrsqrt.f32 %v197_v8 }
 0x20f   :  { %v198_v11 = vadd.f32 1e-05, %v194_v10 }
 0x211   :  { %285 = vrsqrt.f32 %v198_v11 }
 0x216   :  { %v280_v12 = vpop.eup %279 }
 0x217   :  { %v203_v14 = vmul.f32 %v280_v12, %v171_v49 }
 0x219   :  { %v213_v16 = vmul.f32 %v240_v13, %v203_v14 }
 0x21a   :  { %v282_v17 = vpop.eup %281 }
 0x21b   :  { %v284_v18 = vpop.eup %283  ;;  %v223_v19 = vadd.f32 %v241_v15, %v213_v16  ;;  %v204_v20 = vmul.f32 %v282_v17, %v172_v56 }
 0x21c   :  { %v205_v21 = vmul.f32 %v284_v18, %v173_v48 }
 0x21d   :  { %227 = vst.msk [vmem:[%s470_s5] sm:$0xff] %vm153_vm1, %v223_v19  ;;  %v214_v22 = vmul.f32 %v240_v13, %v204_v20 }
 0x21e   :  { %v286_v23 = vpop.eup %285  ;;  %v215_v24 = vmul.f32 %v240_v13, %v205_v21 }
 0x21f   :  { %v224_v25 = vadd.f32 %v241_v15, %v214_v22  ;;  %v206_v26 = vmul.f32 %v286_v23, %v174_v55 }
 0x220   :  { %v225_v27 = vadd.f32 %v241_v15, %v215_v24 }
 0x221   :  { %228 = vst.msk [vmem:[%s470_s5 + $0x8] sm:$0xff] %vm153_vm1, %v224_v25  ;;  %v216_v28 = vmul.f32 %v240_v13, %v206_v26 }
 0x222   :  { %229 = vst.msk [vmem:[%s470_s5 + $0x10] sm:$0xff] %vm153_vm1, %v225_v27 }
 0x223   :  { %v226_v29 = vadd.f32 %v241_v15, %v216_v28 }
 0x225   :  { %230 = vst.msk [vmem:[%s470_s5 + $0x18] sm:$0xff] %vm153_vm1, %v226_v29 }

// kernel: _lambda_.25
= control target key start
LH: loop header
LB: loop body
LE: loop exit
PB: predicated region body
PF: predicated region fallthrough
CT: control target
= control target key end

     0   :  { %vm28_vm0 = vcmask 261120   ;;  %s393_s0 = inlined_call_operand.vmem [shape: f32[32,32], index: 0, kind: input, shape index: {}]   ;;  %s394_s1 = inlined_call_operand.vmem [shape: f32[32,32], index: 1, kind: input, shape index: {}]   ;;  %s395_s3 = inlined_call_operand.vmem [shape: f32[1,32], index: 3, kind: input, shape index: {}]   ;;  %s396_s4 = inlined_call_operand.vmem [shape: f32[1,32], index: 4, kind: input, shape index: {}]   ;;  %s397_s6 = inlined_call_operand.vmem [shape: f32[32,32], index: 6, kind: output, shape index: {1}]   ;;  %s398_s2 = inlined_call_operand.vmem [shape: f32[1,32], index: 2, kind: input, shape index: {}]   ;;  %s399_s5 = inlined_call_operand.vmem [shape: f32[32,32], index: 5, kind: output, shape index: {0}]  }
   0x1   :  { %v22_v0 = vld [vmem:[%s393_s0] sm:$0xff]  ;;  %v23_v1 = vld [vmem:[%s393_s0 + $0x8] sm:$0xff]  ;;  %v24_v2 = vld [vmem:[%s393_s0 + $0x10] sm:$0xff] }
   0x2   :  { %v29_v3 = vsel %vm28_vm0, %v22_v0, 0.0  ;;  %v32_v4 = vsel %vm28_vm0, %v23_v1, 0.0  ;;  %v25_v5 = vld [vmem:[%s393_s0 + $0x18] sm:$0xff]  ;;  %v35_v6 = vsel %vm28_vm0, %v24_v2, 0.0  ;;  %v108_v29 = vld [vmem:[%s394_s1 + $0x10] sm:$0xff]  ;;  %v107_v30 = vld [vmem:[%s394_s1 + $0x8] sm:$0xff] }
   0x3   :  { %30 = vadd.xlane.f32.xlu0 %v29_v3  ;;  %33 = vadd.xlane.f32.xlu1 %v32_v4  ;;  %v38_v7 = vsel %vm28_vm0, %v25_v5, 0.0  ;;  %v109_v28 = vld [vmem:[%s394_s1 + $0x18] sm:$0xff]  ;;  %v106_v31 = vld [vmem:[%s394_s1] sm:$0xff] }
   0x4   :  { %241 = vmatprep.subr.mxu0 %v109_v28  ;;  %255 = vmatprep.subr.mxu1 %v109_v28  ;;  %v226_v45 = vld [vmem:[%s395_s3] ss:$0 sm:$0xff] }
   0x5   :  { %242 = vmatpush3.msra.mxu0 %v109_v28  ;;  %259 = vmatpush3.msra.mxu1 %v109_v28  ;;  %v227_v47 = vld [vmem:[%s396_s4] ss:$0 sm:$0xff] }
   0x6   :  { %243 = vmatprep.subr.mxu0 %v108_v29  ;;  %256 = vmatprep.subr.mxu1 %v108_v29  ;;  %v228_v62 = vld [vmem:[%s398_s2] ss:$0 sm:$0xff] }
   0x7   :  { %36 = vadd.xlane.f32.xlu0 %v35_v6  ;;  %39 = vadd.xlane.f32.xlu1 %v38_v7 }
   0x8   :  { %244 = vmatpush3.msra.mxu0 %v108_v29  ;;  %260 = vmatpush3.msra.mxu1 %v108_v29 }
   0x9   :  { %245 = vmatprep.subr.mxu0 %v107_v30  ;;  %257 = vmatprep.subr.mxu1 %v107_v30 }
   0xa   :  { %246 = vmatpush3.msra.mxu0 %v107_v30  ;;  %261 = vmatpush3.msra.mxu1 %v107_v30 }
   0xb   :  { %247 = vmatprep.subr.mxu0 %v106_v31  ;;  %258 = vmatprep.subr.mxu1 %v106_v31 }
   0xc   :  { %248 = vmatpush3.msra.mxu0 %v106_v31  ;;  %262 = vmatpush3.msra.mxu1 %v106_v31 }
  0x8c   :  { %v31_v8 = vpop.xlane.xlu0 %30  ;;  %v34_v9 = vpop.xlane.xlu1 %33 }
  0x8d   :  { %v42_v10 = vmul.f32 0.03125, %v31_v8  ;;  %v43_v11 = vmul.f32 0.03125, %v34_v9 }
  0x8f   :  { %v46_v12 = vsub.f32 %v22_v0, %v42_v10  ;;  %v322_v13 = vsub.f32 %v23_v1, %v43_v11 }
  0x90   :  { %v37_v14 = vpop.xlane.xlu0 %36  ;;  %v40_v15 = vpop.xlane.xlu1 %39 }
  0x91   :  { %v44_v16 = vmul.f32 0.03125, %v37_v14  ;;  %v45_v17 = vmul.f32 0.03125, %v40_v15  ;;  %v50_v18 = vmul.f32 %v46_v12, %v46_v12  ;;  %v51_v19 = vmul.f32 %v322_v13, %v322_v13 }
  0x93   :  { %v48_v20 = vsub.f32 %v24_v2, %v44_v16  ;;  %v326_v21 = vsub.f32 %v25_v5, %v45_v17  ;;  %v54_v22 = vsel %vm28_vm0, %v50_v18, 0.0  ;;  %v57_v23 = vsel %vm28_vm0, %v51_v19, 0.0 }
  0x94   :  { %55 = vadd.xlane.f32.xlu0 %v54_v22 }
  0x95   :  { %v52_v24 = vmul.f32 %v48_v20, %v48_v20  ;;  %v53_v25 = vmul.f32 %v326_v21, %v326_v21 }
  0x97   :  { %v60_v26 = vsel %vm28_vm0, %v52_v24, 0.0  ;;  %v63_v27 = vsel %vm28_vm0, %v53_v25, 0.0 }
  0x98   :  { %58 = vadd.xlane.f32.xlu0 %v57_v23  ;;  %61 = vadd.xlane.f32.xlu1 %v60_v26 }
  0x9c   :  { %64 = vadd.xlane.f32.xlu1 %v63_v27 }
 0x11d   :  { %v56_v32 = vpop.xlane.xlu0 %55 }
 0x11e   :  { %v66_v33 = vmul.f32 0.03125, %v56_v32 }
 0x120   :  { %v70_v34 = vadd.f32 1e-05, %v66_v33 }
 0x121   :  { %v62_v35 = vpop.xlane.xlu1 %61  ;;  %v59_v36 = vpop.xlane.xlu0 %58 }
 0x122   :  { %263 = vrsqrt.f32 %v70_v34  ;;  %v68_v37 = vmul.f32 0.03125, %v62_v35  ;;  %v67_v38 = vmul.f32 0.03125, %v59_v36 }
 0x124   :  { %v72_v39 = vadd.f32 1e-05, %v68_v37  ;;  %v71_v40 = vadd.f32 1e-05, %v67_v38 }
 0x125   :  { %v65_v41 = vpop.xlane.xlu1 %64 }
 0x126   :  { %265 = vrsqrt.f32 %v72_v39  ;;  %v69_v42 = vmul.f32 0.03125, %v65_v41 }
 0x127   :  { %267 = vrsqrt.f32 %v71_v40 }
 0x128   :  { %v73_v43 = vadd.f32 1e-05, %v69_v42 }
 0x12a   :  { %269 = vrsqrt.f32 %v73_v43 }
 0x12f   :  { %v264_v44 = vpop.eup %263 }
 0x130   :  { %v78_v46 = vmul.f32 %v264_v44, %v46_v12 }
 0x132   :  { %v88_v48 = vmul.f32 %v226_v45, %v78_v46 }
 0x133   :  { %v266_v49 = vpop.eup %265 }
 0x134   :  { %v268_v50 = vpop.eup %267  ;;  %v98_v51 = vadd.f32 %v227_v47, %v88_v48  ;;  %v80_v52 = vmul.f32 %v266_v49, %v48_v20 }
 0x135   :  { %v79_v53 = vmul.f32 %v268_v50, %v322_v13 }
 0x136   :  { %102 = vst.msk [vmem:[%s397_s6] sm:$0xff] %vm28_vm0, %v98_v51  ;;  %249 = vmatprep.mubr.msk.f32.mxu0 %vm28_vm0, %v98_v51  ;;  %v90_v54 = vmul.f32 %v226_v45, %v80_v52 }
 0x137   :  { %v270_v55 = vpop.eup %269  ;;  %v89_v56 = vmul.f32 %v226_v45, %v79_v53 }
 0x138   :  { %v100_v57 = vadd.f32 %v227_v47, %v90_v54  ;;  %v81_v58 = vmul.f32 %v270_v55, %v326_v21 }
 0x139   :  { %v99_v59 = vadd.f32 %v227_v47, %v89_v56 }
 0x13a   :  { %104 = vst.msk [vmem:[%s397_s6 + $0x10] sm:$0xff] %vm28_vm0, %v100_v57  ;;  %252 = vmatprep.mubr.msk.f32.mxu1 %vm28_vm0, %v100_v57  ;;  %v91_v60 = vmul.f32 %v226_v45, %v81_v58 }
 0x13b   :  { %103 = vst.msk [vmem:[%s397_s6 + $0x8] sm:$0xff] %vm28_vm0, %v99_v59  ;;  %250 = vmatmul.mubr.msk.f32.vlgmr.msra.gmra.mxu0 %vm28_vm0, %v99_v59 }
 0x13c   :  { %v101_v61 = vadd.f32 %v227_v47, %v91_v60 }
 0x13e   :  { %105 = vst.msk [vmem:[%s397_s6 + $0x18] sm:$0xff] %vm28_vm0, %v101_v61  ;;  %253 = vmatmul.mubr.msk.f32.vlgmr.msra.gmra.mxu1 %vm28_vm0, %v101_v61 }
 0x1fb   :  { %v251_v63 = vpop.f32.mrf.mxu0 }
 0x1fc   :  { %v201_v0 = vadd.f32 %v251_v63, %v228_v62 }
 0x1fd   :  { %v195_v1 = vpop.f32.mrf.mxu0 }
 0x1fe   :  { %215 = vst.msk [vmem:[%s399_s5 + $0x8] sm:$0xff] %vm28_vm0, %v201_v0  ;;  %v196_v2 = vadd.f32 %v228_v62, %v195_v1  ;;  %v254_v3 = vpop.f32.mrf.mxu1 }
 0x1ff   :  { %v211_v4 = vadd.f32 %v254_v3, %v228_v62 }
 0x200   :  { %214 = vst.msk [vmem:[%s399_s5] sm:$0xff] %vm28_vm0, %v196_v2  ;;  %v205_v5 = vpop.f32.mrf.mxu1 }
 0x201   :  { %217 = vst.msk [vmem:[%s399_s5 + $0x18] sm:$0xff] %vm28_vm0, %v211_v4  ;;  %v206_v6 = vadd.f32 %v228_v62, %v205_v5 }
 0x203   :  { %216 = vst.msk [vmem:[%s399_s5 + $0x10] sm:$0xff] %vm28_vm0, %v206_v6 }

// kernel: _lambda_.29
= control target key start
LH: loop header
LB: loop body
LE: loop exit
PB: predicated region body
PF: predicated region fallthrough
CT: control target
= control target key end

     0   :  { %vm26_vm0 = vcmask 261120   ;;  %s362_s0 = inlined_call_operand.vmem [shape: f32[32,32], index: 0, kind: input, shape index: {}]   ;;  %s363_s1 = inlined_call_operand.vmem [shape: f32[32,32], index: 1, kind: input, shape index: {}]   ;;  %s364_s3 = inlined_call_operand.vmem [shape: f32[1,32], index: 3, kind: input, shape index: {}]   ;;  %s365_s4 = inlined_call_operand.vmem [shape: f32[1,32], index: 4, kind: input, shape index: {}]   ;;  %s366_s2 = inlined_call_operand.vmem [shape: f32[1,32], index: 2, kind: input, shape index: {}]   ;;  %s367_s5 = inlined_call_operand.vmem [shape: f32[32,32], index: 5, kind: output, shape index: {}]  }
   0x1   :  { %v20_v0 = vld [vmem:[%s362_s0] sm:$0xff]  ;;  %v21_v1 = vld [vmem:[%s362_s0 + $0x8] sm:$0xff]  ;;  %v22_v2 = vld [vmem:[%s362_s0 + $0x10] sm:$0xff] }
   0x2   :  { %v27_v3 = vsel %vm26_vm0, %v20_v0, 0.0  ;;  %v30_v4 = vsel %vm26_vm0, %v21_v1, 0.0  ;;  %v23_v5 = vld [vmem:[%s362_s0 + $0x18] sm:$0xff]  ;;  %v33_v6 = vsel %vm26_vm0, %v22_v2, 0.0  ;;  %v102_v29 = vld [vmem:[%s363_s1 + $0x10] sm:$0xff]  ;;  %v101_v30 = vld [vmem:[%s363_s1 + $0x8] sm:$0xff] }
   0x3   :  { %28 = vadd.xlane.f32.xlu0 %v27_v3  ;;  %31 = vadd.xlane.f32.xlu1 %v30_v4  ;;  %v36_v7 = vsel %vm26_vm0, %v23_v5, 0.0  ;;  %v103_v28 = vld [vmem:[%s363_s1 + $0x18] sm:$0xff]  ;;  %v100_v31 = vld [vmem:[%s363_s1] sm:$0xff] }
   0x4   :  { %231 = vmatprep.subr.mxu0 %v103_v28  ;;  %245 = vmatprep.subr.mxu1 %v103_v28  ;;  %v216_v45 = vld [vmem:[%s364_s3] ss:$0 sm:$0xff] }
   0x5   :  { %232 = vmatpush3.msra.mxu0 %v103_v28  ;;  %249 = vmatpush3.msra.mxu1 %v103_v28  ;;  %v217_v47 = vld [vmem:[%s365_s4] ss:$0 sm:$0xff] }
   0x6   :  { %233 = vmatprep.subr.mxu0 %v102_v29  ;;  %246 = vmatprep.subr.mxu1 %v102_v29  ;;  %v218_v62 = vld [vmem:[%s366_s2] ss:$0 sm:$0xff] }
   0x7   :  { %34 = vadd.xlane.f32.xlu0 %v33_v6  ;;  %37 = vadd.xlane.f32.xlu1 %v36_v7 }
   0x8   :  { %234 = vmatpush3.msra.mxu0 %v102_v29  ;;  %250 = vmatpush3.msra.mxu1 %v102_v29 }
   0x9   :  { %235 = vmatprep.subr.mxu0 %v101_v30  ;;  %247 = vmatprep.subr.mxu1 %v101_v30 }
   0xa   :  { %236 = vmatpush3.msra.mxu0 %v101_v30  ;;  %251 = vmatpush3.msra.mxu1 %v101_v30 }
   0xb   :  { %237 = vmatprep.subr.mxu0 %v100_v31  ;;  %248 = vmatprep.subr.mxu1 %v100_v31 }
   0xc   :  { %238 = vmatpush3.msra.mxu0 %v100_v31  ;;  %252 = vmatpush3.msra.mxu1 %v100_v31 }
  0x8c   :  { %v29_v8 = vpop.xlane.xlu0 %28  ;;  %v32_v9 = vpop.xlane.xlu1 %31 }
  0x8d   :  { %v40_v10 = vmul.f32 0.03125, %v29_v8  ;;  %v41_v11 = vmul.f32 0.03125, %v32_v9 }
  0x8f   :  { %v44_v12 = vsub.f32 %v20_v0, %v40_v10  ;;  %v307_v13 = vsub.f32 %v21_v1, %v41_v11 }
  0x90   :  { %v35_v14 = vpop.xlane.xlu0 %34  ;;  %v38_v15 = vpop.xlane.xlu1 %37 }
  0x91   :  { %v42_v16 = vmul.f32 0.03125, %v35_v14  ;;  %v43_v17 = vmul.f32 0.03125, %v38_v15  ;;  %v48_v18 = vmul.f32 %v44_v12, %v44_v12  ;;  %v49_v19 = vmul.f32 %v307_v13, %v307_v13 }
  0x93   :  { %v46_v20 = vsub.f32 %v22_v2, %v42_v16  ;;  %v311_v21 = vsub.f32 %v23_v5, %v43_v17  ;;  %v52_v22 = vsel %vm26_vm0, %v48_v18, 0.0  ;;  %v55_v23 = vsel %vm26_vm0, %v49_v19, 0.0 }
  0x94   :  { %53 = vadd.xlane.f32.xlu0 %v52_v22 }
  0x95   :  { %v50_v24 = vmul.f32 %v46_v20, %v46_v20  ;;  %v51_v25 = vmul.f32 %v311_v21, %v311_v21 }
  0x97   :  { %v58_v26 = vsel %vm26_vm0, %v50_v24, 0.0  ;;  %v61_v27 = vsel %vm26_vm0, %v51_v25, 0.0 }
  0x98   :  { %56 = vadd.xlane.f32.xlu0 %v55_v23  ;;  %59 = vadd.xlane.f32.xlu1 %v58_v26 }
  0x9c   :  { %62 = vadd.xlane.f32.xlu1 %v61_v27 }
 0x11d   :  { %v54_v32 = vpop.xlane.xlu0 %53 }
 0x11e   :  { %v64_v33 = vmul.f32 0.03125, %v54_v32 }
 0x120   :  { %v68_v34 = vadd.f32 1e-05, %v64_v33 }
 0x121   :  { %v60_v35 = vpop.xlane.xlu1 %59  ;;  %v57_v36 = vpop.xlane.xlu0 %56 }
 0x122   :  { %253 = vrsqrt.f32 %v68_v34  ;;  %v66_v37 = vmul.f32 0.03125, %v60_v35  ;;  %v65_v38 = vmul.f32 0.03125, %v57_v36 }
 0x124   :  { %v70_v39 = vadd.f32 1e-05, %v66_v37  ;;  %v69_v40 = vadd.f32 1e-05, %v65_v38 }
 0x125   :  { %v63_v41 = vpop.xlane.xlu1 %62 }
 0x126   :  { %255 = vrsqrt.f32 %v70_v39  ;;  %v67_v42 = vmul.f32 0.03125, %v63_v41 }
 0x127   :  { %257 = vrsqrt.f32 %v69_v40 }
 0x128   :  { %v71_v43 = vadd.f32 1e-05, %v67_v42 }
 0x12a   :  { %259 = vrsqrt.f32 %v71_v43 }
 0x12f   :  { %v254_v44 = vpop.eup %253 }
 0x130   :  { %v76_v46 = vmul.f32 %v254_v44, %v44_v12 }
 0x132   :  { %v86_v48 = vmul.f32 %v216_v45, %v76_v46 }
 0x133   :  { %v256_v49 = vpop.eup %255 }
 0x134   :  { %v258_v50 = vpop.eup %257  ;;  %v96_v51 = vadd.f32 %v217_v47, %v86_v48  ;;  %v78_v52 = vmul.f32 %v256_v49, %v46_v20 }
 0x135   :  { %v77_v53 = vmul.f32 %v258_v50, %v307_v13 }
 0x136   :  { %239 = vmatprep.mubr.msk.f32.mxu0 %vm26_vm0, %v96_v51  ;;  %v88_v54 = vmul.f32 %v216_v45, %v78_v52 }
 0x137   :  { %v260_v55 = vpop.eup %259  ;;  %v87_v56 = vmul.f32 %v216_v45, %v77_v53 }
 0x138   :  { %v98_v57 = vadd.f32 %v217_v47, %v88_v54  ;;  %v79_v58 = vmul.f32 %v260_v55, %v311_v21 }
 0x139   :  { %v97_v59 = vadd.f32 %v217_v47, %v87_v56 }
 0x13a   :  { %242 = vmatprep.mubr.msk.f32.mxu1 %vm26_vm0, %v98_v57  ;;  %v89_v60 = vmul.f32 %v216_v45, %v79_v58 }
 0x13b   :  { %240 = vmatmul.mubr.msk.f32.vlgmr.msra.gmra.mxu0 %vm26_vm0, %v97_v59 }
 0x13c   :  { %v99_v61 = vadd.f32 %v217_v47, %v89_v60 }
 0x13e   :  { %243 = vmatmul.mubr.msk.f32.vlgmr.msra.gmra.mxu1 %vm26_vm0, %v99_v61 }
 0x1fb   :  { %v241_v63 = vpop.f32.mrf.mxu0 }
 0x1fc   :  { %v195_v0 = vadd.f32 %v241_v63, %v218_v62 }
 0x1fd   :  { %v189_v1 = vpop.f32.mrf.mxu0 }
 0x1fe   :  { %209 = vst.msk [vmem:[%s367_s5 + $0x8] sm:$0xff] %vm26_vm0, %v195_v0  ;;  %v190_v2 = vadd.f32 %v218_v62, %v189_v1  ;;  %v244_v3 = vpop.f32.mrf.mxu1 }
 0x1ff   :  { %v205_v4 = vadd.f32 %v244_v3, %v218_v62 }
 0x200   :  { %208 = vst.msk [vmem:[%s367_s5] sm:$0xff] %vm26_vm0, %v190_v2  ;;  %v199_v5 = vpop.f32.mrf.mxu1 }
 0x201   :  { %211 = vst.msk [vmem:[%s367_s5 + $0x18] sm:$0xff] %vm26_vm0, %v205_v4  ;;  %v200_v6 = vadd.f32 %v218_v62, %v199_v5 }
 0x203   :  { %210 = vst.msk [vmem:[%s367_s5 + $0x10] sm:$0xff] %vm26_vm0, %v200_v6 }

// kernel: _lambda_.26
= control target key start
LH: loop header
LB: loop body
LE: loop exit
PB: predicated region body
PF: predicated region fallthrough
CT: control target
= control target key end

     0   :  { %v169_v0 = vmov 0.0   ;;  %vm170_vm0 = vmmov 0   ;;  %vm108_vm1 = vcmask 261120   ;;  %s248_s1 = inlined_call_operand.vmem [shape: f32[128,32], index: 1, kind: input, shape index: {}]   ;;  %s249_s0 = inlined_call_operand.vmem [shape: f32[8,128], index: 0, kind: input, shape index: {}]   ;;  %s250_s2 = inlined_call_operand.vmem [shape: f32[1,32], index: 2, kind: input, shape index: {}]   ;;  %s251_s3 = inlined_call_operand.vmem [shape: f32[8,32], index: 3, kind: output, shape index: {}]  }
   0x1   :  { %132 = vmatprep.subr.mxu0 %v169_v0  ;;  %v30_v1 = vld [vmem:[%s248_s1 + $0x78] sm:$0xff]  ;;  %v29_v2 = vld [vmem:[%s248_s1 + $0x70] sm:$0xff]  ;;  %164 = vmatprep.mubr.msk.f32.mxu0 %vm170_vm0, %v169_v0  ;;  %v28_v3 = vld [vmem:[%s248_s1 + $0x68] sm:$0xff] }
   0x2   :  { %133 = vmatpush3.msra.mxu0 %v30_v1  ;;  %v27_v4 = vld [vmem:[%s248_s1 + $0x60] sm:$0xff]  ;;  %v26_v5 = vld [vmem:[%s248_s1 + $0x58] sm:$0xff]  ;;  %v25_v6 = vld [vmem:[%s248_s1 + $0x50] sm:$0xff] }
   0x3   :  { %134 = vmatprep.subr.mxu0 %v169_v0  ;;  %v24_v7 = vld [vmem:[%s248_s1 + $0x48] sm:$0xff]  ;;  %v23_v8 = vld [vmem:[%s248_s1 + $0x40] sm:$0xff]  ;;  %v22_v9 = vld [vmem:[%s248_s1 + $0x38] sm:$0xff] }
   0x4   :  { %135 = vmatpush3.msra.mxu0 %v29_v2  ;;  %v21_v10 = vld [vmem:[%s248_s1 + $0x30] sm:$0xff]  ;;  %v20_v11 = vld [vmem:[%s248_s1 + $0x28] sm:$0xff]  ;;  %v19_v12 = vld [vmem:[%s248_s1 + $0x20] sm:$0xff] }
   0x5   :  { %136 = vmatprep.subr.mxu0 %v169_v0  ;;  %v18_v13 = vld [vmem:[%s248_s1 + $0x18] sm:$0xff]  ;;  %v17_v14 = vld [vmem:[%s248_s1 + $0x10] sm:$0xff]  ;;  %v16_v15 = vld [vmem:[%s248_s1 + $0x8] sm:$0xff] }
   0x6   :  { %137 = vmatpush3.msra.mxu0 %v28_v3  ;;  %v15_v16 = vld [vmem:[%s248_s1] sm:$0xff] }
   0x7   :  { %138 = vmatprep.subr.mxu0 %v169_v0  ;;  %v14_v17 = vld [vmem:[%s249_s0] sm:$0xff] }
   0x8   :  { %139 = vmatpush3.msra.mxu0 %v27_v4  ;;  %v114_v18 = vld [vmem:[%s250_s2] ss:$0 sm:$0xff] }
   0x9   :  { %140 = vmatprep.subr.mxu0 %v169_v0 }
   0xa   :  { %141 = vmatpush3.msra.mxu0 %v26_v5 }
   0xb   :  { %142 = vmatprep.subr.mxu0 %v169_v0 }
   0xc   :  { %143 = vmatpush3.msra.mxu0 %v25_v6 }
   0xd   :  { %144 = vmatprep.subr.mxu0 %v169_v0 }
   0xe   :  { %145 = vmatpush3.msra.mxu0 %v24_v7 }
   0xf   :  { %146 = vmatprep.subr.mxu0 %v169_v0 }
  0x10   :  { %147 = vmatpush3.msra.mxu0 %v23_v8 }
  0x11   :  { %148 = vmatprep.subr.mxu0 %v169_v0 }
  0x12   :  { %149 = vmatpush3.msra.mxu0 %v22_v9 }
  0x13   :  { %150 = vmatprep.subr.mxu0 %v169_v0 }
  0x14   :  { %151 = vmatpush3.msra.mxu0 %v21_v10 }
  0x15   :  { %152 = vmatprep.subr.mxu0 %v169_v0 }
  0x16   :  { %153 = vmatpush3.msra.mxu0 %v20_v11 }
  0x17   :  { %154 = vmatprep.subr.mxu0 %v169_v0 }
  0x18   :  { %155 = vmatpush3.msra.mxu0 %v19_v12 }
  0x19   :  { %156 = vmatprep.subr.mxu0 %v169_v0 }
  0x1a   :  { %157 = vmatpush3.msra.mxu0 %v18_v13 }
  0x1b   :  { %158 = vmatprep.subr.mxu0 %v169_v0 }
  0x1c   :  { %159 = vmatpush3.msra.mxu0 %v17_v14 }
  0x1d   :  { %160 = vmatprep.subr.mxu0 %v169_v0 }
  0x1e   :  { %161 = vmatpush3.msra.mxu0 %v16_v15 }
  0x1f   :  { %162 = vmatprep.subr.mxu0 %v169_v0 }
  0x20   :  { %163 = vmatpush3.msra.mxu0 %v15_v16 }
  0x21   :  { %165 = vmatmul.mubr.f32.vlgmr.msra.gmra.mxu0 %v14_v17 }
  0xe1   :  { %v104_v19 = vpop.f32.mrf.mxu0 }
  0xe2   :  { %v105_v20 = vadd.f32 %v114_v18, %v104_v19 }
  0xe3   :  { %v166_v21 = vpop.f32.mrf.mxu0 }
  0xe4   :  { %109 = vst.msk [vmem:[%s251_s3] sm:$0xff] %vm108_vm1, %v105_v20 }

// kernel: _lambda_.27
= control target key start
LH: loop header
LB: loop body
LE: loop exit
PB: predicated region body
PF: predicated region fallthrough
CT: control target
= control target key end

     0   :  { %vm23_vm0 = vcmask 261120   ;;  %v166_v7 = vmov 0.0   ;;  %vm167_vm1 = vmmov 0   ;;  %vm136_vm2 = vcmask 523264   ;;  %s228_s0 = inlined_call_operand.vmem [shape: f32[8,32], index: 0, kind: input, shape index: {}]   ;;  %s229_s1 = inlined_call_operand.vmem [shape: f32[32,64], index: 1, kind: input, shape index: {}]   ;;  %s230_s3 = inlined_call_operand.vmem [shape: f32[1,32], index: 3, kind: input, shape index: {}]   ;;  %s231_s4 = inlined_call_operand.vmem [shape: f32[1,32], index: 4, kind: input, shape index: {}]   ;;  %s232_s2 = inlined_call_operand.vmem [shape: f32[1,64], index: 2, kind: input, shape index: {}]   ;;  %s233_s5 = inlined_call_operand.vmem [shape: f32[8,64], index: 5, kind: output, shape index: {}]  }
   0x1   :  { %v20_v0 = vld [vmem:[%s228_s0] sm:$0xff]  ;;  %151 = vmatprep.subr.mxu0 %v166_v7  ;;  %v55_v8 = vld [vmem:[%s229_s1 + $0x18] sm:$0xff]  ;;  %v54_v9 = vld [vmem:[%s229_s1 + $0x10] sm:$0xff]  ;;  %159 = vmatprep.mubr.msk.f32.mxu0 %vm167_vm1, %v166_v7 }
   0x2   :  { %v24_v1 = vsel %vm23_vm0, %v20_v0, 0.0  ;;  %152 = vmatpush3.msra.mxu0 %v55_v8  ;;  %v53_v10 = vld [vmem:[%s229_s1 + $0x8] sm:$0xff]  ;;  %v52_v11 = vld [vmem:[%s229_s1] sm:$0xff] }
   0x3   :  { %25 = vadd.xlane.f32.xlu0 %v24_v1  ;;  %153 = vmatprep.subr.mxu0 %v166_v7  ;;  %v142_v16 = vld [vmem:[%s230_s3] ss:$0 sm:$0xff] }
   0x4   :  { %154 = vmatpush3.msra.mxu0 %v54_v9  ;;  %v143_v18 = vld [vmem:[%s231_s4] ss:$0 sm:$0xff] }
   0x5   :  { %155 = vmatprep.subr.mxu0 %v166_v7  ;;  %v144_v21 = vld [vmem:[%s232_s2] ss:$0 sm:$0xff] }
   0x6   :  { %156 = vmatpush3.msra.mxu0 %v53_v10 }
   0x7   :  { %157 = vmatprep.subr.mxu0 %v166_v7 }
   0x8   :  { %158 = vmatpush3.msra.mxu0 %v52_v11 }
  0x8c   :  { %v26_v2 = vpop.xlane.xlu0 %25 }
  0x8d   :  { %v28_v3 = vmul.f32 0.03125, %v26_v2 }
  0x8f   :  { %v29_v4 = vsub.f32 %v20_v0, %v28_v3 }
  0x91   :  { %v30_v5 = vmul.f32 %v29_v4, %v29_v4 }
  0x93   :  { %v31_v6 = vsel %vm23_vm0, %v30_v5, 0.0 }
  0x94   :  { %32 = vadd.xlane.f32.xlu0 %v31_v6 }
 0x11d   :  { %v33_v12 = vpop.xlane.xlu0 %32 }
 0x11e   :  { %v34_v13 = vmul.f32 0.03125, %v33_v12 }
 0x120   :  { %v35_v14 = vadd.f32 1e-05, %v34_v13 }
 0x122   :  { %164 = vrsqrt.f32 %v35_v14 }
 0x12f   :  { %v165_v15 = vpop.eup %164 }
 0x130   :  { %v37_v17 = vmul.f32 %v165_v15, %v29_v4 }
 0x132   :  { %v44_v19 = vmul.f32 %v142_v16, %v37_v17 }
 0x134   :  { %v51_v20 = vadd.f32 %v143_v18, %v44_v19 }
 0x136   :  { %160 = vmatmul.mubr.msk.f32.vlgmr.msra.gmra.mxu0 %vm23_vm0, %v51_v20 }
 0x1f6   :  { %v132_v22 = vpop.f32.mrf.mxu0 }
 0x1f7   :  { %v133_v23 = vadd.f32 %v144_v21, %v132_v22 }
 0x1f8   :  { %v161_v24 = vpop.f32.mrf.mxu0 }
 0x1f9   :  { %137 = vst.msk [vmem:[%s233_s5] sm:$0xff] %vm136_vm2, %v133_v23 }

// kernel: _lambda_.28
= control target key start
LH: loop header
LB: loop body
LE: loop exit
PB: predicated region body
PF: predicated region fallthrough
CT: control target
= control target key end

     0   :  { %s1760_s21 = smov 0   ;;  %s1914_s0 = inlined_call_operand.vmem [shape: f32[2,16,32], index: 0, kind: input, shape index: {}]   ;;  %s1915_s1 = inlined_call_operand.vmem [shape: f32[2,4,32], index: 1, kind: input, shape index: {}]   ;;  %s1916_s2 = inlined_call_operand.vmem [shape: f32[2,4,32], index: 2, kind: input, shape index: {}]   ;;  %s1917_s3 = inlined_call_operand.vmem [shape: f32[32,32], index: 3, kind: input, shape index: {}]   ;;  %s1918_s4 = inlined_call_operand.vmem [shape: f32[1,32], index: 4, kind: input, shape index: {}]   ;;  %s1919_s5 = inlined_call_operand.vmem [shape: f32[2,16,32], index: 5, kind: input, shape index: {}]   ;;  %s1920_s6 = inlined_call_operand.vmem [shape: f32[2,16,32], index: 6, kind: output, shape index: {}]  }
   0x1 LB: > { %s1524_s22 = sadd.s32 4294967295, %s1720_s21   ;;  %p1528_p0 = scmp.ge.s32.totalorder %s1720_s21, 1  ;;  %s1720_s21 = sphi %s1760_s21, %s16_s21  }
   0x2   : > { %p240_p1 = scmp.lt.s32.totalorder %s1720_s21, 3 }
   0x4   : > { %p241_p2 = pnand %p1528_p0, %p240_p1 }
   0x5   : > { %p283_p3 = scmp.lt.s32.totalorder (!%p241_p2), %s1524_s22, 1  ;;  %s1722_s7 = smov (!%p241_p2), 120  }
   0x6   : > { %244 = sbr.rel (%p241_p2) target bundleno = 2673 (0xa71), region = 44  ;;  %s1723_s15 = smov (!%p241_p2), 112  }
   0x7   : > { %s1724_s16 = smov (!%p241_p2), 104  }
   0xb   : > { %s1922_s22 = smov (!%p283_p3, %s1524_s22), 1  ;;  %vm310_vm0 = vcmask 64512   ;;  %vm395_vm1 = vcmask 31744   ;;  %vm424_vm2 = vcmask 1043456   ;;  %v503_v44 = vld [vmem:[%s1917_s3] sm:$0xff]  ;;  %v698_v45 = vld [vmem:[%s1917_s3 + $0x8] sm:$0xff] }
   0xc   : > { %s1531_s23 = sshll.u32 %s1922_s22, 2  ;;  %s1772_s24 = sshll.u32 %s1922_s22, 4  ;;  %vm1430_vm3 = vcmask 261120  }
   0xd   : > { %s291_s27 = scalar_lea.vmem %s1915_s1, %s1531_s23  ;;  %s287_s30 = scalar_lea.vmem %s1914_s0, %s1772_s24 }
   0xe   : > { %v1783_v0 = vld [vmem:[%s291_s27] sm:$0xf]  ;;  %v1793_v2 = vld [vmem:[%s287_s30 + $0x8] sm:$0xff]  ;;  %s295_s10 = scalar_lea.vmem %s1916_s2, %s1531_s23  ;;  %s300_s25 = scalar_lea.vmem %s1919_s5, %s1772_s24 }
   0xf   : > { %v1785_v1 = vld [vmem:[%s287_s30] sm:$0xff]  ;;  %1611 = vmatprep.subr.msk.mxu0 %vm310_vm0, %v1783_v0  ;;  %s305_s30 = scalar_lea.vmem %s1920_s6, %s1772_s24 }
  0x10   : > { %1613 = vmatprep.mubr.msk.f32.mxu0 %vm310_vm0, %v1785_v1  ;;  %1612 = vmatpush3.xpose.msk.msra.mxu0 %vm310_vm0, %v1783_v0  ;;  %v1810_v17 = vld [vmem:[%s295_s10] sm:$0xf] }
  0x11   : > { %504 = vrot.lane.b32.xlu1 %v1785_v1, %s1722_s7  ;;  %1616 = vmatprep.subr.msk.mxu1 %vm424_vm2, %v1810_v17 }
  0x12   : > { %1617 = vmatpush3.msk.msra.mxu1 %vm424_vm2, %v1810_v17 }
  0x13   : > { %1614 = vmatmul.mubr.msk.f32.vlgmr.msra.gmra.mxu0 %vm310_vm0, %v1793_v2 }
  0x83   : > { %v505_v19 = vpop.permute.xlu1 %504 }
  0xd3   : > { %v1615_v3 = vpop.f32.mrf.mxu0 }
  0xd4   : > { %v399_v6 = vsel %vm395_vm1, %v1615_v3, -inf }
  0xd5   : > { %v386_v4 = vpop.f32.mrf.mxu0 }
  0xd6   : > { %v396_v5 = vsel %vm395_vm1, %v386_v4, -inf }
  0xd7   : > { %397 = vmax.xlane.f32.xlu0 %v396_v5 }
  0xdb   : > { %400 = vmax.xlane.f32.xlu0 %v399_v6 }
  0xf1   : > { %508 = vrot.lane.b32.xlu0 %v1783_v0, %s1722_s7 }
 0x160   : > { %v398_v7 = vpop.xlane.xlu0 %397 }
 0x161   : > { %v402_v8 = vsub.f32 %v386_v4, %v398_v7 }
 0x163   : > { %v404_v11 = vmul.f32 1.442695, %v402_v8 }
 0x164   : > { %v401_v9 = vpop.xlane.xlu0 %400 }
 0x165   : > { %v403_v10 = vsub.f32 %v1615_v3, %v401_v9 }
 0x167   : > { %v406_v12 = vmul.f32 1.442695, %v403_v10 }
 0x168   : > { %v509_v18 = vpop.permute.xlu0 %508 }
 0x169   : > { %1682 = vpow2.f32 %v406_v12  ;;  %1621 = vmatprep.subr.msk.mxu1 %vm310_vm0, %v509_v18 }
 0x16a   : > { %1684 = vpow2.f32 %v404_v11 }
 0x176   : > { %v1683_v13 = vpop.eup %1682 }
 0x177   : > { %v411_v14 = vsel %vm395_vm1, %v1683_v13, 0.0  ;;  %v1685_v15 = vpop.eup %1684 }
 0x178   : > { %412 = vadd.xlane.f32.xlu1 %v411_v14  ;;  %v408_v16 = vsel %vm395_vm1, %v1685_v15, 0.0 }
 0x17c   : > { %409 = vadd.xlane.f32.xlu1 %v408_v16 }
 0x18d   : > { %506 = vrot.lane.b32.xlu1 %v1793_v2, %s1722_s7 }
 0x201   : > { %v413_v20 = vpop.xlane.xlu1 %412 }
 0x202   : > { %1686 = vrcp.f32 %v413_v20  ;;  %v1055_v20 = vld [vmem:[%s1917_s3 + $0x10] sm:$0xff] }
 0x205   : > { %v410_v21 = vpop.xlane.xlu1 %409 }
 0x206   : > { %1688 = vrcp.f32 %v410_v21 }
 0x209   : > { %v507_v26 = vpop.permute.xlu1 %506 }
 0x20f   : > { %v1687_v22 = vpop.eup %1686 }
 0x210   : > { %v417_v25 = vmul.f32 %v1687_v22, %v1683_v13 }
 0x213   : > { %v1689_v23 = vpop.eup %1688 }
 0x214   : > { %v416_v24 = vmul.f32 %v1689_v23, %v1685_v15 }
 0x216   : > { %1618 = vmatprep.mubr.msk.f32.mxu1 %vm395_vm1, %v416_v24 }
 0x217   : > { %1619 = vmatmul.mubr.msk.f32.vlgmr.msra.gmra.mxu1 %vm395_vm1, %v417_v25 }
 0x218   : > { %1622 = vmatpush3.xpose.msk.msra.mxu1 %vm310_vm0, %v509_v18  ;;  %1623 = vmatprep.mubr.msk.f32.mxu1 %vm310_vm0, %v505_v19 }
 0x219   : > { %1631 = vmatprep.subr.mxu1 %v698_v45 }
 0x21b   : > { %1624 = vmatmul.mubr.msk.f32.vlgmr.msra.gmra.mxu1 %vm310_vm0, %v507_v26 }
 0x21c   : > { %1632 = vmatpush3.msra.mxu1 %v698_v45 }
 0x2d7   : > { %v1620_v27 = vpop.f32.mrf.mxu1 }
 0x2d9   : > { %v494_v28 = vpop.f32.mrf.mxu1 }
 0x2db   : > { %v1625_v29 = vpop.f32.mrf.mxu1 }
 0x2dc   : > { %v594_v30 = vsel %vm395_vm1, %v1625_v29, -inf }
 0x2dd   : > { %595 = vmax.xlane.f32.xlu0 %v594_v30  ;;  %v582_v31 = vpop.f32.mrf.mxu1 }
 0x2de   : > { %v591_v32 = vsel %vm395_vm1, %v582_v31, -inf }
 0x2df   : > { %592 = vmax.xlane.f32.xlu1 %v591_v32 }
 0x2f0   : > { %613 = vrot.lane.b32.xlu1 %v1810_v17, %s1722_s7 }
 0x2f4   : > { %861 = vrot.lane.b32.xlu1 %v1785_v1, %s1723_s15 }
 0x2f8   : > { %863 = vrot.lane.b32.xlu1 %v1793_v2, %s1723_s15 }
 0x366   : > { %v596_v33 = vpop.xlane.xlu0 %595 }
 0x367   : > { %v598_v34 = vsub.f32 %v1625_v29, %v596_v33 }
 0x368   : > { %v593_v35 = vpop.xlane.xlu1 %592 }
 0x369   : > { %v597_v36 = vsub.f32 %v582_v31, %v593_v35  ;;  %v601_v37 = vmul.f32 1.442695, %v598_v34 }
 0x36b   : > { %v599_v38 = vmul.f32 1.442695, %v597_v36 }
 0x36c   : > { %v614_v43 = vpop.permute.xlu1 %613 }
 0x36d   : > { %1690 = vpow2.f32 %v599_v38  ;;  %1626 = vmatprep.subr.msk.mxu0 %vm424_vm2, %v614_v43 }
 0x36e   : > { %1692 = vpow2.f32 %v601_v37  ;;  %1627 = vmatpush3.msk.msra.mxu0 %vm424_vm2, %v614_v43 }
 0x36f   : > { %1636 = vmatprep.subr.mxu0 %v503_v44 }
 0x370   : > { %v862_v53 = vpop.permute.xlu1 %861 }
 0x374   : > { %v864_v56 = vpop.permute.xlu1 %863 }
 0x37a   : > { %v1691_v39 = vpop.eup %1690 }
 0x37b   : > { %v603_v40 = vsel %vm395_vm1, %v1691_v39, 0.0  ;;  %v1693_v41 = vpop.eup %1692 }
 0x37c   : > { %604 = vadd.xlane.f32.xlu0 %v603_v40  ;;  %v606_v42 = vsel %vm395_vm1, %v1693_v41, 0.0  ;;  %v1333_v40 = vld [vmem:[%s1917_s3 + $0x18] sm:$0xff] }
 0x380   : > { %607 = vadd.xlane.f32.xlu0 %v606_v42 }
 0x396   : > { %865 = vrot.lane.b32.xlu0 %v1783_v0, %s1723_s15 }
 0x405   : > { %v605_v46 = vpop.xlane.xlu0 %604 }
 0x406   : > { %1694 = vrcp.f32 %v605_v46 }
 0x409   : > { %v608_v47 = vpop.xlane.xlu0 %607 }
 0x40a   : > { %1696 = vrcp.f32 %v608_v47 }
 0x40d   : > { %v866_v52 = vpop.permute.xlu0 %865 }
 0x40e   : > { %1641 = vmatprep.subr.msk.mxu1 %vm310_vm0, %v866_v52 }
 0x413   : > { %v1695_v48 = vpop.eup %1694 }
 0x414   : > { %v611_v49 = vmul.f32 %v1695_v48, %v1691_v39 }
 0x416   : > { %1628 = vmatprep.mubr.msk.f32.mxu0 %vm395_vm1, %v611_v49 }
 0x417   : > { %v1697_v50 = vpop.eup %1696 }
 0x418   : > { %v612_v51 = vmul.f32 %v1697_v50, %v1693_v41 }
 0x41a   : > { %1629 = vmatmul.mubr.msk.f32.vlgmr.msra.gmra.mxu0 %vm395_vm1, %v612_v51 }
 0x41b   : > { %1638 = vmatprep.mubr.msk.f32.mxu0 %vm310_vm0, %v494_v28  ;;  %1637 = vmatpush3.msra.mxu0 %v503_v44 }
 0x41e   : > { %1639 = vmatmul.mubr.msk.f32.vlgmr.msra.gmra.mxu0 %vm310_vm0, %v1620_v27 }
 0x4da   : > { %v1630_v54 = vpop.f32.mrf.mxu0 }
 0x4dc   : > { %v689_v55 = vpop.f32.mrf.mxu0 }
 0x4dd   : > { %1633 = vmatprep.mubr.msk.f32.mxu1 %vm310_vm0, %v689_v55 }
 0x4de   : > { %1634 = vmatmul.mubr.msk.f32.vlgmr.msra.gmra.mxu1 %vm310_vm0, %v1630_v54  ;;  %v1640_v21 = vpop.f32.mrf.mxu0  ;;  %v1569_v54 = vld [vmem:[%s1918_s4] ss:$0 sm:$0xff] }
 0x4df   : > { %1642 = vmatpush3.xpose.msk.msra.mxu1 %vm310_vm0, %v866_v52  ;;  %1643 = vmatprep.mubr.msk.f32.mxu1 %vm310_vm0, %v862_v53 }
 0x4e0   : > { %1651 = vmatprep.subr.mxu1 %v1055_v20  ;;  %v852_v22 = vpop.f32.mrf.mxu0 }
 0x4e2   : > { %1644 = vmatmul.mubr.msk.f32.vlgmr.msra.gmra.mxu1 %vm310_vm0, %v864_v56 }
 0x4e3   : > { %1652 = vmatpush3.msra.mxu1 %v1055_v20 }
 0x59e   : > { %v1854_v57 = vpop.f32.mrf.mxu1 }
 0x5a0   : > { %v1856_v58 = vpop.f32.mrf.mxu1 }
 0x5a1   : > { %v853_v52 = vadd.f32 %v852_v22, %v1856_v58  ;;  %v1426_v58 = vld [vmem:[%s300_s25] sm:$0xff] }
 0x5a2   : > { %v1645_v59 = vpop.f32.mrf.mxu1 }
 0x5a3   : > { %v951_v60 = vsel %vm395_vm1, %v1645_v59, -inf }
 0x5a4   : > { %952 = vmax.xlane.f32.xlu0 %v951_v60  ;;  %v939_v61 = vpop.f32.mrf.mxu1 }
 0x5a5   : > { %v948_v62 = vsel %vm395_vm1, %v939_v61, -inf }
 0x5a6   : > { %949 = vmax.xlane.f32.xlu1 %v948_v62 }
 0x5b7   : > { %970 = vrot.lane.b32.xlu1 %v1810_v17, %s1723_s15 }
 0x5bb   : > { %1139 = vrot.lane.b32.xlu1 %v1785_v1, %s1724_s16 }
 0x5bf   : > { %1141 = vrot.lane.b32.xlu1 %v1793_v2, %s1724_s16 }
 0x62d   : > { %v953_v63 = vpop.xlane.xlu0 %952 }
 0x62e   : > { %v955_v3 = vsub.f32 %v1645_v59, %v953_v63 }
 0x62f   : > { %v950_v4 = vpop.xlane.xlu1 %949 }
 0x630   : > { %v958_v5 = vmul.f32 1.442695, %v955_v3  ;;  %v954_v6 = vsub.f32 %v939_v61, %v950_v4 }
 0x632   : > { %1698 = vpow2.f32 %v958_v5  ;;  %v956_v7 = vmul.f32 1.442695, %v954_v6 }
 0x633   : > { %v971_v1 = vpop.permute.xlu1 %970 }
 0x634   : > { %1700 = vpow2.f32 %v956_v7  ;;  %1646 = vmatprep.subr.msk.mxu0 %vm424_vm2, %v971_v1 }
 0x635   : > { %1647 = vmatpush3.msk.msra.mxu0 %vm424_vm2, %v971_v1 }
 0x637   : > { %v1140_v15 = vpop.permute.xlu1 %1139 }
 0x63f   : > { %v1699_v8 = vpop.eup %1698 }
 0x640   : > { %v963_v9 = vsel %vm395_vm1, %v1699_v8, 0.0 }
 0x641   : > { %v1701_v10 = vpop.eup %1700  ;;  %964 = vadd.xlane.f32.xlu0 %v963_v9 }
 0x642   : > { %v960_v11 = vsel %vm395_vm1, %v1701_v10, 0.0 }
 0x645   : > { %961 = vadd.xlane.f32.xlu0 %v960_v11 }
 0x65b   : > { %1143 = vrot.lane.b32.xlu0 %v1783_v0, %s1724_s16  ;;  %v1142_v0 = vpop.permute.xlu1 %1141 }
 0x6ca   : > { %v965_v2 = vpop.xlane.xlu0 %964 }
 0x6cb   : > { %1702 = vrcp.f32 %v965_v2 }
 0x6ce   : > { %v962_v12 = vpop.xlane.xlu0 %961 }
 0x6cf   : > { %1704 = vrcp.f32 %v962_v12 }
 0x6d2   : > { %v1144_v13 = vpop.permute.xlu0 %1143 }
 0x6d3   : > { %1656 = vmatprep.subr.msk.mxu0 %vm310_vm0, %v1144_v13 }
 0x6d8   : > { %v1703_v14 = vpop.eup %1702 }
 0x6d9   : > { %v969_v19 = vmul.f32 %v1703_v14, %v1699_v8 }
 0x6dc   : > { %v1705_v16 = vpop.eup %1704 }
 0x6dd   : > { %v968_v18 = vmul.f32 %v1705_v16, %v1701_v10 }
 0x6df   : > { %1648 = vmatprep.mubr.msk.f32.mxu0 %vm395_vm1, %v968_v18 }
 0x6e0   : > { %1649 = vmatmul.mubr.msk.f32.vlgmr.msra.gmra.mxu0 %vm395_vm1, %v969_v19 }
 0x6e1   : > { %1657 = vmatpush3.xpose.msk.msra.mxu0 %vm310_vm0, %v1144_v13  ;;  %1658 = vmatprep.mubr.msk.f32.mxu0 %vm310_vm0, %v1140_v15 }
 0x6e2   : > { %1666 = vmatprep.subr.mxu0 %v1333_v40 }
 0x6e4   : > { %1659 = vmatmul.mubr.msk.f32.vlgmr.msra.gmra.mxu0 %vm310_vm0, %v1142_v0 }
 0x6e5   : > { %1667 = vmatpush3.msra.mxu0 %v1333_v40 }
 0x7a0   : > { %v1650_v23 = vpop.f32.mrf.mxu0 }
 0x7a2   : > { %v1046_v24 = vpop.f32.mrf.mxu0 }
 0x7a3   : > { %1653 = vmatprep.mubr.msk.f32.mxu1 %vm310_vm0, %v1046_v24 }
 0x7a4   : > { %1654 = vmatmul.mubr.msk.f32.vlgmr.msra.gmra.mxu1 %vm310_vm0, %v1650_v23  ;;  %v1660_v25 = vpop.f32.mrf.mxu0 }
 0x7a5   : > { %v1229_v26 = vsel %vm395_vm1, %v1660_v25, -inf }
 0x7a6   : > { %1230 = vmax.xlane.f32.xlu0 %v1229_v26  ;;  %v1217_v27 = vpop.f32.mrf.mxu0 }
 0x7a7   : > { %v1226_v28 = vsel %vm395_vm1, %v1217_v27, -inf }
 0x7a8   : > { %1227 = vmax.xlane.f32.xlu1 %v1226_v28 }
 0x7b9   : > { %1248 = vrot.lane.b32.xlu1 %v1810_v17, %s1724_s16  ;;  %v858_v17 = vadd.f32 %v1640_v21, %v1854_v57  ;;  %v1427_v57 = vld [vmem:[%s300_s25 + $0x8] sm:$0xff] }
 0x82f   : > { %v1231_v29 = vpop.xlane.xlu0 %1230 }
 0x830   : > { %v1233_v30 = vsub.f32 %v1660_v25, %v1231_v29 }
 0x831   : > { %v1228_v31 = vpop.xlane.xlu1 %1227 }
 0x832   : > { %v1232_v32 = vsub.f32 %v1217_v27, %v1228_v31  ;;  %v1236_v33 = vmul.f32 1.442695, %v1233_v30 }
 0x834   : > { %v1234_v34 = vmul.f32 1.442695, %v1232_v32 }
 0x835   : > { %v1249_v39 = vpop.permute.xlu1 %1248 }
 0x836   : > { %1706 = vpow2.f32 %v1234_v34  ;;  %1661 = vmatprep.subr.msk.mxu1 %vm424_vm2, %v1249_v39 }
 0x837   : > { %1708 = vpow2.f32 %v1236_v33  ;;  %1662 = vmatpush3.msk.msra.mxu1 %vm424_vm2, %v1249_v39 }
 0x843   : > { %v1707_v35 = vpop.eup %1706 }
 0x844   : > { %v1238_v36 = vsel %vm395_vm1, %v1707_v35, 0.0  ;;  %v1709_v37 = vpop.eup %1708 }
 0x845   : > { %1239 = vadd.xlane.f32.xlu0 %v1238_v36  ;;  %v1241_v38 = vsel %vm395_vm1, %v1709_v37, 0.0 }
 0x849   : > { %1242 = vadd.xlane.f32.xlu0 %v1241_v38 }
 0x864   : > { %v1655_v41 = vpop.f32.mrf.mxu1 }
 0x865   : > { %v1138_v42 = vadd.f32 %v1655_v41, %v858_v17 }
 0x866   : > { %v1128_v49 = vpop.f32.mrf.mxu1 }
 0x867   : > { %v1137_v55 = vadd.f32 %v1128_v49, %v853_v52 }
 0x8ce   : > { %v1240_v43 = vpop.xlane.xlu0 %1239 }
 0x8cf   : > { %1710 = vrcp.f32 %v1240_v43 }
 0x8d2   : > { %v1243_v44 = vpop.xlane.xlu0 %1242 }
 0x8d3   : > { %1712 = vrcp.f32 %v1243_v44 }
 0x8dc   : > { %v1711_v45 = vpop.eup %1710 }
 0x8dd   : > { %v1246_v46 = vmul.f32 %v1711_v45, %v1707_v35 }
 0x8df   : > { %1663 = vmatprep.mubr.msk.f32.mxu1 %vm395_vm1, %v1246_v46 }
 0x8e0   : > { %v1713_v47 = vpop.eup %1712 }
 0x8e1   : > { %v1247_v48 = vmul.f32 %v1713_v47, %v1709_v37 }
 0x8e3   : > { %1664 = vmatmul.mubr.msk.f32.vlgmr.msra.gmra.mxu1 %vm395_vm1, %v1247_v48 }
 0x9a3   : > { %v1665_v50 = vpop.f32.mrf.mxu1 }
 0x9a5   : > { %v1324_v51 = vpop.f32.mrf.mxu1 }
 0x9a6   : > { %1668 = vmatprep.mubr.msk.f32.mxu0 %vm310_vm0, %v1324_v51 }
 0x9a7   : > { %1669 = vmatmul.mubr.msk.f32.vlgmr.msra.gmra.mxu0 %vm310_vm0, %v1665_v50 }
 0xa67   : > { %v1670_v53 = vpop.f32.mrf.mxu0 }
 0xa68   : > { %v1416_v56 = vadd.f32 %v1670_v53, %v1138_v42 }
 0xa69   : > { %v1406_v59 = vpop.f32.mrf.mxu0 }
 0xa6a   : > { %v1425_v60 = vadd.f32 %v1569_v54, %v1416_v56  ;;  %v1415_v61 = vadd.f32 %v1406_v59, %v1137_v55 }
 0xa6c   : > { %v1429_v62 = vadd.f32 %v1427_v57, %v1425_v60  ;;  %v1424_v63 = vadd.f32 %v1569_v54, %v1415_v61 }
 0xa6e   : > { %1432 = vst.msk [vmem:[%s305_s30 + $0x8] sm:$0xff] %vm1430_vm3, %v1429_v62  ;;  %v1428_v3 = vadd.f32 %v1426_v58, %v1424_v63 }
 0xa70   : > { %1431 = vst.msk [vmem:[%s305_s30] sm:$0xff] %vm1430_vm3, %v1428_v3 }
 0xa71 PF: > { %s16_s21 = sadd.s32 1, %s1720_s21  }
 0xa72   : > { %p13_p4 = scmp.ge.s32.totalorder %s16_s21, 4  }
 0xa74   :  { %15 = sbr.rel (!%p13_p4) target bundleno = 1 (0x1), region = 83 }

// kernel: _lambda_.31
= control target key start
LH: loop header
LB: loop body
LE: loop exit
PB: predicated region body
PF: predicated region fallthrough
CT: control target
= control target key end

     0   :  { %vm21_vm0 = vcmask 261120   ;;  %s206_s0 = inlined_call_operand.vmem [shape: f32[32,32], index: 0, kind: input, shape index: {}]   ;;  %s207_s1 = inlined_call_operand.vmem [shape: f32[1,32], index: 1, kind: input, shape index: {}]   ;;  %s208_s2 = inlined_call_operand.vmem [shape: f32[1,32], index: 2, kind: input, shape index: {}]   ;;  %s209_s3 = inlined_call_operand.hbm [shape: f32[32,32], index: 3, kind: output, shape index: {}]  }
   0x1   :  { %v15_v0 = vld [vmem:[%s206_s0] sm:$0xff]  ;;  %v17_v1 = vld [vmem:[%s206_s0 + $0x10] sm:$0xff]  ;;  %v16_v2 = vld [vmem:[%s206_s0 + $0x8] sm:$0xff] }
   0x2   :  { %v22_v3 = vsel %vm21_vm0, %v15_v0, 0.0  ;;  %v28_v4 = vsel %vm21_vm0, %v17_v1, 0.0  ;;  %v18_v5 = vld [vmem:[%s206_s0 + $0x18] sm:$0xff] }
   0x3   :  { %8 = vsyncpa [#allocation3], 0  ;;  %23 = vadd.xlane.f32.xlu0 %v22_v3  ;;  %29 = vadd.xlane.f32.xlu1 %v28_v4  ;;  %v25_v6 = vsel %vm21_vm0, %v16_v2, 0.0  ;;  %v31_v7 = vsel %vm21_vm0, %v18_v5, 0.0  ;;  %v115_v41 = vld [vmem:[%s207_s1] ss:$0 sm:$0xff] }
   0x4   :  { %v116_v43 = vld [vmem:[%s208_s2] ss:$0 sm:$0xff]  ;;  %s150_s1 = smov [#allocation2]  }
   0x5   :  { %s104_s23 = sshll.u32 %s150_s1, 4  ;;  %s105_s23 = int_to_ptr.vmem [resolvable:$true] %s104_s23 }
   0x6   :  { %s128_s2 = scalar_lea.vmem %s105_s23, 512  ;;  %p133_p1 = scmp.lt.s32.totalorder %s105_s23, %s105_s23 }
   0x7   :  { %26 = vadd.xlane.f32.xlu0 %v25_v6  ;;  %32 = vadd.xlane.f32.xlu1 %v31_v7  ;;  %p129_p0 = scmp.ne.s32.totalorder %s105_s23, %s128_s2  ;;  %p134_p2 = scmp.lt.s32.totalorder %s128_s2, %s128_s2 }
   0x9   :  { %p135_p3 = por %p134_p2, %p133_p1 }
   0xb   :  { %p136_p4 = pnand %p135_p3, %p129_p0 }
  0x8c   :  { %v24_v8 = vpop.xlane.xlu0 %23  ;;  %v30_v9 = vpop.xlane.xlu1 %29 }
  0x8d   :  { %v35_v10 = vmul.f32 0.03125, %v24_v8  ;;  %v37_v11 = vmul.f32 0.03125, %v30_v9 }
  0x8f   :  { %v39_v12 = vsub.f32 %v15_v0, %v35_v10  ;;  %v41_v13 = vsub.f32 %v17_v1, %v37_v11 }
  0x90   :  { %v27_v14 = vpop.xlane.xlu0 %26  ;;  %v33_v15 = vpop.xlane.xlu1 %32 }
  0x91   :  { %v36_v16 = vmul.f32 0.03125, %v27_v14  ;;  %v38_v17 = vmul.f32 0.03125, %v33_v15  ;;  %v43_v18 = vmul.f32 %v39_v12, %v39_v12  ;;  %v45_v19 = vmul.f32 %v41_v13, %v41_v13 }
  0x93   :  { %v40_v20 = vsub.f32 %v16_v2, %v36_v16  ;;  %v42_v21 = vsub.f32 %v18_v5, %v38_v17  ;;  %v47_v22 = vsel %vm21_vm0, %v43_v18, 0.0  ;;  %v53_v23 = vsel %vm21_vm0, %v45_v19, 0.0 }
  0x94   :  { %48 = vadd.xlane.f32.xlu0 %v47_v22 }
  0x95   :  { %v44_v24 = vmul.f32 %v40_v20, %v40_v20  ;;  %v46_v25 = vmul.f32 %v42_v21, %v42_v21 }
  0x97   :  { %v50_v26 = vsel %vm21_vm0, %v44_v24, 0.0  ;;  %v56_v27 = vsel %vm21_vm0, %v46_v25, 0.0 }
  0x98   :  { %54 = vadd.xlane.f32.xlu0 %v53_v23  ;;  %51 = vadd.xlane.f32.xlu1 %v50_v26 }
  0x9c   :  { %57 = vadd.xlane.f32.xlu1 %v56_v27 }
 0x11d   :  { %v49_v28 = vpop.xlane.xlu0 %48 }
 0x11e   :  { %v59_v29 = vmul.f32 0.03125, %v49_v28 }
 0x120   :  { %v63_v30 = vadd.f32 1e-05, %v59_v29 }
 0x121   :  { %v52_v31 = vpop.xlane.xlu1 %51  ;;  %v55_v32 = vpop.xlane.xlu0 %54 }
 0x122   :  { %120 = vrsqrt.f32 %v63_v30  ;;  %v60_v33 = vmul.f32 0.03125, %v52_v31  ;;  %v61_v34 = vmul.f32 0.03125, %v55_v32 }
 0x124   :  { %v64_v35 = vadd.f32 1e-05, %v60_v33  ;;  %v65_v36 = vadd.f32 1e-05, %v61_v34 }
 0x125   :  { %v58_v37 = vpop.xlane.xlu1 %57 }
 0x126   :  { %122 = vrsqrt.f32 %v64_v35  ;;  %v62_v38 = vmul.f32 0.03125, %v58_v37 }
 0x127   :  { %124 = vrsqrt.f32 %v65_v36 }
 0x128   :  { %v66_v39 = vadd.f32 1e-05, %v62_v38 }
 0x12a   :  { %126 = vrsqrt.f32 %v66_v39 }
 0x12f   :  { %v121_v40 = vpop.eup %120 }
 0x130   :  { %v71_v42 = vmul.f32 %v121_v40, %v39_v12 }
 0x132   :  { %v81_v44 = vmul.f32 %v115_v41, %v71_v42 }
 0x133   :  { %v123_v45 = vpop.eup %122 }
 0x134   :  { %v125_v46 = vpop.eup %124  ;;  %v72_v47 = vmul.f32 %v123_v45, %v40_v20  ;;  %v91_v48 = vadd.f32 %v116_v43, %v81_v44 }
 0x135   :  { %v73_v49 = vmul.f32 %v125_v46, %v41_v13 }
 0x136   :  { %v82_v50 = vmul.f32 %v115_v41, %v72_v47  ;;  %95 = vst.msk [vmem:[#allocation2] sm:$0xff] %vm21_vm0, %v91_v48 }
 0x137   :  { %v127_v51 = vpop.eup %126  ;;  %v83_v52 = vmul.f32 %v115_v41, %v73_v49 }
 0x138   :  { %v74_v53 = vmul.f32 %v127_v51, %v42_v21  ;;  %v92_v54 = vadd.f32 %v116_v43, %v82_v50 }
 0x139   :  { %v93_v55 = vadd.f32 %v116_v43, %v83_v52 }
 0x13a   :  { %v84_v56 = vmul.f32 %v115_v41, %v74_v53  ;;  %96 = vst.msk [vmem:[#allocation2 + $0x8] sm:$0xff] %vm21_vm0, %v92_v54 }
 0x13b   :  { %97 = vst.msk [vmem:[#allocation2 + $0x10] sm:$0xff] %vm21_vm0, %v93_v55 }
 0x13c   :  { %v94_v57 = vadd.f32 %v116_v43, %v84_v56 }
 0x13e   :  { %98 = vst.msk [vmem:[#allocation2 + $0x18] sm:$0xff] %vm21_vm0, %v94_v57 }
 0x13f   :  { %139 = shalt.err (!%p136_p4)
}
 0x140   :  { %s151_s24 = smov 128   ;;  %s152_s25 = smov 8  }
 0x141   :  { %110 = dma.vmem_to_hbm [thread:$0]  %s105_s23, 512, %s209_s3, [#allocation3], %s151_s24, %s151_s24, %s152_s25  }
 0x142   :  { %148 = dma.done.wait [#allocation3], 512  }
 0x143   :  { %149 = vsyncadd [#allocation3], 4294966784 }
 0x144   :  { %114 = vsyncpa [#allocation3], 1 }

// kernel: _lambda_.30
= control target key start
LH: loop header
LB: loop body
LE: loop exit
PB: predicated region body
PF: predicated region fallthrough
CT: control target
= control target key end

     0   :  { %vm552_vm2 = vcmask 261120   ;;  %s1462_s3 = inlined_call_operand.vmem [shape: f32[2,32,32], index: 3, kind: input, shape index: {}]   ;;  %s1463_s0 = inlined_call_operand.vmem [shape: f32[9,32,32], index: 0, kind: input, shape index: {}]   ;;  %s1464_s1 = inlined_call_operand.vmem [shape: f32[9,2,32], index: 1, kind: input, shape index: {}]   ;;  %s1465_s2 = inlined_call_operand.vmem [shape: f32[2,32], index: 2, kind: input, shape index: {}]   ;;  %s1466_s4 = inlined_call_operand.vmem [shape: f32[1,32], index: 4, kind: input, shape index: {}]   ;;  %s1467_s5 = inlined_call_operand.vmem [shape: f32[32,32], index: 5, kind: input, shape index: {}]   ;;  %s1468_s6 = inlined_call_operand.vmem [shape: f32[32,32], index: 6, kind: output, shape index: {}]  }
   0x1   :  { %v845_v0 = vld [vmem:[%s1462_s3 + $0x38] sm:$0xff]  ;;  %v844_v2 = vld [vmem:[%s1462_s3 + $0x30] sm:$0xff]  ;;  %v843_v4 = vld [vmem:[%s1462_s3 + $0x28] sm:$0xff] }
   0x2   :  { %v312_v1 = vld [vmem:[%s1462_s3 + $0x18] sm:$0xff]  ;;  %871 = vmatprep.subr.mxu0 %v845_v0  ;;  %v311_v3 = vld [vmem:[%s1462_s3 + $0x10] sm:$0xff]  ;;  %v310_v5 = vld [vmem:[%s1462_s3 + $0x8] sm:$0xff] }
   0x3   :  { %885 = vmatprep.subr.mxu1 %v312_v1  ;;  %872 = vmatpush3.msra.mxu0 %v845_v0  ;;  %v842_v6 = vld [vmem:[%s1462_s3 + $0x20] sm:$0xff]  ;;  %v1045_v24 = vld [vmem:[%s1464_s1 + $0x9] ss:$0 sm:$0xff]  ;;  %v1050_v25 = vld [vmem:[%s1464_s1 + $0xb] ss:$0 sm:$0xff] }
   0x4   :  { %886 = vmatpush3.msra.mxu1 %v312_v1  ;;  %873 = vmatprep.subr.mxu0 %v844_v2  ;;  %v23_v7 = vld [vmem:[%s1463_s0] sm:$0xff]  ;;  %v1055_v26 = vld [vmem:[%s1464_s1 + $0xd] ss:$0 sm:$0xff]  ;;  %v1060_v27 = vld [vmem:[%s1464_s1 + $0xf] ss:$0 sm:$0xff] }
   0x5   :  { %887 = vmatprep.subr.mxu1 %v311_v3  ;;  %874 = vmatpush3.msra.mxu0 %v844_v2  ;;  %v309_v8 = vld [vmem:[%s1462_s3] sm:$0xff]  ;;  %v1065_v28 = vld [vmem:[%s1464_s1 + $0x11] ss:$0 sm:$0xff]  ;;  %v1094_v38 = vld [vmem:[%s1464_s1 + $0x8] ss:$0 sm:$0xff] }
   0x6   :  { %888 = vmatpush3.msra.mxu1 %v311_v3  ;;  %v775_v9 = vld [vmem:[%s1463_s0 + $0x20] sm:$0xff]  ;;  %875 = vmatprep.subr.mxu0 %v843_v4  ;;  %v1102_v43 = vld [vmem:[%s1464_s1 + $0xa] ss:$0 sm:$0xff]  ;;  %v1107_v44 = vld [vmem:[%s1464_s1 + $0xc] ss:$0 sm:$0xff] }
   0x7   :  { %v781_v10 = vld [vmem:[%s1463_s0 + $0x40] sm:$0xff]  ;;  %889 = vmatprep.subr.mxu1 %v310_v5  ;;  %876 = vmatpush3.msra.mxu0 %v843_v4  ;;  %v1115_v49 = vld [vmem:[%s1464_s1 + $0xe] ss:$0 sm:$0xff]  ;;  %v1127_v54 = vld [vmem:[%s1464_s1 + $0x10] ss:$0 sm:$0xff] }
   0x8   :  { %v787_v11 = vld [vmem:[%s1463_s0 + $0x60] sm:$0xff]  ;;  %890 = vmatpush3.msra.mxu1 %v310_v5  ;;  %877 = vmatprep.subr.mxu0 %v842_v6  ;;  %v24_v50 = vld [vmem:[%s1463_s0 + $0x8] sm:$0xff] }
   0x9   :  { %v1007_v12 = vld [vmem:[%s1464_s1 + $0x1] ss:$0 sm:$0xff]  ;;  %v1022_v17 = vld [vmem:[%s1464_s1 + $0x3] ss:$0 sm:$0xff]  ;;  %v1027_v18 = vld [vmem:[%s1464_s1 + $0x5] ss:$0 sm:$0xff]  ;;  %891 = vmatprep.subr.mxu1 %v309_v8  ;;  %878 = vmatpush3.msra.mxu0 %v842_v6 }
   0xa   :  { %v793_v13 = vld [vmem:[%s1463_s0 + $0x80] sm:$0xff]  ;;  %v318_v16 = vmul.f32 %v1007_v12, %v23_v7  ;;  %v331_v22 = vmul.f32 %v1022_v17, %v775_v9  ;;  %v344_v23 = vmul.f32 %v1027_v18, %v781_v10  ;;  %892 = vmatpush3.msra.mxu1 %v309_v8  ;;  %v776_v51 = vld [vmem:[%s1463_s0 + $0x28] sm:$0xff]  ;;  %v319_v57 = vmul.f32 %v1007_v12, %v24_v50 }
   0xb   :  { %v799_v14 = vld [vmem:[%s1463_s0 + $0xa0] sm:$0xff]  ;;  %v370_v40 = vmul.f32 %v1045_v24, %v793_v13  ;;  %v108_v53 = vmul.f32 %v1094_v38, %v793_v13  ;;  %v782_v55 = vld [vmem:[%s1463_s0 + $0x48] sm:$0xff]  ;;  %v332_v58 = vmul.f32 %v1022_v17, %v776_v51 }
   0xc   :  { %v805_v15 = vld [vmem:[%s1463_s0 + $0xc0] sm:$0xff]  ;;  %v335_v29 = vadd.f32 %v331_v22, %v318_v16  ;;  %v383_v41 = vmul.f32 %v1050_v25, %v799_v14  ;;  %v788_v56 = vld [vmem:[%s1463_s0 + $0x68] sm:$0xff]  ;;  %v127_v60 = vmul.f32 %v1102_v43, %v799_v14  ;;  %v345_v62 = vmul.f32 %v1027_v18, %v782_v55  ;;  %v25_v16 = vld [vmem:[%s1463_s0 + $0x10] sm:$0xff] }
   0xd   :  { %v1032_v19 = vld [vmem:[%s1464_s1 + $0x7] ss:$0 sm:$0xff]  ;;  %v1071_v31 = vld [vmem:[%s1464_s1] ss:$0 sm:$0xff]  ;;  %v1076_v32 = vld [vmem:[%s1464_s1 + $0x2] ss:$0 sm:$0xff]  ;;  %v396_v42 = vmul.f32 %v1055_v26, %v805_v15  ;;  %v146_v1 = vmul.f32 %v1107_v44, %v805_v15  ;;  %v336_v3 = vadd.f32 %v332_v58, %v319_v57 }
   0xe   :  { %v811_v20 = vld [vmem:[%s1463_s0 + $0xe0] sm:$0xff]  ;;  %v357_v30 = vmul.f32 %v1032_v19, %v787_v11  ;;  %v32_v34 = vmul.f32 %v1071_v31, %v23_v7  ;;  %v51_v35 = vmul.f32 %v1076_v32, %v775_v9  ;;  %v348_v39 = vadd.f32 %v344_v23, %v335_v29  ;;  %v794_v61 = vld [vmem:[%s1463_s0 + $0x88] sm:$0xff]  ;;  %v777_v29 = vld [vmem:[%s1463_s0 + $0x30] sm:$0xff] }
   0xf   :  { %v817_v21 = vld [vmem:[%s1463_s0 + $0x100] sm:$0xff]  ;;  %v409_v45 = vmul.f32 %v1060_v27, %v811_v20  ;;  %v33_v63 = vmul.f32 %v1071_v31, %v24_v50  ;;  %v800_v2 = vld [vmem:[%s1463_s0 + $0xa8] sm:$0xff]  ;;  %v358_v4 = vmul.f32 %v1032_v19, %v788_v56  ;;  %v165_v6 = vmul.f32 %v1115_v49, %v811_v20  ;;  %v789_v50 = vld [vmem:[%s1463_s0 + $0x70] sm:$0xff] }
  0x10   :  { %v1081_v33 = vld [vmem:[%s1464_s1 + $0x4] ss:$0 sm:$0xff]  ;;  %v1089_v37 = vld [vmem:[%s1464_s1 + $0x6] ss:$0 sm:$0xff]  ;;  %v422_v46 = vmul.f32 %v1065_v28, %v817_v21  ;;  %v55_v47 = vadd.f32 %v51_v35, %v32_v34  ;;  %v361_v52 = vadd.f32 %v357_v30, %v348_v39  ;;  %v184_v7 = vmul.f32 %v1127_v54, %v817_v21  ;;  %v806_v8 = vld [vmem:[%s1463_s0 + $0xc8] sm:$0xff] }
  0x11   :  { %v70_v36 = vmul.f32 %v1081_v33, %v781_v10  ;;  %v89_v48 = vmul.f32 %v1089_v37, %v787_v11  ;;  %v812_v9 = vld [vmem:[%s1463_s0 + $0xe8] sm:$0xff]  ;;  %v52_v10 = vmul.f32 %v1076_v32, %v776_v51  ;;  %v349_v13 = vadd.f32 %v345_v62, %v336_v3  ;;  %v783_v30 = vld [vmem:[%s1463_s0 + $0x50] sm:$0xff] }
  0x12   :  { %v374_v0 = vadd.f32 %v370_v40, %v361_v52  ;;  %v371_v14 = vmul.f32 %v1045_v24, %v794_v61  ;;  %v71_v15 = vmul.f32 %v1081_v33, %v782_v55  ;;  %v384_v21 = vmul.f32 %v1050_v25, %v800_v2  ;;  %v818_v35 = vld [vmem:[%s1463_s0 + $0x108] sm:$0xff] }
  0x13   :  { %v74_v59 = vadd.f32 %v70_v36, %v55_v47  ;;  %v56_v22 = vadd.f32 %v52_v10, %v33_v63  ;;  %v90_v23 = vmul.f32 %v1089_v37, %v788_v56  ;;  %v362_v36 = vadd.f32 %v358_v4, %v349_v13  ;;  %v1185_v56 = vld [vmem:[%s1465_s2 + $0x1] ss:$0 sm:$0xff] }
  0x14   :  { %v387_v11 = vadd.f32 %v383_v41, %v374_v0  ;;  %v397_v39 = vmul.f32 %v1055_v26, %v806_v8  ;;  %v410_v40 = vmul.f32 %v1060_v27, %v812_v9  ;;  %v320_v51 = vmul.f32 %v1007_v12, %v25_v16 }
  0x15   :  { %v93_v5 = vadd.f32 %v89_v48, %v74_v59  ;;  %v75_v47 = vadd.f32 %v71_v15, %v56_v22  ;;  %v109_v48 = vmul.f32 %v1094_v38, %v794_v61  ;;  %v375_v52 = vadd.f32 %v371_v14, %v362_v36  ;;  %v1217_v22 = vld [vmem:[%s1463_s0 + $0xd0] sm:$0xff] }
  0x16   :  { %v400_v34 = vadd.f32 %v396_v42, %v387_v11  ;;  %v346_v55 = vmul.f32 %v1027_v18, %v783_v30  ;;  %v423_v58 = vmul.f32 %v1065_v28, %v818_v35  ;;  %v359_v0 = vmul.f32 %v1032_v19, %v789_v50 }
  0x17   :  { %v112_v20 = vadd.f32 %v108_v53, %v93_v5  ;;  %v333_v53 = vmul.f32 %v1022_v17, %v777_v29  ;;  %v94_v59 = vadd.f32 %v90_v23, %v75_v47  ;;  %v388_v62 = vadd.f32 %v384_v21, %v375_v52 }
  0x18   :  { %v413_v42 = vadd.f32 %v409_v45, %v400_v34  ;;  %v1192_v45 = vld [vmem:[%s1463_s0 + $0x90] sm:$0xff]  ;;  %v147_v5 = vmul.f32 %v1107_v44, %v806_v8  ;;  %v53_v15 = vmul.f32 %v1076_v32, %v777_v29 }
  0x19   :  { %v131_v41 = vadd.f32 %v127_v60, %v112_v20  ;;  %v128_v60 = vmul.f32 %v1102_v43, %v800_v2  ;;  %v337_v63 = vadd.f32 %v333_v53, %v320_v51  ;;  %v113_v4 = vadd.f32 %v109_v48, %v94_v59  ;;  %v1200_v2 = vld [vmem:[%s1463_s0 + $0xb0] sm:$0xff] }
  0x1a   :  { %v426_v61 = vadd.f32 %v422_v46, %v413_v42  ;;  %v1206_v46 = vld [vmem:[%s1465_s2] ss:$0 sm:$0xff]  ;;  %v401_v11 = vadd.f32 %v397_v39, %v388_v62  ;;  %v385_v34 = vmul.f32 %v1050_v25, %v1200_v2  ;;  %v813_v48 = vld [vmem:[%s1463_s0 + $0xf0] sm:$0xff]  ;;  %v398_v51 = vmul.f32 %v1055_v26, %v1217_v22 }
  0x1b   :  { %v150_v57 = vadd.f32 %v146_v1, %v131_v41  ;;  %v166_v1 = vmul.f32 %v1115_v49, %v812_v9  ;;  %v350_v13 = vadd.f32 %v346_v55, %v337_v63  ;;  %v132_v14 = vadd.f32 %v128_v60, %v113_v4 }
  0x1c   :  { %v435_v10 = vadd.f32 %v1185_v56, %v426_v61  ;;  %v34_v9 = vmul.f32 %v1071_v31, %v25_v16  ;;  %v414_v21 = vadd.f32 %v410_v40, %v401_v11  ;;  %v185_v16 = vmul.f32 %v1127_v54, %v818_v35 }
  0x1d   :  { %v169_v3 = vadd.f32 %v165_v6, %v150_v57  ;;  %v372_v6 = vmul.f32 %v1045_v24, %v1192_v45  ;;  %v363_v23 = vadd.f32 %v359_v0, %v350_v13  ;;  %v72_v55 = vmul.f32 %v1081_v33, %v783_v30 }
  0x1e   :  { %v1212_v20 = vmul.f32 0.70710677, %v435_v10  ;;  %v427_v39 = vadd.f32 %v423_v58, %v414_v21  ;;  %v57_v42 = vadd.f32 %v53_v15, %v34_v9  ;;  %v411_v60 = vmul.f32 %v1060_v27, %v813_v48 }
  0x1f   :  { %v188_v8 = vadd.f32 %v184_v7, %v169_v3  ;;  %v151_v7 = vadd.f32 %v147_v5, %v132_v14  ;;  %v376_v41 = vadd.f32 %v372_v6, %v363_v23  ;;  %v819_v3 = vld [vmem:[%s1463_s0 + $0x110] sm:$0xff]  ;;  %v91_v5 = vmul.f32 %v1089_v37, %v789_v50 }
  0x20   :  { %v455_v29 = vand.u32 2147483647, %v1212_v20  ;;  %v1235_v53 = vadd.f32 %v1185_v56, %v427_v39  ;;  %v76_v4 = vadd.f32 %v72_v55, %v57_v42  ;;  %vm447_vm0 = vcmp.ge.f32.partialorder %v1212_v20, 0.0 }
  0x21   :  { %v1222_v36 = vadd.f32 %v1206_v46, %v188_v8  ;;  %v170_v47 = vadd.f32 %v166_v1, %v151_v7  ;;  %v389_v35 = vadd.f32 %v385_v34, %v376_v41  ;;  %v424_v8 = vmul.f32 %v1065_v28, %v819_v3 }
  0x22   :  { %v459_v52 = vmul.f32 0.3275911, %v455_v29  ;;  %v511_v61 = vsub.f32 0.0, %v455_v29  ;;  %v1241_v63 = vmul.f32 0.70710677, %v1235_v53  ;;  %v95_v34 = vadd.f32 %v91_v5, %v76_v4 }
  0x23   :  { %v1227_v40 = vmul.f32 0.70710677, %v1222_v36  ;;  %v189_v58 = vadd.f32 %v185_v16, %v170_v47  ;;  %v402_v30 = vadd.f32 %v398_v51, %v389_v35  ;;  %v110_v47 = vmul.f32 %v1094_v38, %v1192_v45  ;;  %v778_v45 = vld [vmem:[%s1463_s0 + $0x38] sm:$0xff] }
  0x24   :  { %v463_v59 = vadd.f32 1.0, %v459_v52  ;;  %v456_v13 = vand.u32 2147483647, %v1241_v63  ;;  %v515_v14 = vmul.f32 %v511_v61, %v455_v29  ;;  %v26_v29 = vld [vmem:[%s1463_s0 + $0x18] sm:$0xff]  ;;  %v1262_v51 = vmul.f32 0.5, %v435_v10 }
  0x25   :  { %v217_v57 = vand.u32 2147483647, %v1227_v40  ;;  %v1244_v0 = vadd.f32 %v1206_v46, %v189_v58  ;;  %v415_v23 = vadd.f32 %v411_v60, %v402_v30  ;;  %v129_v52 = vmul.f32 %v1102_v43, %v1200_v2  ;;  %v784_v10 = vld [vmem:[%s1463_s0 + $0x58] sm:$0xff] }
  0x26   :  { %900 = vrcp.f32 %v463_v59  ;;  %v460_v9 = vmul.f32 0.3275911, %v456_v13  ;;  %v512_v15 = vsub.f32 0.0, %v456_v13  ;;  %v519_v42 = vmul.f32 1.442695, %v515_v14  ;;  %v790_v61 = vld [vmem:[%s1463_s0 + $0x78] sm:$0xff] }
  0x27   :  { %v221_v62 = vmul.f32 0.3275911, %v217_v57  ;;  %v273_v11 = vsub.f32 0.0, %v217_v57  ;;  %v1252_v6 = vmul.f32 0.70710677, %v1244_v0  ;;  %v428_v41 = vadd.f32 %v424_v8, %v415_v23  ;;  %v796_v14 = vld [vmem:[%s1463_s0 + $0x98] sm:$0xff] }
  0x28   :  { %v464_v7 = vadd.f32 1.0, %v460_v9  ;;  %v516_v16 = vmul.f32 %v512_v15, %v456_v13  ;;  %v114_v58 = vadd.f32 %v110_v47, %v95_v34  ;;  %v932_v59 = vmov -1.0  }
  0x29   :  { %v225_v1 = vadd.f32 1.0, %v221_v62  ;;  %v218_v21 = vand.u32 2147483647, %v1252_v6  ;;  %v277_v50 = vmul.f32 %v273_v11, %v217_v57  ;;  %v1267_v57 = vadd.f32 %v1185_v56, %v428_v41 }
  0x2a   :  { %v1278_v60 = vsel %vm447_vm0, 1.0, %v932_v59  ;;  %vm209_vm1 = vcmp.ge.f32.partialorder %v1227_v40, 0.0  ;;  %v148_v2 = vmul.f32 %v1107_v44, %v1217_v22  ;;  %v321_v62 = vmul.f32 %v1007_v12, %v26_v29 }
  0x2b   :  { %902 = vrcp.f32 %v225_v1  ;;  %v222_v39 = vmul.f32 0.3275911, %v218_v21  ;;  %v274_v55 = vsub.f32 0.0, %v218_v21  ;;  %v281_v30 = vmul.f32 1.442695, %v277_v50  ;;  %v802_v50 = vld [vmem:[%s1463_s0 + $0xb8] sm:$0xff] }
  0x2c   :  { %904 = vrcp.f32 %v464_v7  ;;  %v521_v4 = vmul.f32 1.442695, %v516_v16  ;;  %v1288_v5 = vmul.f32 0.70710677, %v1267_v57  ;;  %v133_v20 = vadd.f32 %v129_v52, %v114_v58  ;;  %v808_v52 = vld [vmem:[%s1463_s0 + $0xd8] sm:$0xff] }
  0x2d   :  { %v226_v35 = vadd.f32 1.0, %v222_v39  ;;  %v167_v1 = vmul.f32 %v1115_v49, %v813_v48  ;;  %v334_v11 = vmul.f32 %v1022_v17, %v778_v45  ;;  %v347_v13 = vmul.f32 %v1027_v18, %v784_v10 }
  0x2e   :  { %v1294_v22 = vmul.f32 0.5, %v1222_v36  ;;  %v278_v8 = vmul.f32 %v274_v55, %v218_v21  ;;  %v457_v12 = vand.u32 2147483647, %v1288_v5  ;;  %v152_v15 = vadd.f32 %v148_v2, %v133_v20 }
  0x2f   :  { %906 = vrcp.f32 %v226_v35  ;;  %v186_v48 = vmul.f32 %v1127_v54, %v819_v3  ;;  %v338_v23 = vadd.f32 %v334_v11, %v321_v62  ;;  %v360_v17 = vmul.f32 %v1032_v19, %v790_v61 }
  0x30   :  { %908 = vpow2.f32 %v519_v42  ;;  %v1308_v36 = vsel %vm209_vm1, 1.0, %v932_v59  ;;  %v461_v21 = vmul.f32 0.3275911, %v457_v12  ;;  %v171_v34 = vadd.f32 %v167_v1, %v152_v15 }
  0x31   :  { %910 = vpow2.f32 %v281_v30  ;;  %v351_v7 = vadd.f32 %v347_v13, %v338_v23  ;;  %v373_v3 = vmul.f32 %v1045_v24, %v796_v14  ;;  %v283_v39 = vmul.f32 1.442695, %v278_v8 }
  0x32   :  { %912 = vpow2.f32 %v521_v4  ;;  %v465_v41 = vadd.f32 1.0, %v461_v21  ;;  %v35_v40 = vmul.f32 %v1071_v31, %v26_v29  ;;  %v190_v42 = vadd.f32 %v186_v48, %v171_v34  ;;  %v1331_v29 = vld [vmem:[%s1463_s0 + $0xf8] sm:$0xff] }
  0x33   :  { %v1300_v9 = vpop.eup %900  ;;  %v364_v35 = vadd.f32 %v360_v17, %v351_v7  ;;  %v54_v55 = vmul.f32 %v1076_v32, %v778_v45  ;;  %v386_v24 = vmul.f32 %v1050_v25, %v802_v50  ;;  %v73_v2 = vmul.f32 %v1081_v33, %v784_v10  ;;  %v1338_v25 = vld [vmem:[%s1463_s0 + $0x118] sm:$0xff] }
  0x34   :  { %v475_v18 = vmul.f32 1.0614054, %v1300_v9  ;;  %914 = vrcp.f32 %v465_v41  ;;  %v1326_v31 = vadd.f32 %v1206_v46, %v190_v42  ;;  %v513_v45 = vsub.f32 0.0, %v457_v12 }
  0x35   :  { %v377_v30 = vadd.f32 %v373_v3, %v364_v35  ;;  %v58_v4 = vadd.f32 %v54_v55, %v35_v40  ;;  %916 = vpow2.f32 %v283_v39  ;;  %v399_v33 = vmul.f32 %v1055_v26, %v808_v52 }
  0x36   :  { %v479_v19 = vadd.f32 -1.4531521, %v475_v18  ;;  %v1344_v11 = vmul.f32 0.70710677, %v1326_v31  ;;  %v92_v13 = vmul.f32 %v1089_v37, %v790_v61  ;;  %v412_v48 = vmul.f32 %v1060_v27, %v1331_v29 }
  0x37   :  { %v390_v15 = vadd.f32 %v386_v24, %v377_v30  ;;  %v77_v23 = vadd.f32 %v73_v2, %v58_v4  ;;  %v425_v21 = vmul.f32 %v1065_v28, %v1338_v25  ;;  %v111_v34 = vmul.f32 %v1094_v38, %v796_v14 }
  0x38   :  { %v1314_v16 = vpop.eup %902  ;;  %v483_v58 = vmul.f32 %v1300_v9, %v479_v19  ;;  %v517_v37 = vmul.f32 %v513_v45, %v457_v12  ;;  %v219_v41 = vand.u32 2147483647, %v1344_v11  ;;  %v130_v28 = vmul.f32 %v1102_v43, %v802_v50 }
  0x39   :  { %v237_v47 = vmul.f32 1.0614054, %v1314_v16  ;;  %v1333_v20 = vpop.eup %904  ;;  %v403_v61 = vadd.f32 %v399_v33, %v390_v15  ;;  %v96_v40 = vadd.f32 %v92_v13, %v77_v23  ;;  %vm448_vm3 = vcmp.ge.f32.partialorder %v1241_v63, 0.0 }
  0x3a   :  { %v487_v32 = vadd.f32 1.4214138, %v483_v58  ;;  %v476_v1 = vmul.f32 1.0614054, %v1333_v20  ;;  %v223_v58 = vmul.f32 0.3275911, %v219_v41 }
  0x3b   :  { %v241_v62 = vadd.f32 -1.4531521, %v237_v47  ;;  %v416_v35 = vadd.f32 %v412_v48, %v403_v61  ;;  %v115_v12 = vadd.f32 %v111_v34, %v96_v40  ;;  %v523_v30 = vmul.f32 1.442695, %v517_v37 }
  0x3c   :  { %v491_v8 = vmul.f32 %v1300_v9, %v487_v32  ;;  %v1350_v17 = vpop.eup %906  ;;  %v480_v26 = vadd.f32 -1.4531521, %v476_v1  ;;  %v227_v33 = vadd.f32 1.0, %v223_v58  ;;  %vm210_vm4 = vcmp.ge.f32.partialorder %v1252_v6, 0.0 }
  0x3d   :  { %v245_v10 = vmul.f32 %v1314_v16, %v241_v62  ;;  %v238_v3 = vmul.f32 1.0614054, %v1350_v17  ;;  %v909_v19 = vpop.eup %908  ;;  %v429_v4 = vadd.f32 %v425_v21, %v416_v35  ;;  %v134_v13 = vadd.f32 %v130_v28, %v115_v12 }
  0x3e   :  { %v495_v7 = vadd.f32 -0.28449672, %v491_v8  ;;  %v484_v27 = vmul.f32 %v1333_v20, %v480_v26  ;;  %v911_v38 = vpop.eup %910  ;;  %918 = vrcp.f32 %v227_v33  ;;  %v168_v21 = vmul.f32 %v1115_v49, %v1331_v29 }
  0x3f   :  { %v249_v18 = vadd.f32 1.4214138, %v245_v10  ;;  %v242_v42 = vadd.f32 -1.4531521, %v238_v3  ;;  %v913_v24 = vpop.eup %912  ;;  %v149_v10 = vmul.f32 %v1107_v44, %v808_v52  ;;  %v1367_v1 = vadd.f32 %v1185_v56, %v429_v4 }
  0x40   :  { %v499_v47 = vmul.f32 %v1300_v9, %v495_v7  ;;  %v488_v55 = vadd.f32 1.4214138, %v484_v27  ;;  %920 = vpow2.f32 %v523_v30  ;;  %vm449_vm5 = vcmp.ge.f32.partialorder %v1288_v5, 0.0 }
  0x41   :  { %v253_v39 = vmul.f32 %v1314_v16, %v249_v18  ;;  %v246_v62 = vmul.f32 %v1350_v17, %v242_v42  ;;  %v1369_v8 = vpop.eup %914  ;;  %v1377_v26 = vmul.f32 0.70710677, %v1367_v1  ;;  %v153_v37 = vadd.f32 %v149_v10, %v134_v13 }
  0x42   :  { %v503_v2 = vadd.f32 0.2548296, %v499_v47  ;;  %v492_v45 = vmul.f32 %v1333_v20, %v488_v55  ;;  %v477_v44 = vmul.f32 1.0614054, %v1369_v8  ;;  %vm211_vm6 = vcmp.ge.f32.partialorder %v1344_v11, 0.0 }
  0x43   :  { %v257_v14 = vadd.f32 -0.28449672, %v253_v39  ;;  %v250_v50 = vadd.f32 1.4214138, %v246_v62  ;;  %v275_v39 = vsub.f32 0.0, %v219_v41  ;;  %v172_v55 = vadd.f32 %v168_v21, %v153_v37 }
  0x44   :  { %v507_v43 = vmul.f32 %v1300_v9, %v503_v2  ;;  %v496_v48 = vadd.f32 -0.28449672, %v492_v45  ;;  %v917_v9 = vpop.eup %916  ;;  %v481_v3 = vadd.f32 -1.4531521, %v477_v44  ;;  %v458_v27 = vand.u32 2147483647, %v1377_v26 }
  0x45   :  { %v261_v32 = vmul.f32 %v1314_v16, %v257_v14  ;;  %v254_v18 = vmul.f32 %v1350_v17, %v250_v50  ;;  %v279_v12 = vmul.f32 %v275_v39, %v219_v41  ;;  %v440_v45 = vmul.f32 0.5, %v1235_v53 }
  0x46   :  { %v527_v23 = vmul.f32 %v909_v19, %v507_v43  ;;  %v500_v56 = vmul.f32 %v1333_v20, %v496_v48  ;;  %v485_v42 = vmul.f32 %v1369_v8, %v481_v3  ;;  %v462_v35 = vmul.f32 0.3275911, %v458_v27 }
  0x47   :  { %v265_v15 = vadd.f32 0.2548296, %v261_v32  ;;  %v258_v7 = vadd.f32 -0.28449672, %v254_v18  ;;  %v285_v10 = vmul.f32 1.442695, %v279_v12 }
  0x48   :  { %v531_v34 = vsub.f32 1.0, %v527_v23  ;;  %v504_v19 = vadd.f32 0.2548296, %v500_v56  ;;  %v489_v14 = vadd.f32 1.4214138, %v485_v42  ;;  %v466_v63 = vadd.f32 1.0, %v462_v35 }
  0x49   :  { %v269_v52 = vmul.f32 %v1314_v16, %v265_v15  ;;  %v452_v16 = vsel %vm448_vm3, 1.0, %v932_v59  ;;  %v262_v47 = vmul.f32 %v1350_v17, %v258_v7  ;;  %v514_v48 = vsub.f32 0.0, %v458_v27 }
  0x4a   :  { %v535_v40 = vmul.f32 %v531_v34, %v1278_v60  ;;  %v508_v29 = vmul.f32 %v1333_v20, %v504_v19  ;;  %v493_v30 = vmul.f32 %v1369_v8, %v489_v14  ;;  %v187_v20 = vmul.f32 %v1127_v54, %v1338_v25 }
  0x4b   :  { %v289_v61 = vmul.f32 %v911_v38, %v269_v52  ;;  %v266_v38 = vadd.f32 0.2548296, %v262_v47  ;;  %922 = vrcp.f32 %v466_v63  ;;  %v919_v43 = vpop.eup %918  ;;  %v518_v34 = vmul.f32 %v514_v48, %v458_v27 }
  0x4c   :  { %v539_v28 = vadd.f32 1.0, %v535_v40  ;;  %v528_v58 = vmul.f32 %v913_v24, %v508_v29  ;;  %v497_v24 = vadd.f32 -0.28449672, %v493_v30  ;;  %v191_v41 = vadd.f32 %v187_v20, %v172_v55 }
  0x4d   :  { %v293_v49 = vsub.f32 1.0, %v289_v61  ;;  %v270_v62 = vmul.f32 %v1350_v17, %v266_v38  ;;  %v214_v17 = vsel %vm210_vm4, 1.0, %v932_v59  ;;  %v921_v13 = vpop.eup %920  ;;  %v239_v15 = vmul.f32 1.0614054, %v919_v43 }
  0x4e   :  { %v543_v2 = vmul.f32 %v539_v28, %v1262_v51  ;;  %v532_v32 = vsub.f32 1.0, %v528_v58  ;;  %v501_v25 = vmul.f32 %v1369_v8, %v497_v24  ;;  %v1404_v50 = vadd.f32 %v1206_v46, %v191_v41 }
  0x4f   :  { %v297_v60 = vmul.f32 %v293_v49, %v1308_v36  ;;  %v290_v36 = vmul.f32 %v917_v9, %v270_v62  ;;  %v243_v9 = vadd.f32 -1.4531521, %v239_v15  ;;  %924 = vpow2.f32 %v285_v10 }
  0x50   :  { %879 = vmatprep.mubr.msk.f32.mxu0 %vm552_vm2, %v543_v2  ;;  %v536_v51 = vmul.f32 %v532_v32, %v452_v16  ;;  %v505_v18 = vadd.f32 0.2548296, %v501_v25  ;;  %v1409_v6 = vmul.f32 0.70710677, %v1404_v50  ;;  %v453_v37 = vsel %vm449_vm5, 1.0, %v932_v59 }
  0x51   :  { %v301_v4 = vadd.f32 1.0, %v297_v60  ;;  %v294_v54 = vsub.f32 1.0, %v290_v36  ;;  %v247_v21 = vmul.f32 %v919_v43, %v243_v9  ;;  %v525_v5 = vmul.f32 1.442695, %v518_v34 }
  0x52   :  { %v540_v53 = vadd.f32 1.0, %v536_v51  ;;  %v509_v46 = vmul.f32 %v1369_v8, %v505_v18  ;;  %v220_v56 = vand.u32 2147483647, %v1409_v6  ;;  %v441_v8 = vmul.f32 0.5, %v1267_v57 }
  0x53   :  { %v305_v33 = vmul.f32 %v301_v4, %v1294_v22  ;;  %v202_v22 = vmul.f32 0.5, %v1244_v0  ;;  %v298_v23 = vmul.f32 %v294_v54, %v214_v17  ;;  %v251_v61 = vadd.f32 1.4214138, %v247_v21 }
  0x54   :  { %v544_v44 = vmul.f32 %v540_v53, %v440_v45  ;;  %v529_v7 = vmul.f32 %v921_v13, %v509_v46  ;;  %v224_v3 = vmul.f32 0.3275911, %v220_v56  ;;  %v276_v38 = vsub.f32 0.0, %v220_v56 }
  0x55   :  { %893 = vmatprep.mubr.msk.f32.mxu1 %vm552_vm2, %v305_v33  ;;  %v302_v52 = vadd.f32 1.0, %v298_v23  ;;  %v255_v40 = vmul.f32 %v919_v43, %v251_v61  ;;  %v215_v62 = vsel %vm211_vm6, 1.0, %v932_v59  ;;  %v203_v45 = vmul.f32 0.5, %v1326_v31 }
  0x56   :  { %880 = vmatmul.mubr.msk.f32.vlgmr.msra.gmra.mxu0 %vm552_vm2, %v544_v44  ;;  %v533_v19 = vsub.f32 1.0, %v529_v7  ;;  %v228_v39 = vadd.f32 1.0, %v224_v3  ;;  %v280_v57 = vmul.f32 %v276_v38, %v220_v56  ;;  %vm450_vm7 = vcmp.ge.f32.partialorder %v1377_v26, 0.0 }
  0x57   :  { %v306_v0 = vmul.f32 %v302_v52, %v202_v22  ;;  %v259_v42 = vadd.f32 -0.28449672, %v255_v40  ;;  %v454_v13 = vsel %vm450_vm7, 1.0, %v932_v59  ;;  %v442_v48 = vmul.f32 0.5, %v1367_v1 }
  0x58   :  { %v923_v16 = vpop.eup %922  ;;  %v537_v47 = vmul.f32 %v533_v19, %v453_v37  ;;  %926 = vrcp.f32 %v228_v39  ;;  %v287_v4 = vmul.f32 1.442695, %v280_v57  ;;  %vm212_vm8 = vcmp.ge.f32.partialorder %v1409_v6, 0.0  ;;  %v854_v19 = vld [vmem:[%s1466_s4] ss:$0 sm:$0xff] }
  0x59   :  { %894 = vmatmul.mubr.msk.f32.vlgmr.msra.gmra.mxu1 %vm552_vm2, %v306_v0  ;;  %v478_v49 = vmul.f32 1.0614054, %v923_v16  ;;  %v263_v29 = vmul.f32 %v919_v43, %v259_v42  ;;  %928 = vpow2.f32 %v525_v5  ;;  %v216_v21 = vsel %vm212_vm8, 1.0, %v932_v59  ;;  %v759_v59 = vld [vmem:[%s1467_s5 + $0x8] sm:$0xff] }
  0x5a   :  { %v541_v27 = vadd.f32 1.0, %v537_v47  ;;  %930 = vpow2.f32 %v287_v4  ;;  %v204_v0 = vmul.f32 0.5, %v1404_v50 }
  0x5b   :  { %v482_v35 = vadd.f32 -1.4531521, %v478_v49  ;;  %v267_v14 = vadd.f32 0.2548296, %v263_v29 }
  0x5c   :  { %v545_v28 = vmul.f32 %v541_v27, %v441_v8  ;;  %v925_v60 = vpop.eup %924 }
  0x5d   :  { %v486_v55 = vmul.f32 %v923_v16, %v482_v35  ;;  %v271_v58 = vmul.f32 %v919_v43, %v267_v14 }
  0x5e   :  { %882 = vmatprep.mubr.msk.f32.mxu0 %vm552_vm2, %v545_v28  ;;  %v761_v28 = vld [vmem:[%s1467_s5 + $0x18] sm:$0xff] }
  0x5f   :  { %v490_v12 = vadd.f32 1.4214138, %v486_v55  ;;  %v291_v63 = vmul.f32 %v925_v60, %v271_v58  ;;  %v760_v60 = vld [vmem:[%s1467_s5 + $0x10] sm:$0xff] }
  0x61   :  { %v494_v2 = vmul.f32 %v923_v16, %v490_v12  ;;  %v295_v30 = vsub.f32 1.0, %v291_v63 }
  0x63   :  { %v498_v20 = vadd.f32 -0.28449672, %v494_v2  ;;  %v299_v36 = vmul.f32 %v295_v30, %v215_v62 }
  0x65   :  { %v927_v32 = vpop.eup %926  ;;  %v502_v24 = vmul.f32 %v923_v16, %v498_v20  ;;  %v303_v33 = vadd.f32 1.0, %v299_v36 }
  0x66   :  { %v240_v41 = vmul.f32 1.0614054, %v927_v32  ;;  %v929_v17 = vpop.eup %928 }
  0x67   :  { %v506_v51 = vadd.f32 0.2548296, %v502_v24  ;;  %v307_v10 = vmul.f32 %v303_v33, %v203_v45  ;;  %v931_v46 = vpop.eup %930 }
  0x68   :  { %v244_v11 = vadd.f32 -1.4531521, %v240_v41 }
  0x69   :  { %v510_v43 = vmul.f32 %v923_v16, %v506_v51  ;;  %896 = vmatprep.mubr.msk.f32.mxu1 %vm552_vm2, %v307_v10  ;;  %v758_v16 = vld [vmem:[%s1467_s5] sm:$0xff] }
  0x6a   :  { %v248_v54 = vmul.f32 %v927_v32, %v244_v11 }
  0x6b   :  { %v530_v25 = vmul.f32 %v929_v17, %v510_v43 }
  0x6c   :  { %v252_v53 = vadd.f32 1.4214138, %v248_v54 }
  0x6d   :  { %v534_v31 = vsub.f32 1.0, %v530_v25 }
  0x6e   :  { %v256_v15 = vmul.f32 %v927_v32, %v252_v53 }
  0x6f   :  { %v538_v22 = vmul.f32 %v534_v31, %v454_v13 }
  0x70   :  { %v260_v23 = vadd.f32 -0.28449672, %v256_v15 }
  0x71   :  { %v542_v18 = vadd.f32 1.0, %v538_v22 }
  0x72   :  { %v264_v44 = vmul.f32 %v927_v32, %v260_v23 }
  0x73   :  { %v546_v9 = vmul.f32 %v542_v18, %v442_v48 }
  0x74   :  { %v268_v52 = vadd.f32 0.2548296, %v264_v44 }
  0x75   :  { %883 = vmatmul.mubr.msk.f32.gmra.mxu0 %vm552_vm2, %v546_v9 }
  0x76   :  { %v272_v26 = vmul.f32 %v927_v32, %v268_v52 }
  0x78   :  { %v292_v56 = vmul.f32 %v931_v46, %v272_v26 }
  0x7a   :  { %v296_v34 = vsub.f32 1.0, %v292_v56 }
  0x7c   :  { %v300_v7 = vmul.f32 %v296_v34, %v216_v21 }
  0x7e   :  { %v304_v1 = vadd.f32 1.0, %v300_v7 }
  0x80   :  { %v308_v3 = vmul.f32 %v304_v1, %v204_v0 }
  0x82   :  { %897 = vmatmul.mubr.msk.f32.gmra.mxu1 %vm552_vm2, %v308_v3 }
 0x116   :  { %v881_v37 = vpop.f32.mrf.mxu0 }
 0x118   :  { %v631_v39 = vpop.f32.mrf.mxu0 }
 0x119   :  { %v895_v61 = vpop.f32.mrf.mxu1 }
 0x11a   :  { %v734_v6 = vadd.f32 %v895_v61, %v881_v37 }
 0x11b   :  { %v728_v40 = vpop.f32.mrf.mxu1 }
 0x11c   :  { %v755_v5 = vadd.f32 %v854_v19, %v734_v6  ;;  %v729_v50 = vadd.f32 %v728_v40, %v631_v39 }
 0x11e   :  { %v763_v8 = vadd.f32 %v759_v59, %v755_v5  ;;  %v754_v47 = vadd.f32 %v854_v19, %v729_v50 }
 0x120   :  { %767 = vst.msk [vmem:[%s1468_s6 + $0x8] sm:$0xff] %vm552_vm2, %v763_v8  ;;  %v762_v42 = vadd.f32 %v758_v16, %v754_v47 }
 0x122   :  { %766 = vst.msk [vmem:[%s1468_s6] sm:$0xff] %vm552_vm2, %v762_v42 }
 0x135   :  { %v884_v49 = vpop.f32.mrf.mxu0 }
 0x137   :  { %v641_v29 = vpop.f32.mrf.mxu0 }
 0x142   :  { %v898_v27 = vpop.f32.mrf.mxu1 }
 0x143   :  { %v744_v35 = vadd.f32 %v898_v27, %v884_v49 }
 0x144   :  { %v738_v38 = vpop.f32.mrf.mxu1 }
 0x145   :  { %v757_v14 = vadd.f32 %v854_v19, %v744_v35  ;;  %v739_v55 = vadd.f32 %v738_v38, %v641_v29 }
 0x147   :  { %v765_v58 = vadd.f32 %v761_v28, %v757_v14  ;;  %v756_v12 = vadd.f32 %v854_v19, %v739_v55 }
 0x149   :  { %769 = vst.msk [vmem:[%s1468_s6 + $0x18] sm:$0xff] %vm552_vm2, %v765_v58  ;;  %v764_v57 = vadd.f32 %v760_v60, %v756_v12 }
 0x14b   :  { %768 = vst.msk [vmem:[%s1468_s6 + $0x10] sm:$0xff] %vm552_vm2, %v764_v57 }

</bundles_post_ra>
